<compile_context>
chip_gen: v7x
topology: tpu7x:2x2x1
jax: 0.10.0
libtpu: 0.0.40
codegen_flags: <defaults>
</compile_context>

<pallas_src>
import functools

import jax
import jax.numpy as jnp
from jax.experimental import pallas as pl
from jax.experimental.pallas import tpu as pltpu

BN_EPS = 1e-5


# ----------------------------- small helpers ---------------------------------
def _round_up(x, m):
    return (x + m - 1) // m * m


def _dw_pitch(w):
    # Padded-plane row pitch: a multiple of 8 (so interior row stores start on
    # an 8-sublane boundary) and >= w + 8 (so a padded column index can never
    # alias the next padded row's slots).
    return _round_up(w + 8, 8)


def _dw_scratch_rows(b_blk, h, w):
    return b_blk * (h + 2) * _dw_pitch(w)


# ----------------------------- activations -----------------------------------
def _hswish(x):          # x * relu6(x + 3) / 6
    return x * jnp.clip(x + 3.0, 0.0, 6.0) * (1.0 / 6.0)


def _hsigmoid(x):        # relu6(x + 3) / 6
    return jnp.clip(x + 3.0, 0.0, 6.0) * (1.0 / 6.0)


def _relu(x):
    return jnp.maximum(x, 0.0)


# ----------------------------- in-kernel pieces -------------------------------
def _depthwise3x3_s2(yp_ref, y, b_blk, h, w, wd, cd):
    """Depthwise 3x3, stride 2, pad 1 conv (+ folded-BN bias) + ReLU.

    y      : (b_blk*h*w, C) activations, channel-last, image/row-major.
    yp_ref : (b_blk*(h+2)*pitch, C) VMEM scratch holding zero-padded planes.
    wd     : (9, C) depthwise taps (BN scale already folded in), k = kh*3 + kw.
    cd     : (1, C) folded BatchNorm bias.
    Returns (b_blk * h//2 * w//2, C).
    """
    c = y.shape[1]
    ho, wo = h // 2, w // 2
    pitch = _dw_pitch(w)
    plane = (h + 2) * pitch
    hw = h * w

    # Border slots must read zero; interiors are fully re-written below.  The
    # grid has at most two steps (vs. one per image before), and on v7x the two
    # steps may run on different TensorCores with private scratch, so the
    # memset is done unconditionally rather than once under pl.when.
    yp_ref[...] = jnp.zeros(yp_ref.shape, yp_ref.dtype)

    # Scatter interior rows.  Padded pixel (pr, pc) lives at sublane
    # pr*pitch + pc + 7, so every row store below starts at a static offset
    # that is a multiple of 8 (unmasked, sublane-aligned stores); the pc == 0
    # and pr == 0 padding slots are never written and keep their zeros.
    for b in range(b_blk):
        for row in range(h):
            dst = b * plane + (row + 1) * pitch + 8      # static, multiple of 8
            src = b * hw + row * w
            yp_ref[pl.ds(dst, w), :] = y[src:src + w, :]

    # Hoist the 9 per-tap filter rows (each (1, C), sublane-broadcast operand).
    wtaps = [wd[k:k + 1, :] for k in range(9)]

    out_rows = []
    for b in range(b_blk):
        boff = b * plane
        for oh in range(ho):
            acc = jnp.zeros((wo, c), jnp.float32)
            for kh in range(3):
                rbase = boff + (2 * oh + kh) * pitch + 7
                for kw in range(3):
                    # Strided sublane load == the (kh, kw) tap of this out row.
                    tap = yp_ref[pl.ds(rbase + kw, wo, 2), :]
                    acc = acc + tap * wtaps[kh * 3 + kw]
            out_rows.append(_relu(acc + cd))
    return jnp.concatenate(out_rows, axis=0)


def _se_gate(p, b_blk, hw, wse1, cse1, wse2, cse2):
    """Squeeze-and-excite, batched over the images in this grid step."""
    c = p.shape[1]
    pooled = jnp.concatenate(
        [jnp.mean(p[b * hw:(b + 1) * hw, :], axis=0, keepdims=True)
         for b in range(b_blk)], axis=0)                               # (B, C)
    hdn = _relu(jnp.dot(pooled, wse1, preferred_element_type=jnp.float32) + cse1)
    g = _hsigmoid(jnp.dot(hdn, wse2, preferred_element_type=jnp.float32) + cse2)
    gate = jnp.concatenate(
        [jnp.broadcast_to(g[b:b + 1, :], (hw, c)) for b in range(b_blk)], axis=0)
    return p * gate


# ----------------------------- fused kernel -----------------------------------
def _fused_forward_kernel(cols_ref, w_stem, w1a, wd1, w3a, wse1, wse2,
                          w1b, wd2, w3b, bias_ref, out_ref,
                          yp1_ref, yp2_ref, mp_ref, *, h1, w1, b_blk):
    h2, w2 = h1 // 2, w1 // 2          # Block1 output spatial
    h3, w3 = h2 // 2, w2 // 2          # Block2 output spatial
    ho4 = (h3 - 3) // 2 + 1            # max-pool output spatial
    wo4 = (w3 - 3) // 2 + 1

    def bias(k, c):                    # packed per-channel BN biases, (1, c)
        return bias_ref[k:k + 1, 0:c]

    # ---- stem: Conv2d(1,16,3,s=2,p=1) + BN + hswish (im2col matmul) ----
    x = jnp.dot(cols_ref[...], w_stem[...], preferred_element_type=jnp.float32)
    x = _hswish(x + bias(0, 16))                               # (B*h1*w1, 16)

    # ---- Block 1: expand 16->16, dw3x3 s2, project ->16 (linear), SE ----
    y = _relu(jnp.dot(x, w1a[...], preferred_element_type=jnp.float32)
              + bias(1, 16))
    z = _depthwise3x3_s2(yp1_ref, y, b_blk, h1, w1, wd1[...], bias(2, 16))
    p = jnp.dot(z, w3a[...], preferred_element_type=jnp.float32) + bias(3, 16)
    p = _se_gate(p, b_blk, h2 * w2, wse1[...], bias(4, 4), wse2[...], bias(5, 16))
    # stride == 2 for both blocks -> no residual shortcut (PyTorch semantics)

    # ---- Block 2: expand 16->96, dw3x3 s2, project ->64 (linear), no SE ----
    y = _relu(jnp.dot(p, w1b[...], preferred_element_type=jnp.float32)
              + bias(6, 96))
    z = _depthwise3x3_s2(yp2_ref, y, b_blk, h2, w2, wd2[...], bias(7, 96))
    p = jnp.dot(z, w3b[...], preferred_element_type=jnp.float32) + bias(8, 64)

    # ---- MaxPool2d(kernel_size=3, stride=2, padding=0), vectorized ----
    mp_ref[...] = p                                            # (B*h3*w3, 64)
    rows = []
    for b in range(b_blk):
        for oh in range(ho4):
            m = None
            for kh in range(3):
                base = (b * h3 + 2 * oh + kh) * w3
                for kw in range(3):
                    if wo4 > 1:
                        t = mp_ref[pl.ds(base + kw, wo4, 2), :]
                    else:
                        t = mp_ref[pl.ds(base + kw, 1), :]
                    m = t if m is None else jnp.maximum(m, t)
            rows.append(m)
    out_ref[...] = jnp.concatenate(rows, axis=0)


# ----------------------------- host-side glue ----------------------------------
def _bn_fold(bn):
    gamma, beta, mean, var = bn
    scale = gamma * jax.lax.rsqrt(var + BN_EPS)
    bias = beta - mean * scale
    return scale.reshape(1, -1), bias.reshape(1, -1)


def _pack_biases(biases, width=128):
    rows = [jnp.pad(b, ((0, 0), (0, width - b.shape[1]))) for b in biases]
    return jnp.concatenate(rows, axis=0)                       # (len, 128)


def _stem_im2col(x_nhwc, ksize=3, stride=2, pad=1):
    """Im2col for the 1-input-channel stem conv: (N,H,W,1) -> (N, Ho*Wo, k*k)."""
    n, h, w, c = x_nhwc.shape
    assert c == 1
    xp = jnp.pad(x_nhwc, ((0, 0), (pad, pad), (pad, pad), (0, 0)))
    ho = (h + 2 * pad - ksize) // stride + 1
    wo = (w + 2 * pad - ksize) // stride + 1
    taps = []
    for kh in range(ksize):
        for kw in range(ksize):
            s = jax.lax.slice(
                xp, (0, kh, kw, 0),
                (n, kh + stride * (ho - 1) + 1, kw + stride * (wo - 1) + 1, c),
                (1, stride, stride, 1))
            taps.append(s.reshape(n, ho * wo))
    return jnp.stack(taps, axis=-1), ho, wo


def _wspec(a):
    nd = a.ndim
    return pl.BlockSpec(a.shape, lambda i, nd=nd: (0,) * nd)


@jax.jit
def mobilenet_v3_blocknet_forward(x_nchw, params):
    x = jnp.transpose(x_nchw, (0, 2, 3, 1)).astype(jnp.float32)  # NCHW -> NHWC
    n = x.shape[0]
    cols, h1, w1 = _stem_im2col(x)                               # (N, h1*w1, 9)
    h2, w2 = h1 // 2, w1 // 2
    h3, w3 = h2 // 2, w2 // 2
    if h1 % 2 or w1 % 2 or h2 % 2 or w2 % 2:
        raise ValueError("stride-2 stages require even intermediate spatial "
                         f"dims, got {h1}x{w1} -> {h2}x{w2} (use e.g. 32x32)")
    if h3 < 3 or w3 < 3:
        raise ValueError(f"final 3x3 max-pool needs spatial >= 3, got {h3}x{w3}")
    ho4 = (h3 - 3) // 2 + 1
    wo4 = (w3 - 3) // 2 + 1

    # Batch folding: one grid step for small/odd batches (single-TC chips),
    # two "parallel" steps for even batches >= 4 so both v7x TCs get work.
    grid_steps = 2 if (n % 2 == 0 and n >= 4) else 1
    b_blk = n // grid_steps

    b1, b2 = params['block1'], params['block2']
    se = b1['se']
    s_stem, c_stem = _bn_fold(params['bn1'])
    s1a, c1a = _bn_fold(b1['bn1'])
    sd1, cd1 = _bn_fold(b1['bn2'])
    s3a, c3a = _bn_fold(b1['bn3'])
    sse1, cse1 = _bn_fold(se['bn1'])
    sse2, cse2 = _bn_fold(se['bn2'])
    s1b, c1b = _bn_fold(b2['bn1'])
    sd2, cd2 = _bn_fold(b2['bn2'])
    s3b, c3b = _bn_fold(b2['bn3'])

    # BN scales folded into the weights (per-output-channel columns / per-channel
    # depthwise taps); biases packed into a single (9, 128) operand.
    weights = (
        params['conv1_w'] * s_stem,
        b1['w1'] * s1a, b1['w2'] * sd1, b1['w3'] * s3a,
        se['w1'] * sse1, se['w2'] * sse2,
        b2['w1'] * s1b, b2['w2'] * sd2, b2['w3'] * s3b,
        _pack_biases((c_stem, c1a, cd1, c3a, cse1, cse2, c1b, cd2, c3b)),
    )

    cols = cols.reshape(grid_steps, b_blk * h1 * w1, 9)

    kernel = functools.partial(_fused_forward_kernel, h1=h1, w1=w1, b_blk=b_blk)
    grid_spec = pltpu.PrefetchScalarGridSpec(
        num_scalar_prefetch=0,
        grid=(grid_steps,),
        in_specs=[pl.BlockSpec((None, b_blk * h1 * w1, 9), lambda i: (i, 0, 0))]
                 + [_wspec(a) for a in weights],
        out_specs=pl.BlockSpec((None, b_blk * ho4 * wo4, 64),
                               lambda i: (i, 0, 0)),
        scratch_shapes=[
            pltpu.VMEM((_dw_scratch_rows(b_blk, h1, w1), 16), jnp.float32),
            pltpu.VMEM((_dw_scratch_rows(b_blk, h2, w2), 96), jnp.float32),
            pltpu.VMEM((b_blk * h3 * w3, 64), jnp.float32),
        ],
    )
    out = pl.pallas_call(
        kernel,
        out_shape=jax.ShapeDtypeStruct((grid_steps, b_blk * ho4 * wo4, 64),
                                       jnp.float32),
        grid_spec=grid_spec,
        compiler_params=pltpu.CompilerParams(
            dimension_semantics=("parallel",)),
    )(cols, *weights)

    # (steps, B_blk*Ho*Wo, 64) -> NCHW (N, 64, Ho, Wo)
    return jnp.transpose(out.reshape(n, ho4, wo4, 64), (0, 3, 1, 2))


# ----------------------------- parameters --------------------------------------
def init_params(key):
    keys = iter(jax.random.split(key, 64))

    def w(shape, std=0.2):
        return std * jax.random.normal(next(keys), shape, jnp.float32)

    def bn(c):  # (gamma, beta, running_mean, running_var)
        return (1.0 + 0.1 * jax.random.normal(next(keys), (c,), jnp.float32),
                0.1 * jax.random.normal(next(keys), (c,), jnp.float32),
                0.1 * jax.random.normal(next(keys), (c,), jnp.float32),
                0.5 + jax.random.uniform(next(keys), (c,), jnp.float32))

    def pw(cin, cout):            # PyTorch (cout, cin, 1, 1) -> (cin, cout)
        return w((cout, cin, 1, 1)).reshape(cout, cin).T

    def dw(c, k=3):               # PyTorch (c, 1, k, k) -> (k*k, c), taps (kh, kw)
        return w((c, 1, k, k)).reshape(c, k * k).T

    def block(cin, cexp, cout, se):
        p = dict(w1=pw(cin, cexp), bn1=bn(cexp),
                 w2=dw(cexp), bn2=bn(cexp),
                 w3=pw(cexp, cout), bn3=bn(cout))
        if se:
            cr = cout // 4
            p['se'] = dict(w1=pw(cout, cr), bn1=bn(cr),
                           w2=pw(cr, cout), bn2=bn(cout))
        return p

    conv1_pt = w((16, 1, 3, 3))   # PyTorch (cout, cin, kh, kw), cin = 1
    return dict(
        conv1_w=conv1_pt.transpose(2, 3, 1, 0).reshape(9, 16),   # (kh*kw*cin, cout)
        bn1=bn(16),
        block1=block(16, 16, 16, se=True),    # Block(3, 16, 16, 16, ReLU, SeModule(16), 2)
        block2=block(16, 96, 64, se=False),   # Block(3, 16, 96, 64, ReLU, None, 2)
    )


if __name__ == "__main__":
    key = jax.random.PRNGKey(0)
    pkey, xkey = jax.random.split(key)
    params = init_params(pkey)
    # conv1 expects 1 input channel; 32x32 spatial -> final output (2, 64, 1, 1)
    x = jax.random.normal(xkey, (2, 1, 32, 32), jnp.float32)
    out = mobilenet_v3_blocknet_forward(x, params)
    jax.block_until_ready(out)
    assert out.shape == (2, 64, 1, 1), out.shape
    assert bool(jnp.all(jnp.isfinite(out)))
    print("KERNEL_OK")
</pallas_src>

<mosaic_0001>
module attributes {stable_mosaic.version = 11 : i64} {
  func.func @_fused_forward_kernel(%arg0: i32, %arg1: memref<1x512x9xf32, #tpu.memory_space<vmem>>, %arg2: memref<9x16xf32, #tpu.memory_space<vmem>>, %arg3: memref<16x16xf32, #tpu.memory_space<vmem>>, %arg4: memref<9x16xf32, #tpu.memory_space<vmem>>, %arg5: memref<16x16xf32, #tpu.memory_space<vmem>>, %arg6: memref<16x4xf32, #tpu.memory_space<vmem>>, %arg7: memref<4x16xf32, #tpu.memory_space<vmem>>, %arg8: memref<16x96xf32, #tpu.memory_space<vmem>>, %arg9: memref<9x96xf32, #tpu.memory_space<vmem>>, %arg10: memref<96x64xf32, #tpu.memory_space<vmem>>, %arg11: memref<9x128xf32, #tpu.memory_space<vmem>>, %arg12: memref<1x2x64xf32, #tpu.memory_space<vmem>>, %arg13: memref<864x16xf32, #tpu.memory_space<vmem>>, %arg14: memref<320x96xf32, #tpu.memory_space<vmem>>, %arg15: memref<32x64xf32, #tpu.memory_space<vmem>>) attributes {dimension_semantics = [#tpu.dimension_semantics<parallel>], iteration_bounds = array<i64: 1>, scalar_prefetch = 0 : i64, scratch_operands = 3 : i64, tpu.core_type = #tpu.core_type<tc>, window_params = [{transform_indices = @transform_0, window_bounds = array<i64: 1, 512, 9>}, {pipeline_mode = #tpu.pipeline_mode<synchronous>, transform_indices = @transform_1, window_bounds = array<i64: 9, 16>}, {pipeline_mode = #tpu.pipeline_mode<synchronous>, transform_indices = @transform_2, window_bounds = array<i64: 16, 16>}, {pipeline_mode = #tpu.pipeline_mode<synchronous>, transform_indices = @transform_3, window_bounds = array<i64: 9, 16>}, {pipeline_mode = #tpu.pipeline_mode<synchronous>, transform_indices = @transform_4, window_bounds = array<i64: 16, 16>}, {pipeline_mode = #tpu.pipeline_mode<synchronous>, transform_indices = @transform_5, window_bounds = array<i64: 16, 4>}, {pipeline_mode = #tpu.pipeline_mode<synchronous>, transform_indices = @transform_6, window_bounds = array<i64: 4, 16>}, {pipeline_mode = #tpu.pipeline_mode<synchronous>, transform_indices = @transform_7, window_bounds = array<i64: 16, 96>}, {pipeline_mode = #tpu.pipeline_mode<synchronous>, transform_indices = @transform_8, window_bounds = array<i64: 9, 96>}, {pipeline_mode = #tpu.pipeline_mode<synchronous>, transform_indices = @transform_9, window_bounds = array<i64: 96, 64>}, {pipeline_mode = #tpu.pipeline_mode<synchronous>, transform_indices = @transform_10, window_bounds = array<i64: 9, 128>}, {transform_indices = @transform_11, window_bounds = array<i64: 1, 2, 64>}]} {
    %c0 = arith.constant 0 : index
    %c0_0 = arith.constant 0 : index
    %c0_1 = arith.constant 0 : index
    %0 = vector.load %arg1[%c0, %c0_0, %c0_1] : memref<1x512x9xf32, #tpu.memory_space<vmem>>, vector<1x512x9xf32>
    %1 = vector.shape_cast %0 : vector<1x512x9xf32> to vector<512x9xf32>
    %c0_2 = arith.constant 0 : index
    %c0_3 = arith.constant 0 : index
    %2 = vector.load %arg2[%c0_2, %c0_3] : memref<9x16xf32, #tpu.memory_space<vmem>>, vector<9x16xf32>
    %cst = arith.constant dense<0.000000e+00> : vector<512x16xf32>
    %3 = tpu.matmul %1, %2, %cst {dimension_numbers = #tpu.dot_dimension_numbers<[1], [0], [0], [1], [0, 0, 1, 1], [], []>} : vector<512x9xf32>, vector<9x16xf32>, vector<512x16xf32> -> vector<512x16xf32>
    %c0_4 = arith.constant 0 : index
    %c0_5 = arith.constant 0 : index
    %4 = vector.load %arg11[%c0_4, %c0_5] : memref<9x128xf32, #tpu.memory_space<vmem>>, vector<1x16xf32>
    %5 = vector.broadcast %4 : vector<1x16xf32> to vector<512x16xf32>
    %6 = arith.addf %3, %5 : vector<512x16xf32>
    %cst_6 = arith.constant 3.000000e+00 : f32
    %7 = vector.broadcast %cst_6 : f32 to vector<512x16xf32>
    %8 = arith.addf %6, %7 : vector<512x16xf32>
    %cst_7 = arith.constant 0.000000e+00 : f32
    %cst_8 = arith.constant 6.000000e+00 : f32
    %9 = vector.broadcast %cst_7 : f32 to vector<512x16xf32>
    %10 = arith.maximumf %9, %8 : vector<512x16xf32>
    %11 = vector.broadcast %cst_8 : f32 to vector<512x16xf32>
    %12 = arith.minimumf %11, %10 : vector<512x16xf32>
    %13 = arith.mulf %6, %12 : vector<512x16xf32>
    %cst_9 = arith.constant 0.166666672 : f32
    %14 = vector.broadcast %cst_9 : f32 to vector<512x16xf32>
    %15 = arith.mulf %13, %14 : vector<512x16xf32>
    %c0_10 = arith.constant 0 : index
    %c0_11 = arith.constant 0 : index
    %16 = vector.load %arg3[%c0_10, %c0_11] : memref<16x16xf32, #tpu.memory_space<vmem>>, vector<16x16xf32>
    %cst_12 = arith.constant dense<0.000000e+00> : vector<512x16xf32>
    %17 = tpu.matmul %15, %16, %cst_12 {dimension_numbers = #tpu.dot_dimension_numbers<[1], [0], [0], [1], [0, 0, 1, 1], [], []>} : vector<512x16xf32>, vector<16x16xf32>, vector<512x16xf32> -> vector<512x16xf32>
    %c1 = arith.constant 1 : index
    %c0_13 = arith.constant 0 : index
    %18 = vector.load %arg11[%c1, %c0_13] : memref<9x128xf32, #tpu.memory_space<vmem>>, vector<1x16xf32>
    %19 = vector.broadcast %18 : vector<1x16xf32> to vector<512x16xf32>
    %20 = arith.addf %17, %19 : vector<512x16xf32>
    %cst_14 = arith.constant 0.000000e+00 : f32
    %21 = vector.broadcast %cst_14 : f32 to vector<512x16xf32>
    %22 = arith.maximumf %20, %21 : vector<512x16xf32>
    %c0_15 = arith.constant 0 : index
    %c0_16 = arith.constant 0 : index
    %23 = vector.load %arg4[%c0_15, %c0_16] : memref<9x16xf32, #tpu.memory_space<vmem>>, vector<9x16xf32>
    %c2 = arith.constant 2 : index
    %c0_17 = arith.constant 0 : index
    %24 = vector.load %arg11[%c2, %c0_17] : memref<9x128xf32, #tpu.memory_space<vmem>>, vector<1x16xf32>
    %cst_18 = arith.constant 0.000000e+00 : f32
    %25 = vector.broadcast %cst_18 : f32 to vector<864x16xf32>
    %c0_19 = arith.constant 0 : index
    %c0_20 = arith.constant 0 : index
    %26 = vector.load %arg13[%c0_19, %c0_20] : memref<864x16xf32, #tpu.memory_space<vmem>>, vector<864x16xf32>
    tpu.vector_store %arg13[%c0_19, %c0_20], %25 {strides = array<i32>} : memref<864x16xf32, #tpu.memory_space<vmem>>, vector<864x16xf32>,
    %27 = vector.extract_strided_slice %22 {offsets = [0, 0], sizes = [16, 16], strides = [1, 1]} : vector<512x16xf32> to vector<16x16xf32>
    %c32 = arith.constant 32 : index
    %c0_21 = arith.constant 0 : index
    %28 = vector.load %arg13[%c32, %c0_21] : memref<864x16xf32, #tpu.memory_space<vmem>>, vector<16x16xf32>
    tpu.vector_store %arg13[%c32, %c0_21], %27 {strides = array<i32>} : memref<864x16xf32, #tpu.memory_space<vmem>>, vector<16x16xf32>,
    %29 = vector.extract_strided_slice %22 {offsets = [16, 0], sizes = [16, 16], strides = [1, 1]} : vector<512x16xf32> to vector<16x16xf32>
    %c56 = arith.constant 56 : index
    %c0_22 = arith.constant 0 : index
    %30 = vector.load %arg13[%c56, %c0_22] : memref<864x16xf32, #tpu.memory_space<vmem>>, vector<16x16xf32>
    tpu.vector_store %arg13[%c56, %c0_22], %29 {strides = array<i32>} : memref<864x16xf32, #tpu.memory_space<vmem>>, vector<16x16xf32>,
    %31 = vector.extract_strided_slice %22 {offsets = [32, 0], sizes = [16, 16], strides = [1, 1]} : vector<512x16xf32> to vector<16x16xf32>
    %c80 = arith.constant 80 : index
    %c0_23 = arith.constant 0 : index
    %32 = vector.load %arg13[%c80, %c0_23] : memref<864x16xf32, #tpu.memory_space<vmem>>, vector<16x16xf32>
    tpu.vector_store %arg13[%c80, %c0_23], %31 {strides = array<i32>} : memref<864x16xf32, #tpu.memory_space<vmem>>, vector<16x16xf32>,
    %33 = vector.extract_strided_slice %22 {offsets = [48, 0], sizes = [16, 16], strides = [1, 1]} : vector<512x16xf32> to vector<16x16xf32>
    %c104 = arith.constant 104 : index
    %c0_24 = arith.constant 0 : index
    %34 = vector.load %arg13[%c104, %c0_24] : memref<864x16xf32, #tpu.memory_space<vmem>>, vector<16x16xf32>
    tpu.vector_store %arg13[%c104, %c0_24], %33 {strides = array<i32>} : memref<864x16xf32, #tpu.memory_space<vmem>>, vector<16x16xf32>,
    %35 = vector.extract_strided_slice %22 {offsets = [64, 0], sizes = [16, 16], strides = [1, 1]} : vector<512x16xf32> to vector<16x16xf32>
    %c128 = arith.constant 128 : index
    %c0_25 = arith.constant 0 : index
    %36 = vector.load %arg13[%c128, %c0_25] : memref<864x16xf32, #tpu.memory_space<vmem>>, vector<16x16xf32>
    tpu.vector_store %arg13[%c128, %c0_25], %35 {strides = array<i32>} : memref<864x16xf32, #tpu.memory_space<vmem>>, vector<16x16xf32>,
    %37 = vector.extract_strided_slice %22 {offsets = [80, 0], sizes = [16, 16], strides = [1, 1]} : vector<512x16xf32> to vector<16x16xf32>
    %c152 = arith.constant 152 : index
    %c0_26 = arith.constant 0 : index
    %38 = vector.load %arg13[%c152, %c0_26] : memref<864x16xf32, #tpu.memory_space<vmem>>, vector<16x16xf32>
    tpu.vector_store %arg13[%c152, %c0_26], %37 {strides = array<i32>} : memref<864x16xf32, #tpu.memory_space<vmem>>, vector<16x16xf32>,
    %39 = vector.extract_strided_slice %22 {offsets = [96, 0], sizes = [16, 16], strides = [1, 1]} : vector<512x16xf32> to vector<16x16xf32>
    %c176 = arith.constant 176 : index
    %c0_27 = arith.constant 0 : index
    %40 = vector.load %arg13[%c176, %c0_27] : memref<864x16xf32, #tpu.memory_space<vmem>>, vector<16x16xf32>
    tpu.vector_store %arg13[%c176, %c0_27], %39 {strides = array<i32>} : memref<864x16xf32, #tpu.memory_space<vmem>>, vector<16x16xf32>,
    %41 = vector.extract_strided_slice %22 {offsets = [112, 0], sizes = [16, 16], strides = [1, 1]} : vector<512x16xf32> to vector<16x16xf32>
    %c200 = arith.constant 200 : index
    %c0_28 = arith.constant 0 : index
    %42 = vector.load %arg13[%c200, %c0_28] : memref<864x16xf32, #tpu.memory_space<vmem>>, vector<16x16xf32>
    tpu.vector_store %arg13[%c200, %c0_28], %41 {strides = array<i32>} : memref<864x16xf32, #tpu.memory_space<vmem>>, vector<16x16xf32>,
    %43 = vector.extract_strided_slice %22 {offsets = [128, 0], sizes = [16, 16], strides = [1, 1]} : vector<512x16xf32> to vector<16x16xf32>
    %c224 = arith.constant 224 : index
    %c0_29 = arith.constant 0 : index
    %44 = vector.load %arg13[%c224, %c0_29] : memref<864x16xf32, #tpu.memory_space<vmem>>, vector<16x16xf32>
    tpu.vector_store %arg13[%c224, %c0_29], %43 {strides = array<i32>} : memref<864x16xf32, #tpu.memory_space<vmem>>, vector<16x16xf32>,
    %45 = vector.extract_strided_slice %22 {offsets = [144, 0], sizes = [16, 16], strides = [1, 1]} : vector<512x16xf32> to vector<16x16xf32>
    %c248 = arith.constant 248 : index
    %c0_30 = arith.constant 0 : index
    %46 = vector.load %arg13[%c248, %c0_30] : memref<864x16xf32, #tpu.memory_space<vmem>>, vector<16x16xf32>
    tpu.vector_store %arg13[%c248, %c0_30], %45 {strides = array<i32>} : memref<864x16xf32, #tpu.memory_space<vmem>>, vector<16x16xf32>,
    %47 = vector.extract_strided_slice %22 {offsets = [160, 0], sizes = [16, 16], strides = [1, 1]} : vector<512x16xf32> to vector<16x16xf32>
    %c272 = arith.constant 272 : index
    %c0_31 = arith.constant 0 : index
    %48 = vector.load %arg13[%c272, %c0_31] : memref<864x16xf32, #tpu.memory_space<vmem>>, vector<16x16xf32>
    tpu.vector_store %arg13[%c272, %c0_31], %47 {strides = array<i32>} : memref<864x16xf32, #tpu.memory_space<vmem>>, vector<16x16xf32>,
    %49 = vector.extract_strided_slice %22 {offsets = [176, 0], sizes = [16, 16], strides = [1, 1]} : vector<512x16xf32> to vector<16x16xf32>
    %c296 = arith.constant 296 : index
    %c0_32 = arith.constant 0 : index
    %50 = vector.load %arg13[%c296, %c0_32] : memref<864x16xf32, #tpu.memory_space<vmem>>, vector<16x16xf32>
    tpu.vector_store %arg13[%c296, %c0_32], %49 {strides = array<i32>} : memref<864x16xf32, #tpu.memory_space<vmem>>, vector<16x16xf32>,
    %51 = vector.extract_strided_slice %22 {offsets = [192, 0], sizes = [16, 16], strides = [1, 1]} : vector<512x16xf32> to vector<16x16xf32>
    %c320 = arith.constant 320 : index
    %c0_33 = arith.constant 0 : index
    %52 = vector.load %arg13[%c320, %c0_33] : memref<864x16xf32, #tpu.memory_space<vmem>>, vector<16x16xf32>
    tpu.vector_store %arg13[%c320, %c0_33], %51 {strides = array<i32>} : memref<864x16xf32, #tpu.memory_space<vmem>>, vector<16x16xf32>,
    %53 = vector.extract_strided_slice %22 {offsets = [208, 0], sizes = [16, 16], strides = [1, 1]} : vector<512x16xf32> to vector<16x16xf32>
    %c344 = arith.constant 344 : index
    %c0_34 = arith.constant 0 : index
    %54 = vector.load %arg13[%c344, %c0_34] : memref<864x16xf32, #tpu.memory_space<vmem>>, vector<16x16xf32>
    tpu.vector_store %arg13[%c344, %c0_34], %53 {strides = array<i32>} : memref<864x16xf32, #tpu.memory_space<vmem>>, vector<16x16xf32>,
    %55 = vector.extract_strided_slice %22 {offsets = [224, 0], sizes = [16, 16], strides = [1, 1]} : vector<512x16xf32> to vector<16x16xf32>
    %c368 = arith.constant 368 : index
    %c0_35 = arith.constant 0 : index
    %56 = vector.load %arg13[%c368, %c0_35] : memref<864x16xf32, #tpu.memory_space<vmem>>, vector<16x16xf32>
    tpu.vector_store %arg13[%c368, %c0_35], %55 {strides = array<i32>} : memref<864x16xf32, #tpu.memory_space<vmem>>, vector<16x16xf32>,
    %57 = vector.extract_strided_slice %22 {offsets = [240, 0], sizes = [16, 16], strides = [1, 1]} : vector<512x16xf32> to vector<16x16xf32>
    %c392 = arith.constant 392 : index
    %c0_36 = arith.constant 0 : index
    %58 = vector.load %arg13[%c392, %c0_36] : memref<864x16xf32, #tpu.memory_space<vmem>>, vector<16x16xf32>
    tpu.vector_store %arg13[%c392, %c0_36], %57 {strides = array<i32>} : memref<864x16xf32, #tpu.memory_space<vmem>>, vector<16x16xf32>,
    %59 = vector.extract_strided_slice %22 {offsets = [256, 0], sizes = [16, 16], strides = [1, 1]} : vector<512x16xf32> to vector<16x16xf32>
    %c464 = arith.constant 464 : index
    %c0_37 = arith.constant 0 : index
    %60 = vector.load %arg13[%c464, %c0_37] : memref<864x16xf32, #tpu.memory_space<vmem>>, vector<16x16xf32>
    tpu.vector_store %arg13[%c464, %c0_37], %59 {strides = array<i32>} : memref<864x16xf32, #tpu.memory_space<vmem>>, vector<16x16xf32>,
    %61 = vector.extract_strided_slice %22 {offsets = [272, 0], sizes = [16, 16], strides = [1, 1]} : vector<512x16xf32> to vector<16x16xf32>
    %c488 = arith.constant 488 : index
    %c0_38 = arith.constant 0 : index
    %62 = vector.load %arg13[%c488, %c0_38] : memref<864x16xf32, #tpu.memory_space<vmem>>, vector<16x16xf32>
    tpu.vector_store %arg13[%c488, %c0_38], %61 {strides = array<i32>} : memref<864x16xf32, #tpu.memory_space<vmem>>, vector<16x16xf32>,
    %63 = vector.extract_strided_slice %22 {offsets = [288, 0], sizes = [16, 16], strides = [1, 1]} : vector<512x16xf32> to vector<16x16xf32>
    %c512 = arith.constant 512 : index
    %c0_39 = arith.constant 0 : index
    %64 = vector.load %arg13[%c512, %c0_39] : memref<864x16xf32, #tpu.memory_space<vmem>>, vector<16x16xf32>
    tpu.vector_store %arg13[%c512, %c0_39], %63 {strides = array<i32>} : memref<864x16xf32, #tpu.memory_space<vmem>>, vector<16x16xf32>,
    %65 = vector.extract_strided_slice %22 {offsets = [304, 0], sizes = [16, 16], strides = [1, 1]} : vector<512x16xf32> to vector<16x16xf32>
    %c536 = arith.constant 536 : index
    %c0_40 = arith.constant 0 : index
    %66 = vector.load %arg13[%c536, %c0_40] : memref<864x16xf32, #tpu.memory_space<vmem>>, vector<16x16xf32>
    tpu.vector_store %arg13[%c536, %c0_40], %65 {strides = array<i32>} : memref<864x16xf32, #tpu.memory_space<vmem>>, vector<16x16xf32>,
    %67 = vector.extract_strided_slice %22 {offsets = [320, 0], sizes = [16, 16], strides = [1, 1]} : vector<512x16xf32> to vector<16x16xf32>
    %c560 = arith.constant 560 : index
    %c0_41 = arith.constant 0 : index
    %68 = vector.load %arg13[%c560, %c0_41] : memref<864x16xf32, #tpu.memory_space<vmem>>, vector<16x16xf32>
    tpu.vector_store %arg13[%c560, %c0_41], %67 {strides = array<i32>} : memref<864x16xf32, #tpu.memory_space<vmem>>, vector<16x16xf32>,
    %69 = vector.extract_strided_slice %22 {offsets = [336, 0], sizes = [16, 16], strides = [1, 1]} : vector<512x16xf32> to vector<16x16xf32>
    %c584 = arith.constant 584 : index
    %c0_42 = arith.constant 0 : index
    %70 = vector.load %arg13[%c584, %c0_42] : memref<864x16xf32, #tpu.memory_space<vmem>>, vector<16x16xf32>
    tpu.vector_store %arg13[%c584, %c0_42], %69 {strides = array<i32>} : memref<864x16xf32, #tpu.memory_space<vmem>>, vector<16x16xf32>,
    %71 = vector.extract_strided_slice %22 {offsets = [352, 0], sizes = [16, 16], strides = [1, 1]} : vector<512x16xf32> to vector<16x16xf32>
    %c608 = arith.constant 608 : index
    %c0_43 = arith.constant 0 : index
    %72 = vector.load %arg13[%c608, %c0_43] : memref<864x16xf32, #tpu.memory_space<vmem>>, vector<16x16xf32>
    tpu.vector_store %arg13[%c608, %c0_43], %71 {strides = array<i32>} : memref<864x16xf32, #tpu.memory_space<vmem>>, vector<16x16xf32>,
    %73 = vector.extract_strided_slice %22 {offsets = [368, 0], sizes = [16, 16], strides = [1, 1]} : vector<512x16xf32> to vector<16x16xf32>
    %c632 = arith.constant 632 : index
    %c0_44 = arith.constant 0 : index
    %74 = vector.load %arg13[%c632, %c0_44] : memref<864x16xf32, #tpu.memory_space<vmem>>, vector<16x16xf32>
    tpu.vector_store %arg13[%c632, %c0_44], %73 {strides = array<i32>} : memref<864x16xf32, #tpu.memory_space<vmem>>, vector<16x16xf32>,
    %75 = vector.extract_strided_slice %22 {offsets = [384, 0], sizes = [16, 16], strides = [1, 1]} : vector<512x16xf32> to vector<16x16xf32>
    %c656 = arith.constant 656 : index
    %c0_45 = arith.constant 0 : index
    %76 = vector.load %arg13[%c656, %c0_45] : memref<864x16xf32, #tpu.memory_space<vmem>>, vector<16x16xf32>
    tpu.vector_store %arg13[%c656, %c0_45], %75 {strides = array<i32>} : memref<864x16xf32, #tpu.memory_space<vmem>>, vector<16x16xf32>,
    %77 = vector.extract_strided_slice %22 {offsets = [400, 0], sizes = [16, 16], strides = [1, 1]} : vector<512x16xf32> to vector<16x16xf32>
    %c680 = arith.constant 680 : index
    %c0_46 = arith.constant 0 : index
    %78 = vector.load %arg13[%c680, %c0_46] : memref<864x16xf32, #tpu.memory_space<vmem>>, vector<16x16xf32>
    tpu.vector_store %arg13[%c680, %c0_46], %77 {strides = array<i32>} : memref<864x16xf32, #tpu.memory_space<vmem>>, vector<16x16xf32>,
    %79 = vector.extract_strided_slice %22 {offsets = [416, 0], sizes = [16, 16], strides = [1, 1]} : vector<512x16xf32> to vector<16x16xf32>
    %c704 = arith.constant 704 : index
    %c0_47 = arith.constant 0 : index
    %80 = vector.load %arg13[%c704, %c0_47] : memref<864x16xf32, #tpu.memory_space<vmem>>, vector<16x16xf32>
    tpu.vector_store %arg13[%c704, %c0_47], %79 {strides = array<i32>} : memref<864x16xf32, #tpu.memory_space<vmem>>, vector<16x16xf32>,
    %81 = vector.extract_strided_slice %22 {offsets = [432, 0], sizes = [16, 16], strides = [1, 1]} : vector<512x16xf32> to vector<16x16xf32>
    %c728 = arith.constant 728 : index
    %c0_48 = arith.constant 0 : index
    %82 = vector.load %arg13[%c728, %c0_48] : memref<864x16xf32, #tpu.memory_space<vmem>>, vector<16x16xf32>
    tpu.vector_store %arg13[%c728, %c0_48], %81 {strides = array<i32>} : memref<864x16xf32, #tpu.memory_space<vmem>>, vector<16x16xf32>,
    %83 = vector.extract_strided_slice %22 {offsets = [448, 0], sizes = [16, 16], strides = [1, 1]} : vector<512x16xf32> to vector<16x16xf32>
    %c752 = arith.constant 752 : index
    %c0_49 = arith.constant 0 : index
    %84 = vector.load %arg13[%c752, %c0_49] : memref<864x16xf32, #tpu.memory_space<vmem>>, vector<16x16xf32>
    tpu.vector_store %arg13[%c752, %c0_49], %83 {strides = array<i32>} : memref<864x16xf32, #tpu.memory_space<vmem>>, vector<16x16xf32>,
    %85 = vector.extract_strided_slice %22 {offsets = [464, 0], sizes = [16, 16], strides = [1, 1]} : vector<512x16xf32> to vector<16x16xf32>
    %c776 = arith.constant 776 : index
    %c0_50 = arith.constant 0 : index
    %86 = vector.load %arg13[%c776, %c0_50] : memref<864x16xf32, #tpu.memory_space<vmem>>, vector<16x16xf32>
    tpu.vector_store %arg13[%c776, %c0_50], %85 {strides = array<i32>} : memref<864x16xf32, #tpu.memory_space<vmem>>, vector<16x16xf32>,
    %87 = vector.extract_strided_slice %22 {offsets = [480, 0], sizes = [16, 16], strides = [1, 1]} : vector<512x16xf32> to vector<16x16xf32>
    %c800 = arith.constant 800 : index
    %c0_51 = arith.constant 0 : index
    %88 = vector.load %arg13[%c800, %c0_51] : memref<864x16xf32, #tpu.memory_space<vmem>>, vector<16x16xf32>
    tpu.vector_store %arg13[%c800, %c0_51], %87 {strides = array<i32>} : memref<864x16xf32, #tpu.memory_space<vmem>>, vector<16x16xf32>,
    %89 = vector.extract_strided_slice %22 {offsets = [496, 0], sizes = [16, 16], strides = [1, 1]} : vector<512x16xf32> to vector<16x16xf32>
    %c824 = arith.constant 824 : index
    %c0_52 = arith.constant 0 : index
    %90 = vector.load %arg13[%c824, %c0_52] : memref<864x16xf32, #tpu.memory_space<vmem>>, vector<16x16xf32>
    tpu.vector_store %arg13[%c824, %c0_52], %89 {strides = array<i32>} : memref<864x16xf32, #tpu.memory_space<vmem>>, vector<16x16xf32>,
    %91 = vector.extract_strided_slice %23 {offsets = [0, 0], sizes = [1, 16], strides = [1, 1]} : vector<9x16xf32> to vector<1x16xf32>
    %92 = vector.extract_strided_slice %23 {offsets = [1, 0], sizes = [1, 16], strides = [1, 1]} : vector<9x16xf32> to vector<1x16xf32>
    %93 = vector.extract_strided_slice %23 {offsets = [2, 0], sizes = [1, 16], strides = [1, 1]} : vector<9x16xf32> to vector<1x16xf32>
    %94 = vector.extract_strided_slice %23 {offsets = [3, 0], sizes = [1, 16], strides = [1, 1]} : vector<9x16xf32> to vector<1x16xf32>
    %95 = vector.extract_strided_slice %23 {offsets = [4, 0], sizes = [1, 16], strides = [1, 1]} : vector<9x16xf32> to vector<1x16xf32>
    %96 = vector.extract_strided_slice %23 {offsets = [5, 0], sizes = [1, 16], strides = [1, 1]} : vector<9x16xf32> to vector<1x16xf32>
    %97 = vector.extract_strided_slice %23 {offsets = [6, 0], sizes = [1, 16], strides = [1, 1]} : vector<9x16xf32> to vector<1x16xf32>
    %98 = vector.extract_strided_slice %23 {offsets = [7, 0], sizes = [1, 16], strides = [1, 1]} : vector<9x16xf32> to vector<1x16xf32>
    %99 = vector.extract_strided_slice %23 {offsets = [8, 0], sizes = [1, 16], strides = [1, 1]} : vector<9x16xf32> to vector<1x16xf32>
    %cst_53 = arith.constant 0.000000e+00 : f32
    %100 = vector.broadcast %cst_53 : f32 to vector<8x16xf32>
    %c7 = arith.constant 7 : index
    %c0_54 = arith.constant 0 : index
    %101 = tpu.strided_load %arg13[%c7, %c0_54] {strides = array<i32: 2, 1>} : memref<864x16xf32, #tpu.memory_space<vmem>>, vector<8x16xf32>
    %102 = vector.broadcast %91 : vector<1x16xf32> to vector<8x16xf32>
    %103 = arith.mulf %101, %102 : vector<8x16xf32>
    %104 = arith.addf %100, %103 : vector<8x16xf32>
    %c8 = arith.constant 8 : index
    %c0_55 = arith.constant 0 : index
    %105 = tpu.strided_load %arg13[%c8, %c0_55] {strides = array<i32: 2, 1>} : memref<864x16xf32, #tpu.memory_space<vmem>>, vector<8x16xf32>
    %106 = vector.broadcast %92 : vector<1x16xf32> to vector<8x16xf32>
    %107 = arith.mulf %105, %106 : vector<8x16xf32>
    %108 = arith.addf %104, %107 : vector<8x16xf32>
    %c9 = arith.constant 9 : index
    %c0_56 = arith.constant 0 : index
    %109 = tpu.strided_load %arg13[%c9, %c0_56] {strides = array<i32: 2, 1>} : memref<864x16xf32, #tpu.memory_space<vmem>>, vector<8x16xf32>
    %110 = vector.broadcast %93 : vector<1x16xf32> to vector<8x16xf32>
    %111 = arith.mulf %109, %110 : vector<8x16xf32>
    %112 = arith.addf %108, %111 : vector<8x16xf32>
    %c31 = arith.constant 31 : index
    %c0_57 = arith.constant 0 : index
    %113 = tpu.strided_load %arg13[%c31, %c0_57] {strides = array<i32: 2, 1>} : memref<864x16xf32, #tpu.memory_space<vmem>>, vector<8x16xf32>
    %114 = vector.broadcast %94 : vector<1x16xf32> to vector<8x16xf32>
    %115 = arith.mulf %113, %114 : vector<8x16xf32>
    %116 = arith.addf %112, %115 : vector<8x16xf32>
    %c32_58 = arith.constant 32 : index
    %c0_59 = arith.constant 0 : index
    %117 = tpu.strided_load %arg13[%c32_58, %c0_59] {strides = array<i32: 2, 1>} : memref<864x16xf32, #tpu.memory_space<vmem>>, vector<8x16xf32>
    %118 = vector.broadcast %95 : vector<1x16xf32> to vector<8x16xf32>
    %119 = arith.mulf %117, %118 : vector<8x16xf32>
    %120 = arith.addf %116, %119 : vector<8x16xf32>
    %c33 = arith.constant 33 : index
    %c0_60 = arith.constant 0 : index
    %121 = tpu.strided_load %arg13[%c33, %c0_60] {strides = array<i32: 2, 1>} : memref<864x16xf32, #tpu.memory_space<vmem>>, vector<8x16xf32>
    %122 = vector.broadcast %96 : vector<1x16xf32> to vector<8x16xf32>
    %123 = arith.mulf %121, %122 : vector<8x16xf32>
    %124 = arith.addf %120, %123 : vector<8x16xf32>
    %c55 = arith.constant 55 : index
    %c0_61 = arith.constant 0 : index
    %125 = tpu.strided_load %arg13[%c55, %c0_61] {strides = array<i32: 2, 1>} : memref<864x16xf32, #tpu.memory_space<vmem>>, vector<8x16xf32>
    %126 = vector.broadcast %97 : vector<1x16xf32> to vector<8x16xf32>
    %127 = arith.mulf %125, %126 : vector<8x16xf32>
    %128 = arith.addf %124, %127 : vector<8x16xf32>
    %c56_62 = arith.constant 56 : index
    %c0_63 = arith.constant 0 : index
    %129 = tpu.strided_load %arg13[%c56_62, %c0_63] {strides = array<i32: 2, 1>} : memref<864x16xf32, #tpu.memory_space<vmem>>, vector<8x16xf32>
    %130 = vector.broadcast %98 : vector<1x16xf32> to vector<8x16xf32>
    %131 = arith.mulf %129, %130 : vector<8x16xf32>
    %132 = arith.addf %128, %131 : vector<8x16xf32>
    %c57 = arith.constant 57 : index
    %c0_64 = arith.constant 0 : index
    %133 = tpu.strided_load %arg13[%c57, %c0_64] {strides = array<i32: 2, 1>} : memref<864x16xf32, #tpu.memory_space<vmem>>, vector<8x16xf32>
    %134 = vector.broadcast %99 : vector<1x16xf32> to vector<8x16xf32>
    %135 = arith.mulf %133, %134 : vector<8x16xf32>
    %136 = arith.addf %132, %135 : vector<8x16xf32>
    %137 = vector.broadcast %24 : vector<1x16xf32> to vector<8x16xf32>
    %138 = arith.addf %136, %137 : vector<8x16xf32>
    %cst_65 = arith.constant 0.000000e+00 : f32
    %139 = vector.broadcast %cst_65 : f32 to vector<8x16xf32>
    %140 = arith.maximumf %138, %139 : vector<8x16xf32>
    %cst_66 = arith.constant 0.000000e+00 : f32
    %141 = vector.broadcast %cst_66 : f32 to vector<8x16xf32>
    %c55_67 = arith.constant 55 : index
    %c0_68 = arith.constant 0 : index
    %142 = tpu.strided_load %arg13[%c55_67, %c0_68] {strides = array<i32: 2, 1>} : memref<864x16xf32, #tpu.memory_space<vmem>>, vector<8x16xf32>
    %143 = vector.broadcast %91 : vector<1x16xf32> to vector<8x16xf32>
    %144 = arith.mulf %142, %143 : vector<8x16xf32>
    %145 = arith.addf %141, %144 : vector<8x16xf32>
    %c56_69 = arith.constant 56 : index
    %c0_70 = arith.constant 0 : index
    %146 = tpu.strided_load %arg13[%c56_69, %c0_70] {strides = array<i32: 2, 1>} : memref<864x16xf32, #tpu.memory_space<vmem>>, vector<8x16xf32>
    %147 = vector.broadcast %92 : vector<1x16xf32> to vector<8x16xf32>
    %148 = arith.mulf %146, %147 : vector<8x16xf32>
    %149 = arith.addf %145, %148 : vector<8x16xf32>
    %c57_71 = arith.constant 57 : index
    %c0_72 = arith.constant 0 : index
    %150 = tpu.strided_load %arg13[%c57_71, %c0_72] {strides = array<i32: 2, 1>} : memref<864x16xf32, #tpu.memory_space<vmem>>, vector<8x16xf32>
    %151 = vector.broadcast %93 : vector<1x16xf32> to vector<8x16xf32>
    %152 = arith.mulf %150, %151 : vector<8x16xf32>
    %153 = arith.addf %149, %152 : vector<8x16xf32>
    %c79 = arith.constant 79 : index
    %c0_73 = arith.constant 0 : index
    %154 = tpu.strided_load %arg13[%c79, %c0_73] {strides = array<i32: 2, 1>} : memref<864x16xf32, #tpu.memory_space<vmem>>, vector<8x16xf32>
    %155 = vector.broadcast %94 : vector<1x16xf32> to vector<8x16xf32>
    %156 = arith.mulf %154, %155 : vector<8x16xf32>
    %157 = arith.addf %153, %156 : vector<8x16xf32>
    %c80_74 = arith.constant 80 : index
    %c0_75 = arith.constant 0 : index
    %158 = tpu.strided_load %arg13[%c80_74, %c0_75] {strides = array<i32: 2, 1>} : memref<864x16xf32, #tpu.memory_space<vmem>>, vector<8x16xf32>
    %159 = vector.broadcast %95 : vector<1x16xf32> to vector<8x16xf32>
    %160 = arith.mulf %158, %159 : vector<8x16xf32>
    %161 = arith.addf %157, %160 : vector<8x16xf32>
    %c81 = arith.constant 81 : index
    %c0_76 = arith.constant 0 : index
    %162 = tpu.strided_load %arg13[%c81, %c0_76] {strides = array<i32: 2, 1>} : memref<864x16xf32, #tpu.memory_space<vmem>>, vector<8x16xf32>
    %163 = vector.broadcast %96 : vector<1x16xf32> to vector<8x16xf32>
    %164 = arith.mulf %162, %163 : vector<8x16xf32>
    %165 = arith.addf %161, %164 : vector<8x16xf32>
    %c103 = arith.constant 103 : index
    %c0_77 = arith.constant 0 : index
    %166 = tpu.strided_load %arg13[%c103, %c0_77] {strides = array<i32: 2, 1>} : memref<864x16xf32, #tpu.memory_space<vmem>>, vector<8x16xf32>
    %167 = vector.broadcast %97 : vector<1x16xf32> to vector<8x16xf32>
    %168 = arith.mulf %166, %167 : vector<8x16xf32>
    %169 = arith.addf %165, %168 : vector<8x16xf32>
    %c104_78 = arith.constant 104 : index
    %c0_79 = arith.constant 0 : index
    %170 = tpu.strided_load %arg13[%c104_78, %c0_79] {strides = array<i32: 2, 1>} : memref<864x16xf32, #tpu.memory_space<vmem>>, vector<8x16xf32>
    %171 = vector.broadcast %98 : vector<1x16xf32> to vector<8x16xf32>
    %172 = arith.mulf %170, %171 : vector<8x16xf32>
    %173 = arith.addf %169, %172 : vector<8x16xf32>
    %c105 = arith.constant 105 : index
    %c0_80 = arith.constant 0 : index
    %174 = tpu.strided_load %arg13[%c105, %c0_80] {strides = array<i32: 2, 1>} : memref<864x16xf32, #tpu.memory_space<vmem>>, vector<8x16xf32>
    %175 = vector.broadcast %99 : vector<1x16xf32> to vector<8x16xf32>
    %176 = arith.mulf %174, %175 : vector<8x16xf32>
    %177 = arith.addf %173, %176 : vector<8x16xf32>
    %178 = vector.broadcast %24 : vector<1x16xf32> to vector<8x16xf32>
    %179 = arith.addf %177, %178 : vector<8x16xf32>
    %cst_81 = arith.constant 0.000000e+00 : f32
    %180 = vector.broadcast %cst_81 : f32 to vector<8x16xf32>
    %181 = arith.maximumf %179, %180 : vector<8x16xf32>
    %cst_82 = arith.constant 0.000000e+00 : f32
    %182 = vector.broadcast %cst_82 : f32 to vector<8x16xf32>
    %c103_83 = arith.constant 103 : index
    %c0_84 = arith.constant 0 : index
    %183 = tpu.strided_load %arg13[%c103_83, %c0_84] {strides = array<i32: 2, 1>} : memref<864x16xf32, #tpu.memory_space<vmem>>, vector<8x16xf32>
    %184 = vector.broadcast %91 : vector<1x16xf32> to vector<8x16xf32>
    %185 = arith.mulf %183, %184 : vector<8x16xf32>
    %186 = arith.addf %182, %185 : vector<8x16xf32>
    %c104_85 = arith.constant 104 : index
    %c0_86 = arith.constant 0 : index
    %187 = tpu.strided_load %arg13[%c104_85, %c0_86] {strides = array<i32: 2, 1>} : memref<864x16xf32, #tpu.memory_space<vmem>>, vector<8x16xf32>
    %188 = vector.broadcast %92 : vector<1x16xf32> to vector<8x16xf32>
    %189 = arith.mulf %187, %188 : vector<8x16xf32>
    %190 = arith.addf %186, %189 : vector<8x16xf32>
    %c105_87 = arith.constant 105 : index
    %c0_88 = arith.constant 0 : index
    %191 = tpu.strided_load %arg13[%c105_87, %c0_88] {strides = array<i32: 2, 1>} : memref<864x16xf32, #tpu.memory_space<vmem>>, vector<8x16xf32>
    %192 = vector.broadcast %93 : vector<1x16xf32> to vector<8x16xf32>
    %193 = arith.mulf %191, %192 : vector<8x16xf32>
    %194 = arith.addf %190, %193 : vector<8x16xf32>
    %c127 = arith.constant 127 : index
    %c0_89 = arith.constant 0 : index
    %195 = tpu.strided_load %arg13[%c127, %c0_89] {strides = array<i32: 2, 1>} : memref<864x16xf32, #tpu.memory_space<vmem>>, vector<8x16xf32>
    %196 = vector.broadcast %94 : vector<1x16xf32> to vector<8x16xf32>
    %197 = arith.mulf %195, %196 : vector<8x16xf32>
    %198 = arith.addf %194, %197 : vector<8x16xf32>
    %c128_90 = arith.constant 128 : index
    %c0_91 = arith.constant 0 : index
    %199 = tpu.strided_load %arg13[%c128_90, %c0_91] {strides = array<i32: 2, 1>} : memref<864x16xf32, #tpu.memory_space<vmem>>, vector<8x16xf32>
    %200 = vector.broadcast %95 : vector<1x16xf32> to vector<8x16xf32>
    %201 = arith.mulf %199, %200 : vector<8x16xf32>
    %202 = arith.addf %198, %201 : vector<8x16xf32>
    %c129 = arith.constant 129 : index
    %c0_92 = arith.constant 0 : index
    %203 = tpu.strided_load %arg13[%c129, %c0_92] {strides = array<i32: 2, 1>} : memref<864x16xf32, #tpu.memory_space<vmem>>, vector<8x16xf32>
    %204 = vector.broadcast %96 : vector<1x16xf32> to vector<8x16xf32>
    %205 = arith.mulf %203, %204 : vector<8x16xf32>
    %206 = arith.addf %202, %205 : vector<8x16xf32>
    %c151 = arith.constant 151 : index
    %c0_93 = arith.constant 0 : index
    %207 = tpu.strided_load %arg13[%c151, %c0_93] {strides = array<i32: 2, 1>} : memref<864x16xf32, #tpu.memory_space<vmem>>, vector<8x16xf32>
    %208 = vector.broadcast %97 : vector<1x16xf32> to vector<8x16xf32>
    %209 = arith.mulf %207, %208 : vector<8x16xf32>
    %210 = arith.addf %206, %209 : vector<8x16xf32>
    %c152_94 = arith.constant 152 : index
    %c0_95 = arith.constant 0 : index
    %211 = tpu.strided_load %arg13[%c152_94, %c0_95] {strides = array<i32: 2, 1>} : memref<864x16xf32, #tpu.memory_space<vmem>>, vector<8x16xf32>
    %212 = vector.broadcast %98 : vector<1x16xf32> to vector<8x16xf32>
    %213 = arith.mulf %211, %212 : vector<8x16xf32>
    %214 = arith.addf %210, %213 : vector<8x16xf32>
    %c153 = arith.constant 153 : index
    %c0_96 = arith.constant 0 : index
    %215 = tpu.strided_load %arg13[%c153, %c0_96] {strides = array<i32: 2, 1>} : memref<864x16xf32, #tpu.memory_space<vmem>>, vector<8x16xf32>
    %216 = vector.broadcast %99 : vector<1x16xf32> to vector<8x16xf32>
    %217 = arith.mulf %215, %216 : vector<8x16xf32>
    %218 = arith.addf %214, %217 : vector<8x16xf32>
    %219 = vector.broadcast %24 : vector<1x16xf32> to vector<8x16xf32>
    %220 = arith.addf %218, %219 : vector<8x16xf32>
    %cst_97 = arith.constant 0.000000e+00 : f32
    %221 = vector.broadcast %cst_97 : f32 to vector<8x16xf32>
    %222 = arith.maximumf %220, %221 : vector<8x16xf32>
    %cst_98 = arith.constant 0.000000e+00 : f32
    %223 = vector.broadcast %cst_98 : f32 to vector<8x16xf32>
    %c151_99 = arith.constant 151 : index
    %c0_100 = arith.constant 0 : index
    %224 = tpu.strided_load %arg13[%c151_99, %c0_100] {strides = array<i32: 2, 1>} : memref<864x16xf32, #tpu.memory_space<vmem>>, vector<8x16xf32>
    %225 = vector.broadcast %91 : vector<1x16xf32> to vector<8x16xf32>
    %226 = arith.mulf %224, %225 : vector<8x16xf32>
    %227 = arith.addf %223, %226 : vector<8x16xf32>
    %c152_101 = arith.constant 152 : index
    %c0_102 = arith.constant 0 : index
    %228 = tpu.strided_load %arg13[%c152_101, %c0_102] {strides = array<i32: 2, 1>} : memref<864x16xf32, #tpu.memory_space<vmem>>, vector<8x16xf32>
    %229 = vector.broadcast %92 : vector<1x16xf32> to vector<8x16xf32>
    %230 = arith.mulf %228, %229 : vector<8x16xf32>
    %231 = arith.addf %227, %230 : vector<8x16xf32>
    %c153_103 = arith.constant 153 : index
    %c0_104 = arith.constant 0 : index
    %232 = tpu.strided_load %arg13[%c153_103, %c0_104] {strides = array<i32: 2, 1>} : memref<864x16xf32, #tpu.memory_space<vmem>>, vector<8x16xf32>
    %233 = vector.broadcast %93 : vector<1x16xf32> to vector<8x16xf32>
    %234 = arith.mulf %232, %233 : vector<8x16xf32>
    %235 = arith.addf %231, %234 : vector<8x16xf32>
    %c175 = arith.constant 175 : index
    %c0_105 = arith.constant 0 : index
    %236 = tpu.strided_load %arg13[%c175, %c0_105] {strides = array<i32: 2, 1>} : memref<864x16xf32, #tpu.memory_space<vmem>>, vector<8x16xf32>
    %237 = vector.broadcast %94 : vector<1x16xf32> to vector<8x16xf32>
    %238 = arith.mulf %236, %237 : vector<8x16xf32>
    %239 = arith.addf %235, %238 : vector<8x16xf32>
    %c176_106 = arith.constant 176 : index
    %c0_107 = arith.constant 0 : index
    %240 = tpu.strided_load %arg13[%c176_106, %c0_107] {strides = array<i32: 2, 1>} : memref<864x16xf32, #tpu.memory_space<vmem>>, vector<8x16xf32>
    %241 = vector.broadcast %95 : vector<1x16xf32> to vector<8x16xf32>
    %242 = arith.mulf %240, %241 : vector<8x16xf32>
    %243 = arith.addf %239, %242 : vector<8x16xf32>
    %c177 = arith.constant 177 : index
    %c0_108 = arith.constant 0 : index
    %244 = tpu.strided_load %arg13[%c177, %c0_108] {strides = array<i32: 2, 1>} : memref<864x16xf32, #tpu.memory_space<vmem>>, vector<8x16xf32>
    %245 = vector.broadcast %96 : vector<1x16xf32> to vector<8x16xf32>
    %246 = arith.mulf %244, %245 : vector<8x16xf32>
    %247 = arith.addf %243, %246 : vector<8x16xf32>
    %c199 = arith.constant 199 : index
    %c0_109 = arith.constant 0 : index
    %248 = tpu.strided_load %arg13[%c199, %c0_109] {strides = array<i32: 2, 1>} : memref<864x16xf32, #tpu.memory_space<vmem>>, vector<8x16xf32>
    %249 = vector.broadcast %97 : vector<1x16xf32> to vector<8x16xf32>
    %250 = arith.mulf %248, %249 : vector<8x16xf32>
    %251 = arith.addf %247, %250 : vector<8x16xf32>
    %c200_110 = arith.constant 200 : index
    %c0_111 = arith.constant 0 : index
    %252 = tpu.strided_load %arg13[%c200_110, %c0_111] {strides = array<i32: 2, 1>} : memref<864x16xf32, #tpu.memory_space<vmem>>, vector<8x16xf32>
    %253 = vector.broadcast %98 : vector<1x16xf32> to vector<8x16xf32>
    %254 = arith.mulf %252, %253 : vector<8x16xf32>
    %255 = arith.addf %251, %254 : vector<8x16xf32>
    %c201 = arith.constant 201 : index
    %c0_112 = arith.constant 0 : index
    %256 = tpu.strided_load %arg13[%c201, %c0_112] {strides = array<i32: 2, 1>} : memref<864x16xf32, #tpu.memory_space<vmem>>, vector<8x16xf32>
    %257 = vector.broadcast %99 : vector<1x16xf32> to vector<8x16xf32>
    %258 = arith.mulf %256, %257 : vector<8x16xf32>
    %259 = arith.addf %255, %258 : vector<8x16xf32>
    %260 = vector.broadcast %24 : vector<1x16xf32> to vector<8x16xf32>
    %261 = arith.addf %259, %260 : vector<8x16xf32>
    %cst_113 = arith.constant 0.000000e+00 : f32
    %262 = vector.broadcast %cst_113 : f32 to vector<8x16xf32>
    %263 = arith.maximumf %261, %262 : vector<8x16xf32>
    %cst_114 = arith.constant 0.000000e+00 : f32
    %264 = vector.broadcast %cst_114 : f32 to vector<8x16xf32>
    %c199_115 = arith.constant 199 : index
    %c0_116 = arith.constant 0 : index
    %265 = tpu.strided_load %arg13[%c199_115, %c0_116] {strides = array<i32: 2, 1>} : memref<864x16xf32, #tpu.memory_space<vmem>>, vector<8x16xf32>
    %266 = vector.broadcast %91 : vector<1x16xf32> to vector<8x16xf32>
    %267 = arith.mulf %265, %266 : vector<8x16xf32>
    %268 = arith.addf %264, %267 : vector<8x16xf32>
    %c200_117 = arith.constant 200 : index
    %c0_118 = arith.constant 0 : index
    %269 = tpu.strided_load %arg13[%c200_117, %c0_118] {strides = array<i32: 2, 1>} : memref<864x16xf32, #tpu.memory_space<vmem>>, vector<8x16xf32>
    %270 = vector.broadcast %92 : vector<1x16xf32> to vector<8x16xf32>
    %271 = arith.mulf %269, %270 : vector<8x16xf32>
    %272 = arith.addf %268, %271 : vector<8x16xf32>
    %c201_119 = arith.constant 201 : index
    %c0_120 = arith.constant 0 : index
    %273 = tpu.strided_load %arg13[%c201_119, %c0_120] {strides = array<i32: 2, 1>} : memref<864x16xf32, #tpu.memory_space<vmem>>, vector<8x16xf32>
    %274 = vector.broadcast %93 : vector<1x16xf32> to vector<8x16xf32>
    %275 = arith.mulf %273, %274 : vector<8x16xf32>
    %276 = arith.addf %272, %275 : vector<8x16xf32>
    %c223 = arith.constant 223 : index
    %c0_121 = arith.constant 0 : index
    %277 = tpu.strided_load %arg13[%c223, %c0_121] {strides = array<i32: 2, 1>} : memref<864x16xf32, #tpu.memory_space<vmem>>, vector<8x16xf32>
    %278 = vector.broadcast %94 : vector<1x16xf32> to vector<8x16xf32>
    %279 = arith.mulf %277, %278 : vector<8x16xf32>
    %280 = arith.addf %276, %279 : vector<8x16xf32>
    %c224_122 = arith.constant 224 : index
    %c0_123 = arith.constant 0 : index
    %281 = tpu.strided_load %arg13[%c224_122, %c0_123] {strides = array<i32: 2, 1>} : memref<864x16xf32, #tpu.memory_space<vmem>>, vector<8x16xf32>
    %282 = vector.broadcast %95 : vector<1x16xf32> to vector<8x16xf32>
    %283 = arith.mulf %281, %282 : vector<8x16xf32>
    %284 = arith.addf %280, %283 : vector<8x16xf32>
    %c225 = arith.constant 225 : index
    %c0_124 = arith.constant 0 : index
    %285 = tpu.strided_load %arg13[%c225, %c0_124] {strides = array<i32: 2, 1>} : memref<864x16xf32, #tpu.memory_space<vmem>>, vector<8x16xf32>
    %286 = vector.broadcast %96 : vector<1x16xf32> to vector<8x16xf32>
    %287 = arith.mulf %285, %286 : vector<8x16xf32>
    %288 = arith.addf %284, %287 : vector<8x16xf32>
    %c247 = arith.constant 247 : index
    %c0_125 = arith.constant 0 : index
    %289 = tpu.strided_load %arg13[%c247, %c0_125] {strides = array<i32: 2, 1>} : memref<864x16xf32, #tpu.memory_space<vmem>>, vector<8x16xf32>
    %290 = vector.broadcast %97 : vector<1x16xf32> to vector<8x16xf32>
    %291 = arith.mulf %289, %290 : vector<8x16xf32>
    %292 = arith.addf %288, %291 : vector<8x16xf32>
    %c248_126 = arith.constant 248 : index
    %c0_127 = arith.constant 0 : index
    %293 = tpu.strided_load %arg13[%c248_126, %c0_127] {strides = array<i32: 2, 1>} : memref<864x16xf32, #tpu.memory_space<vmem>>, vector<8x16xf32>
    %294 = vector.broadcast %98 : vector<1x16xf32> to vector<8x16xf32>
    %295 = arith.mulf %293, %294 : vector<8x16xf32>
    %296 = arith.addf %292, %295 : vector<8x16xf32>
    %c249 = arith.constant 249 : index
    %c0_128 = arith.constant 0 : index
    %297 = tpu.strided_load %arg13[%c249, %c0_128] {strides = array<i32: 2, 1>} : memref<864x16xf32, #tpu.memory_space<vmem>>, vector<8x16xf32>
    %298 = vector.broadcast %99 : vector<1x16xf32> to vector<8x16xf32>
    %299 = arith.mulf %297, %298 : vector<8x16xf32>
    %300 = arith.addf %296, %299 : vector<8x16xf32>
    %301 = vector.broadcast %24 : vector<1x16xf32> to vector<8x16xf32>
    %302 = arith.addf %300, %301 : vector<8x16xf32>
    %cst_129 = arith.constant 0.000000e+00 : f32
    %303 = vector.broadcast %cst_129 : f32 to vector<8x16xf32>
    %304 = arith.maximumf %302, %303 : vector<8x16xf32>
    %cst_130 = arith.constant 0.000000e+00 : f32
    %305 = vector.broadcast %cst_130 : f32 to vector<8x16xf32>
    %c247_131 = arith.constant 247 : index
    %c0_132 = arith.constant 0 : index
    %306 = tpu.strided_load %arg13[%c247_131, %c0_132] {strides = array<i32: 2, 1>} : memref<864x16xf32, #tpu.memory_space<vmem>>, vector<8x16xf32>
    %307 = vector.broadcast %91 : vector<1x16xf32> to vector<8x16xf32>
    %308 = arith.mulf %306, %307 : vector<8x16xf32>
    %309 = arith.addf %305, %308 : vector<8x16xf32>
    %c248_133 = arith.constant 248 : index
    %c0_134 = arith.constant 0 : index
    %310 = tpu.strided_load %arg13[%c248_133, %c0_134] {strides = array<i32: 2, 1>} : memref<864x16xf32, #tpu.memory_space<vmem>>, vector<8x16xf32>
    %311 = vector.broadcast %92 : vector<1x16xf32> to vector<8x16xf32>
    %312 = arith.mulf %310, %311 : vector<8x16xf32>
    %313 = arith.addf %309, %312 : vector<8x16xf32>
    %c249_135 = arith.constant 249 : index
    %c0_136 = arith.constant 0 : index
    %314 = tpu.strided_load %arg13[%c249_135, %c0_136] {strides = array<i32: 2, 1>} : memref<864x16xf32, #tpu.memory_space<vmem>>, vector<8x16xf32>
    %315 = vector.broadcast %93 : vector<1x16xf32> to vector<8x16xf32>
    %316 = arith.mulf %314, %315 : vector<8x16xf32>
    %317 = arith.addf %313, %316 : vector<8x16xf32>
    %c271 = arith.constant 271 : index
    %c0_137 = arith.constant 0 : index
    %318 = tpu.strided_load %arg13[%c271, %c0_137] {strides = array<i32: 2, 1>} : memref<864x16xf32, #tpu.memory_space<vmem>>, vector<8x16xf32>
    %319 = vector.broadcast %94 : vector<1x16xf32> to vector<8x16xf32>
    %320 = arith.mulf %318, %319 : vector<8x16xf32>
    %321 = arith.addf %317, %320 : vector<8x16xf32>
    %c272_138 = arith.constant 272 : index
    %c0_139 = arith.constant 0 : index
    %322 = tpu.strided_load %arg13[%c272_138, %c0_139] {strides = array<i32: 2, 1>} : memref<864x16xf32, #tpu.memory_space<vmem>>, vector<8x16xf32>
    %323 = vector.broadcast %95 : vector<1x16xf32> to vector<8x16xf32>
    %324 = arith.mulf %322, %323 : vector<8x16xf32>
    %325 = arith.addf %321, %324 : vector<8x16xf32>
    %c273 = arith.constant 273 : index
    %c0_140 = arith.constant 0 : index
    %326 = tpu.strided_load %arg13[%c273, %c0_140] {strides = array<i32: 2, 1>} : memref<864x16xf32, #tpu.memory_space<vmem>>, vector<8x16xf32>
    %327 = vector.broadcast %96 : vector<1x16xf32> to vector<8x16xf32>
    %328 = arith.mulf %326, %327 : vector<8x16xf32>
    %329 = arith.addf %325, %328 : vector<8x16xf32>
    %c295 = arith.constant 295 : index
    %c0_141 = arith.constant 0 : index
    %330 = tpu.strided_load %arg13[%c295, %c0_141] {strides = array<i32: 2, 1>} : memref<864x16xf32, #tpu.memory_space<vmem>>, vector<8x16xf32>
    %331 = vector.broadcast %97 : vector<1x16xf32> to vector<8x16xf32>
    %332 = arith.mulf %330, %331 : vector<8x16xf32>
    %333 = arith.addf %329, %332 : vector<8x16xf32>
    %c296_142 = arith.constant 296 : index
    %c0_143 = arith.constant 0 : index
    %334 = tpu.strided_load %arg13[%c296_142, %c0_143] {strides = array<i32: 2, 1>} : memref<864x16xf32, #tpu.memory_space<vmem>>, vector<8x16xf32>
    %335 = vector.broadcast %98 : vector<1x16xf32> to vector<8x16xf32>
    %336 = arith.mulf %334, %335 : vector<8x16xf32>
    %337 = arith.addf %333, %336 : vector<8x16xf32>
    %c297 = arith.constant 297 : index
    %c0_144 = arith.constant 0 : index
    %338 = tpu.strided_load %arg13[%c297, %c0_144] {strides = array<i32: 2, 1>} : memref<864x16xf32, #tpu.memory_space<vmem>>, vector<8x16xf32>
    %339 = vector.broadcast %99 : vector<1x16xf32> to vector<8x16xf32>
    %340 = arith.mulf %338, %339 : vector<8x16xf32>
    %341 = arith.addf %337, %340 : vector<8x16xf32>
    %342 = vector.broadcast %24 : vector<1x16xf32> to vector<8x16xf32>
    %343 = arith.addf %341, %342 : vector<8x16xf32>
    %cst_145 = arith.constant 0.000000e+00 : f32
    %344 = vector.broadcast %cst_145 : f32 to vector<8x16xf32>
    %345 = arith.maximumf %343, %344 : vector<8x16xf32>
    %cst_146 = arith.constant 0.000000e+00 : f32
    %346 = vector.broadcast %cst_146 : f32 to vector<8x16xf32>
    %c295_147 = arith.constant 295 : index
    %c0_148 = arith.constant 0 : index
    %347 = tpu.strided_load %arg13[%c295_147, %c0_148] {strides = array<i32: 2, 1>} : memref<864x16xf32, #tpu.memory_space<vmem>>, vector<8x16xf32>
    %348 = vector.broadcast %91 : vector<1x16xf32> to vector<8x16xf32>
    %349 = arith.mulf %347, %348 : vector<8x16xf32>
    %350 = arith.addf %346, %349 : vector<8x16xf32>
    %c296_149 = arith.constant 296 : index
    %c0_150 = arith.constant 0 : index
    %351 = tpu.strided_load %arg13[%c296_149, %c0_150] {strides = array<i32: 2, 1>} : memref<864x16xf32, #tpu.memory_space<vmem>>, vector<8x16xf32>
    %352 = vector.broadcast %92 : vector<1x16xf32> to vector<8x16xf32>
    %353 = arith.mulf %351, %352 : vector<8x16xf32>
    %354 = arith.addf %350, %353 : vector<8x16xf32>
    %c297_151 = arith.constant 297 : index
    %c0_152 = arith.constant 0 : index
    %355 = tpu.strided_load %arg13[%c297_151, %c0_152] {strides = array<i32: 2, 1>} : memref<864x16xf32, #tpu.memory_space<vmem>>, vector<8x16xf32>
    %356 = vector.broadcast %93 : vector<1x16xf32> to vector<8x16xf32>
    %357 = arith.mulf %355, %356 : vector<8x16xf32>
    %358 = arith.addf %354, %357 : vector<8x16xf32>
    %c319 = arith.constant 319 : index
    %c0_153 = arith.constant 0 : index
    %359 = tpu.strided_load %arg13[%c319, %c0_153] {strides = array<i32: 2, 1>} : memref<864x16xf32, #tpu.memory_space<vmem>>, vector<8x16xf32>
    %360 = vector.broadcast %94 : vector<1x16xf32> to vector<8x16xf32>
    %361 = arith.mulf %359, %360 : vector<8x16xf32>
    %362 = arith.addf %358, %361 : vector<8x16xf32>
    %c320_154 = arith.constant 320 : index
    %c0_155 = arith.constant 0 : index
    %363 = tpu.strided_load %arg13[%c320_154, %c0_155] {strides = array<i32: 2, 1>} : memref<864x16xf32, #tpu.memory_space<vmem>>, vector<8x16xf32>
    %364 = vector.broadcast %95 : vector<1x16xf32> to vector<8x16xf32>
    %365 = arith.mulf %363, %364 : vector<8x16xf32>
    %366 = arith.addf %362, %365 : vector<8x16xf32>
    %c321 = arith.constant 321 : index
    %c0_156 = arith.constant 0 : index
    %367 = tpu.strided_load %arg13[%c321, %c0_156] {strides = array<i32: 2, 1>} : memref<864x16xf32, #tpu.memory_space<vmem>>, vector<8x16xf32>
    %368 = vector.broadcast %96 : vector<1x16xf32> to vector<8x16xf32>
    %369 = arith.mulf %367, %368 : vector<8x16xf32>
    %370 = arith.addf %366, %369 : vector<8x16xf32>
    %c343 = arith.constant 343 : index
    %c0_157 = arith.constant 0 : index
    %371 = tpu.strided_load %arg13[%c343, %c0_157] {strides = array<i32: 2, 1>} : memref<864x16xf32, #tpu.memory_space<vmem>>, vector<8x16xf32>
    %372 = vector.broadcast %97 : vector<1x16xf32> to vector<8x16xf32>
    %373 = arith.mulf %371, %372 : vector<8x16xf32>
    %374 = arith.addf %370, %373 : vector<8x16xf32>
    %c344_158 = arith.constant 344 : index
    %c0_159 = arith.constant 0 : index
    %375 = tpu.strided_load %arg13[%c344_158, %c0_159] {strides = array<i32: 2, 1>} : memref<864x16xf32, #tpu.memory_space<vmem>>, vector<8x16xf32>
    %376 = vector.broadcast %98 : vector<1x16xf32> to vector<8x16xf32>
    %377 = arith.mulf %375, %376 : vector<8x16xf32>
    %378 = arith.addf %374, %377 : vector<8x16xf32>
    %c345 = arith.constant 345 : index
    %c0_160 = arith.constant 0 : index
    %379 = tpu.strided_load %arg13[%c345, %c0_160] {strides = array<i32: 2, 1>} : memref<864x16xf32, #tpu.memory_space<vmem>>, vector<8x16xf32>
    %380 = vector.broadcast %99 : vector<1x16xf32> to vector<8x16xf32>
    %381 = arith.mulf %379, %380 : vector<8x16xf32>
    %382 = arith.addf %378, %381 : vector<8x16xf32>
    %383 = vector.broadcast %24 : vector<1x16xf32> to vector<8x16xf32>
    %384 = arith.addf %382, %383 : vector<8x16xf32>
    %cst_161 = arith.constant 0.000000e+00 : f32
    %385 = vector.broadcast %cst_161 : f32 to vector<8x16xf32>
    %386 = arith.maximumf %384, %385 : vector<8x16xf32>
    %cst_162 = arith.constant 0.000000e+00 : f32
    %387 = vector.broadcast %cst_162 : f32 to vector<8x16xf32>
    %c343_163 = arith.constant 343 : index
    %c0_164 = arith.constant 0 : index
    %388 = tpu.strided_load %arg13[%c343_163, %c0_164] {strides = array<i32: 2, 1>} : memref<864x16xf32, #tpu.memory_space<vmem>>, vector<8x16xf32>
    %389 = vector.broadcast %91 : vector<1x16xf32> to vector<8x16xf32>
    %390 = arith.mulf %388, %389 : vector<8x16xf32>
    %391 = arith.addf %387, %390 : vector<8x16xf32>
    %c344_165 = arith.constant 344 : index
    %c0_166 = arith.constant 0 : index
    %392 = tpu.strided_load %arg13[%c344_165, %c0_166] {strides = array<i32: 2, 1>} : memref<864x16xf32, #tpu.memory_space<vmem>>, vector<8x16xf32>
    %393 = vector.broadcast %92 : vector<1x16xf32> to vector<8x16xf32>
    %394 = arith.mulf %392, %393 : vector<8x16xf32>
    %395 = arith.addf %391, %394 : vector<8x16xf32>
    %c345_167 = arith.constant 345 : index
    %c0_168 = arith.constant 0 : index
    %396 = tpu.strided_load %arg13[%c345_167, %c0_168] {strides = array<i32: 2, 1>} : memref<864x16xf32, #tpu.memory_space<vmem>>, vector<8x16xf32>
    %397 = vector.broadcast %93 : vector<1x16xf32> to vector<8x16xf32>
    %398 = arith.mulf %396, %397 : vector<8x16xf32>
    %399 = arith.addf %395, %398 : vector<8x16xf32>
    %c367 = arith.constant 367 : index
    %c0_169 = arith.constant 0 : index
    %400 = tpu.strided_load %arg13[%c367, %c0_169] {strides = array<i32: 2, 1>} : memref<864x16xf32, #tpu.memory_space<vmem>>, vector<8x16xf32>
    %401 = vector.broadcast %94 : vector<1x16xf32> to vector<8x16xf32>
    %402 = arith.mulf %400, %401 : vector<8x16xf32>
    %403 = arith.addf %399, %402 : vector<8x16xf32>
    %c368_170 = arith.constant 368 : index
    %c0_171 = arith.constant 0 : index
    %404 = tpu.strided_load %arg13[%c368_170, %c0_171] {strides = array<i32: 2, 1>} : memref<864x16xf32, #tpu.memory_space<vmem>>, vector<8x16xf32>
    %405 = vector.broadcast %95 : vector<1x16xf32> to vector<8x16xf32>
    %406 = arith.mulf %404, %405 : vector<8x16xf32>
    %407 = arith.addf %403, %406 : vector<8x16xf32>
    %c369 = arith.constant 369 : index
    %c0_172 = arith.constant 0 : index
    %408 = tpu.strided_load %arg13[%c369, %c0_172] {strides = array<i32: 2, 1>} : memref<864x16xf32, #tpu.memory_space<vmem>>, vector<8x16xf32>
    %409 = vector.broadcast %96 : vector<1x16xf32> to vector<8x16xf32>
    %410 = arith.mulf %408, %409 : vector<8x16xf32>
    %411 = arith.addf %407, %410 : vector<8x16xf32>
    %c391 = arith.constant 391 : index
    %c0_173 = arith.constant 0 : index
    %412 = tpu.strided_load %arg13[%c391, %c0_173] {strides = array<i32: 2, 1>} : memref<864x16xf32, #tpu.memory_space<vmem>>, vector<8x16xf32>
    %413 = vector.broadcast %97 : vector<1x16xf32> to vector<8x16xf32>
    %414 = arith.mulf %412, %413 : vector<8x16xf32>
    %415 = arith.addf %411, %414 : vector<8x16xf32>
    %c392_174 = arith.constant 392 : index
    %c0_175 = arith.constant 0 : index
    %416 = tpu.strided_load %arg13[%c392_174, %c0_175] {strides = array<i32: 2, 1>} : memref<864x16xf32, #tpu.memory_space<vmem>>, vector<8x16xf32>
    %417 = vector.broadcast %98 : vector<1x16xf32> to vector<8x16xf32>
    %418 = arith.mulf %416, %417 : vector<8x16xf32>
    %419 = arith.addf %415, %418 : vector<8x16xf32>
    %c393 = arith.constant 393 : index
    %c0_176 = arith.constant 0 : index
    %420 = tpu.strided_load %arg13[%c393, %c0_176] {strides = array<i32: 2, 1>} : memref<864x16xf32, #tpu.memory_space<vmem>>, vector<8x16xf32>
    %421 = vector.broadcast %99 : vector<1x16xf32> to vector<8x16xf32>
    %422 = arith.mulf %420, %421 : vector<8x16xf32>
    %423 = arith.addf %419, %422 : vector<8x16xf32>
    %424 = vector.broadcast %24 : vector<1x16xf32> to vector<8x16xf32>
    %425 = arith.addf %423, %424 : vector<8x16xf32>
    %cst_177 = arith.constant 0.000000e+00 : f32
    %426 = vector.broadcast %cst_177 : f32 to vector<8x16xf32>
    %427 = arith.maximumf %425, %426 : vector<8x16xf32>
    %cst_178 = arith.constant 0.000000e+00 : f32
    %428 = vector.broadcast %cst_178 : f32 to vector<8x16xf32>
    %c439 = arith.constant 439 : index
    %c0_179 = arith.constant 0 : index
    %429 = tpu.strided_load %arg13[%c439, %c0_179] {strides = array<i32: 2, 1>} : memref<864x16xf32, #tpu.memory_space<vmem>>, vector<8x16xf32>
    %430 = vector.broadcast %91 : vector<1x16xf32> to vector<8x16xf32>
    %431 = arith.mulf %429, %430 : vector<8x16xf32>
    %432 = arith.addf %428, %431 : vector<8x16xf32>
    %c440 = arith.constant 440 : index
    %c0_180 = arith.constant 0 : index
    %433 = tpu.strided_load %arg13[%c440, %c0_180] {strides = array<i32: 2, 1>} : memref<864x16xf32, #tpu.memory_space<vmem>>, vector<8x16xf32>
    %434 = vector.broadcast %92 : vector<1x16xf32> to vector<8x16xf32>
    %435 = arith.mulf %433, %434 : vector<8x16xf32>
    %436 = arith.addf %432, %435 : vector<8x16xf32>
    %c441 = arith.constant 441 : index
    %c0_181 = arith.constant 0 : index
    %437 = tpu.strided_load %arg13[%c441, %c0_181] {strides = array<i32: 2, 1>} : memref<864x16xf32, #tpu.memory_space<vmem>>, vector<8x16xf32>
    %438 = vector.broadcast %93 : vector<1x16xf32> to vector<8x16xf32>
    %439 = arith.mulf %437, %438 : vector<8x16xf32>
    %440 = arith.addf %436, %439 : vector<8x16xf32>
    %c463 = arith.constant 463 : index
    %c0_182 = arith.constant 0 : index
    %441 = tpu.strided_load %arg13[%c463, %c0_182] {strides = array<i32: 2, 1>} : memref<864x16xf32, #tpu.memory_space<vmem>>, vector<8x16xf32>
    %442 = vector.broadcast %94 : vector<1x16xf32> to vector<8x16xf32>
    %443 = arith.mulf %441, %442 : vector<8x16xf32>
    %444 = arith.addf %440, %443 : vector<8x16xf32>
    %c464_183 = arith.constant 464 : index
    %c0_184 = arith.constant 0 : index
    %445 = tpu.strided_load %arg13[%c464_183, %c0_184] {strides = array<i32: 2, 1>} : memref<864x16xf32, #tpu.memory_space<vmem>>, vector<8x16xf32>
    %446 = vector.broadcast %95 : vector<1x16xf32> to vector<8x16xf32>
    %447 = arith.mulf %445, %446 : vector<8x16xf32>
    %448 = arith.addf %444, %447 : vector<8x16xf32>
    %c465 = arith.constant 465 : index
    %c0_185 = arith.constant 0 : index
    %449 = tpu.strided_load %arg13[%c465, %c0_185] {strides = array<i32: 2, 1>} : memref<864x16xf32, #tpu.memory_space<vmem>>, vector<8x16xf32>
    %450 = vector.broadcast %96 : vector<1x16xf32> to vector<8x16xf32>
    %451 = arith.mulf %449, %450 : vector<8x16xf32>
    %452 = arith.addf %448, %451 : vector<8x16xf32>
    %c487 = arith.constant 487 : index
    %c0_186 = arith.constant 0 : index
    %453 = tpu.strided_load %arg13[%c487, %c0_186] {strides = array<i32: 2, 1>} : memref<864x16xf32, #tpu.memory_space<vmem>>, vector<8x16xf32>
    %454 = vector.broadcast %97 : vector<1x16xf32> to vector<8x16xf32>
    %455 = arith.mulf %453, %454 : vector<8x16xf32>
    %456 = arith.addf %452, %455 : vector<8x16xf32>
    %c488_187 = arith.constant 488 : index
    %c0_188 = arith.constant 0 : index
    %457 = tpu.strided_load %arg13[%c488_187, %c0_188] {strides = array<i32: 2, 1>} : memref<864x16xf32, #tpu.memory_space<vmem>>, vector<8x16xf32>
    %458 = vector.broadcast %98 : vector<1x16xf32> to vector<8x16xf32>
    %459 = arith.mulf %457, %458 : vector<8x16xf32>
    %460 = arith.addf %456, %459 : vector<8x16xf32>
    %c489 = arith.constant 489 : index
    %c0_189 = arith.constant 0 : index
    %461 = tpu.strided_load %arg13[%c489, %c0_189] {strides = array<i32: 2, 1>} : memref<864x16xf32, #tpu.memory_space<vmem>>, vector<8x16xf32>
    %462 = vector.broadcast %99 : vector<1x16xf32> to vector<8x16xf32>
    %463 = arith.mulf %461, %462 : vector<8x16xf32>
    %464 = arith.addf %460, %463 : vector<8x16xf32>
    %465 = vector.broadcast %24 : vector<1x16xf32> to vector<8x16xf32>
    %466 = arith.addf %464, %465 : vector<8x16xf32>
    %cst_190 = arith.constant 0.000000e+00 : f32
    %467 = vector.broadcast %cst_190 : f32 to vector<8x16xf32>
    %468 = arith.maximumf %466, %467 : vector<8x16xf32>
    %cst_191 = arith.constant 0.000000e+00 : f32
    %469 = vector.broadcast %cst_191 : f32 to vector<8x16xf32>
    %c487_192 = arith.constant 487 : index
    %c0_193 = arith.constant 0 : index
    %470 = tpu.strided_load %arg13[%c487_192, %c0_193] {strides = array<i32: 2, 1>} : memref<864x16xf32, #tpu.memory_space<vmem>>, vector<8x16xf32>
    %471 = vector.broadcast %91 : vector<1x16xf32> to vector<8x16xf32>
    %472 = arith.mulf %470, %471 : vector<8x16xf32>
    %473 = arith.addf %469, %472 : vector<8x16xf32>
    %c488_194 = arith.constant 488 : index
    %c0_195 = arith.constant 0 : index
    %474 = tpu.strided_load %arg13[%c488_194, %c0_195] {strides = array<i32: 2, 1>} : memref<864x16xf32, #tpu.memory_space<vmem>>, vector<8x16xf32>
    %475 = vector.broadcast %92 : vector<1x16xf32> to vector<8x16xf32>
    %476 = arith.mulf %474, %475 : vector<8x16xf32>
    %477 = arith.addf %473, %476 : vector<8x16xf32>
    %c489_196 = arith.constant 489 : index
    %c0_197 = arith.constant 0 : index
    %478 = tpu.strided_load %arg13[%c489_196, %c0_197] {strides = array<i32: 2, 1>} : memref<864x16xf32, #tpu.memory_space<vmem>>, vector<8x16xf32>
    %479 = vector.broadcast %93 : vector<1x16xf32> to vector<8x16xf32>
    %480 = arith.mulf %478, %479 : vector<8x16xf32>
    %481 = arith.addf %477, %480 : vector<8x16xf32>
    %c511 = arith.constant 511 : index
    %c0_198 = arith.constant 0 : index
    %482 = tpu.strided_load %arg13[%c511, %c0_198] {strides = array<i32: 2, 1>} : memref<864x16xf32, #tpu.memory_space<vmem>>, vector<8x16xf32>
    %483 = vector.broadcast %94 : vector<1x16xf32> to vector<8x16xf32>
    %484 = arith.mulf %482, %483 : vector<8x16xf32>
    %485 = arith.addf %481, %484 : vector<8x16xf32>
    %c512_199 = arith.constant 512 : index
    %c0_200 = arith.constant 0 : index
    %486 = tpu.strided_load %arg13[%c512_199, %c0_200] {strides = array<i32: 2, 1>} : memref<864x16xf32, #tpu.memory_space<vmem>>, vector<8x16xf32>
    %487 = vector.broadcast %95 : vector<1x16xf32> to vector<8x16xf32>
    %488 = arith.mulf %486, %487 : vector<8x16xf32>
    %489 = arith.addf %485, %488 : vector<8x16xf32>
    %c513 = arith.constant 513 : index
    %c0_201 = arith.constant 0 : index
    %490 = tpu.strided_load %arg13[%c513, %c0_201] {strides = array<i32: 2, 1>} : memref<864x16xf32, #tpu.memory_space<vmem>>, vector<8x16xf32>
    %491 = vector.broadcast %96 : vector<1x16xf32> to vector<8x16xf32>
    %492 = arith.mulf %490, %491 : vector<8x16xf32>
    %493 = arith.addf %489, %492 : vector<8x16xf32>
    %c535 = arith.constant 535 : index
    %c0_202 = arith.constant 0 : index
    %494 = tpu.strided_load %arg13[%c535, %c0_202] {strides = array<i32: 2, 1>} : memref<864x16xf32, #tpu.memory_space<vmem>>, vector<8x16xf32>
    %495 = vector.broadcast %97 : vector<1x16xf32> to vector<8x16xf32>
    %496 = arith.mulf %494, %495 : vector<8x16xf32>
    %497 = arith.addf %493, %496 : vector<8x16xf32>
    %c536_203 = arith.constant 536 : index
    %c0_204 = arith.constant 0 : index
    %498 = tpu.strided_load %arg13[%c536_203, %c0_204] {strides = array<i32: 2, 1>} : memref<864x16xf32, #tpu.memory_space<vmem>>, vector<8x16xf32>
    %499 = vector.broadcast %98 : vector<1x16xf32> to vector<8x16xf32>
    %500 = arith.mulf %498, %499 : vector<8x16xf32>
    %501 = arith.addf %497, %500 : vector<8x16xf32>
    %c537 = arith.constant 537 : index
    %c0_205 = arith.constant 0 : index
    %502 = tpu.strided_load %arg13[%c537, %c0_205] {strides = array<i32: 2, 1>} : memref<864x16xf32, #tpu.memory_space<vmem>>, vector<8x16xf32>
    %503 = vector.broadcast %99 : vector<1x16xf32> to vector<8x16xf32>
    %504 = arith.mulf %502, %503 : vector<8x16xf32>
    %505 = arith.addf %501, %504 : vector<8x16xf32>
    %506 = vector.broadcast %24 : vector<1x16xf32> to vector<8x16xf32>
    %507 = arith.addf %505, %506 : vector<8x16xf32>
    %cst_206 = arith.constant 0.000000e+00 : f32
    %508 = vector.broadcast %cst_206 : f32 to vector<8x16xf32>
    %509 = arith.maximumf %507, %508 : vector<8x16xf32>
    %cst_207 = arith.constant 0.000000e+00 : f32
    %510 = vector.broadcast %cst_207 : f32 to vector<8x16xf32>
    %c535_208 = arith.constant 535 : index
    %c0_209 = arith.constant 0 : index
    %511 = tpu.strided_load %arg13[%c535_208, %c0_209] {strides = array<i32: 2, 1>} : memref<864x16xf32, #tpu.memory_space<vmem>>, vector<8x16xf32>
    %512 = vector.broadcast %91 : vector<1x16xf32> to vector<8x16xf32>
    %513 = arith.mulf %511, %512 : vector<8x16xf32>
    %514 = arith.addf %510, %513 : vector<8x16xf32>
    %c536_210 = arith.constant 536 : index
    %c0_211 = arith.constant 0 : index
    %515 = tpu.strided_load %arg13[%c536_210, %c0_211] {strides = array<i32: 2, 1>} : memref<864x16xf32, #tpu.memory_space<vmem>>, vector<8x16xf32>
    %516 = vector.broadcast %92 : vector<1x16xf32> to vector<8x16xf32>
    %517 = arith.mulf %515, %516 : vector<8x16xf32>
    %518 = arith.addf %514, %517 : vector<8x16xf32>
    %c537_212 = arith.constant 537 : index
    %c0_213 = arith.constant 0 : index
    %519 = tpu.strided_load %arg13[%c537_212, %c0_213] {strides = array<i32: 2, 1>} : memref<864x16xf32, #tpu.memory_space<vmem>>, vector<8x16xf32>
    %520 = vector.broadcast %93 : vector<1x16xf32> to vector<8x16xf32>
    %521 = arith.mulf %519, %520 : vector<8x16xf32>
    %522 = arith.addf %518, %521 : vector<8x16xf32>
    %c559 = arith.constant 559 : index
    %c0_214 = arith.constant 0 : index
    %523 = tpu.strided_load %arg13[%c559, %c0_214] {strides = array<i32: 2, 1>} : memref<864x16xf32, #tpu.memory_space<vmem>>, vector<8x16xf32>
    %524 = vector.broadcast %94 : vector<1x16xf32> to vector<8x16xf32>
    %525 = arith.mulf %523, %524 : vector<8x16xf32>
    %526 = arith.addf %522, %525 : vector<8x16xf32>
    %c560_215 = arith.constant 560 : index
    %c0_216 = arith.constant 0 : index
    %527 = tpu.strided_load %arg13[%c560_215, %c0_216] {strides = array<i32: 2, 1>} : memref<864x16xf32, #tpu.memory_space<vmem>>, vector<8x16xf32>
    %528 = vector.broadcast %95 : vector<1x16xf32> to vector<8x16xf32>
    %529 = arith.mulf %527, %528 : vector<8x16xf32>
    %530 = arith.addf %526, %529 : vector<8x16xf32>
    %c561 = arith.constant 561 : index
    %c0_217 = arith.constant 0 : index
    %531 = tpu.strided_load %arg13[%c561, %c0_217] {strides = array<i32: 2, 1>} : memref<864x16xf32, #tpu.memory_space<vmem>>, vector<8x16xf32>
    %532 = vector.broadcast %96 : vector<1x16xf32> to vector<8x16xf32>
    %533 = arith.mulf %531, %532 : vector<8x16xf32>
    %534 = arith.addf %530, %533 : vector<8x16xf32>
    %c583 = arith.constant 583 : index
    %c0_218 = arith.constant 0 : index
    %535 = tpu.strided_load %arg13[%c583, %c0_218] {strides = array<i32: 2, 1>} : memref<864x16xf32, #tpu.memory_space<vmem>>, vector<8x16xf32>
    %536 = vector.broadcast %97 : vector<1x16xf32> to vector<8x16xf32>
    %537 = arith.mulf %535, %536 : vector<8x16xf32>
    %538 = arith.addf %534, %537 : vector<8x16xf32>
    %c584_219 = arith.constant 584 : index
    %c0_220 = arith.constant 0 : index
    %539 = tpu.strided_load %arg13[%c584_219, %c0_220] {strides = array<i32: 2, 1>} : memref<864x16xf32, #tpu.memory_space<vmem>>, vector<8x16xf32>
    %540 = vector.broadcast %98 : vector<1x16xf32> to vector<8x16xf32>
    %541 = arith.mulf %539, %540 : vector<8x16xf32>
    %542 = arith.addf %538, %541 : vector<8x16xf32>
    %c585 = arith.constant 585 : index
    %c0_221 = arith.constant 0 : index
    %543 = tpu.strided_load %arg13[%c585, %c0_221] {strides = array<i32: 2, 1>} : memref<864x16xf32, #tpu.memory_space<vmem>>, vector<8x16xf32>
    %544 = vector.broadcast %99 : vector<1x16xf32> to vector<8x16xf32>
    %545 = arith.mulf %543, %544 : vector<8x16xf32>
    %546 = arith.addf %542, %545 : vector<8x16xf32>
    %547 = vector.broadcast %24 : vector<1x16xf32> to vector<8x16xf32>
    %548 = arith.addf %546, %547 : vector<8x16xf32>
    %cst_222 = arith.constant 0.000000e+00 : f32
    %549 = vector.broadcast %cst_222 : f32 to vector<8x16xf32>
    %550 = arith.maximumf %548, %549 : vector<8x16xf32>
    %cst_223 = arith.constant 0.000000e+00 : f32
    %551 = vector.broadcast %cst_223 : f32 to vector<8x16xf32>
    %c583_224 = arith.constant 583 : index
    %c0_225 = arith.constant 0 : index
    %552 = tpu.strided_load %arg13[%c583_224, %c0_225] {strides = array<i32: 2, 1>} : memref<864x16xf32, #tpu.memory_space<vmem>>, vector<8x16xf32>
    %553 = vector.broadcast %91 : vector<1x16xf32> to vector<8x16xf32>
    %554 = arith.mulf %552, %553 : vector<8x16xf32>
    %555 = arith.addf %551, %554 : vector<8x16xf32>
    %c584_226 = arith.constant 584 : index
    %c0_227 = arith.constant 0 : index
    %556 = tpu.strided_load %arg13[%c584_226, %c0_227] {strides = array<i32: 2, 1>} : memref<864x16xf32, #tpu.memory_space<vmem>>, vector<8x16xf32>
    %557 = vector.broadcast %92 : vector<1x16xf32> to vector<8x16xf32>
    %558 = arith.mulf %556, %557 : vector<8x16xf32>
    %559 = arith.addf %555, %558 : vector<8x16xf32>
    %c585_228 = arith.constant 585 : index
    %c0_229 = arith.constant 0 : index
    %560 = tpu.strided_load %arg13[%c585_228, %c0_229] {strides = array<i32: 2, 1>} : memref<864x16xf32, #tpu.memory_space<vmem>>, vector<8x16xf32>
    %561 = vector.broadcast %93 : vector<1x16xf32> to vector<8x16xf32>
    %562 = arith.mulf %560, %561 : vector<8x16xf32>
    %563 = arith.addf %559, %562 : vector<8x16xf32>
    %c607 = arith.constant 607 : index
    %c0_230 = arith.constant 0 : index
    %564 = tpu.strided_load %arg13[%c607, %c0_230] {strides = array<i32: 2, 1>} : memref<864x16xf32, #tpu.memory_space<vmem>>, vector<8x16xf32>
    %565 = vector.broadcast %94 : vector<1x16xf32> to vector<8x16xf32>
    %566 = arith.mulf %564, %565 : vector<8x16xf32>
    %567 = arith.addf %563, %566 : vector<8x16xf32>
    %c608_231 = arith.constant 608 : index
    %c0_232 = arith.constant 0 : index
    %568 = tpu.strided_load %arg13[%c608_231, %c0_232] {strides = array<i32: 2, 1>} : memref<864x16xf32, #tpu.memory_space<vmem>>, vector<8x16xf32>
    %569 = vector.broadcast %95 : vector<1x16xf32> to vector<8x16xf32>
    %570 = arith.mulf %568, %569 : vector<8x16xf32>
    %571 = arith.addf %567, %570 : vector<8x16xf32>
    %c609 = arith.constant 609 : index
    %c0_233 = arith.constant 0 : index
    %572 = tpu.strided_load %arg13[%c609, %c0_233] {strides = array<i32: 2, 1>} : memref<864x16xf32, #tpu.memory_space<vmem>>, vector<8x16xf32>
    %573 = vector.broadcast %96 : vector<1x16xf32> to vector<8x16xf32>
    %574 = arith.mulf %572, %573 : vector<8x16xf32>
    %575 = arith.addf %571, %574 : vector<8x16xf32>
    %c631 = arith.constant 631 : index
    %c0_234 = arith.constant 0 : index
    %576 = tpu.strided_load %arg13[%c631, %c0_234] {strides = array<i32: 2, 1>} : memref<864x16xf32, #tpu.memory_space<vmem>>, vector<8x16xf32>
    %577 = vector.broadcast %97 : vector<1x16xf32> to vector<8x16xf32>
    %578 = arith.mulf %576, %577 : vector<8x16xf32>
    %579 = arith.addf %575, %578 : vector<8x16xf32>
    %c632_235 = arith.constant 632 : index
    %c0_236 = arith.constant 0 : index
    %580 = tpu.strided_load %arg13[%c632_235, %c0_236] {strides = array<i32: 2, 1>} : memref<864x16xf32, #tpu.memory_space<vmem>>, vector<8x16xf32>
    %581 = vector.broadcast %98 : vector<1x16xf32> to vector<8x16xf32>
    %582 = arith.mulf %580, %581 : vector<8x16xf32>
    %583 = arith.addf %579, %582 : vector<8x16xf32>
    %c633 = arith.constant 633 : index
    %c0_237 = arith.constant 0 : index
    %584 = tpu.strided_load %arg13[%c633, %c0_237] {strides = array<i32: 2, 1>} : memref<864x16xf32, #tpu.memory_space<vmem>>, vector<8x16xf32>
    %585 = vector.broadcast %99 : vector<1x16xf32> to vector<8x16xf32>
    %586 = arith.mulf %584, %585 : vector<8x16xf32>
    %587 = arith.addf %583, %586 : vector<8x16xf32>
    %588 = vector.broadcast %24 : vector<1x16xf32> to vector<8x16xf32>
    %589 = arith.addf %587, %588 : vector<8x16xf32>
    %cst_238 = arith.constant 0.000000e+00 : f32
    %590 = vector.broadcast %cst_238 : f32 to vector<8x16xf32>
    %591 = arith.maximumf %589, %590 : vector<8x16xf32>
    %cst_239 = arith.constant 0.000000e+00 : f32
    %592 = vector.broadcast %cst_239 : f32 to vector<8x16xf32>
    %c631_240 = arith.constant 631 : index
    %c0_241 = arith.constant 0 : index
    %593 = tpu.strided_load %arg13[%c631_240, %c0_241] {strides = array<i32: 2, 1>} : memref<864x16xf32, #tpu.memory_space<vmem>>, vector<8x16xf32>
    %594 = vector.broadcast %91 : vector<1x16xf32> to vector<8x16xf32>
    %595 = arith.mulf %593, %594 : vector<8x16xf32>
    %596 = arith.addf %592, %595 : vector<8x16xf32>
    %c632_242 = arith.constant 632 : index
    %c0_243 = arith.constant 0 : index
    %597 = tpu.strided_load %arg13[%c632_242, %c0_243] {strides = array<i32: 2, 1>} : memref<864x16xf32, #tpu.memory_space<vmem>>, vector<8x16xf32>
    %598 = vector.broadcast %92 : vector<1x16xf32> to vector<8x16xf32>
    %599 = arith.mulf %597, %598 : vector<8x16xf32>
    %600 = arith.addf %596, %599 : vector<8x16xf32>
    %c633_244 = arith.constant 633 : index
    %c0_245 = arith.constant 0 : index
    %601 = tpu.strided_load %arg13[%c633_244, %c0_245] {strides = array<i32: 2, 1>} : memref<864x16xf32, #tpu.memory_space<vmem>>, vector<8x16xf32>
    %602 = vector.broadcast %93 : vector<1x16xf32> to vector<8x16xf32>
    %603 = arith.mulf %601, %602 : vector<8x16xf32>
    %604 = arith.addf %600, %603 : vector<8x16xf32>
    %c655 = arith.constant 655 : index
    %c0_246 = arith.constant 0 : index
    %605 = tpu.strided_load %arg13[%c655, %c0_246] {strides = array<i32: 2, 1>} : memref<864x16xf32, #tpu.memory_space<vmem>>, vector<8x16xf32>
    %606 = vector.broadcast %94 : vector<1x16xf32> to vector<8x16xf32>
    %607 = arith.mulf %605, %606 : vector<8x16xf32>
    %608 = arith.addf %604, %607 : vector<8x16xf32>
    %c656_247 = arith.constant 656 : index
    %c0_248 = arith.constant 0 : index
    %609 = tpu.strided_load %arg13[%c656_247, %c0_248] {strides = array<i32: 2, 1>} : memref<864x16xf32, #tpu.memory_space<vmem>>, vector<8x16xf32>
    %610 = vector.broadcast %95 : vector<1x16xf32> to vector<8x16xf32>
    %611 = arith.mulf %609, %610 : vector<8x16xf32>
    %612 = arith.addf %608, %611 : vector<8x16xf32>
    %c657 = arith.constant 657 : index
    %c0_249 = arith.constant 0 : index
    %613 = tpu.strided_load %arg13[%c657, %c0_249] {strides = array<i32: 2, 1>} : memref<864x16xf32, #tpu.memory_space<vmem>>, vector<8x16xf32>
    %614 = vector.broadcast %96 : vector<1x16xf32> to vector<8x16xf32>
    %615 = arith.mulf %613, %614 : vector<8x16xf32>
    %616 = arith.addf %612, %615 : vector<8x16xf32>
    %c679 = arith.constant 679 : index
    %c0_250 = arith.constant 0 : index
    %617 = tpu.strided_load %arg13[%c679, %c0_250] {strides = array<i32: 2, 1>} : memref<864x16xf32, #tpu.memory_space<vmem>>, vector<8x16xf32>
    %618 = vector.broadcast %97 : vector<1x16xf32> to vector<8x16xf32>
    %619 = arith.mulf %617, %618 : vector<8x16xf32>
    %620 = arith.addf %616, %619 : vector<8x16xf32>
    %c680_251 = arith.constant 680 : index
    %c0_252 = arith.constant 0 : index
    %621 = tpu.strided_load %arg13[%c680_251, %c0_252] {strides = array<i32: 2, 1>} : memref<864x16xf32, #tpu.memory_space<vmem>>, vector<8x16xf32>
    %622 = vector.broadcast %98 : vector<1x16xf32> to vector<8x16xf32>
    %623 = arith.mulf %621, %622 : vector<8x16xf32>
    %624 = arith.addf %620, %623 : vector<8x16xf32>
    %c681 = arith.constant 681 : index
    %c0_253 = arith.constant 0 : index
    %625 = tpu.strided_load %arg13[%c681, %c0_253] {strides = array<i32: 2, 1>} : memref<864x16xf32, #tpu.memory_space<vmem>>, vector<8x16xf32>
    %626 = vector.broadcast %99 : vector<1x16xf32> to vector<8x16xf32>
    %627 = arith.mulf %625, %626 : vector<8x16xf32>
    %628 = arith.addf %624, %627 : vector<8x16xf32>
    %629 = vector.broadcast %24 : vector<1x16xf32> to vector<8x16xf32>
    %630 = arith.addf %628, %629 : vector<8x16xf32>
    %cst_254 = arith.constant 0.000000e+00 : f32
    %631 = vector.broadcast %cst_254 : f32 to vector<8x16xf32>
    %632 = arith.maximumf %630, %631 : vector<8x16xf32>
    %cst_255 = arith.constant 0.000000e+00 : f32
    %633 = vector.broadcast %cst_255 : f32 to vector<8x16xf32>
    %c679_256 = arith.constant 679 : index
    %c0_257 = arith.constant 0 : index
    %634 = tpu.strided_load %arg13[%c679_256, %c0_257] {strides = array<i32: 2, 1>} : memref<864x16xf32, #tpu.memory_space<vmem>>, vector<8x16xf32>
    %635 = vector.broadcast %91 : vector<1x16xf32> to vector<8x16xf32>
    %636 = arith.mulf %634, %635 : vector<8x16xf32>
    %637 = arith.addf %633, %636 : vector<8x16xf32>
    %c680_258 = arith.constant 680 : index
    %c0_259 = arith.constant 0 : index
    %638 = tpu.strided_load %arg13[%c680_258, %c0_259] {strides = array<i32: 2, 1>} : memref<864x16xf32, #tpu.memory_space<vmem>>, vector<8x16xf32>
    %639 = vector.broadcast %92 : vector<1x16xf32> to vector<8x16xf32>
    %640 = arith.mulf %638, %639 : vector<8x16xf32>
    %641 = arith.addf %637, %640 : vector<8x16xf32>
    %c681_260 = arith.constant 681 : index
    %c0_261 = arith.constant 0 : index
    %642 = tpu.strided_load %arg13[%c681_260, %c0_261] {strides = array<i32: 2, 1>} : memref<864x16xf32, #tpu.memory_space<vmem>>, vector<8x16xf32>
    %643 = vector.broadcast %93 : vector<1x16xf32> to vector<8x16xf32>
    %644 = arith.mulf %642, %643 : vector<8x16xf32>
    %645 = arith.addf %641, %644 : vector<8x16xf32>
    %c703 = arith.constant 703 : index
    %c0_262 = arith.constant 0 : index
    %646 = tpu.strided_load %arg13[%c703, %c0_262] {strides = array<i32: 2, 1>} : memref<864x16xf32, #tpu.memory_space<vmem>>, vector<8x16xf32>
    %647 = vector.broadcast %94 : vector<1x16xf32> to vector<8x16xf32>
    %648 = arith.mulf %646, %647 : vector<8x16xf32>
    %649 = arith.addf %645, %648 : vector<8x16xf32>
    %c704_263 = arith.constant 704 : index
    %c0_264 = arith.constant 0 : index
    %650 = tpu.strided_load %arg13[%c704_263, %c0_264] {strides = array<i32: 2, 1>} : memref<864x16xf32, #tpu.memory_space<vmem>>, vector<8x16xf32>
    %651 = vector.broadcast %95 : vector<1x16xf32> to vector<8x16xf32>
    %652 = arith.mulf %650, %651 : vector<8x16xf32>
    %653 = arith.addf %649, %652 : vector<8x16xf32>
    %c705 = arith.constant 705 : index
    %c0_265 = arith.constant 0 : index
    %654 = tpu.strided_load %arg13[%c705, %c0_265] {strides = array<i32: 2, 1>} : memref<864x16xf32, #tpu.memory_space<vmem>>, vector<8x16xf32>
    %655 = vector.broadcast %96 : vector<1x16xf32> to vector<8x16xf32>
    %656 = arith.mulf %654, %655 : vector<8x16xf32>
    %657 = arith.addf %653, %656 : vector<8x16xf32>
    %c727 = arith.constant 727 : index
    %c0_266 = arith.constant 0 : index
    %658 = tpu.strided_load %arg13[%c727, %c0_266] {strides = array<i32: 2, 1>} : memref<864x16xf32, #tpu.memory_space<vmem>>, vector<8x16xf32>
    %659 = vector.broadcast %97 : vector<1x16xf32> to vector<8x16xf32>
    %660 = arith.mulf %658, %659 : vector<8x16xf32>
    %661 = arith.addf %657, %660 : vector<8x16xf32>
    %c728_267 = arith.constant 728 : index
    %c0_268 = arith.constant 0 : index
    %662 = tpu.strided_load %arg13[%c728_267, %c0_268] {strides = array<i32: 2, 1>} : memref<864x16xf32, #tpu.memory_space<vmem>>, vector<8x16xf32>
    %663 = vector.broadcast %98 : vector<1x16xf32> to vector<8x16xf32>
    %664 = arith.mulf %662, %663 : vector<8x16xf32>
    %665 = arith.addf %661, %664 : vector<8x16xf32>
    %c729 = arith.constant 729 : index
    %c0_269 = arith.constant 0 : index
    %666 = tpu.strided_load %arg13[%c729, %c0_269] {strides = array<i32: 2, 1>} : memref<864x16xf32, #tpu.memory_space<vmem>>, vector<8x16xf32>
    %667 = vector.broadcast %99 : vector<1x16xf32> to vector<8x16xf32>
    %668 = arith.mulf %666, %667 : vector<8x16xf32>
    %669 = arith.addf %665, %668 : vector<8x16xf32>
    %670 = vector.broadcast %24 : vector<1x16xf32> to vector<8x16xf32>
    %671 = arith.addf %669, %670 : vector<8x16xf32>
    %cst_270 = arith.constant 0.000000e+00 : f32
    %672 = vector.broadcast %cst_270 : f32 to vector<8x16xf32>
    %673 = arith.maximumf %671, %672 : vector<8x16xf32>
    %cst_271 = arith.constant 0.000000e+00 : f32
    %674 = vector.broadcast %cst_271 : f32 to vector<8x16xf32>
    %c727_272 = arith.constant 727 : index
    %c0_273 = arith.constant 0 : index
    %675 = tpu.strided_load %arg13[%c727_272, %c0_273] {strides = array<i32: 2, 1>} : memref<864x16xf32, #tpu.memory_space<vmem>>, vector<8x16xf32>
    %676 = vector.broadcast %91 : vector<1x16xf32> to vector<8x16xf32>
    %677 = arith.mulf %675, %676 : vector<8x16xf32>
    %678 = arith.addf %674, %677 : vector<8x16xf32>
    %c728_274 = arith.constant 728 : index
    %c0_275 = arith.constant 0 : index
    %679 = tpu.strided_load %arg13[%c728_274, %c0_275] {strides = array<i32: 2, 1>} : memref<864x16xf32, #tpu.memory_space<vmem>>, vector<8x16xf32>
    %680 = vector.broadcast %92 : vector<1x16xf32> to vector<8x16xf32>
    %681 = arith.mulf %679, %680 : vector<8x16xf32>
    %682 = arith.addf %678, %681 : vector<8x16xf32>
    %c729_276 = arith.constant 729 : index
    %c0_277 = arith.constant 0 : index
    %683 = tpu.strided_load %arg13[%c729_276, %c0_277] {strides = array<i32: 2, 1>} : memref<864x16xf32, #tpu.memory_space<vmem>>, vector<8x16xf32>
    %684 = vector.broadcast %93 : vector<1x16xf32> to vector<8x16xf32>
    %685 = arith.mulf %683, %684 : vector<8x16xf32>
    %686 = arith.addf %682, %685 : vector<8x16xf32>
    %c751 = arith.constant 751 : index
    %c0_278 = arith.constant 0 : index
    %687 = tpu.strided_load %arg13[%c751, %c0_278] {strides = array<i32: 2, 1>} : memref<864x16xf32, #tpu.memory_space<vmem>>, vector<8x16xf32>
    %688 = vector.broadcast %94 : vector<1x16xf32> to vector<8x16xf32>
    %689 = arith.mulf %687, %688 : vector<8x16xf32>
    %690 = arith.addf %686, %689 : vector<8x16xf32>
    %c752_279 = arith.constant 752 : index
    %c0_280 = arith.constant 0 : index
    %691 = tpu.strided_load %arg13[%c752_279, %c0_280] {strides = array<i32: 2, 1>} : memref<864x16xf32, #tpu.memory_space<vmem>>, vector<8x16xf32>
    %692 = vector.broadcast %95 : vector<1x16xf32> to vector<8x16xf32>
    %693 = arith.mulf %691, %692 : vector<8x16xf32>
    %694 = arith.addf %690, %693 : vector<8x16xf32>
    %c753 = arith.constant 753 : index
    %c0_281 = arith.constant 0 : index
    %695 = tpu.strided_load %arg13[%c753, %c0_281] {strides = array<i32: 2, 1>} : memref<864x16xf32, #tpu.memory_space<vmem>>, vector<8x16xf32>
    %696 = vector.broadcast %96 : vector<1x16xf32> to vector<8x16xf32>
    %697 = arith.mulf %695, %696 : vector<8x16xf32>
    %698 = arith.addf %694, %697 : vector<8x16xf32>
    %c775 = arith.constant 775 : index
    %c0_282 = arith.constant 0 : index
    %699 = tpu.strided_load %arg13[%c775, %c0_282] {strides = array<i32: 2, 1>} : memref<864x16xf32, #tpu.memory_space<vmem>>, vector<8x16xf32>
    %700 = vector.broadcast %97 : vector<1x16xf32> to vector<8x16xf32>
    %701 = arith.mulf %699, %700 : vector<8x16xf32>
    %702 = arith.addf %698, %701 : vector<8x16xf32>
    %c776_283 = arith.constant 776 : index
    %c0_284 = arith.constant 0 : index
    %703 = tpu.strided_load %arg13[%c776_283, %c0_284] {strides = array<i32: 2, 1>} : memref<864x16xf32, #tpu.memory_space<vmem>>, vector<8x16xf32>
    %704 = vector.broadcast %98 : vector<1x16xf32> to vector<8x16xf32>
    %705 = arith.mulf %703, %704 : vector<8x16xf32>
    %706 = arith.addf %702, %705 : vector<8x16xf32>
    %c777 = arith.constant 777 : index
    %c0_285 = arith.constant 0 : index
    %707 = tpu.strided_load %arg13[%c777, %c0_285] {strides = array<i32: 2, 1>} : memref<864x16xf32, #tpu.memory_space<vmem>>, vector<8x16xf32>
    %708 = vector.broadcast %99 : vector<1x16xf32> to vector<8x16xf32>
    %709 = arith.mulf %707, %708 : vector<8x16xf32>
    %710 = arith.addf %706, %709 : vector<8x16xf32>
    %711 = vector.broadcast %24 : vector<1x16xf32> to vector<8x16xf32>
    %712 = arith.addf %710, %711 : vector<8x16xf32>
    %cst_286 = arith.constant 0.000000e+00 : f32
    %713 = vector.broadcast %cst_286 : f32 to vector<8x16xf32>
    %714 = arith.maximumf %712, %713 : vector<8x16xf32>
    %cst_287 = arith.constant 0.000000e+00 : f32
    %715 = vector.broadcast %cst_287 : f32 to vector<8x16xf32>
    %c775_288 = arith.constant 775 : index
    %c0_289 = arith.constant 0 : index
    %716 = tpu.strided_load %arg13[%c775_288, %c0_289] {strides = array<i32: 2, 1>} : memref<864x16xf32, #tpu.memory_space<vmem>>, vector<8x16xf32>
    %717 = vector.broadcast %91 : vector<1x16xf32> to vector<8x16xf32>
    %718 = arith.mulf %716, %717 : vector<8x16xf32>
    %719 = arith.addf %715, %718 : vector<8x16xf32>
    %c776_290 = arith.constant 776 : index
    %c0_291 = arith.constant 0 : index
    %720 = tpu.strided_load %arg13[%c776_290, %c0_291] {strides = array<i32: 2, 1>} : memref<864x16xf32, #tpu.memory_space<vmem>>, vector<8x16xf32>
    %721 = vector.broadcast %92 : vector<1x16xf32> to vector<8x16xf32>
    %722 = arith.mulf %720, %721 : vector<8x16xf32>
    %723 = arith.addf %719, %722 : vector<8x16xf32>
    %c777_292 = arith.constant 777 : index
    %c0_293 = arith.constant 0 : index
    %724 = tpu.strided_load %arg13[%c777_292, %c0_293] {strides = array<i32: 2, 1>} : memref<864x16xf32, #tpu.memory_space<vmem>>, vector<8x16xf32>
    %725 = vector.broadcast %93 : vector<1x16xf32> to vector<8x16xf32>
    %726 = arith.mulf %724, %725 : vector<8x16xf32>
    %727 = arith.addf %723, %726 : vector<8x16xf32>
    %c799 = arith.constant 799 : index
    %c0_294 = arith.constant 0 : index
    %728 = tpu.strided_load %arg13[%c799, %c0_294] {strides = array<i32: 2, 1>} : memref<864x16xf32, #tpu.memory_space<vmem>>, vector<8x16xf32>
    %729 = vector.broadcast %94 : vector<1x16xf32> to vector<8x16xf32>
    %730 = arith.mulf %728, %729 : vector<8x16xf32>
    %731 = arith.addf %727, %730 : vector<8x16xf32>
    %c800_295 = arith.constant 800 : index
    %c0_296 = arith.constant 0 : index
    %732 = tpu.strided_load %arg13[%c800_295, %c0_296] {strides = array<i32: 2, 1>} : memref<864x16xf32, #tpu.memory_space<vmem>>, vector<8x16xf32>
    %733 = vector.broadcast %95 : vector<1x16xf32> to vector<8x16xf32>
    %734 = arith.mulf %732, %733 : vector<8x16xf32>
    %735 = arith.addf %731, %734 : vector<8x16xf32>
    %c801 = arith.constant 801 : index
    %c0_297 = arith.constant 0 : index
    %736 = tpu.strided_load %arg13[%c801, %c0_297] {strides = array<i32: 2, 1>} : memref<864x16xf32, #tpu.memory_space<vmem>>, vector<8x16xf32>
    %737 = vector.broadcast %96 : vector<1x16xf32> to vector<8x16xf32>
    %738 = arith.mulf %736, %737 : vector<8x16xf32>
    %739 = arith.addf %735, %738 : vector<8x16xf32>
    %c823 = arith.constant 823 : index
    %c0_298 = arith.constant 0 : index
    %740 = tpu.strided_load %arg13[%c823, %c0_298] {strides = array<i32: 2, 1>} : memref<864x16xf32, #tpu.memory_space<vmem>>, vector<8x16xf32>
    %741 = vector.broadcast %97 : vector<1x16xf32> to vector<8x16xf32>
    %742 = arith.mulf %740, %741 : vector<8x16xf32>
    %743 = arith.addf %739, %742 : vector<8x16xf32>
    %c824_299 = arith.constant 824 : index
    %c0_300 = arith.constant 0 : index
    %744 = tpu.strided_load %arg13[%c824_299, %c0_300] {strides = array<i32: 2, 1>} : memref<864x16xf32, #tpu.memory_space<vmem>>, vector<8x16xf32>
    %745 = vector.broadcast %98 : vector<1x16xf32> to vector<8x16xf32>
    %746 = arith.mulf %744, %745 : vector<8x16xf32>
    %747 = arith.addf %743, %746 : vector<8x16xf32>
    %c825 = arith.constant 825 : index
    %c0_301 = arith.constant 0 : index
    %748 = tpu.strided_load %arg13[%c825, %c0_301] {strides = array<i32: 2, 1>} : memref<864x16xf32, #tpu.memory_space<vmem>>, vector<8x16xf32>
    %749 = vector.broadcast %99 : vector<1x16xf32> to vector<8x16xf32>
    %750 = arith.mulf %748, %749 : vector<8x16xf32>
    %751 = arith.addf %747, %750 : vector<8x16xf32>
    %752 = vector.broadcast %24 : vector<1x16xf32> to vector<8x16xf32>
    %753 = arith.addf %751, %752 : vector<8x16xf32>
    %cst_302 = arith.constant 0.000000e+00 : f32
    %754 = vector.broadcast %cst_302 : f32 to vector<8x16xf32>
    %755 = arith.maximumf %753, %754 : vector<8x16xf32>
    %756 = tpu.concatenate %140, %181, %222, %263, %304, %345, %386, %427, %468, %509, %550, %591, %632, %673, %714, %755 in 0 : vector<8x16xf32>, vector<8x16xf32>, vector<8x16xf32>, vector<8x16xf32>, vector<8x16xf32>, vector<8x16xf32>, vector<8x16xf32>, vector<8x16xf32>, vector<8x16xf32>, vector<8x16xf32>, vector<8x16xf32>, vector<8x16xf32>, vector<8x16xf32>, vector<8x16xf32>, vector<8x16xf32>, vector<8x16xf32> -> vector<128x16xf32>
    %c0_303 = arith.constant 0 : index
    %c0_304 = arith.constant 0 : index
    %757 = vector.load %arg5[%c0_303, %c0_304] : memref<16x16xf32, #tpu.memory_space<vmem>>, vector<16x16xf32>
    %cst_305 = arith.constant dense<0.000000e+00> : vector<128x16xf32>
    %758 = tpu.matmul %756, %757, %cst_305 {dimension_numbers = #tpu.dot_dimension_numbers<[1], [0], [0], [1], [0, 0, 1, 1], [], []>} : vector<128x16xf32>, vector<16x16xf32>, vector<128x16xf32> -> vector<128x16xf32>
    %c3 = arith.constant 3 : index
    %c0_306 = arith.constant 0 : index
    %759 = vector.load %arg11[%c3, %c0_306] : memref<9x128xf32, #tpu.memory_space<vmem>>, vector<1x16xf32>
    %760 = vector.broadcast %759 : vector<1x16xf32> to vector<128x16xf32>
    %761 = arith.addf %758, %760 : vector<128x16xf32>
    %c0_307 = arith.constant 0 : index
    %c0_308 = arith.constant 0 : index
    %762 = vector.load %arg6[%c0_307, %c0_308] : memref<16x4xf32, #tpu.memory_space<vmem>>, vector<16x4xf32>
    %c4 = arith.constant 4 : index
    %c0_309 = arith.constant 0 : index
    %763 = vector.load %arg11[%c4, %c0_309] : memref<9x128xf32, #tpu.memory_space<vmem>>, vector<1x4xf32>
    %c0_310 = arith.constant 0 : index
    %c0_311 = arith.constant 0 : index
    %764 = vector.load %arg7[%c0_310, %c0_311] : memref<4x16xf32, #tpu.memory_space<vmem>>, vector<4x16xf32>
    %c5 = arith.constant 5 : index
    %c0_312 = arith.constant 0 : index
    %765 = vector.load %arg11[%c5, %c0_312] : memref<9x128xf32, #tpu.memory_space<vmem>>, vector<1x16xf32>
    %766 = vector.extract_strided_slice %761 {offsets = [0, 0], sizes = [64, 16], strides = [1, 1]} : vector<128x16xf32> to vector<64x16xf32>
    %cst_313 = arith.constant dense<0.000000e+00> : vector<16xf32>
    %767 = vector.multi_reduction <add>, %766, %cst_313 [0] : vector<64x16xf32> to vector<16xf32>
    %768 = vector.shape_cast %767 : vector<16xf32> to vector<1x16xf32>
    %cst_314 = arith.constant 6.400000e+01 : f32
    %769 = vector.broadcast %cst_314 : f32 to vector<1x16xf32>
    %770 = arith.divf %768, %769 : vector<1x16xf32>
    %771 = vector.extract_strided_slice %761 {offsets = [64, 0], sizes = [64, 16], strides = [1, 1]} : vector<128x16xf32> to vector<64x16xf32>
    %cst_315 = arith.constant dense<0.000000e+00> : vector<16xf32>
    %772 = vector.multi_reduction <add>, %771, %cst_315 [0] : vector<64x16xf32> to vector<16xf32>
    %773 = vector.shape_cast %772 : vector<16xf32> to vector<1x16xf32>
    %cst_316 = arith.constant 6.400000e+01 : f32
    %774 = vector.broadcast %cst_316 : f32 to vector<1x16xf32>
    %775 = arith.divf %773, %774 : vector<1x16xf32>
    %776 = tpu.concatenate %770, %775 in 0 : vector<1x16xf32>, vector<1x16xf32> -> vector<2x16xf32>
    %cst_317 = arith.constant dense<0.000000e+00> : vector<2x4xf32>
    %777 = tpu.matmul %776, %762, %cst_317 {dimension_numbers = #tpu.dot_dimension_numbers<[1], [0], [0], [1], [0, 0, 1, 1], [], []>} : vector<2x16xf32>, vector<16x4xf32>, vector<2x4xf32> -> vector<2x4xf32>
    %778 = vector.broadcast %763 : vector<1x4xf32> to vector<2x4xf32>
    %779 = arith.addf %777, %778 : vector<2x4xf32>
    %cst_318 = arith.constant 0.000000e+00 : f32
    %780 = vector.broadcast %cst_318 : f32 to vector<2x4xf32>
    %781 = arith.maximumf %779, %780 : vector<2x4xf32>
    %cst_319 = arith.constant dense<0.000000e+00> : vector<2x16xf32>
    %782 = tpu.matmul %781, %764, %cst_319 {dimension_numbers = #tpu.dot_dimension_numbers<[1], [0], [0], [1], [0, 0, 1, 1], [], []>} : vector<2x4xf32>, vector<4x16xf32>, vector<2x16xf32> -> vector<2x16xf32>
    %783 = vector.broadcast %765 : vector<1x16xf32> to vector<2x16xf32>
    %784 = arith.addf %782, %783 : vector<2x16xf32>
    %cst_320 = arith.constant 3.000000e+00 : f32
    %785 = vector.broadcast %cst_320 : f32 to vector<2x16xf32>
    %786 = arith.addf %784, %785 : vector<2x16xf32>
    %cst_321 = arith.constant 0.000000e+00 : f32
    %cst_322 = arith.constant 6.000000e+00 : f32
    %787 = vector.broadcast %cst_321 : f32 to vector<2x16xf32>
    %788 = arith.maximumf %787, %786 : vector<2x16xf32>
    %789 = vector.broadcast %cst_322 : f32 to vector<2x16xf32>
    %790 = arith.minimumf %789, %788 : vector<2x16xf32>
    %cst_323 = arith.constant 0.166666672 : f32
    %791 = vector.broadcast %cst_323 : f32 to vector<2x16xf32>
    %792 = arith.mulf %790, %791 : vector<2x16xf32>
    %793 = vector.extract_strided_slice %792 {offsets = [0, 0], sizes = [1, 16], strides = [1, 1]} : vector<2x16xf32> to vector<1x16xf32>
    %794 = vector.shape_cast %793 : vector<1x16xf32> to vector<1x16xf32>
    %795 = vector.broadcast %794 : vector<1x16xf32> to vector<64x16xf32>
    %796 = vector.extract_strided_slice %792 {offsets = [1, 0], sizes = [1, 16], strides = [1, 1]} : vector<2x16xf32> to vector<1x16xf32>
    %797 = vector.shape_cast %796 : vector<1x16xf32> to vector<1x16xf32>
    %798 = vector.broadcast %797 : vector<1x16xf32> to vector<64x16xf32>
    %799 = tpu.concatenate %795, %798 in 0 : vector<64x16xf32>, vector<64x16xf32> -> vector<128x16xf32>
    %800 = arith.mulf %761, %799 : vector<128x16xf32>
    %c0_324 = arith.constant 0 : index
    %c0_325 = arith.constant 0 : index
    %801 = vector.load %arg8[%c0_324, %c0_325] : memref<16x96xf32, #tpu.memory_space<vmem>>, vector<16x96xf32>
    %cst_326 = arith.constant dense<0.000000e+00> : vector<128x96xf32>
    %802 = tpu.matmul %800, %801, %cst_326 {dimension_numbers = #tpu.dot_dimension_numbers<[1], [0], [0], [1], [0, 0, 1, 1], [], []>} : vector<128x16xf32>, vector<16x96xf32>, vector<128x96xf32> -> vector<128x96xf32>
    %c6 = arith.constant 6 : index
    %c0_327 = arith.constant 0 : index
    %803 = vector.load %arg11[%c6, %c0_327] : memref<9x128xf32, #tpu.memory_space<vmem>>, vector<1x96xf32>
    %804 = vector.broadcast %803 : vector<1x96xf32> to vector<128x96xf32>
    %805 = arith.addf %802, %804 : vector<128x96xf32>
    %cst_328 = arith.constant 0.000000e+00 : f32
    %806 = vector.broadcast %cst_328 : f32 to vector<128x96xf32>
    %807 = arith.maximumf %805, %806 : vector<128x96xf32>
    %c0_329 = arith.constant 0 : index
    %c0_330 = arith.constant 0 : index
    %808 = vector.load %arg9[%c0_329, %c0_330] : memref<9x96xf32, #tpu.memory_space<vmem>>, vector<9x96xf32>
    %c7_331 = arith.constant 7 : index
    %c0_332 = arith.constant 0 : index
    %809 = vector.load %arg11[%c7_331, %c0_332] : memref<9x128xf32, #tpu.memory_space<vmem>>, vector<1x96xf32>
    %cst_333 = arith.constant 0.000000e+00 : f32
    %810 = vector.broadcast %cst_333 : f32 to vector<320x96xf32>
    %c0_334 = arith.constant 0 : index
    %c0_335 = arith.constant 0 : index
    %811 = vector.load %arg14[%c0_334, %c0_335] : memref<320x96xf32, #tpu.memory_space<vmem>>, vector<320x96xf32>
    tpu.vector_store %arg14[%c0_334, %c0_335], %810 {strides = array<i32>} : memref<320x96xf32, #tpu.memory_space<vmem>>, vector<320x96xf32>,
    %812 = vector.extract_strided_slice %807 {offsets = [0, 0], sizes = [8, 96], strides = [1, 1]} : vector<128x96xf32> to vector<8x96xf32>
    %c24 = arith.constant 24 : index
    %c0_336 = arith.constant 0 : index
    %813 = vector.load %arg14[%c24, %c0_336] : memref<320x96xf32, #tpu.memory_space<vmem>>, vector<8x96xf32>
    tpu.vector_store %arg14[%c24, %c0_336], %812 {strides = array<i32>} : memref<320x96xf32, #tpu.memory_space<vmem>>, vector<8x96xf32>,
    %814 = vector.extract_strided_slice %807 {offsets = [8, 0], sizes = [8, 96], strides = [1, 1]} : vector<128x96xf32> to vector<8x96xf32>
    %c40 = arith.constant 40 : index
    %c0_337 = arith.constant 0 : index
    %815 = vector.load %arg14[%c40, %c0_337] : memref<320x96xf32, #tpu.memory_space<vmem>>, vector<8x96xf32>
    tpu.vector_store %arg14[%c40, %c0_337], %814 {strides = array<i32>} : memref<320x96xf32, #tpu.memory_space<vmem>>, vector<8x96xf32>,
    %816 = vector.extract_strided_slice %807 {offsets = [16, 0], sizes = [8, 96], strides = [1, 1]} : vector<128x96xf32> to vector<8x96xf32>
    %c56_338 = arith.constant 56 : index
    %c0_339 = arith.constant 0 : index
    %817 = vector.load %arg14[%c56_338, %c0_339] : memref<320x96xf32, #tpu.memory_space<vmem>>, vector<8x96xf32>
    tpu.vector_store %arg14[%c56_338, %c0_339], %816 {strides = array<i32>} : memref<320x96xf32, #tpu.memory_space<vmem>>, vector<8x96xf32>,
    %818 = vector.extract_strided_slice %807 {offsets = [24, 0], sizes = [8, 96], strides = [1, 1]} : vector<128x96xf32> to vector<8x96xf32>
    %c72 = arith.constant 72 : index
    %c0_340 = arith.constant 0 : index
    %819 = vector.load %arg14[%c72, %c0_340] : memref<320x96xf32, #tpu.memory_space<vmem>>, vector<8x96xf32>
    tpu.vector_store %arg14[%c72, %c0_340], %818 {strides = array<i32>} : memref<320x96xf32, #tpu.memory_space<vmem>>, vector<8x96xf32>,
    %820 = vector.extract_strided_slice %807 {offsets = [32, 0], sizes = [8, 96], strides = [1, 1]} : vector<128x96xf32> to vector<8x96xf32>
    %c88 = arith.constant 88 : index
    %c0_341 = arith.constant 0 : index
    %821 = vector.load %arg14[%c88, %c0_341] : memref<320x96xf32, #tpu.memory_space<vmem>>, vector<8x96xf32>
    tpu.vector_store %arg14[%c88, %c0_341], %820 {strides = array<i32>} : memref<320x96xf32, #tpu.memory_space<vmem>>, vector<8x96xf32>,
    %822 = vector.extract_strided_slice %807 {offsets = [40, 0], sizes = [8, 96], strides = [1, 1]} : vector<128x96xf32> to vector<8x96xf32>
    %c104_342 = arith.constant 104 : index
    %c0_343 = arith.constant 0 : index
    %823 = vector.load %arg14[%c104_342, %c0_343] : memref<320x96xf32, #tpu.memory_space<vmem>>, vector<8x96xf32>
    tpu.vector_store %arg14[%c104_342, %c0_343], %822 {strides = array<i32>} : memref<320x96xf32, #tpu.memory_space<vmem>>, vector<8x96xf32>,
    %824 = vector.extract_strided_slice %807 {offsets = [48, 0], sizes = [8, 96], strides = [1, 1]} : vector<128x96xf32> to vector<8x96xf32>
    %c120 = arith.constant 120 : index
    %c0_344 = arith.constant 0 : index
    %825 = vector.load %arg14[%c120, %c0_344] : memref<320x96xf32, #tpu.memory_space<vmem>>, vector<8x96xf32>
    tpu.vector_store %arg14[%c120, %c0_344], %824 {strides = array<i32>} : memref<320x96xf32, #tpu.memory_space<vmem>>, vector<8x96xf32>,
    %826 = vector.extract_strided_slice %807 {offsets = [56, 0], sizes = [8, 96], strides = [1, 1]} : vector<128x96xf32> to vector<8x96xf32>
    %c136 = arith.constant 136 : index
    %c0_345 = arith.constant 0 : index
    %827 = vector.load %arg14[%c136, %c0_345] : memref<320x96xf32, #tpu.memory_space<vmem>>, vector<8x96xf32>
    tpu.vector_store %arg14[%c136, %c0_345], %826 {strides = array<i32>} : memref<320x96xf32, #tpu.memory_space<vmem>>, vector<8x96xf32>,
    %828 = vector.extract_strided_slice %807 {offsets = [64, 0], sizes = [8, 96], strides = [1, 1]} : vector<128x96xf32> to vector<8x96xf32>
    %c184 = arith.constant 184 : index
    %c0_346 = arith.constant 0 : index
    %829 = vector.load %arg14[%c184, %c0_346] : memref<320x96xf32, #tpu.memory_space<vmem>>, vector<8x96xf32>
    tpu.vector_store %arg14[%c184, %c0_346], %828 {strides = array<i32>} : memref<320x96xf32, #tpu.memory_space<vmem>>, vector<8x96xf32>,
    %830 = vector.extract_strided_slice %807 {offsets = [72, 0], sizes = [8, 96], strides = [1, 1]} : vector<128x96xf32> to vector<8x96xf32>
    %c200_347 = arith.constant 200 : index
    %c0_348 = arith.constant 0 : index
    %831 = vector.load %arg14[%c200_347, %c0_348] : memref<320x96xf32, #tpu.memory_space<vmem>>, vector<8x96xf32>
    tpu.vector_store %arg14[%c200_347, %c0_348], %830 {strides = array<i32>} : memref<320x96xf32, #tpu.memory_space<vmem>>, vector<8x96xf32>,
    %832 = vector.extract_strided_slice %807 {offsets = [80, 0], sizes = [8, 96], strides = [1, 1]} : vector<128x96xf32> to vector<8x96xf32>
    %c216 = arith.constant 216 : index
    %c0_349 = arith.constant 0 : index
    %833 = vector.load %arg14[%c216, %c0_349] : memref<320x96xf32, #tpu.memory_space<vmem>>, vector<8x96xf32>
    tpu.vector_store %arg14[%c216, %c0_349], %832 {strides = array<i32>} : memref<320x96xf32, #tpu.memory_space<vmem>>, vector<8x96xf32>,
    %834 = vector.extract_strided_slice %807 {offsets = [88, 0], sizes = [8, 96], strides = [1, 1]} : vector<128x96xf32> to vector<8x96xf32>
    %c232 = arith.constant 232 : index
    %c0_350 = arith.constant 0 : index
    %835 = vector.load %arg14[%c232, %c0_350] : memref<320x96xf32, #tpu.memory_space<vmem>>, vector<8x96xf32>
    tpu.vector_store %arg14[%c232, %c0_350], %834 {strides = array<i32>} : memref<320x96xf32, #tpu.memory_space<vmem>>, vector<8x96xf32>,
    %836 = vector.extract_strided_slice %807 {offsets = [96, 0], sizes = [8, 96], strides = [1, 1]} : vector<128x96xf32> to vector<8x96xf32>
    %c248_351 = arith.constant 248 : index
    %c0_352 = arith.constant 0 : index
    %837 = vector.load %arg14[%c248_351, %c0_352] : memref<320x96xf32, #tpu.memory_space<vmem>>, vector<8x96xf32>
    tpu.vector_store %arg14[%c248_351, %c0_352], %836 {strides = array<i32>} : memref<320x96xf32, #tpu.memory_space<vmem>>, vector<8x96xf32>,
    %838 = vector.extract_strided_slice %807 {offsets = [104, 0], sizes = [8, 96], strides = [1, 1]} : vector<128x96xf32> to vector<8x96xf32>
    %c264 = arith.constant 264 : index
    %c0_353 = arith.constant 0 : index
    %839 = vector.load %arg14[%c264, %c0_353] : memref<320x96xf32, #tpu.memory_space<vmem>>, vector<8x96xf32>
    tpu.vector_store %arg14[%c264, %c0_353], %838 {strides = array<i32>} : memref<320x96xf32, #tpu.memory_space<vmem>>, vector<8x96xf32>,
    %840 = vector.extract_strided_slice %807 {offsets = [112, 0], sizes = [8, 96], strides = [1, 1]} : vector<128x96xf32> to vector<8x96xf32>
    %c280 = arith.constant 280 : index
    %c0_354 = arith.constant 0 : index
    %841 = vector.load %arg14[%c280, %c0_354] : memref<320x96xf32, #tpu.memory_space<vmem>>, vector<8x96xf32>
    tpu.vector_store %arg14[%c280, %c0_354], %840 {strides = array<i32>} : memref<320x96xf32, #tpu.memory_space<vmem>>, vector<8x96xf32>,
    %842 = vector.extract_strided_slice %807 {offsets = [120, 0], sizes = [8, 96], strides = [1, 1]} : vector<128x96xf32> to vector<8x96xf32>
    %c296_355 = arith.constant 296 : index
    %c0_356 = arith.constant 0 : index
    %843 = vector.load %arg14[%c296_355, %c0_356] : memref<320x96xf32, #tpu.memory_space<vmem>>, vector<8x96xf32>
    tpu.vector_store %arg14[%c296_355, %c0_356], %842 {strides = array<i32>} : memref<320x96xf32, #tpu.memory_space<vmem>>, vector<8x96xf32>,
    %844 = vector.extract_strided_slice %808 {offsets = [0, 0], sizes = [1, 96], strides = [1, 1]} : vector<9x96xf32> to vector<1x96xf32>
    %845 = vector.extract_strided_slice %808 {offsets = [1, 0], sizes = [1, 96], strides = [1, 1]} : vector<9x96xf32> to vector<1x96xf32>
    %846 = vector.extract_strided_slice %808 {offsets = [2, 0], sizes = [1, 96], strides = [1, 1]} : vector<9x96xf32> to vector<1x96xf32>
    %847 = vector.extract_strided_slice %808 {offsets = [3, 0], sizes = [1, 96], strides = [1, 1]} : vector<9x96xf32> to vector<1x96xf32>
    %848 = vector.extract_strided_slice %808 {offsets = [4, 0], sizes = [1, 96], strides = [1, 1]} : vector<9x96xf32> to vector<1x96xf32>
    %849 = vector.extract_strided_slice %808 {offsets = [5, 0], sizes = [1, 96], strides = [1, 1]} : vector<9x96xf32> to vector<1x96xf32>
    %850 = vector.extract_strided_slice %808 {offsets = [6, 0], sizes = [1, 96], strides = [1, 1]} : vector<9x96xf32> to vector<1x96xf32>
    %851 = vector.extract_strided_slice %808 {offsets = [7, 0], sizes = [1, 96], strides = [1, 1]} : vector<9x96xf32> to vector<1x96xf32>
    %852 = vector.extract_strided_slice %808 {offsets = [8, 0], sizes = [1, 96], strides = [1, 1]} : vector<9x96xf32> to vector<1x96xf32>
    %cst_357 = arith.constant 0.000000e+00 : f32
    %853 = vector.broadcast %cst_357 : f32 to vector<4x96xf32>
    %c7_358 = arith.constant 7 : index
    %c0_359 = arith.constant 0 : index
    %854 = tpu.strided_load %arg14[%c7_358, %c0_359] {strides = array<i32: 2, 1>} : memref<320x96xf32, #tpu.memory_space<vmem>>, vector<4x96xf32>
    %855 = vector.broadcast %844 : vector<1x96xf32> to vector<4x96xf32>
    %856 = arith.mulf %854, %855 : vector<4x96xf32>
    %857 = arith.addf %853, %856 : vector<4x96xf32>
    %c8_360 = arith.constant 8 : index
    %c0_361 = arith.constant 0 : index
    %858 = tpu.strided_load %arg14[%c8_360, %c0_361] {strides = array<i32: 2, 1>} : memref<320x96xf32, #tpu.memory_space<vmem>>, vector<4x96xf32>
    %859 = vector.broadcast %845 : vector<1x96xf32> to vector<4x96xf32>
    %860 = arith.mulf %858, %859 : vector<4x96xf32>
    %861 = arith.addf %857, %860 : vector<4x96xf32>
    %c9_362 = arith.constant 9 : index
    %c0_363 = arith.constant 0 : index
    %862 = tpu.strided_load %arg14[%c9_362, %c0_363] {strides = array<i32: 2, 1>} : memref<320x96xf32, #tpu.memory_space<vmem>>, vector<4x96xf32>
    %863 = vector.broadcast %846 : vector<1x96xf32> to vector<4x96xf32>
    %864 = arith.mulf %862, %863 : vector<4x96xf32>
    %865 = arith.addf %861, %864 : vector<4x96xf32>
    %c23 = arith.constant 23 : index
    %c0_364 = arith.constant 0 : index
    %866 = tpu.strided_load %arg14[%c23, %c0_364] {strides = array<i32: 2, 1>} : memref<320x96xf32, #tpu.memory_space<vmem>>, vector<4x96xf32>
    %867 = vector.broadcast %847 : vector<1x96xf32> to vector<4x96xf32>
    %868 = arith.mulf %866, %867 : vector<4x96xf32>
    %869 = arith.addf %865, %868 : vector<4x96xf32>
    %c24_365 = arith.constant 24 : index
    %c0_366 = arith.constant 0 : index
    %870 = tpu.strided_load %arg14[%c24_365, %c0_366] {strides = array<i32: 2, 1>} : memref<320x96xf32, #tpu.memory_space<vmem>>, vector<4x96xf32>
    %871 = vector.broadcast %848 : vector<1x96xf32> to vector<4x96xf32>
    %872 = arith.mulf %870, %871 : vector<4x96xf32>
    %873 = arith.addf %869, %872 : vector<4x96xf32>
    %c25 = arith.constant 25 : index
    %c0_367 = arith.constant 0 : index
    %874 = tpu.strided_load %arg14[%c25, %c0_367] {strides = array<i32: 2, 1>} : memref<320x96xf32, #tpu.memory_space<vmem>>, vector<4x96xf32>
    %875 = vector.broadcast %849 : vector<1x96xf32> to vector<4x96xf32>
    %876 = arith.mulf %874, %875 : vector<4x96xf32>
    %877 = arith.addf %873, %876 : vector<4x96xf32>
    %c39 = arith.constant 39 : index
    %c0_368 = arith.constant 0 : index
    %878 = tpu.strided_load %arg14[%c39, %c0_368] {strides = array<i32: 2, 1>} : memref<320x96xf32, #tpu.memory_space<vmem>>, vector<4x96xf32>
    %879 = vector.broadcast %850 : vector<1x96xf32> to vector<4x96xf32>
    %880 = arith.mulf %878, %879 : vector<4x96xf32>
    %881 = arith.addf %877, %880 : vector<4x96xf32>
    %c40_369 = arith.constant 40 : index
    %c0_370 = arith.constant 0 : index
    %882 = tpu.strided_load %arg14[%c40_369, %c0_370] {strides = array<i32: 2, 1>} : memref<320x96xf32, #tpu.memory_space<vmem>>, vector<4x96xf32>
    %883 = vector.broadcast %851 : vector<1x96xf32> to vector<4x96xf32>
    %884 = arith.mulf %882, %883 : vector<4x96xf32>
    %885 = arith.addf %881, %884 : vector<4x96xf32>
    %c41 = arith.constant 41 : index
    %c0_371 = arith.constant 0 : index
    %886 = tpu.strided_load %arg14[%c41, %c0_371] {strides = array<i32: 2, 1>} : memref<320x96xf32, #tpu.memory_space<vmem>>, vector<4x96xf32>
    %887 = vector.broadcast %852 : vector<1x96xf32> to vector<4x96xf32>
    %888 = arith.mulf %886, %887 : vector<4x96xf32>
    %889 = arith.addf %885, %888 : vector<4x96xf32>
    %890 = vector.broadcast %809 : vector<1x96xf32> to vector<4x96xf32>
    %891 = arith.addf %889, %890 : vector<4x96xf32>
    %cst_372 = arith.constant 0.000000e+00 : f32
    %892 = vector.broadcast %cst_372 : f32 to vector<4x96xf32>
    %893 = arith.maximumf %891, %892 : vector<4x96xf32>
    %cst_373 = arith.constant 0.000000e+00 : f32
    %894 = vector.broadcast %cst_373 : f32 to vector<4x96xf32>
    %c39_374 = arith.constant 39 : index
    %c0_375 = arith.constant 0 : index
    %895 = tpu.strided_load %arg14[%c39_374, %c0_375] {strides = array<i32: 2, 1>} : memref<320x96xf32, #tpu.memory_space<vmem>>, vector<4x96xf32>
    %896 = vector.broadcast %844 : vector<1x96xf32> to vector<4x96xf32>
    %897 = arith.mulf %895, %896 : vector<4x96xf32>
    %898 = arith.addf %894, %897 : vector<4x96xf32>
    %c40_376 = arith.constant 40 : index
    %c0_377 = arith.constant 0 : index
    %899 = tpu.strided_load %arg14[%c40_376, %c0_377] {strides = array<i32: 2, 1>} : memref<320x96xf32, #tpu.memory_space<vmem>>, vector<4x96xf32>
    %900 = vector.broadcast %845 : vector<1x96xf32> to vector<4x96xf32>
    %901 = arith.mulf %899, %900 : vector<4x96xf32>
    %902 = arith.addf %898, %901 : vector<4x96xf32>
    %c41_378 = arith.constant 41 : index
    %c0_379 = arith.constant 0 : index
    %903 = tpu.strided_load %arg14[%c41_378, %c0_379] {strides = array<i32: 2, 1>} : memref<320x96xf32, #tpu.memory_space<vmem>>, vector<4x96xf32>
    %904 = vector.broadcast %846 : vector<1x96xf32> to vector<4x96xf32>
    %905 = arith.mulf %903, %904 : vector<4x96xf32>
    %906 = arith.addf %902, %905 : vector<4x96xf32>
    %c55_380 = arith.constant 55 : index
    %c0_381 = arith.constant 0 : index
    %907 = tpu.strided_load %arg14[%c55_380, %c0_381] {strides = array<i32: 2, 1>} : memref<320x96xf32, #tpu.memory_space<vmem>>, vector<4x96xf32>
    %908 = vector.broadcast %847 : vector<1x96xf32> to vector<4x96xf32>
    %909 = arith.mulf %907, %908 : vector<4x96xf32>
    %910 = arith.addf %906, %909 : vector<4x96xf32>
    %c56_382 = arith.constant 56 : index
    %c0_383 = arith.constant 0 : index
    %911 = tpu.strided_load %arg14[%c56_382, %c0_383] {strides = array<i32: 2, 1>} : memref<320x96xf32, #tpu.memory_space<vmem>>, vector<4x96xf32>
    %912 = vector.broadcast %848 : vector<1x96xf32> to vector<4x96xf32>
    %913 = arith.mulf %911, %912 : vector<4x96xf32>
    %914 = arith.addf %910, %913 : vector<4x96xf32>
    %c57_384 = arith.constant 57 : index
    %c0_385 = arith.constant 0 : index
    %915 = tpu.strided_load %arg14[%c57_384, %c0_385] {strides = array<i32: 2, 1>} : memref<320x96xf32, #tpu.memory_space<vmem>>, vector<4x96xf32>
    %916 = vector.broadcast %849 : vector<1x96xf32> to vector<4x96xf32>
    %917 = arith.mulf %915, %916 : vector<4x96xf32>
    %918 = arith.addf %914, %917 : vector<4x96xf32>
    %c71 = arith.constant 71 : index
    %c0_386 = arith.constant 0 : index
    %919 = tpu.strided_load %arg14[%c71, %c0_386] {strides = array<i32: 2, 1>} : memref<320x96xf32, #tpu.memory_space<vmem>>, vector<4x96xf32>
    %920 = vector.broadcast %850 : vector<1x96xf32> to vector<4x96xf32>
    %921 = arith.mulf %919, %920 : vector<4x96xf32>
    %922 = arith.addf %918, %921 : vector<4x96xf32>
    %c72_387 = arith.constant 72 : index
    %c0_388 = arith.constant 0 : index
    %923 = tpu.strided_load %arg14[%c72_387, %c0_388] {strides = array<i32: 2, 1>} : memref<320x96xf32, #tpu.memory_space<vmem>>, vector<4x96xf32>
    %924 = vector.broadcast %851 : vector<1x96xf32> to vector<4x96xf32>
    %925 = arith.mulf %923, %924 : vector<4x96xf32>
    %926 = arith.addf %922, %925 : vector<4x96xf32>
    %c73 = arith.constant 73 : index
    %c0_389 = arith.constant 0 : index
    %927 = tpu.strided_load %arg14[%c73, %c0_389] {strides = array<i32: 2, 1>} : memref<320x96xf32, #tpu.memory_space<vmem>>, vector<4x96xf32>
    %928 = vector.broadcast %852 : vector<1x96xf32> to vector<4x96xf32>
    %929 = arith.mulf %927, %928 : vector<4x96xf32>
    %930 = arith.addf %926, %929 : vector<4x96xf32>
    %931 = vector.broadcast %809 : vector<1x96xf32> to vector<4x96xf32>
    %932 = arith.addf %930, %931 : vector<4x96xf32>
    %cst_390 = arith.constant 0.000000e+00 : f32
    %933 = vector.broadcast %cst_390 : f32 to vector<4x96xf32>
    %934 = arith.maximumf %932, %933 : vector<4x96xf32>
    %cst_391 = arith.constant 0.000000e+00 : f32
    %935 = vector.broadcast %cst_391 : f32 to vector<4x96xf32>
    %c71_392 = arith.constant 71 : index
    %c0_393 = arith.constant 0 : index
    %936 = tpu.strided_load %arg14[%c71_392, %c0_393] {strides = array<i32: 2, 1>} : memref<320x96xf32, #tpu.memory_space<vmem>>, vector<4x96xf32>
    %937 = vector.broadcast %844 : vector<1x96xf32> to vector<4x96xf32>
    %938 = arith.mulf %936, %937 : vector<4x96xf32>
    %939 = arith.addf %935, %938 : vector<4x96xf32>
    %c72_394 = arith.constant 72 : index
    %c0_395 = arith.constant 0 : index
    %940 = tpu.strided_load %arg14[%c72_394, %c0_395] {strides = array<i32: 2, 1>} : memref<320x96xf32, #tpu.memory_space<vmem>>, vector<4x96xf32>
    %941 = vector.broadcast %845 : vector<1x96xf32> to vector<4x96xf32>
    %942 = arith.mulf %940, %941 : vector<4x96xf32>
    %943 = arith.addf %939, %942 : vector<4x96xf32>
    %c73_396 = arith.constant 73 : index
    %c0_397 = arith.constant 0 : index
    %944 = tpu.strided_load %arg14[%c73_396, %c0_397] {strides = array<i32: 2, 1>} : memref<320x96xf32, #tpu.memory_space<vmem>>, vector<4x96xf32>
    %945 = vector.broadcast %846 : vector<1x96xf32> to vector<4x96xf32>
    %946 = arith.mulf %944, %945 : vector<4x96xf32>
    %947 = arith.addf %943, %946 : vector<4x96xf32>
    %c87 = arith.constant 87 : index
    %c0_398 = arith.constant 0 : index
    %948 = tpu.strided_load %arg14[%c87, %c0_398] {strides = array<i32: 2, 1>} : memref<320x96xf32, #tpu.memory_space<vmem>>, vector<4x96xf32>
    %949 = vector.broadcast %847 : vector<1x96xf32> to vector<4x96xf32>
    %950 = arith.mulf %948, %949 : vector<4x96xf32>
    %951 = arith.addf %947, %950 : vector<4x96xf32>
    %c88_399 = arith.constant 88 : index
    %c0_400 = arith.constant 0 : index
    %952 = tpu.strided_load %arg14[%c88_399, %c0_400] {strides = array<i32: 2, 1>} : memref<320x96xf32, #tpu.memory_space<vmem>>, vector<4x96xf32>
    %953 = vector.broadcast %848 : vector<1x96xf32> to vector<4x96xf32>
    %954 = arith.mulf %952, %953 : vector<4x96xf32>
    %955 = arith.addf %951, %954 : vector<4x96xf32>
    %c89 = arith.constant 89 : index
    %c0_401 = arith.constant 0 : index
    %956 = tpu.strided_load %arg14[%c89, %c0_401] {strides = array<i32: 2, 1>} : memref<320x96xf32, #tpu.memory_space<vmem>>, vector<4x96xf32>
    %957 = vector.broadcast %849 : vector<1x96xf32> to vector<4x96xf32>
    %958 = arith.mulf %956, %957 : vector<4x96xf32>
    %959 = arith.addf %955, %958 : vector<4x96xf32>
    %c103_402 = arith.constant 103 : index
    %c0_403 = arith.constant 0 : index
    %960 = tpu.strided_load %arg14[%c103_402, %c0_403] {strides = array<i32: 2, 1>} : memref<320x96xf32, #tpu.memory_space<vmem>>, vector<4x96xf32>
    %961 = vector.broadcast %850 : vector<1x96xf32> to vector<4x96xf32>
    %962 = arith.mulf %960, %961 : vector<4x96xf32>
    %963 = arith.addf %959, %962 : vector<4x96xf32>
    %c104_404 = arith.constant 104 : index
    %c0_405 = arith.constant 0 : index
    %964 = tpu.strided_load %arg14[%c104_404, %c0_405] {strides = array<i32: 2, 1>} : memref<320x96xf32, #tpu.memory_space<vmem>>, vector<4x96xf32>
    %965 = vector.broadcast %851 : vector<1x96xf32> to vector<4x96xf32>
    %966 = arith.mulf %964, %965 : vector<4x96xf32>
    %967 = arith.addf %963, %966 : vector<4x96xf32>
    %c105_406 = arith.constant 105 : index
    %c0_407 = arith.constant 0 : index
    %968 = tpu.strided_load %arg14[%c105_406, %c0_407] {strides = array<i32: 2, 1>} : memref<320x96xf32, #tpu.memory_space<vmem>>, vector<4x96xf32>
    %969 = vector.broadcast %852 : vector<1x96xf32> to vector<4x96xf32>
    %970 = arith.mulf %968, %969 : vector<4x96xf32>
    %971 = arith.addf %967, %970 : vector<4x96xf32>
    %972 = vector.broadcast %809 : vector<1x96xf32> to vector<4x96xf32>
    %973 = arith.addf %971, %972 : vector<4x96xf32>
    %cst_408 = arith.constant 0.000000e+00 : f32
    %974 = vector.broadcast %cst_408 : f32 to vector<4x96xf32>
    %975 = arith.maximumf %973, %974 : vector<4x96xf32>
    %cst_409 = arith.constant 0.000000e+00 : f32
    %976 = vector.broadcast %cst_409 : f32 to vector<4x96xf32>
    %c103_410 = arith.constant 103 : index
    %c0_411 = arith.constant 0 : index
    %977 = tpu.strided_load %arg14[%c103_410, %c0_411] {strides = array<i32: 2, 1>} : memref<320x96xf32, #tpu.memory_space<vmem>>, vector<4x96xf32>
    %978 = vector.broadcast %844 : vector<1x96xf32> to vector<4x96xf32>
    %979 = arith.mulf %977, %978 : vector<4x96xf32>
    %980 = arith.addf %976, %979 : vector<4x96xf32>
    %c104_412 = arith.constant 104 : index
    %c0_413 = arith.constant 0 : index
    %981 = tpu.strided_load %arg14[%c104_412, %c0_413] {strides = array<i32: 2, 1>} : memref<320x96xf32, #tpu.memory_space<vmem>>, vector<4x96xf32>
    %982 = vector.broadcast %845 : vector<1x96xf32> to vector<4x96xf32>
    %983 = arith.mulf %981, %982 : vector<4x96xf32>
    %984 = arith.addf %980, %983 : vector<4x96xf32>
    %c105_414 = arith.constant 105 : index
    %c0_415 = arith.constant 0 : index
    %985 = tpu.strided_load %arg14[%c105_414, %c0_415] {strides = array<i32: 2, 1>} : memref<320x96xf32, #tpu.memory_space<vmem>>, vector<4x96xf32>
    %986 = vector.broadcast %846 : vector<1x96xf32> to vector<4x96xf32>
    %987 = arith.mulf %985, %986 : vector<4x96xf32>
    %988 = arith.addf %984, %987 : vector<4x96xf32>
    %c119 = arith.constant 119 : index
    %c0_416 = arith.constant 0 : index
    %989 = tpu.strided_load %arg14[%c119, %c0_416] {strides = array<i32: 2, 1>} : memref<320x96xf32, #tpu.memory_space<vmem>>, vector<4x96xf32>
    %990 = vector.broadcast %847 : vector<1x96xf32> to vector<4x96xf32>
    %991 = arith.mulf %989, %990 : vector<4x96xf32>
    %992 = arith.addf %988, %991 : vector<4x96xf32>
    %c120_417 = arith.constant 120 : index
    %c0_418 = arith.constant 0 : index
    %993 = tpu.strided_load %arg14[%c120_417, %c0_418] {strides = array<i32: 2, 1>} : memref<320x96xf32, #tpu.memory_space<vmem>>, vector<4x96xf32>
    %994 = vector.broadcast %848 : vector<1x96xf32> to vector<4x96xf32>
    %995 = arith.mulf %993, %994 : vector<4x96xf32>
    %996 = arith.addf %992, %995 : vector<4x96xf32>
    %c121 = arith.constant 121 : index
    %c0_419 = arith.constant 0 : index
    %997 = tpu.strided_load %arg14[%c121, %c0_419] {strides = array<i32: 2, 1>} : memref<320x96xf32, #tpu.memory_space<vmem>>, vector<4x96xf32>
    %998 = vector.broadcast %849 : vector<1x96xf32> to vector<4x96xf32>
    %999 = arith.mulf %997, %998 : vector<4x96xf32>
    %1000 = arith.addf %996, %999 : vector<4x96xf32>
    %c135 = arith.constant 135 : index
    %c0_420 = arith.constant 0 : index
    %1001 = tpu.strided_load %arg14[%c135, %c0_420] {strides = array<i32: 2, 1>} : memref<320x96xf32, #tpu.memory_space<vmem>>, vector<4x96xf32>
    %1002 = vector.broadcast %850 : vector<1x96xf32> to vector<4x96xf32>
    %1003 = arith.mulf %1001, %1002 : vector<4x96xf32>
    %1004 = arith.addf %1000, %1003 : vector<4x96xf32>
    %c136_421 = arith.constant 136 : index
    %c0_422 = arith.constant 0 : index
    %1005 = tpu.strided_load %arg14[%c136_421, %c0_422] {strides = array<i32: 2, 1>} : memref<320x96xf32, #tpu.memory_space<vmem>>, vector<4x96xf32>
    %1006 = vector.broadcast %851 : vector<1x96xf32> to vector<4x96xf32>
    %1007 = arith.mulf %1005, %1006 : vector<4x96xf32>
    %1008 = arith.addf %1004, %1007 : vector<4x96xf32>
    %c137 = arith.constant 137 : index
    %c0_423 = arith.constant 0 : index
    %1009 = tpu.strided_load %arg14[%c137, %c0_423] {strides = array<i32: 2, 1>} : memref<320x96xf32, #tpu.memory_space<vmem>>, vector<4x96xf32>
    %1010 = vector.broadcast %852 : vector<1x96xf32> to vector<4x96xf32>
    %1011 = arith.mulf %1009, %1010 : vector<4x96xf32>
    %1012 = arith.addf %1008, %1011 : vector<4x96xf32>
    %1013 = vector.broadcast %809 : vector<1x96xf32> to vector<4x96xf32>
    %1014 = arith.addf %1012, %1013 : vector<4x96xf32>
    %cst_424 = arith.constant 0.000000e+00 : f32
    %1015 = vector.broadcast %cst_424 : f32 to vector<4x96xf32>
    %1016 = arith.maximumf %1014, %1015 : vector<4x96xf32>
    %cst_425 = arith.constant 0.000000e+00 : f32
    %1017 = vector.broadcast %cst_425 : f32 to vector<4x96xf32>
    %c167 = arith.constant 167 : index
    %c0_426 = arith.constant 0 : index
    %1018 = tpu.strided_load %arg14[%c167, %c0_426] {strides = array<i32: 2, 1>} : memref<320x96xf32, #tpu.memory_space<vmem>>, vector<4x96xf32>
    %1019 = vector.broadcast %844 : vector<1x96xf32> to vector<4x96xf32>
    %1020 = arith.mulf %1018, %1019 : vector<4x96xf32>
    %1021 = arith.addf %1017, %1020 : vector<4x96xf32>
    %c168 = arith.constant 168 : index
    %c0_427 = arith.constant 0 : index
    %1022 = tpu.strided_load %arg14[%c168, %c0_427] {strides = array<i32: 2, 1>} : memref<320x96xf32, #tpu.memory_space<vmem>>, vector<4x96xf32>
    %1023 = vector.broadcast %845 : vector<1x96xf32> to vector<4x96xf32>
    %1024 = arith.mulf %1022, %1023 : vector<4x96xf32>
    %1025 = arith.addf %1021, %1024 : vector<4x96xf32>
    %c169 = arith.constant 169 : index
    %c0_428 = arith.constant 0 : index
    %1026 = tpu.strided_load %arg14[%c169, %c0_428] {strides = array<i32: 2, 1>} : memref<320x96xf32, #tpu.memory_space<vmem>>, vector<4x96xf32>
    %1027 = vector.broadcast %846 : vector<1x96xf32> to vector<4x96xf32>
    %1028 = arith.mulf %1026, %1027 : vector<4x96xf32>
    %1029 = arith.addf %1025, %1028 : vector<4x96xf32>
    %c183 = arith.constant 183 : index
    %c0_429 = arith.constant 0 : index
    %1030 = tpu.strided_load %arg14[%c183, %c0_429] {strides = array<i32: 2, 1>} : memref<320x96xf32, #tpu.memory_space<vmem>>, vector<4x96xf32>
    %1031 = vector.broadcast %847 : vector<1x96xf32> to vector<4x96xf32>
    %1032 = arith.mulf %1030, %1031 : vector<4x96xf32>
    %1033 = arith.addf %1029, %1032 : vector<4x96xf32>
    %c184_430 = arith.constant 184 : index
    %c0_431 = arith.constant 0 : index
    %1034 = tpu.strided_load %arg14[%c184_430, %c0_431] {strides = array<i32: 2, 1>} : memref<320x96xf32, #tpu.memory_space<vmem>>, vector<4x96xf32>
    %1035 = vector.broadcast %848 : vector<1x96xf32> to vector<4x96xf32>
    %1036 = arith.mulf %1034, %1035 : vector<4x96xf32>
    %1037 = arith.addf %1033, %1036 : vector<4x96xf32>
    %c185 = arith.constant 185 : index
    %c0_432 = arith.constant 0 : index
    %1038 = tpu.strided_load %arg14[%c185, %c0_432] {strides = array<i32: 2, 1>} : memref<320x96xf32, #tpu.memory_space<vmem>>, vector<4x96xf32>
    %1039 = vector.broadcast %849 : vector<1x96xf32> to vector<4x96xf32>
    %1040 = arith.mulf %1038, %1039 : vector<4x96xf32>
    %1041 = arith.addf %1037, %1040 : vector<4x96xf32>
    %c199_433 = arith.constant 199 : index
    %c0_434 = arith.constant 0 : index
    %1042 = tpu.strided_load %arg14[%c199_433, %c0_434] {strides = array<i32: 2, 1>} : memref<320x96xf32, #tpu.memory_space<vmem>>, vector<4x96xf32>
    %1043 = vector.broadcast %850 : vector<1x96xf32> to vector<4x96xf32>
    %1044 = arith.mulf %1042, %1043 : vector<4x96xf32>
    %1045 = arith.addf %1041, %1044 : vector<4x96xf32>
    %c200_435 = arith.constant 200 : index
    %c0_436 = arith.constant 0 : index
    %1046 = tpu.strided_load %arg14[%c200_435, %c0_436] {strides = array<i32: 2, 1>} : memref<320x96xf32, #tpu.memory_space<vmem>>, vector<4x96xf32>
    %1047 = vector.broadcast %851 : vector<1x96xf32> to vector<4x96xf32>
    %1048 = arith.mulf %1046, %1047 : vector<4x96xf32>
    %1049 = arith.addf %1045, %1048 : vector<4x96xf32>
    %c201_437 = arith.constant 201 : index
    %c0_438 = arith.constant 0 : index
    %1050 = tpu.strided_load %arg14[%c201_437, %c0_438] {strides = array<i32: 2, 1>} : memref<320x96xf32, #tpu.memory_space<vmem>>, vector<4x96xf32>
    %1051 = vector.broadcast %852 : vector<1x96xf32> to vector<4x96xf32>
    %1052 = arith.mulf %1050, %1051 : vector<4x96xf32>
    %1053 = arith.addf %1049, %1052 : vector<4x96xf32>
    %1054 = vector.broadcast %809 : vector<1x96xf32> to vector<4x96xf32>
    %1055 = arith.addf %1053, %1054 : vector<4x96xf32>
    %cst_439 = arith.constant 0.000000e+00 : f32
    %1056 = vector.broadcast %cst_439 : f32 to vector<4x96xf32>
    %1057 = arith.maximumf %1055, %1056 : vector<4x96xf32>
    %cst_440 = arith.constant 0.000000e+00 : f32
    %1058 = vector.broadcast %cst_440 : f32 to vector<4x96xf32>
    %c199_441 = arith.constant 199 : index
    %c0_442 = arith.constant 0 : index
    %1059 = tpu.strided_load %arg14[%c199_441, %c0_442] {strides = array<i32: 2, 1>} : memref<320x96xf32, #tpu.memory_space<vmem>>, vector<4x96xf32>
    %1060 = vector.broadcast %844 : vector<1x96xf32> to vector<4x96xf32>
    %1061 = arith.mulf %1059, %1060 : vector<4x96xf32>
    %1062 = arith.addf %1058, %1061 : vector<4x96xf32>
    %c200_443 = arith.constant 200 : index
    %c0_444 = arith.constant 0 : index
    %1063 = tpu.strided_load %arg14[%c200_443, %c0_444] {strides = array<i32: 2, 1>} : memref<320x96xf32, #tpu.memory_space<vmem>>, vector<4x96xf32>
    %1064 = vector.broadcast %845 : vector<1x96xf32> to vector<4x96xf32>
    %1065 = arith.mulf %1063, %1064 : vector<4x96xf32>
    %1066 = arith.addf %1062, %1065 : vector<4x96xf32>
    %c201_445 = arith.constant 201 : index
    %c0_446 = arith.constant 0 : index
    %1067 = tpu.strided_load %arg14[%c201_445, %c0_446] {strides = array<i32: 2, 1>} : memref<320x96xf32, #tpu.memory_space<vmem>>, vector<4x96xf32>
    %1068 = vector.broadcast %846 : vector<1x96xf32> to vector<4x96xf32>
    %1069 = arith.mulf %1067, %1068 : vector<4x96xf32>
    %1070 = arith.addf %1066, %1069 : vector<4x96xf32>
    %c215 = arith.constant 215 : index
    %c0_447 = arith.constant 0 : index
    %1071 = tpu.strided_load %arg14[%c215, %c0_447] {strides = array<i32: 2, 1>} : memref<320x96xf32, #tpu.memory_space<vmem>>, vector<4x96xf32>
    %1072 = vector.broadcast %847 : vector<1x96xf32> to vector<4x96xf32>
    %1073 = arith.mulf %1071, %1072 : vector<4x96xf32>
    %1074 = arith.addf %1070, %1073 : vector<4x96xf32>
    %c216_448 = arith.constant 216 : index
    %c0_449 = arith.constant 0 : index
    %1075 = tpu.strided_load %arg14[%c216_448, %c0_449] {strides = array<i32: 2, 1>} : memref<320x96xf32, #tpu.memory_space<vmem>>, vector<4x96xf32>
    %1076 = vector.broadcast %848 : vector<1x96xf32> to vector<4x96xf32>
    %1077 = arith.mulf %1075, %1076 : vector<4x96xf32>
    %1078 = arith.addf %1074, %1077 : vector<4x96xf32>
    %c217 = arith.constant 217 : index
    %c0_450 = arith.constant 0 : index
    %1079 = tpu.strided_load %arg14[%c217, %c0_450] {strides = array<i32: 2, 1>} : memref<320x96xf32, #tpu.memory_space<vmem>>, vector<4x96xf32>
    %1080 = vector.broadcast %849 : vector<1x96xf32> to vector<4x96xf32>
    %1081 = arith.mulf %1079, %1080 : vector<4x96xf32>
    %1082 = arith.addf %1078, %1081 : vector<4x96xf32>
    %c231 = arith.constant 231 : index
    %c0_451 = arith.constant 0 : index
    %1083 = tpu.strided_load %arg14[%c231, %c0_451] {strides = array<i32: 2, 1>} : memref<320x96xf32, #tpu.memory_space<vmem>>, vector<4x96xf32>
    %1084 = vector.broadcast %850 : vector<1x96xf32> to vector<4x96xf32>
    %1085 = arith.mulf %1083, %1084 : vector<4x96xf32>
    %1086 = arith.addf %1082, %1085 : vector<4x96xf32>
    %c232_452 = arith.constant 232 : index
    %c0_453 = arith.constant 0 : index
    %1087 = tpu.strided_load %arg14[%c232_452, %c0_453] {strides = array<i32: 2, 1>} : memref<320x96xf32, #tpu.memory_space<vmem>>, vector<4x96xf32>
    %1088 = vector.broadcast %851 : vector<1x96xf32> to vector<4x96xf32>
    %1089 = arith.mulf %1087, %1088 : vector<4x96xf32>
    %1090 = arith.addf %1086, %1089 : vector<4x96xf32>
    %c233 = arith.constant 233 : index
    %c0_454 = arith.constant 0 : index
    %1091 = tpu.strided_load %arg14[%c233, %c0_454] {strides = array<i32: 2, 1>} : memref<320x96xf32, #tpu.memory_space<vmem>>, vector<4x96xf32>
    %1092 = vector.broadcast %852 : vector<1x96xf32> to vector<4x96xf32>
    %1093 = arith.mulf %1091, %1092 : vector<4x96xf32>
    %1094 = arith.addf %1090, %1093 : vector<4x96xf32>
    %1095 = vector.broadcast %809 : vector<1x96xf32> to vector<4x96xf32>
    %1096 = arith.addf %1094, %1095 : vector<4x96xf32>
    %cst_455 = arith.constant 0.000000e+00 : f32
    %1097 = vector.broadcast %cst_455 : f32 to vector<4x96xf32>
    %1098 = arith.maximumf %1096, %1097 : vector<4x96xf32>
    %cst_456 = arith.constant 0.000000e+00 : f32
    %1099 = vector.broadcast %cst_456 : f32 to vector<4x96xf32>
    %c231_457 = arith.constant 231 : index
    %c0_458 = arith.constant 0 : index
    %1100 = tpu.strided_load %arg14[%c231_457, %c0_458] {strides = array<i32: 2, 1>} : memref<320x96xf32, #tpu.memory_space<vmem>>, vector<4x96xf32>
    %1101 = vector.broadcast %844 : vector<1x96xf32> to vector<4x96xf32>
    %1102 = arith.mulf %1100, %1101 : vector<4x96xf32>
    %1103 = arith.addf %1099, %1102 : vector<4x96xf32>
    %c232_459 = arith.constant 232 : index
    %c0_460 = arith.constant 0 : index
    %1104 = tpu.strided_load %arg14[%c232_459, %c0_460] {strides = array<i32: 2, 1>} : memref<320x96xf32, #tpu.memory_space<vmem>>, vector<4x96xf32>
    %1105 = vector.broadcast %845 : vector<1x96xf32> to vector<4x96xf32>
    %1106 = arith.mulf %1104, %1105 : vector<4x96xf32>
    %1107 = arith.addf %1103, %1106 : vector<4x96xf32>
    %c233_461 = arith.constant 233 : index
    %c0_462 = arith.constant 0 : index
    %1108 = tpu.strided_load %arg14[%c233_461, %c0_462] {strides = array<i32: 2, 1>} : memref<320x96xf32, #tpu.memory_space<vmem>>, vector<4x96xf32>
    %1109 = vector.broadcast %846 : vector<1x96xf32> to vector<4x96xf32>
    %1110 = arith.mulf %1108, %1109 : vector<4x96xf32>
    %1111 = arith.addf %1107, %1110 : vector<4x96xf32>
    %c247_463 = arith.constant 247 : index
    %c0_464 = arith.constant 0 : index
    %1112 = tpu.strided_load %arg14[%c247_463, %c0_464] {strides = array<i32: 2, 1>} : memref<320x96xf32, #tpu.memory_space<vmem>>, vector<4x96xf32>
    %1113 = vector.broadcast %847 : vector<1x96xf32> to vector<4x96xf32>
    %1114 = arith.mulf %1112, %1113 : vector<4x96xf32>
    %1115 = arith.addf %1111, %1114 : vector<4x96xf32>
    %c248_465 = arith.constant 248 : index
    %c0_466 = arith.constant 0 : index
    %1116 = tpu.strided_load %arg14[%c248_465, %c0_466] {strides = array<i32: 2, 1>} : memref<320x96xf32, #tpu.memory_space<vmem>>, vector<4x96xf32>
    %1117 = vector.broadcast %848 : vector<1x96xf32> to vector<4x96xf32>
    %1118 = arith.mulf %1116, %1117 : vector<4x96xf32>
    %1119 = arith.addf %1115, %1118 : vector<4x96xf32>
    %c249_467 = arith.constant 249 : index
    %c0_468 = arith.constant 0 : index
    %1120 = tpu.strided_load %arg14[%c249_467, %c0_468] {strides = array<i32: 2, 1>} : memref<320x96xf32, #tpu.memory_space<vmem>>, vector<4x96xf32>
    %1121 = vector.broadcast %849 : vector<1x96xf32> to vector<4x96xf32>
    %1122 = arith.mulf %1120, %1121 : vector<4x96xf32>
    %1123 = arith.addf %1119, %1122 : vector<4x96xf32>
    %c263 = arith.constant 263 : index
    %c0_469 = arith.constant 0 : index
    %1124 = tpu.strided_load %arg14[%c263, %c0_469] {strides = array<i32: 2, 1>} : memref<320x96xf32, #tpu.memory_space<vmem>>, vector<4x96xf32>
    %1125 = vector.broadcast %850 : vector<1x96xf32> to vector<4x96xf32>
    %1126 = arith.mulf %1124, %1125 : vector<4x96xf32>
    %1127 = arith.addf %1123, %1126 : vector<4x96xf32>
    %c264_470 = arith.constant 264 : index
    %c0_471 = arith.constant 0 : index
    %1128 = tpu.strided_load %arg14[%c264_470, %c0_471] {strides = array<i32: 2, 1>} : memref<320x96xf32, #tpu.memory_space<vmem>>, vector<4x96xf32>
    %1129 = vector.broadcast %851 : vector<1x96xf32> to vector<4x96xf32>
    %1130 = arith.mulf %1128, %1129 : vector<4x96xf32>
    %1131 = arith.addf %1127, %1130 : vector<4x96xf32>
    %c265 = arith.constant 265 : index
    %c0_472 = arith.constant 0 : index
    %1132 = tpu.strided_load %arg14[%c265, %c0_472] {strides = array<i32: 2, 1>} : memref<320x96xf32, #tpu.memory_space<vmem>>, vector<4x96xf32>
    %1133 = vector.broadcast %852 : vector<1x96xf32> to vector<4x96xf32>
    %1134 = arith.mulf %1132, %1133 : vector<4x96xf32>
    %1135 = arith.addf %1131, %1134 : vector<4x96xf32>
    %1136 = vector.broadcast %809 : vector<1x96xf32> to vector<4x96xf32>
    %1137 = arith.addf %1135, %1136 : vector<4x96xf32>
    %cst_473 = arith.constant 0.000000e+00 : f32
    %1138 = vector.broadcast %cst_473 : f32 to vector<4x96xf32>
    %1139 = arith.maximumf %1137, %1138 : vector<4x96xf32>
    %cst_474 = arith.constant 0.000000e+00 : f32
    %1140 = vector.broadcast %cst_474 : f32 to vector<4x96xf32>
    %c263_475 = arith.constant 263 : index
    %c0_476 = arith.constant 0 : index
    %1141 = tpu.strided_load %arg14[%c263_475, %c0_476] {strides = array<i32: 2, 1>} : memref<320x96xf32, #tpu.memory_space<vmem>>, vector<4x96xf32>
    %1142 = vector.broadcast %844 : vector<1x96xf32> to vector<4x96xf32>
    %1143 = arith.mulf %1141, %1142 : vector<4x96xf32>
    %1144 = arith.addf %1140, %1143 : vector<4x96xf32>
    %c264_477 = arith.constant 264 : index
    %c0_478 = arith.constant 0 : index
    %1145 = tpu.strided_load %arg14[%c264_477, %c0_478] {strides = array<i32: 2, 1>} : memref<320x96xf32, #tpu.memory_space<vmem>>, vector<4x96xf32>
    %1146 = vector.broadcast %845 : vector<1x96xf32> to vector<4x96xf32>
    %1147 = arith.mulf %1145, %1146 : vector<4x96xf32>
    %1148 = arith.addf %1144, %1147 : vector<4x96xf32>
    %c265_479 = arith.constant 265 : index
    %c0_480 = arith.constant 0 : index
    %1149 = tpu.strided_load %arg14[%c265_479, %c0_480] {strides = array<i32: 2, 1>} : memref<320x96xf32, #tpu.memory_space<vmem>>, vector<4x96xf32>
    %1150 = vector.broadcast %846 : vector<1x96xf32> to vector<4x96xf32>
    %1151 = arith.mulf %1149, %1150 : vector<4x96xf32>
    %1152 = arith.addf %1148, %1151 : vector<4x96xf32>
    %c279 = arith.constant 279 : index
    %c0_481 = arith.constant 0 : index
    %1153 = tpu.strided_load %arg14[%c279, %c0_481] {strides = array<i32: 2, 1>} : memref<320x96xf32, #tpu.memory_space<vmem>>, vector<4x96xf32>
    %1154 = vector.broadcast %847 : vector<1x96xf32> to vector<4x96xf32>
    %1155 = arith.mulf %1153, %1154 : vector<4x96xf32>
    %1156 = arith.addf %1152, %1155 : vector<4x96xf32>
    %c280_482 = arith.constant 280 : index
    %c0_483 = arith.constant 0 : index
    %1157 = tpu.strided_load %arg14[%c280_482, %c0_483] {strides = array<i32: 2, 1>} : memref<320x96xf32, #tpu.memory_space<vmem>>, vector<4x96xf32>
    %1158 = vector.broadcast %848 : vector<1x96xf32> to vector<4x96xf32>
    %1159 = arith.mulf %1157, %1158 : vector<4x96xf32>
    %1160 = arith.addf %1156, %1159 : vector<4x96xf32>
    %c281 = arith.constant 281 : index
    %c0_484 = arith.constant 0 : index
    %1161 = tpu.strided_load %arg14[%c281, %c0_484] {strides = array<i32: 2, 1>} : memref<320x96xf32, #tpu.memory_space<vmem>>, vector<4x96xf32>
    %1162 = vector.broadcast %849 : vector<1x96xf32> to vector<4x96xf32>
    %1163 = arith.mulf %1161, %1162 : vector<4x96xf32>
    %1164 = arith.addf %1160, %1163 : vector<4x96xf32>
    %c295_485 = arith.constant 295 : index
    %c0_486 = arith.constant 0 : index
    %1165 = tpu.strided_load %arg14[%c295_485, %c0_486] {strides = array<i32: 2, 1>} : memref<320x96xf32, #tpu.memory_space<vmem>>, vector<4x96xf32>
    %1166 = vector.broadcast %850 : vector<1x96xf32> to vector<4x96xf32>
    %1167 = arith.mulf %1165, %1166 : vector<4x96xf32>
    %1168 = arith.addf %1164, %1167 : vector<4x96xf32>
    %c296_487 = arith.constant 296 : index
    %c0_488 = arith.constant 0 : index
    %1169 = tpu.strided_load %arg14[%c296_487, %c0_488] {strides = array<i32: 2, 1>} : memref<320x96xf32, #tpu.memory_space<vmem>>, vector<4x96xf32>
    %1170 = vector.broadcast %851 : vector<1x96xf32> to vector<4x96xf32>
    %1171 = arith.mulf %1169, %1170 : vector<4x96xf32>
    %1172 = arith.addf %1168, %1171 : vector<4x96xf32>
    %c297_489 = arith.constant 297 : index
    %c0_490 = arith.constant 0 : index
    %1173 = tpu.strided_load %arg14[%c297_489, %c0_490] {strides = array<i32: 2, 1>} : memref<320x96xf32, #tpu.memory_space<vmem>>, vector<4x96xf32>
    %1174 = vector.broadcast %852 : vector<1x96xf32> to vector<4x96xf32>
    %1175 = arith.mulf %1173, %1174 : vector<4x96xf32>
    %1176 = arith.addf %1172, %1175 : vector<4x96xf32>
    %1177 = vector.broadcast %809 : vector<1x96xf32> to vector<4x96xf32>
    %1178 = arith.addf %1176, %1177 : vector<4x96xf32>
    %cst_491 = arith.constant 0.000000e+00 : f32
    %1179 = vector.broadcast %cst_491 : f32 to vector<4x96xf32>
    %1180 = arith.maximumf %1178, %1179 : vector<4x96xf32>
    %1181 = tpu.concatenate %893, %934, %975, %1016, %1057, %1098, %1139, %1180 in 0 : vector<4x96xf32>, vector<4x96xf32>, vector<4x96xf32>, vector<4x96xf32>, vector<4x96xf32>, vector<4x96xf32>, vector<4x96xf32>, vector<4x96xf32> -> vector<32x96xf32>
    %c0_492 = arith.constant 0 : index
    %c0_493 = arith.constant 0 : index
    %1182 = vector.load %arg10[%c0_492, %c0_493] : memref<96x64xf32, #tpu.memory_space<vmem>>, vector<96x64xf32>
    %cst_494 = arith.constant dense<0.000000e+00> : vector<32x64xf32>
    %1183 = tpu.matmul %1181, %1182, %cst_494 {dimension_numbers = #tpu.dot_dimension_numbers<[1], [0], [0], [1], [0, 0, 1, 1], [], []>} : vector<32x96xf32>, vector<96x64xf32>, vector<32x64xf32> -> vector<32x64xf32>
    %c8_495 = arith.constant 8 : index
    %c0_496 = arith.constant 0 : index
    %1184 = vector.load %arg11[%c8_495, %c0_496] : memref<9x128xf32, #tpu.memory_space<vmem>>, vector<1x64xf32>
    %1185 = vector.broadcast %1184 : vector<1x64xf32> to vector<32x64xf32>
    %1186 = arith.addf %1183, %1185 : vector<32x64xf32>
    %c0_497 = arith.constant 0 : index
    %c0_498 = arith.constant 0 : index
    %1187 = vector.load %arg15[%c0_497, %c0_498] : memref<32x64xf32, #tpu.memory_space<vmem>>, vector<32x64xf32>
    tpu.vector_store %arg15[%c0_497, %c0_498], %1186 {strides = array<i32>} : memref<32x64xf32, #tpu.memory_space<vmem>>, vector<32x64xf32>,
    %c0_499 = arith.constant 0 : index
    %c0_500 = arith.constant 0 : index
    %1188 = vector.load %arg15[%c0_499, %c0_500] : memref<32x64xf32, #tpu.memory_space<vmem>>, vector<1x64xf32>
    %c1_501 = arith.constant 1 : index
    %c0_502 = arith.constant 0 : index
    %1189 = vector.load %arg15[%c1_501, %c0_502] : memref<32x64xf32, #tpu.memory_space<vmem>>, vector<1x64xf32>
    %1190 = arith.maximumf %1188, %1189 : vector<1x64xf32>
    %c2_503 = arith.constant 2 : index
    %c0_504 = arith.constant 0 : index
    %1191 = vector.load %arg15[%c2_503, %c0_504] : memref<32x64xf32, #tpu.memory_space<vmem>>, vector<1x64xf32>
    %1192 = arith.maximumf %1190, %1191 : vector<1x64xf32>
    %c4_505 = arith.constant 4 : index
    %c0_506 = arith.constant 0 : index
    %1193 = vector.load %arg15[%c4_505, %c0_506] : memref<32x64xf32, #tpu.memory_space<vmem>>, vector<1x64xf32>
    %1194 = arith.maximumf %1192, %1193 : vector<1x64xf32>
    %c5_507 = arith.constant 5 : index
    %c0_508 = arith.constant 0 : index
    %1195 = vector.load %arg15[%c5_507, %c0_508] : memref<32x64xf32, #tpu.memory_space<vmem>>, vector<1x64xf32>
    %1196 = arith.maximumf %1194, %1195 : vector<1x64xf32>
    %c6_509 = arith.constant 6 : index
    %c0_510 = arith.constant 0 : index
    %1197 = vector.load %arg15[%c6_509, %c0_510] : memref<32x64xf32, #tpu.memory_space<vmem>>, vector<1x64xf32>
    %1198 = arith.maximumf %1196, %1197 : vector<1x64xf32>
    %c8_511 = arith.constant 8 : index
    %c0_512 = arith.constant 0 : index
    %1199 = vector.load %arg15[%c8_511, %c0_512] : memref<32x64xf32, #tpu.memory_space<vmem>>, vector<1x64xf32>
    %1200 = arith.maximumf %1198, %1199 : vector<1x64xf32>
    %c9_513 = arith.constant 9 : index
    %c0_514 = arith.constant 0 : index
    %1201 = vector.load %arg15[%c9_513, %c0_514] : memref<32x64xf32, #tpu.memory_space<vmem>>, vector<1x64xf32>
    %1202 = arith.maximumf %1200, %1201 : vector<1x64xf32>
    %c10 = arith.constant 10 : index
    %c0_515 = arith.constant 0 : index
    %1203 = vector.load %arg15[%c10, %c0_515] : memref<32x64xf32, #tpu.memory_space<vmem>>, vector<1x64xf32>
    %1204 = arith.maximumf %1202, %1203 : vector<1x64xf32>
    %c16 = arith.constant 16 : index
    %c0_516 = arith.constant 0 : index
    %1205 = vector.load %arg15[%c16, %c0_516] : memref<32x64xf32, #tpu.memory_space<vmem>>, vector<1x64xf32>
    %c17 = arith.constant 17 : index
    %c0_517 = arith.constant 0 : index
    %1206 = vector.load %arg15[%c17, %c0_517] : memref<32x64xf32, #tpu.memory_space<vmem>>, vector<1x64xf32>
    %1207 = arith.maximumf %1205, %1206 : vector<1x64xf32>
    %c18 = arith.constant 18 : index
    %c0_518 = arith.constant 0 : index
    %1208 = vector.load %arg15[%c18, %c0_518] : memref<32x64xf32, #tpu.memory_space<vmem>>, vector<1x64xf32>
    %1209 = arith.maximumf %1207, %1208 : vector<1x64xf32>
    %c20 = arith.constant 20 : index
    %c0_519 = arith.constant 0 : index
    %1210 = vector.load %arg15[%c20, %c0_519] : memref<32x64xf32, #tpu.memory_space<vmem>>, vector<1x64xf32>
    %1211 = arith.maximumf %1209, %1210 : vector<1x64xf32>
    %c21 = arith.constant 21 : index
    %c0_520 = arith.constant 0 : index
    %1212 = vector.load %arg15[%c21, %c0_520] : memref<32x64xf32, #tpu.memory_space<vmem>>, vector<1x64xf32>
    %1213 = arith.maximumf %1211, %1212 : vector<1x64xf32>
    %c22 = arith.constant 22 : index
    %c0_521 = arith.constant 0 : index
    %1214 = vector.load %arg15[%c22, %c0_521] : memref<32x64xf32, #tpu.memory_space<vmem>>, vector<1x64xf32>
    %1215 = arith.maximumf %1213, %1214 : vector<1x64xf32>
    %c24_522 = arith.constant 24 : index
    %c0_523 = arith.constant 0 : index
    %1216 = vector.load %arg15[%c24_522, %c0_523] : memref<32x64xf32, #tpu.memory_space<vmem>>, vector<1x64xf32>
    %1217 = arith.maximumf %1215, %1216 : vector<1x64xf32>
    %c25_524 = arith.constant 25 : index
    %c0_525 = arith.constant 0 : index
    %1218 = vector.load %arg15[%c25_524, %c0_525] : memref<32x64xf32, #tpu.memory_space<vmem>>, vector<1x64xf32>
    %1219 = arith.maximumf %1217, %1218 : vector<1x64xf32>
    %c26 = arith.constant 26 : index
    %c0_526 = arith.constant 0 : index
    %1220 = vector.load %arg15[%c26, %c0_526] : memref<32x64xf32, #tpu.memory_space<vmem>>, vector<1x64xf32>
    %1221 = arith.maximumf %1219, %1220 : vector<1x64xf32>
    %1222 = tpu.concatenate %1204, %1221 in 0 : vector<1x64xf32>, vector<1x64xf32> -> vector<2x64xf32>
    %c0_527 = arith.constant 0 : index
    %c0_528 = arith.constant 0 : index
    %c0_529 = arith.constant 0 : index
    %1223 = vector.load %arg12[%c0_527, %c0_528, %c0_529] : memref<1x2x64xf32, #tpu.memory_space<vmem>>, vector<1x2x64xf32>
    %1224 = vector.shape_cast %1223 : vector<1x2x64xf32> to vector<2x64xf32>
    %1225 = vector.shape_cast %1222 : vector<2x64xf32> to vector<1x2x64xf32>
    tpu.vector_store %arg12[%c0_527, %c0_528, %c0_529], %1225 {strides = array<i32>} : memref<1x2x64xf32, #tpu.memory_space<vmem>>, vector<1x2x64xf32>,
    return
  }
  func.func @transform_0(%arg0: i32) -> (i32, i32, i32) {
    %c0_i32 = arith.constant 0 : i32
    %c0_i32_0 = arith.constant 0 : i32
    %c0_i32_1 = arith.constant 0 : i32
    return %arg0, %c0_i32, %c0_i32_0 : i32, i32, i32
  }
  func.func @transform_1(%arg0: i32) -> (i32, i32) {
    %c0_i32 = arith.constant 0 : i32
    %c0_i32_0 = arith.constant 0 : i32
    %c0_i32_1 = arith.constant 0 : i32
    return %c0_i32, %c0_i32_0 : i32, i32
  }
  func.func @transform_2(%arg0: i32) -> (i32, i32) {
    %c0_i32 = arith.constant 0 : i32
    %c0_i32_0 = arith.constant 0 : i32
    %c0_i32_1 = arith.constant 0 : i32
    return %c0_i32, %c0_i32_0 : i32, i32
  }
  func.func @transform_3(%arg0: i32) -> (i32, i32) {
    %c0_i32 = arith.constant 0 : i32
    %c0_i32_0 = arith.constant 0 : i32
    %c0_i32_1 = arith.constant 0 : i32
    return %c0_i32, %c0_i32_0 : i32, i32
  }
  func.func @transform_4(%arg0: i32) -> (i32, i32) {
    %c0_i32 = arith.constant 0 : i32
    %c0_i32_0 = arith.constant 0 : i32
    %c0_i32_1 = arith.constant 0 : i32
    return %c0_i32, %c0_i32_0 : i32, i32
  }
  func.func @transform_5(%arg0: i32) -> (i32, i32) {
    %c0_i32 = arith.constant 0 : i32
    %c0_i32_0 = arith.constant 0 : i32
    %c0_i32_1 = arith.constant 0 : i32
    return %c0_i32, %c0_i32_0 : i32, i32
  }
  func.func @transform_6(%arg0: i32) -> (i32, i32) {
    %c0_i32 = arith.constant 0 : i32
    %c0_i32_0 = arith.constant 0 : i32
    %c0_i32_1 = arith.constant 0 : i32
    return %c0_i32, %c0_i32_0 : i32, i32
  }
  func.func @transform_7(%arg0: i32) -> (i32, i32) {
    %c0_i32 = arith.constant 0 : i32
    %c0_i32_0 = arith.constant 0 : i32
    %c0_i32_1 = arith.constant 0 : i32
    return %c0_i32, %c0_i32_0 : i32, i32
  }
  func.func @transform_8(%arg0: i32) -> (i32, i32) {
    %c0_i32 = arith.constant 0 : i32
    %c0_i32_0 = arith.constant 0 : i32
    %c0_i32_1 = arith.constant 0 : i32
    return %c0_i32, %c0_i32_0 : i32, i32
  }
  func.func @transform_9(%arg0: i32) -> (i32, i32) {
    %c0_i32 = arith.constant 0 : i32
    %c0_i32_0 = arith.constant 0 : i32
    %c0_i32_1 = arith.constant 0 : i32
    return %c0_i32, %c0_i32_0 : i32, i32
  }
  func.func @transform_10(%arg0: i32) -> (i32, i32) {
    %c0_i32 = arith.constant 0 : i32
    %c0_i32_0 = arith.constant 0 : i32
    %c0_i32_1 = arith.constant 0 : i32
    return %c0_i32, %c0_i32_0 : i32, i32
  }
  func.func @transform_11(%arg0: i32) -> (i32, i32, i32) {
    %c0_i32 = arith.constant 0 : i32
    %c0_i32_0 = arith.constant 0 : i32
    %c0_i32_1 = arith.constant 0 : i32
    return %arg0, %c0_i32, %c0_i32_0 : i32, i32, i32
  }
}

</mosaic_0001>

<bundles_post_ra>
// kernel: mobilenet_v3_blocknet_forward.1
= control target key start
LH: loop header
LB: loop body
LE: loop exit
PB: predicated region body
PF: predicated region fallthrough
CT: control target
= control target key end

     0   :  { %vm303_vm0 = vcmask 1040384   ;;  %vm4356_vm1 = vmmov 1   ;;  %vm110_vm3 = vcmask 72704   ;;  %s5908_s0 = inlined_call_operand.vmem [shape: f32[1,512,9], index: 0, kind: input, shape index: {}]   ;;  %s5909_s1 = inlined_call_operand.vmem [shape: f32[9,16], index: 1, kind: input, shape index: {}]   ;;  %s5910_s2 = inlined_call_operand.vmem [shape: f32[16,16], index: 2, kind: input, shape index: {}]   ;;  %s5911_s3 = inlined_call_operand.vmem [shape: f32[9,16], index: 3, kind: input, shape index: {}]   ;;  %s5912_s4 = inlined_call_operand.vmem [shape: f32[16,16], index: 4, kind: input, shape index: {}]   ;;  %s5913_s5 = inlined_call_operand.vmem [shape: f32[16,4], index: 5, kind: input, shape index: {}]   ;;  %s5914_s6 = inlined_call_operand.vmem [shape: f32[4,16], index: 6, kind: input, shape index: {}]   ;;  %s5915_s7 = inlined_call_operand.vmem [shape: f32[16,96], index: 7, kind: input, shape index: {}]   ;;  %s5916_s8 = inlined_call_operand.vmem [shape: f32[9,96], index: 8, kind: input, shape index: {}]   ;;  %s5917_s9 = inlined_call_operand.vmem [shape: f32[96,64], index: 9, kind: input, shape index: {}]   ;;  %s5918_s10 = inlined_call_operand.vmem [shape: f32[9,128], index: 10, kind: input, shape index: {}]   ;;  %s5919_s11 = inlined_call_operand.hbm [shape: f32[1,2,64], index: 11, kind: output, shape index: {}]  }
   0x1   :  { %v103_v0 = vld [vmem:[%s5909_s1] sm:$0xff]  ;;  %v104_v1 = vld [vmem:[%s5909_s1 + $0x8] sm:$0x1]  ;;  %vm4279_vm2 = vmpackc.low %vm303_vm0, %vm4356_vm1 }
   0x2   :  { %v39_v2 = vld [vmem:[%s5908_s0] sm:$0xff]  ;;  %v4278_v3 = vpack.c.bf16 %v104_v1, %v103_v0  ;;  %v40_v4 = vld [vmem:[%s5908_s0 + $0x8] sm:$0xff]  ;;  %v41_v5 = vld [vmem:[%s5908_s0 + $0x10] sm:$0xff] }
   0x3   :  { %3984 = vmatprep.mubr.msk.f32.mxu0 %vm110_vm3, %v39_v2  ;;  %v42_v6 = vld [vmem:[%s5908_s0 + $0x18] sm:$0xff]  ;;  %v43_v7 = vld [vmem:[%s5908_s0 + $0x20] sm:$0xff]  ;;  %v44_v8 = vld [vmem:[%s5908_s0 + $0x28] sm:$0xff] }
   0x4   :  { %4280 = vmatprep.subr.msk.bf16.mxu0 %vm4279_vm2, %v4278_v3  ;;  %v45_v9 = vld [vmem:[%s5908_s0 + $0x30] sm:$0xff]  ;;  %v46_v10 = vld [vmem:[%s5908_s0 + $0x38] sm:$0xff]  ;;  %v47_v11 = vld [vmem:[%s5908_s0 + $0x40] sm:$0xff] }
   0x5   :  { %4283 = vmatpush3.bf16.msk.msra.mxu0 %vm4279_vm2, %v4278_v3  ;;  %v48_v12 = vld [vmem:[%s5908_s0 + $0x48] sm:$0xff]  ;;  %v49_v13 = vld [vmem:[%s5908_s0 + $0x50] sm:$0xff] }
   0x8   :  { %3985 = vmatmul.mubr.msk.f32.vlgmr.msra.gmra.mrb[0].mxu0 %vm110_vm3, %v40_v4 }
   0x9   :  { %3987 = vmatprep.mubr.msk.f32.mxu0 %vm110_vm3, %v41_v5 }
   0xc   :  { %3988 = vmatmul.mubr.msk.f32.gmra.mrb[2].mxu0 %vm110_vm3, %v42_v6 }
   0xd   :  { %3990 = vmatprep.mubr.msk.f32.mxu0 %vm110_vm3, %v43_v7 }
  0x10   :  { %3991 = vmatmul.mubr.msk.f32.gmra.mrb[4].mxu0 %vm110_vm3, %v44_v8 }
  0x11   :  { %3993 = vmatprep.mubr.msk.f32.mxu0 %vm110_vm3, %v45_v9 }
  0x14   :  { %3994 = vmatmul.mubr.msk.f32.gmra.mrb[6].mxu0 %vm110_vm3, %v46_v10 }
  0x15   :  { %3996 = vmatprep.mubr.msk.f32.mxu0 %vm110_vm3, %v47_v11 }
  0x16   :  { %16 = vsyncpa [#allocation6], 0  ;;  %v50_v14 = vld [vmem:[%s5908_s0 + $0x58] sm:$0xff]  ;;  %v51_v15 = vld [vmem:[%s5908_s0 + $0x60] sm:$0xff]  ;;  %vm1019_vm4 = vcmask 130048   ;;  %vm4359_vm5 = vmmov 0  }
  0x17   :  { %v52_v16 = vld [vmem:[%s5908_s0 + $0x68] sm:$0xff]  ;;  %v53_v17 = vld [vmem:[%s5908_s0 + $0x70] sm:$0xff]  ;;  %v54_v18 = vld [vmem:[%s5908_s0 + $0x78] sm:$0xff]  ;;  %vm2737_vm6 = vcmask 1043456   ;;  %vm2733_vm7 = vcmask 31744   ;;  %vm3058_vm8 = vcmask 785408  }
  0x18   :  { %3997 = vmatmul.mubr.msk.f32.gmra.mrb[8].mxu0 %vm110_vm3, %v48_v12  ;;  %v55_v19 = vld [vmem:[%s5908_s0 + $0x80] sm:$0xff]  ;;  %v56_v20 = vld [vmem:[%s5908_s0 + $0x88] sm:$0xff]  ;;  %v57_v21 = vld [vmem:[%s5908_s0 + $0x90] sm:$0xff]  ;;  %vm3553_vm9 = vcmask 523264   ;;  %vm3596_vm10 = vcmask 517120  }
  0x19   :  { %3999 = vmatprep.mubr.msk.f32.mxu0 %vm110_vm3, %v49_v13  ;;  %v58_v22 = vld [vmem:[%s5908_s0 + $0x98] sm:$0xff]  ;;  %v59_v23 = vld [vmem:[%s5908_s0 + $0xa0] sm:$0xff]  ;;  %v60_v24 = vld [vmem:[%s5908_s0 + $0xa8] sm:$0xff] }
  0x1a   :  { %v61_v25 = vld [vmem:[%s5908_s0 + $0xb0] sm:$0xff]  ;;  %v62_v26 = vld [vmem:[%s5908_s0 + $0xb8] sm:$0xff]  ;;  %v63_v27 = vld [vmem:[%s5908_s0 + $0xc0] sm:$0xff] }
  0x1b   :  { %v64_v28 = vld [vmem:[%s5908_s0 + $0xc8] sm:$0xff]  ;;  %v65_v29 = vld [vmem:[%s5908_s0 + $0xd0] sm:$0xff]  ;;  %v66_v30 = vld [vmem:[%s5908_s0 + $0xd8] sm:$0xff] }
  0x1c   :  { %4000 = vmatmul.mubr.msk.f32.gmra.mrb[10].mxu0 %vm110_vm3, %v50_v14  ;;  %v67_v31 = vld [vmem:[%s5908_s0 + $0xe0] sm:$0xff]  ;;  %v68_v32 = vld [vmem:[%s5908_s0 + $0xe8] sm:$0xff]  ;;  %v69_v33 = vld [vmem:[%s5908_s0 + $0xf0] sm:$0xff] }
  0x1d   :  { %4002 = vmatprep.mubr.msk.f32.mxu0 %vm110_vm3, %v51_v15  ;;  %v70_v34 = vld [vmem:[%s5908_s0 + $0xf8] sm:$0xff]  ;;  %v71_v35 = vld [vmem:[%s5908_s0 + $0x100] sm:$0xff]  ;;  %v72_v36 = vld [vmem:[%s5908_s0 + $0x108] sm:$0xff] }
  0x1e   :  { %v73_v37 = vld [vmem:[%s5908_s0 + $0x110] sm:$0xff]  ;;  %v74_v38 = vld [vmem:[%s5908_s0 + $0x118] sm:$0xff]  ;;  %v75_v39 = vld [vmem:[%s5908_s0 + $0x120] sm:$0xff] }
  0x1f   :  { %v76_v40 = vld [vmem:[%s5908_s0 + $0x128] sm:$0xff]  ;;  %v77_v41 = vld [vmem:[%s5908_s0 + $0x130] sm:$0xff]  ;;  %v78_v42 = vld [vmem:[%s5908_s0 + $0x138] sm:$0xff] }
  0x20   :  { %4003 = vmatmul.mubr.msk.f32.gmra.mrb[12].mxu0 %vm110_vm3, %v52_v16  ;;  %v79_v43 = vld [vmem:[%s5908_s0 + $0x140] sm:$0xff]  ;;  %v80_v44 = vld [vmem:[%s5908_s0 + $0x148] sm:$0xff]  ;;  %v81_v45 = vld [vmem:[%s5908_s0 + $0x150] sm:$0xff] }
  0x21   :  { %4005 = vmatprep.mubr.msk.f32.mxu0 %vm110_vm3, %v53_v17  ;;  %v82_v46 = vld [vmem:[%s5908_s0 + $0x158] sm:$0xff]  ;;  %v83_v47 = vld [vmem:[%s5908_s0 + $0x160] sm:$0xff]  ;;  %v84_v48 = vld [vmem:[%s5908_s0 + $0x168] sm:$0xff] }
  0x22   :  { %v85_v49 = vld [vmem:[%s5908_s0 + $0x170] sm:$0xff]  ;;  %v86_v50 = vld [vmem:[%s5908_s0 + $0x178] sm:$0xff]  ;;  %v87_v51 = vld [vmem:[%s5908_s0 + $0x180] sm:$0xff] }
  0x23   :  { %v1012_v52 = vld [vmem:[%s5910_s2] sm:$0xff]  ;;  %v1013_v53 = vld [vmem:[%s5910_s2 + $0x8] sm:$0xff]  ;;  %v89_v56 = vld [vmem:[%s5908_s0 + $0x190] sm:$0xff] }
  0x24   :  { %4006 = vmatmul.mubr.msk.f32.gmra.mrb[14].mxu0 %vm110_vm3, %v54_v18  ;;  %v4284_v54 = vpack.c.bf16 %v1013_v53, %v1012_v52  ;;  %v88_v55 = vld [vmem:[%s5908_s0 + $0x188] sm:$0xff]  ;;  %v90_v57 = vld [vmem:[%s5908_s0 + $0x198] sm:$0xff]  ;;  %v91_v58 = vld [vmem:[%s5908_s0 + $0x1a0] sm:$0xff] }
  0x25   :  { %4008 = vmatprep.mubr.msk.f32.mxu0 %vm110_vm3, %v55_v19  ;;  %v92_v59 = vld [vmem:[%s5908_s0 + $0x1a8] sm:$0xff]  ;;  %v93_v60 = vld [vmem:[%s5908_s0 + $0x1b0] sm:$0xff]  ;;  %v94_v61 = vld [vmem:[%s5908_s0 + $0x1b8] sm:$0xff] }
  0x26   :  { %4285 = vmatprep.subr.bf16.mxu1 %v4284_v54  ;;  %v95_v62 = vld [vmem:[%s5908_s0 + $0x1c0] sm:$0xff]  ;;  %v96_v63 = vld [vmem:[%s5908_s0 + $0x1c8] sm:$0xff]  ;;  %v97_v0 = vld [vmem:[%s5908_s0 + $0x1d0] sm:$0xff] }
  0x27   :  { %4287 = vmatpush3.bf16.msra.mxu1 %v4284_v54  ;;  %v98_v1 = vld [vmem:[%s5908_s0 + $0x1d8] sm:$0xff]  ;;  %v99_v2 = vld [vmem:[%s5908_s0 + $0x1e0] sm:$0xff]  ;;  %v100_v3 = vld [vmem:[%s5908_s0 + $0x1e8] sm:$0xff] }
  0x28   :  { %4009 = vmatmul.mubr.msk.f32.gmra.mrb[16].mxu0 %vm110_vm3, %v56_v20  ;;  %v101_v4 = vld [vmem:[%s5908_s0 + $0x1f0] sm:$0xff]  ;;  %v102_v5 = vld [vmem:[%s5908_s0 + $0x1f8] sm:$0xff]  ;;  %v4693_v6 = vld [vmem:[%s5918_s10] ss:$0 sm:$0xff] }
  0x29   :  { %4011 = vmatprep.mubr.msk.f32.mxu0 %vm110_vm3, %v57_v21 }
  0x2c   :  { %4012 = vmatmul.mubr.msk.f32.gmra.mrb[18].mxu0 %vm110_vm3, %v58_v22 }
  0x2d   :  { %4014 = vmatprep.mubr.msk.f32.mxu0 %vm110_vm3, %v59_v23 }
  0x30   :  { %4015 = vmatmul.mubr.msk.f32.gmra.mrb[20].mxu0 %vm110_vm3, %v60_v24 }
  0x31   :  { %4017 = vmatprep.mubr.msk.f32.mxu0 %vm110_vm3, %v61_v25 }
  0x34   :  { %4018 = vmatmul.mubr.msk.f32.gmra.mrb[22].mxu0 %vm110_vm3, %v62_v26 }
  0x35   :  { %4020 = vmatprep.mubr.msk.f32.mxu0 %vm110_vm3, %v63_v27 }
  0x38   :  { %4021 = vmatmul.mubr.msk.f32.gmra.mrb[24].mxu0 %vm110_vm3, %v64_v28 }
  0x39   :  { %4023 = vmatprep.mubr.msk.f32.mxu0 %vm110_vm3, %v65_v29 }
  0x3c   :  { %4024 = vmatmul.mubr.msk.f32.gmra.mrb[26].mxu0 %vm110_vm3, %v66_v30 }
  0x3d   :  { %4026 = vmatprep.mubr.msk.f32.mxu0 %vm110_vm3, %v67_v31 }
  0x40   :  { %4027 = vmatmul.mubr.msk.f32.gmra.mrb[28].mxu0 %vm110_vm3, %v68_v32 }
  0x41   :  { %4029 = vmatprep.mubr.msk.f32.mxu0 %vm110_vm3, %v69_v33  ;;  %v2400_v33 = vld [vmem:[%s5912_s4] sm:$0xff] }
  0x44   :  { %4030 = vmatmul.mubr.msk.f32.gmra.mrb[30].mxu0 %vm110_vm3, %v70_v34  ;;  %v2401_v34 = vld [vmem:[%s5912_s4 + $0x8] sm:$0xff] }
  0x45   :  { %4032 = vmatprep.mubr.msk.f32.mxu0 %vm110_vm3, %v71_v35 }
  0x48   :  { %4033 = vmatmul.mubr.msk.f32.gmra.mrb[32].mxu0 %vm110_vm3, %v72_v36 }
  0x49   :  { %4035 = vmatprep.mubr.msk.f32.mxu0 %vm110_vm3, %v73_v37 }
  0x4c   :  { %4036 = vmatmul.mubr.msk.f32.gmra.mrb[34].mxu0 %vm110_vm3, %v74_v38 }
  0x4d   :  { %4038 = vmatprep.mubr.msk.f32.mxu0 %vm110_vm3, %v75_v39  ;;  %v4288_v39 = vpack.c.bf16 %v2401_v34, %v2400_v33 }
  0x4f   :  { %4289 = vmatprep.subr.bf16.mxu0 %v4288_v39 }
  0x50   :  { %4039 = vmatmul.mubr.msk.f32.gmra.mrb[36].mxu0 %vm110_vm3, %v76_v40 }
  0x51   :  { %4041 = vmatprep.mubr.msk.f32.mxu0 %vm110_vm3, %v77_v41  ;;  %4291 = vmatpush3.bf16.msra.mxu0 %v4288_v39 }
  0x54   :  { %4042 = vmatmul.mubr.msk.f32.gmra.mrb[38].mxu0 %vm110_vm3, %v78_v42 }
  0x55   :  { %4044 = vmatprep.mubr.msk.f32.mxu0 %vm110_vm3, %v79_v43 }
  0x58   :  { %4045 = vmatmul.mubr.msk.f32.gmra.mrb[40].mxu0 %vm110_vm3, %v80_v44 }
  0x59   :  { %4047 = vmatprep.mubr.msk.f32.mxu0 %vm110_vm3, %v81_v45 }
  0x5c   :  { %4048 = vmatmul.mubr.msk.f32.gmra.mrb[42].mxu0 %vm110_vm3, %v82_v46 }
  0x5d   :  { %4050 = vmatprep.mubr.msk.f32.mxu0 %vm110_vm3, %v83_v47 }
  0x60   :  { %4051 = vmatmul.mubr.msk.f32.gmra.mrb[44].mxu0 %vm110_vm3, %v84_v48 }
  0x61   :  { %4053 = vmatprep.mubr.msk.f32.mxu0 %vm110_vm3, %v85_v49 }
  0x64   :  { %4054 = vmatmul.mubr.msk.f32.gmra.mrb[46].mxu0 %vm110_vm3, %v86_v50 }
  0x65   :  { %4056 = vmatprep.mubr.msk.f32.mxu0 %vm110_vm3, %v87_v51 }
  0x68   :  { %4057 = vmatmul.mubr.msk.f32.gmra.mrb[48].mxu0 %vm110_vm3, %v88_v55 }
  0x69   :  { %4059 = vmatprep.mubr.msk.f32.mxu0 %vm110_vm3, %v89_v56 }
  0x6c   :  { %4060 = vmatmul.mubr.msk.f32.gmra.mrb[50].mxu0 %vm110_vm3, %v90_v57 }
  0x6d   :  { %4062 = vmatprep.mubr.msk.f32.mxu0 %vm110_vm3, %v91_v58 }
  0x70   :  { %4063 = vmatmul.mubr.msk.f32.gmra.mrb[52].mxu0 %vm110_vm3, %v92_v59 }
  0x71   :  { %4065 = vmatprep.mubr.msk.f32.mxu0 %vm110_vm3, %v93_v60 }
  0x74   :  { %4066 = vmatmul.mubr.msk.f32.gmra.mrb[54].mxu0 %vm110_vm3, %v94_v61 }
  0x75   :  { %4068 = vmatprep.mubr.msk.f32.mxu0 %vm110_vm3, %v95_v62 }
  0x78   :  { %4069 = vmatmul.mubr.msk.f32.gmra.mrb[56].mxu0 %vm110_vm3, %v96_v63 }
  0x79   :  { %4071 = vmatprep.mubr.msk.f32.mxu0 %vm110_vm3, %v97_v0 }
  0x7c   :  { %4072 = vmatmul.mubr.msk.f32.gmra.mrb[58].mxu0 %vm110_vm3, %v98_v1 }
  0x7d   :  { %4074 = vmatprep.mubr.msk.f32.mxu0 %vm110_vm3, %v99_v2 }
  0x80   :  { %4075 = vmatmul.mubr.msk.f32.gmra.mrb[60].mxu0 %vm110_vm3, %v100_v3 }
  0x81   :  { %4077 = vmatprep.mubr.msk.f32.mxu0 %vm110_vm3, %v101_v4 }
  0x84   :  { %4078 = vmatmul.mubr.msk.f32.gmra.mrb[62].mxu0 %vm110_vm3, %v102_v5 }
  0xdb   :  { %v3986_v7 = vpop.f32.mrb[0].mxu0 }
  0xdc   :  { %v379_v8 = vadd.f32 %v3986_v7, %v4693_v6  ;;  %v373_v9 = vpop.f32.mrb[1].mxu0 }
  0xdd   :  { %v374_v10 = vadd.f32 %v4693_v6, %v373_v9 }
  0xde   :  { %v693_v11 = vadd.f32 3.0, %v379_v8 }
  0xdf   :  { %v692_v12 = vadd.f32 3.0, %v374_v10  ;;  %v3989_v13 = vpop.f32.mrb[2].mxu0 }
  0xe0   :  { %v757_v14 = vmax.f32 %v693_v11, 0.0  ;;  %v389_v15 = vadd.f32 %v3989_v13, %v4693_v6  ;;  %v383_v16 = vpop.f32.mrb[3].mxu0 }
  0xe1   :  { %v756_v17 = vmax.f32 %v692_v12, 0.0  ;;  %v384_v18 = vadd.f32 %v4693_v6, %v383_v16 }
  0xe2   :  { %v821_v19 = vmin.f32 %v757_v14, 6.0  ;;  %v695_v20 = vadd.f32 3.0, %v389_v15 }
  0xe3   :  { %v820_v21 = vmin.f32 %v756_v17, 6.0  ;;  %v694_v22 = vadd.f32 3.0, %v384_v18  ;;  %v3992_v23 = vpop.f32.mrb[4].mxu0 }
  0xe4   :  { %v885_v24 = vmul.f32 %v821_v19, %v379_v8  ;;  %v759_v25 = vmax.f32 %v695_v20, 0.0  ;;  %v399_v26 = vadd.f32 %v3992_v23, %v4693_v6  ;;  %v393_v27 = vpop.f32.mrb[5].mxu0 }
  0xe5   :  { %v758_v28 = vmax.f32 %v694_v22, 0.0  ;;  %v394_v29 = vadd.f32 %v4693_v6, %v393_v27  ;;  %v884_v30 = vmul.f32 %v820_v21, %v374_v10 }
  0xe6   :  { %v823_v31 = vmin.f32 %v759_v25, 6.0  ;;  %v697_v32 = vadd.f32 3.0, %v399_v26  ;;  %v949_v40 = vmul.f32 0.16666667, %v885_v24 }
  0xe7   :  { %v822_v35 = vmin.f32 %v758_v28, 6.0  ;;  %v696_v36 = vadd.f32 3.0, %v394_v29  ;;  %v3995_v37 = vpop.f32.mrb[6].mxu0  ;;  %v948_v38 = vmul.f32 0.16666667, %v884_v30 }
  0xe8   :  { %v887_v41 = vmul.f32 %v823_v31, %v389_v15  ;;  %v761_v42 = vmax.f32 %v697_v32, 0.0  ;;  %v409_v43 = vadd.f32 %v3995_v37, %v4693_v6  ;;  %v403_v44 = vpop.f32.mrb[7].mxu0 }
  0xe9   :  { %v886_v45 = vmul.f32 %v822_v35, %v384_v18  ;;  %v760_v46 = vmax.f32 %v696_v36, 0.0  ;;  %v404_v47 = vadd.f32 %v4693_v6, %v403_v44  ;;  %4084 = vmatprep.mubr.msk.f32.mxu1 %vm1019_vm4, %v948_v38 }
  0xea   :  { %v825_v48 = vmin.f32 %v761_v42, 6.0  ;;  %v699_v49 = vadd.f32 3.0, %v409_v43  ;;  %4085 = vmatmul.mubr.msk.f32.vlgmr.msra.gmra.mrb[0].mxu1 %vm1019_vm4, %v949_v40  ;;  %v951_v54 = vmul.f32 0.16666667, %v887_v41 }
  0xeb   :  { %v950_v50 = vmul.f32 0.16666667, %v886_v45  ;;  %v824_v51 = vmin.f32 %v760_v46, 6.0  ;;  %v698_v52 = vadd.f32 3.0, %v404_v47  ;;  %v3998_v53 = vpop.f32.mrb[8].mxu0 }
  0xec   :  { %v889_v55 = vmul.f32 %v825_v48, %v399_v26  ;;  %v763_v56 = vmax.f32 %v699_v49, 0.0  ;;  %v419_v57 = vadd.f32 %v3998_v53, %v4693_v6  ;;  %v413_v58 = vpop.f32.mrb[9].mxu0 }
  0xed   :  { %v888_v59 = vmul.f32 %v824_v51, %v394_v29  ;;  %v762_v60 = vmax.f32 %v698_v52, 0.0  ;;  %v414_v61 = vadd.f32 %v4693_v6, %v413_v58  ;;  %4087 = vmatprep.mubr.msk.f32.mxu1 %vm1019_vm4, %v950_v50 }
  0xee   :  { %v827_v62 = vmin.f32 %v763_v56, 6.0  ;;  %v701_v63 = vadd.f32 3.0, %v419_v57  ;;  %4088 = vmatmul.mubr.msk.f32.gmra.mrb[2].mxu1 %vm1019_vm4, %v951_v54  ;;  %v953_v4 = vmul.f32 0.16666667, %v889_v55 }
  0xef   :  { %v952_v0 = vmul.f32 0.16666667, %v888_v59  ;;  %v826_v1 = vmin.f32 %v762_v60, 6.0  ;;  %v700_v2 = vadd.f32 3.0, %v414_v61  ;;  %v4001_v3 = vpop.f32.mrb[10].mxu0 }
  0xf0   :  { %v891_v5 = vmul.f32 %v827_v62, %v409_v43  ;;  %v765_v7 = vmax.f32 %v701_v63, 0.0  ;;  %v429_v8 = vadd.f32 %v4001_v3, %v4693_v6  ;;  %v423_v9 = vpop.f32.mrb[11].mxu0 }
  0xf1   :  { %v890_v10 = vmul.f32 %v826_v1, %v404_v47  ;;  %v764_v11 = vmax.f32 %v700_v2, 0.0  ;;  %v424_v12 = vadd.f32 %v4693_v6, %v423_v9  ;;  %4090 = vmatprep.mubr.msk.f32.mxu1 %vm1019_vm4, %v952_v0 }
  0xf2   :  { %v829_v13 = vmin.f32 %v765_v7, 6.0  ;;  %v703_v14 = vadd.f32 3.0, %v429_v8  ;;  %4091 = vmatmul.mubr.msk.f32.gmra.mrb[4].mxu1 %vm1019_vm4, %v953_v4  ;;  %v955_v19 = vmul.f32 0.16666667, %v891_v5 }
  0xf3   :  { %v954_v15 = vmul.f32 0.16666667, %v890_v10  ;;  %v828_v16 = vmin.f32 %v764_v11, 6.0  ;;  %v702_v17 = vadd.f32 3.0, %v424_v12  ;;  %v4004_v18 = vpop.f32.mrb[12].mxu0 }
  0xf4   :  { %v893_v20 = vmul.f32 %v829_v13, %v419_v57  ;;  %v767_v21 = vmax.f32 %v703_v14, 0.0  ;;  %v439_v22 = vadd.f32 %v4004_v18, %v4693_v6  ;;  %v433_v23 = vpop.f32.mrb[13].mxu0 }
  0xf5   :  { %v892_v24 = vmul.f32 %v828_v16, %v414_v61  ;;  %v766_v25 = vmax.f32 %v702_v17, 0.0  ;;  %v434_v26 = vadd.f32 %v4693_v6, %v433_v23  ;;  %4093 = vmatprep.mubr.msk.f32.mxu1 %vm1019_vm4, %v954_v15 }
  0xf6   :  { %v831_v27 = vmin.f32 %v767_v21, 6.0  ;;  %v705_v28 = vadd.f32 3.0, %v439_v22  ;;  %4094 = vmatmul.mubr.msk.f32.gmra.mrb[6].mxu1 %vm1019_vm4, %v955_v19  ;;  %v957_v33 = vmul.f32 0.16666667, %v893_v20 }
  0xf7   :  { %v956_v29 = vmul.f32 0.16666667, %v892_v24  ;;  %v830_v30 = vmin.f32 %v766_v25, 6.0  ;;  %v704_v31 = vadd.f32 3.0, %v434_v26  ;;  %v4007_v32 = vpop.f32.mrb[14].mxu0 }
  0xf8   :  { %v895_v34 = vmul.f32 %v831_v27, %v429_v8  ;;  %v769_v35 = vmax.f32 %v705_v28, 0.0  ;;  %v449_v36 = vadd.f32 %v4007_v32, %v4693_v6  ;;  %v443_v37 = vpop.f32.mrb[15].mxu0 }
  0xf9   :  { %v894_v38 = vmul.f32 %v830_v30, %v424_v12  ;;  %v768_v39 = vmax.f32 %v704_v31, 0.0  ;;  %v444_v40 = vadd.f32 %v4693_v6, %v443_v37  ;;  %4096 = vmatprep.mubr.msk.f32.mxu1 %vm1019_vm4, %v956_v29 }
  0xfa   :  { %v833_v41 = vmin.f32 %v769_v35, 6.0  ;;  %v707_v42 = vadd.f32 3.0, %v449_v36  ;;  %4097 = vmatmul.mubr.msk.f32.gmra.mrb[8].mxu1 %vm1019_vm4, %v957_v33  ;;  %v959_v47 = vmul.f32 0.16666667, %v895_v34 }
  0xfb   :  { %v958_v43 = vmul.f32 0.16666667, %v894_v38  ;;  %v832_v44 = vmin.f32 %v768_v39, 6.0  ;;  %v706_v45 = vadd.f32 3.0, %v444_v40  ;;  %v4010_v46 = vpop.f32.mrb[16].mxu0 }
  0xfc   :  { %v897_v48 = vmul.f32 %v833_v41, %v439_v22  ;;  %v771_v49 = vmax.f32 %v707_v42, 0.0  ;;  %v459_v50 = vadd.f32 %v4010_v46, %v4693_v6  ;;  %v453_v51 = vpop.f32.mrb[17].mxu0 }
  0xfd   :  { %v896_v52 = vmul.f32 %v832_v44, %v434_v26  ;;  %v770_v53 = vmax.f32 %v706_v45, 0.0  ;;  %v454_v54 = vadd.f32 %v4693_v6, %v453_v51  ;;  %4099 = vmatprep.mubr.msk.f32.mxu1 %vm1019_vm4, %v958_v43 }
  0xfe   :  { %v835_v55 = vmin.f32 %v771_v49, 6.0  ;;  %v709_v56 = vadd.f32 3.0, %v459_v50  ;;  %4100 = vmatmul.mubr.msk.f32.gmra.mrb[10].mxu1 %vm1019_vm4, %v959_v47  ;;  %v961_v61 = vmul.f32 0.16666667, %v897_v48 }
  0xff   :  { %v960_v57 = vmul.f32 0.16666667, %v896_v52  ;;  %v834_v58 = vmin.f32 %v770_v53, 6.0  ;;  %v708_v59 = vadd.f32 3.0, %v454_v54  ;;  %v4013_v60 = vpop.f32.mrb[18].mxu0 }
 0x100   :  { %v899_v62 = vmul.f32 %v835_v55, %v449_v36  ;;  %v773_v63 = vmax.f32 %v709_v56, 0.0  ;;  %v469_v0 = vadd.f32 %v4013_v60, %v4693_v6  ;;  %v463_v1 = vpop.f32.mrb[19].mxu0 }
 0x101   :  { %v898_v2 = vmul.f32 %v834_v58, %v444_v40  ;;  %v772_v3 = vmax.f32 %v708_v59, 0.0  ;;  %v464_v4 = vadd.f32 %v4693_v6, %v463_v1  ;;  %4102 = vmatprep.mubr.msk.f32.mxu1 %vm1019_vm4, %v960_v57 }
 0x102   :  { %v837_v5 = vmin.f32 %v773_v63, 6.0  ;;  %v711_v7 = vadd.f32 3.0, %v469_v0  ;;  %4103 = vmatmul.mubr.msk.f32.gmra.mrb[12].mxu1 %vm1019_vm4, %v961_v61  ;;  %v963_v12 = vmul.f32 0.16666667, %v899_v62 }
 0x103   :  { %v962_v8 = vmul.f32 0.16666667, %v898_v2  ;;  %v836_v9 = vmin.f32 %v772_v3, 6.0  ;;  %v710_v10 = vadd.f32 3.0, %v464_v4  ;;  %v4016_v11 = vpop.f32.mrb[20].mxu0 }
 0x104   :  { %v901_v13 = vmul.f32 %v837_v5, %v459_v50  ;;  %v775_v14 = vmax.f32 %v711_v7, 0.0  ;;  %v479_v15 = vadd.f32 %v4016_v11, %v4693_v6  ;;  %v473_v16 = vpop.f32.mrb[21].mxu0 }
 0x105   :  { %v900_v17 = vmul.f32 %v836_v9, %v454_v54  ;;  %v774_v18 = vmax.f32 %v710_v10, 0.0  ;;  %v474_v19 = vadd.f32 %v4693_v6, %v473_v16  ;;  %4105 = vmatprep.mubr.msk.f32.mxu1 %vm1019_vm4, %v962_v8 }
 0x106   :  { %v839_v20 = vmin.f32 %v775_v14, 6.0  ;;  %v713_v21 = vadd.f32 3.0, %v479_v15  ;;  %4106 = vmatmul.mubr.msk.f32.gmra.mrb[14].mxu1 %vm1019_vm4, %v963_v12  ;;  %v965_v26 = vmul.f32 0.16666667, %v901_v13 }
 0x107   :  { %v964_v22 = vmul.f32 0.16666667, %v900_v17  ;;  %v838_v23 = vmin.f32 %v774_v18, 6.0  ;;  %v712_v24 = vadd.f32 3.0, %v474_v19  ;;  %v4019_v25 = vpop.f32.mrb[22].mxu0 }
 0x108   :  { %v903_v27 = vmul.f32 %v839_v20, %v469_v0  ;;  %v777_v28 = vmax.f32 %v713_v21, 0.0  ;;  %v489_v29 = vadd.f32 %v4019_v25, %v4693_v6  ;;  %v483_v30 = vpop.f32.mrb[23].mxu0 }
 0x109   :  { %v902_v31 = vmul.f32 %v838_v23, %v464_v4  ;;  %v776_v32 = vmax.f32 %v712_v24, 0.0  ;;  %v484_v33 = vadd.f32 %v4693_v6, %v483_v30  ;;  %4108 = vmatprep.mubr.msk.f32.mxu1 %vm1019_vm4, %v964_v22 }
 0x10a   :  { %v841_v34 = vmin.f32 %v777_v28, 6.0  ;;  %v715_v35 = vadd.f32 3.0, %v489_v29  ;;  %4109 = vmatmul.mubr.msk.f32.gmra.mrb[16].mxu1 %vm1019_vm4, %v965_v26  ;;  %v967_v40 = vmul.f32 0.16666667, %v903_v27 }
 0x10b   :  { %v966_v36 = vmul.f32 0.16666667, %v902_v31  ;;  %v840_v37 = vmin.f32 %v776_v32, 6.0  ;;  %v714_v38 = vadd.f32 3.0, %v484_v33  ;;  %v4022_v39 = vpop.f32.mrb[24].mxu0 }
 0x10c   :  { %v905_v41 = vmul.f32 %v841_v34, %v479_v15  ;;  %v779_v42 = vmax.f32 %v715_v35, 0.0  ;;  %v499_v43 = vadd.f32 %v4022_v39, %v4693_v6  ;;  %v493_v44 = vpop.f32.mrb[25].mxu0 }
 0x10d   :  { %v904_v45 = vmul.f32 %v840_v37, %v474_v19  ;;  %v778_v46 = vmax.f32 %v714_v38, 0.0  ;;  %v494_v47 = vadd.f32 %v4693_v6, %v493_v44  ;;  %4111 = vmatprep.mubr.msk.f32.mxu1 %vm1019_vm4, %v966_v36 }
 0x10e   :  { %v843_v48 = vmin.f32 %v779_v42, 6.0  ;;  %v717_v49 = vadd.f32 3.0, %v499_v43  ;;  %4112 = vmatmul.mubr.msk.f32.gmra.mrb[18].mxu1 %vm1019_vm4, %v967_v40  ;;  %v969_v54 = vmul.f32 0.16666667, %v905_v41 }
 0x10f   :  { %v968_v50 = vmul.f32 0.16666667, %v904_v45  ;;  %v842_v51 = vmin.f32 %v778_v46, 6.0  ;;  %v716_v52 = vadd.f32 3.0, %v494_v47  ;;  %v4025_v53 = vpop.f32.mrb[26].mxu0 }
 0x110   :  { %v907_v55 = vmul.f32 %v843_v48, %v489_v29  ;;  %v781_v56 = vmax.f32 %v717_v49, 0.0  ;;  %v509_v57 = vadd.f32 %v4025_v53, %v4693_v6  ;;  %v503_v58 = vpop.f32.mrb[27].mxu0 }
 0x111   :  { %v906_v59 = vmul.f32 %v842_v51, %v484_v33  ;;  %v780_v60 = vmax.f32 %v716_v52, 0.0  ;;  %v504_v61 = vadd.f32 %v4693_v6, %v503_v58  ;;  %4114 = vmatprep.mubr.msk.f32.mxu1 %vm1019_vm4, %v968_v50 }
 0x112   :  { %v845_v62 = vmin.f32 %v781_v56, 6.0  ;;  %v719_v63 = vadd.f32 3.0, %v509_v57  ;;  %4115 = vmatmul.mubr.msk.f32.gmra.mrb[20].mxu1 %vm1019_vm4, %v969_v54  ;;  %v971_v4 = vmul.f32 0.16666667, %v907_v55 }
 0x113   :  { %v970_v0 = vmul.f32 0.16666667, %v906_v59  ;;  %v844_v1 = vmin.f32 %v780_v60, 6.0  ;;  %v718_v2 = vadd.f32 3.0, %v504_v61  ;;  %v4028_v3 = vpop.f32.mrb[28].mxu0 }
 0x114   :  { %v909_v5 = vmul.f32 %v845_v62, %v499_v43  ;;  %v783_v7 = vmax.f32 %v719_v63, 0.0  ;;  %v519_v8 = vadd.f32 %v4028_v3, %v4693_v6  ;;  %v513_v9 = vpop.f32.mrb[29].mxu0 }
 0x115   :  { %v908_v10 = vmul.f32 %v844_v1, %v494_v47  ;;  %v782_v11 = vmax.f32 %v718_v2, 0.0  ;;  %v514_v12 = vadd.f32 %v4693_v6, %v513_v9  ;;  %4117 = vmatprep.mubr.msk.f32.mxu1 %vm1019_vm4, %v970_v0 }
 0x116   :  { %v847_v13 = vmin.f32 %v783_v7, 6.0  ;;  %v721_v14 = vadd.f32 3.0, %v519_v8  ;;  %4118 = vmatmul.mubr.msk.f32.gmra.mrb[22].mxu1 %vm1019_vm4, %v971_v4  ;;  %v973_v19 = vmul.f32 0.16666667, %v909_v5 }
 0x117   :  { %v972_v15 = vmul.f32 0.16666667, %v908_v10  ;;  %v846_v16 = vmin.f32 %v782_v11, 6.0  ;;  %v720_v17 = vadd.f32 3.0, %v514_v12  ;;  %v4031_v18 = vpop.f32.mrb[30].mxu0 }
 0x118   :  { %v911_v20 = vmul.f32 %v847_v13, %v509_v57  ;;  %v785_v21 = vmax.f32 %v721_v14, 0.0  ;;  %v529_v22 = vadd.f32 %v4031_v18, %v4693_v6  ;;  %v523_v23 = vpop.f32.mrb[31].mxu0 }
 0x119   :  { %v910_v24 = vmul.f32 %v846_v16, %v504_v61  ;;  %v784_v25 = vmax.f32 %v720_v17, 0.0  ;;  %v524_v26 = vadd.f32 %v4693_v6, %v523_v23  ;;  %4120 = vmatprep.mubr.msk.f32.mxu1 %vm1019_vm4, %v972_v15 }
 0x11a   :  { %v849_v27 = vmin.f32 %v785_v21, 6.0  ;;  %v723_v28 = vadd.f32 3.0, %v529_v22  ;;  %4121 = vmatmul.mubr.msk.f32.gmra.mrb[24].mxu1 %vm1019_vm4, %v973_v19  ;;  %v975_v33 = vmul.f32 0.16666667, %v911_v20 }
 0x11b   :  { %v974_v29 = vmul.f32 0.16666667, %v910_v24  ;;  %v848_v30 = vmin.f32 %v784_v25, 6.0  ;;  %v722_v31 = vadd.f32 3.0, %v524_v26  ;;  %v4034_v32 = vpop.f32.mrb[32].mxu0 }
 0x11c   :  { %v913_v34 = vmul.f32 %v849_v27, %v519_v8  ;;  %v787_v35 = vmax.f32 %v723_v28, 0.0  ;;  %v539_v36 = vadd.f32 %v4034_v32, %v4693_v6  ;;  %v533_v37 = vpop.f32.mrb[33].mxu0 }
 0x11d   :  { %v912_v38 = vmul.f32 %v848_v30, %v514_v12  ;;  %v786_v39 = vmax.f32 %v722_v31, 0.0  ;;  %v534_v40 = vadd.f32 %v4693_v6, %v533_v37  ;;  %4123 = vmatprep.mubr.msk.f32.mxu1 %vm1019_vm4, %v974_v29 }
 0x11e   :  { %v851_v41 = vmin.f32 %v787_v35, 6.0  ;;  %v725_v42 = vadd.f32 3.0, %v539_v36  ;;  %4124 = vmatmul.mubr.msk.f32.gmra.mrb[26].mxu1 %vm1019_vm4, %v975_v33  ;;  %v977_v47 = vmul.f32 0.16666667, %v913_v34 }
 0x11f   :  { %v976_v43 = vmul.f32 0.16666667, %v912_v38  ;;  %v850_v44 = vmin.f32 %v786_v39, 6.0  ;;  %v724_v45 = vadd.f32 3.0, %v534_v40  ;;  %v4037_v46 = vpop.f32.mrb[34].mxu0 }
 0x120   :  { %v915_v48 = vmul.f32 %v851_v41, %v529_v22  ;;  %v789_v49 = vmax.f32 %v725_v42, 0.0  ;;  %v549_v50 = vadd.f32 %v4037_v46, %v4693_v6  ;;  %v543_v51 = vpop.f32.mrb[35].mxu0 }
 0x121   :  { %v914_v52 = vmul.f32 %v850_v44, %v524_v26  ;;  %v788_v53 = vmax.f32 %v724_v45, 0.0  ;;  %v544_v54 = vadd.f32 %v4693_v6, %v543_v51  ;;  %4126 = vmatprep.mubr.msk.f32.mxu1 %vm1019_vm4, %v976_v43 }
 0x122   :  { %v853_v55 = vmin.f32 %v789_v49, 6.0  ;;  %v727_v56 = vadd.f32 3.0, %v549_v50  ;;  %4127 = vmatmul.mubr.msk.f32.gmra.mrb[28].mxu1 %vm1019_vm4, %v977_v47  ;;  %v979_v61 = vmul.f32 0.16666667, %v915_v48 }
 0x123   :  { %v978_v57 = vmul.f32 0.16666667, %v914_v52  ;;  %v852_v58 = vmin.f32 %v788_v53, 6.0  ;;  %v726_v59 = vadd.f32 3.0, %v544_v54  ;;  %v4040_v60 = vpop.f32.mrb[36].mxu0 }
 0x124   :  { %v917_v62 = vmul.f32 %v853_v55, %v539_v36  ;;  %v791_v63 = vmax.f32 %v727_v56, 0.0  ;;  %v559_v0 = vadd.f32 %v4040_v60, %v4693_v6  ;;  %v553_v1 = vpop.f32.mrb[37].mxu0 }
 0x125   :  { %v916_v2 = vmul.f32 %v852_v58, %v534_v40  ;;  %v790_v3 = vmax.f32 %v726_v59, 0.0  ;;  %v554_v4 = vadd.f32 %v4693_v6, %v553_v1  ;;  %4129 = vmatprep.mubr.msk.f32.mxu1 %vm1019_vm4, %v978_v57 }
 0x126   :  { %v855_v5 = vmin.f32 %v791_v63, 6.0  ;;  %v729_v7 = vadd.f32 3.0, %v559_v0  ;;  %4130 = vmatmul.mubr.msk.f32.gmra.mrb[30].mxu1 %vm1019_vm4, %v979_v61  ;;  %v981_v12 = vmul.f32 0.16666667, %v917_v62 }
 0x127   :  { %v980_v8 = vmul.f32 0.16666667, %v916_v2  ;;  %v854_v9 = vmin.f32 %v790_v3, 6.0  ;;  %v728_v10 = vadd.f32 3.0, %v554_v4  ;;  %v4043_v11 = vpop.f32.mrb[38].mxu0 }
 0x128   :  { %v919_v13 = vmul.f32 %v855_v5, %v549_v50  ;;  %v793_v14 = vmax.f32 %v729_v7, 0.0  ;;  %v569_v15 = vadd.f32 %v4043_v11, %v4693_v6  ;;  %v563_v16 = vpop.f32.mrb[39].mxu0 }
 0x129   :  { %v918_v17 = vmul.f32 %v854_v9, %v544_v54  ;;  %v792_v18 = vmax.f32 %v728_v10, 0.0  ;;  %v564_v19 = vadd.f32 %v4693_v6, %v563_v16  ;;  %4132 = vmatprep.mubr.msk.f32.mxu1 %vm1019_vm4, %v980_v8 }
 0x12a   :  { %v857_v20 = vmin.f32 %v793_v14, 6.0  ;;  %v731_v21 = vadd.f32 3.0, %v569_v15  ;;  %4133 = vmatmul.mubr.msk.f32.gmra.mrb[32].mxu1 %vm1019_vm4, %v981_v12  ;;  %v983_v26 = vmul.f32 0.16666667, %v919_v13 }
 0x12b   :  { %v982_v22 = vmul.f32 0.16666667, %v918_v17  ;;  %v856_v23 = vmin.f32 %v792_v18, 6.0  ;;  %v730_v24 = vadd.f32 3.0, %v564_v19  ;;  %v4046_v25 = vpop.f32.mrb[40].mxu0 }
 0x12c   :  { %v921_v27 = vmul.f32 %v857_v20, %v559_v0  ;;  %v795_v28 = vmax.f32 %v731_v21, 0.0  ;;  %v579_v29 = vadd.f32 %v4046_v25, %v4693_v6  ;;  %v573_v30 = vpop.f32.mrb[41].mxu0 }
 0x12d   :  { %v920_v31 = vmul.f32 %v856_v23, %v554_v4  ;;  %v794_v32 = vmax.f32 %v730_v24, 0.0  ;;  %v574_v33 = vadd.f32 %v4693_v6, %v573_v30  ;;  %4135 = vmatprep.mubr.msk.f32.mxu1 %vm1019_vm4, %v982_v22 }
 0x12e   :  { %v859_v34 = vmin.f32 %v795_v28, 6.0  ;;  %v733_v35 = vadd.f32 3.0, %v579_v29  ;;  %4136 = vmatmul.mubr.msk.f32.gmra.mrb[34].mxu1 %vm1019_vm4, %v983_v26  ;;  %v985_v40 = vmul.f32 0.16666667, %v921_v27 }
 0x12f   :  { %v984_v36 = vmul.f32 0.16666667, %v920_v31  ;;  %v858_v37 = vmin.f32 %v794_v32, 6.0  ;;  %v732_v38 = vadd.f32 3.0, %v574_v33  ;;  %v4049_v39 = vpop.f32.mrb[42].mxu0 }
 0x130   :  { %v923_v41 = vmul.f32 %v859_v34, %v569_v15  ;;  %v797_v42 = vmax.f32 %v733_v35, 0.0  ;;  %v589_v43 = vadd.f32 %v4049_v39, %v4693_v6  ;;  %v583_v44 = vpop.f32.mrb[43].mxu0 }
 0x131   :  { %v922_v45 = vmul.f32 %v858_v37, %v564_v19  ;;  %v796_v46 = vmax.f32 %v732_v38, 0.0  ;;  %v584_v47 = vadd.f32 %v4693_v6, %v583_v44  ;;  %4138 = vmatprep.mubr.msk.f32.mxu1 %vm1019_vm4, %v984_v36 }
 0x132   :  { %v861_v48 = vmin.f32 %v797_v42, 6.0  ;;  %v735_v49 = vadd.f32 3.0, %v589_v43  ;;  %4139 = vmatmul.mubr.msk.f32.gmra.mrb[36].mxu1 %vm1019_vm4, %v985_v40  ;;  %v987_v54 = vmul.f32 0.16666667, %v923_v41 }
 0x133   :  { %v986_v50 = vmul.f32 0.16666667, %v922_v45  ;;  %v860_v51 = vmin.f32 %v796_v46, 6.0  ;;  %v734_v52 = vadd.f32 3.0, %v584_v47  ;;  %v4052_v53 = vpop.f32.mrb[44].mxu0 }
 0x134   :  { %v925_v55 = vmul.f32 %v861_v48, %v579_v29  ;;  %v799_v56 = vmax.f32 %v735_v49, 0.0  ;;  %v599_v57 = vadd.f32 %v4052_v53, %v4693_v6  ;;  %v593_v58 = vpop.f32.mrb[45].mxu0 }
 0x135   :  { %v924_v59 = vmul.f32 %v860_v51, %v574_v33  ;;  %v798_v60 = vmax.f32 %v734_v52, 0.0  ;;  %v594_v61 = vadd.f32 %v4693_v6, %v593_v58  ;;  %4141 = vmatprep.mubr.msk.f32.mxu1 %vm1019_vm4, %v986_v50  ;;  %v4357_v33 = vmov 0.0   ;;  %v5042_v51 = vld [vmem:[%s5918_s10] ss:$0 sm:$0xff] }
 0x136   :  { %v863_v62 = vmin.f32 %v799_v56, 6.0  ;;  %v737_v63 = vadd.f32 3.0, %v599_v57  ;;  %4142 = vmatmul.mubr.msk.f32.gmra.mrb[38].mxu1 %vm1019_vm4, %v987_v54  ;;  %v989_v4 = vmul.f32 0.16666667, %v925_v55  ;;  %1669 = vst.msk [vmem:[#allocation2 + $0x28] sm:$0xff] %vm1019_vm4, %v4357_v33  ;;  %1664 = vst.msk [vmem:[#allocation2] sm:$0xff] %vm1019_vm4, %v4357_v33 }
 0x137   :  { %v988_v0 = vmul.f32 0.16666667, %v924_v59  ;;  %v862_v1 = vmin.f32 %v798_v60, 6.0  ;;  %v736_v2 = vadd.f32 3.0, %v594_v61  ;;  %v4055_v3 = vpop.f32.mrb[46].mxu0  ;;  %1665 = vst.msk [vmem:[#allocation2 + $0x8] sm:$0xff] %vm1019_vm4, %v4357_v33 }
 0x138   :  { %v927_v5 = vmul.f32 %v863_v62, %v589_v43  ;;  %v801_v7 = vmax.f32 %v737_v63, 0.0  ;;  %v4788_v8 = vadd.f32 %v4055_v3, %v4693_v6  ;;  %v603_v9 = vpop.f32.mrb[47].mxu0  ;;  %1666 = vst.msk [vmem:[#allocation2 + $0x10] sm:$0xff] %vm1019_vm4, %v4357_v33  ;;  %1667 = vst.msk [vmem:[#allocation2 + $0x18] sm:$0xff] %vm1019_vm4, %v4357_v33 }
 0x139   :  { %v926_v10 = vmul.f32 %v862_v1, %v584_v47  ;;  %v800_v11 = vmax.f32 %v736_v2, 0.0  ;;  %v4791_v12 = vadd.f32 %v4693_v6, %v603_v9  ;;  %4144 = vmatprep.mubr.msk.f32.mxu1 %vm1019_vm4, %v988_v0  ;;  %1668 = vst.msk [vmem:[#allocation2 + $0x20] sm:$0xff] %vm1019_vm4, %v4357_v33  ;;  %1670 = vst.msk [vmem:[#allocation2 + $0x30] sm:$0xff] %vm1019_vm4, %v4357_v33 }
 0x13a   :  { %v865_v13 = vmin.f32 %v801_v7, 6.0  ;;  %v739_v14 = vadd.f32 3.0, %v4788_v8  ;;  %4145 = vmatmul.mubr.msk.f32.gmra.mrb[40].mxu1 %vm1019_vm4, %v989_v4  ;;  %v991_v19 = vmul.f32 0.16666667, %v927_v5  ;;  %1671 = vst.msk [vmem:[#allocation2 + $0x38] sm:$0xff] %vm1019_vm4, %v4357_v33  ;;  %1672 = vst.msk [vmem:[#allocation2 + $0x40] sm:$0xff] %vm1019_vm4, %v4357_v33 }
 0x13b   :  { %v990_v15 = vmul.f32 0.16666667, %v926_v10  ;;  %v864_v16 = vmin.f32 %v800_v11, 6.0  ;;  %v738_v17 = vadd.f32 3.0, %v4791_v12  ;;  %v4058_v18 = vpop.f32.mrb[48].mxu0  ;;  %1673 = vst.msk [vmem:[#allocation2 + $0x48] sm:$0xff] %vm1019_vm4, %v4357_v33 }
 0x13c   :  { %v4797_v20 = vmul.f32 %v865_v13, %v599_v57  ;;  %v803_v21 = vmax.f32 %v739_v14, 0.0  ;;  %v4800_v22 = vadd.f32 %v4058_v18, %v4693_v6  ;;  %v613_v23 = vpop.f32.mrb[49].mxu0  ;;  %1674 = vst.msk [vmem:[#allocation2 + $0x50] sm:$0xff] %vm1019_vm4, %v4357_v33  ;;  %1675 = vst.msk [vmem:[#allocation2 + $0x58] sm:$0xff] %vm1019_vm4, %v4357_v33 }
 0x13d   :  { %v928_v24 = vmul.f32 %v864_v16, %v594_v61  ;;  %v802_v25 = vmax.f32 %v738_v17, 0.0  ;;  %v4803_v26 = vadd.f32 %v4693_v6, %v613_v23  ;;  %4147 = vmatprep.mubr.msk.f32.mxu1 %vm1019_vm4, %v990_v15  ;;  %1676 = vst.msk [vmem:[#allocation2 + $0x60] sm:$0xff] %vm1019_vm4, %v4357_v33  ;;  %1677 = vst.msk [vmem:[#allocation2 + $0x68] sm:$0xff] %vm1019_vm4, %v4357_v33 }
 0x13e   :  { %v4806_v27 = vmin.f32 %v803_v21, 6.0  ;;  %v4809_v28 = vadd.f32 3.0, %v4800_v22  ;;  %4148 = vmatmul.mubr.msk.f32.gmra.mrb[42].mxu1 %vm1019_vm4, %v991_v19  ;;  %1678 = vst.msk [vmem:[#allocation2 + $0x70] sm:$0xff] %vm1019_vm4, %v4357_v33  ;;  %1679 = vst.msk [vmem:[#allocation2 + $0x78] sm:$0xff] %vm1019_vm4, %v4357_v33  ;;  %v993_v34 = vmul.f32 0.16666667, %v4797_v20 }
 0x13f   :  { %v4812_v29 = vmul.f32 0.16666667, %v928_v24  ;;  %v4814_v30 = vmin.f32 %v802_v25, 6.0  ;;  %v4817_v31 = vadd.f32 3.0, %v4803_v26  ;;  %v4819_v32 = vpop.f32.mrb[50].mxu0  ;;  %1680 = vst.msk [vmem:[#allocation2 + $0x80] sm:$0xff] %vm1019_vm4, %v4357_v33 }
 0x140   :  { %1681 = vst.msk [vmem:[#allocation2 + $0x88] sm:$0xff] %vm1019_vm4, %v4357_v33  ;;  %1682 = vst.msk [vmem:[#allocation2 + $0x90] sm:$0xff] %vm1019_vm4, %v4357_v33  ;;  %v931_v35 = vmul.f32 %v4806_v27, %v4788_v8  ;;  %v805_v36 = vmax.f32 %v4809_v28, 0.0  ;;  %v629_v37 = vadd.f32 %v4819_v32, %v4693_v6  ;;  %v623_v38 = vpop.f32.mrb[51].mxu0 }
 0x141   :  { %1683 = vst.msk [vmem:[#allocation2 + $0x98] sm:$0xff] %vm1019_vm4, %v4357_v33  ;;  %1684 = vst.msk [vmem:[#allocation2 + $0xa0] sm:$0xff] %vm1019_vm4, %v4357_v33  ;;  %v930_v39 = vmul.f32 %v4814_v30, %v4791_v12  ;;  %v804_v40 = vmax.f32 %v4817_v31, 0.0  ;;  %v624_v41 = vadd.f32 %v4693_v6, %v623_v38  ;;  %4150 = vmatprep.mubr.msk.f32.mxu1 %vm1019_vm4, %v4812_v29 }
 0x142   :  { %1685 = vst.msk [vmem:[#allocation2 + $0xa8] sm:$0xff] %vm1019_vm4, %v4357_v33  ;;  %1686 = vst.msk [vmem:[#allocation2 + $0xb0] sm:$0xff] %vm1019_vm4, %v4357_v33  ;;  %v869_v42 = vmin.f32 %v805_v36, 6.0  ;;  %v743_v43 = vadd.f32 3.0, %v629_v37  ;;  %4151 = vmatmul.mubr.msk.f32.gmra.mrb[44].mxu1 %vm1019_vm4, %v993_v34  ;;  %v995_v48 = vmul.f32 0.16666667, %v931_v35 }
 0x143   :  { %1687 = vst.msk [vmem:[#allocation2 + $0xb8] sm:$0xff] %vm1019_vm4, %v4357_v33  ;;  %1688 = vst.msk [vmem:[#allocation2 + $0xc0] sm:$0xff] %vm1019_vm4, %v4357_v33  ;;  %v994_v44 = vmul.f32 0.16666667, %v930_v39  ;;  %v868_v45 = vmin.f32 %v804_v40, 6.0  ;;  %v742_v46 = vadd.f32 3.0, %v624_v41 }
 0x144   :  { %1689 = vst.msk [vmem:[#allocation2 + $0xc8] sm:$0xff] %vm1019_vm4, %v4357_v33  ;;  %1690 = vst.msk [vmem:[#allocation2 + $0xd0] sm:$0xff] %vm1019_vm4, %v4357_v33  ;;  %v4064_v47 = vpop.f32.mrb[52].mxu0  ;;  %v933_v49 = vmul.f32 %v869_v42, %v4800_v22  ;;  %v807_v50 = vmax.f32 %v743_v43, 0.0 }
 0x145   :  { %1691 = vst.msk [vmem:[#allocation2 + $0xd8] sm:$0xff] %vm1019_vm4, %v4357_v33  ;;  %1692 = vst.msk [vmem:[#allocation2 + $0xe0] sm:$0xff] %vm1019_vm4, %v4357_v33  ;;  %v639_v6 = vadd.f32 %v5042_v51, %v4064_v47  ;;  %v633_v52 = vpop.f32.mrb[53].mxu0  ;;  %v932_v53 = vmul.f32 %v868_v45, %v4803_v26  ;;  %v806_v54 = vmax.f32 %v742_v46, 0.0  ;;  %4153 = vmatprep.mubr.msk.f32.mxu1 %vm1019_vm4, %v994_v44 }
 0x146   :  { %1693 = vst.msk [vmem:[#allocation2 + $0xe8] sm:$0xff] %vm1019_vm4, %v4357_v33  ;;  %1694 = vst.msk [vmem:[#allocation2 + $0xf0] sm:$0xff] %vm1019_vm4, %v4357_v33  ;;  %v634_v55 = vadd.f32 %v5042_v51, %v633_v52  ;;  %v871_v56 = vmin.f32 %v807_v50, 6.0  ;;  %4154 = vmatmul.mubr.msk.f32.gmra.mrb[46].mxu1 %vm1019_vm4, %v995_v48  ;;  %v997_v62 = vmul.f32 0.16666667, %v933_v49 }
 0x147   :  { %1695 = vst.msk [vmem:[#allocation2 + $0xf8] sm:$0xff] %vm1019_vm4, %v4357_v33  ;;  %1696 = vst.msk [vmem:[#allocation2 + $0x100] sm:$0xff] %vm1019_vm4, %v4357_v33  ;;  %v745_v57 = vadd.f32 3.0, %v639_v6  ;;  %v996_v58 = vmul.f32 0.16666667, %v932_v53  ;;  %v870_v59 = vmin.f32 %v806_v54, 6.0 }
 0x148   :  { %1697 = vst.msk [vmem:[#allocation2 + $0x108] sm:$0xff] %vm1019_vm4, %v4357_v33  ;;  %1698 = vst.msk [vmem:[#allocation2 + $0x110] sm:$0xff] %vm1019_vm4, %v4357_v33  ;;  %v744_v60 = vadd.f32 3.0, %v634_v55  ;;  %v4067_v61 = vpop.f32.mrb[54].mxu0  ;;  %v935_v63 = vmul.f32 %v871_v56, %v629_v37 }
 0x149   :  { %1699 = vst.msk [vmem:[#allocation2 + $0x118] sm:$0xff] %vm1019_vm4, %v4357_v33  ;;  %1700 = vst.msk [vmem:[#allocation2 + $0x120] sm:$0xff] %vm1019_vm4, %v4357_v33  ;;  %v809_v0 = vmax.f32 %v745_v57, 0.0  ;;  %v649_v1 = vadd.f32 %v5042_v51, %v4067_v61  ;;  %v643_v2 = vpop.f32.mrb[55].mxu0  ;;  %v934_v3 = vmul.f32 %v870_v59, %v624_v41  ;;  %4156 = vmatprep.mubr.msk.f32.mxu1 %vm1019_vm4, %v996_v58 }
 0x14a   :  { %1701 = vst.msk [vmem:[#allocation2 + $0x128] sm:$0xff] %vm1019_vm4, %v4357_v33  ;;  %1702 = vst.msk [vmem:[#allocation2 + $0x130] sm:$0xff] %vm1019_vm4, %v4357_v33  ;;  %v808_v4 = vmax.f32 %v744_v60, 0.0  ;;  %v644_v5 = vadd.f32 %v5042_v51, %v643_v2  ;;  %4157 = vmatmul.mubr.msk.f32.gmra.mrb[48].mxu1 %vm1019_vm4, %v997_v62  ;;  %v999_v13 = vmul.f32 0.16666667, %v935_v63 }
 0x14b   :  { %1703 = vst.msk [vmem:[#allocation2 + $0x138] sm:$0xff] %vm1019_vm4, %v4357_v33  ;;  %1704 = vst.msk [vmem:[#allocation2 + $0x140] sm:$0xff] %vm1019_vm4, %v4357_v33  ;;  %v873_v7 = vmin.f32 %v809_v0, 6.0  ;;  %v747_v8 = vadd.f32 3.0, %v649_v1  ;;  %v998_v9 = vmul.f32 0.16666667, %v934_v3 }
 0x14c   :  { %1705 = vst.msk [vmem:[#allocation2 + $0x148] sm:$0xff] %vm1019_vm4, %v4357_v33  ;;  %1706 = vst.msk [vmem:[#allocation2 + $0x150] sm:$0xff] %vm1019_vm4, %v4357_v33  ;;  %v872_v10 = vmin.f32 %v808_v4, 6.0  ;;  %v746_v11 = vadd.f32 3.0, %v644_v5  ;;  %v4070_v12 = vpop.f32.mrb[56].mxu0 }
 0x14d   :  { %1707 = vst.msk [vmem:[#allocation2 + $0x158] sm:$0xff] %vm1019_vm4, %v4357_v33  ;;  %1708 = vst.msk [vmem:[#allocation2 + $0x160] sm:$0xff] %vm1019_vm4, %v4357_v33  ;;  %v937_v14 = vmul.f32 %v873_v7, %v639_v6  ;;  %v811_v15 = vmax.f32 %v747_v8, 0.0  ;;  %v659_v16 = vadd.f32 %v5042_v51, %v4070_v12  ;;  %v653_v17 = vpop.f32.mrb[57].mxu0  ;;  %4159 = vmatprep.mubr.msk.f32.mxu1 %vm1019_vm4, %v998_v9 }
 0x14e   :  { %1709 = vst.msk [vmem:[#allocation2 + $0x168] sm:$0xff] %vm1019_vm4, %v4357_v33  ;;  %1710 = vst.msk [vmem:[#allocation2 + $0x170] sm:$0xff] %vm1019_vm4, %v4357_v33  ;;  %v936_v18 = vmul.f32 %v872_v10, %v634_v55  ;;  %v810_v19 = vmax.f32 %v746_v11, 0.0  ;;  %v654_v20 = vadd.f32 %v5042_v51, %v653_v17  ;;  %4160 = vmatmul.mubr.msk.f32.gmra.mrb[50].mxu1 %vm1019_vm4, %v999_v13 }
 0x14f   :  { %1711 = vst.msk [vmem:[#allocation2 + $0x178] sm:$0xff] %vm1019_vm4, %v4357_v33  ;;  %1712 = vst.msk [vmem:[#allocation2 + $0x180] sm:$0xff] %vm1019_vm4, %v4357_v33  ;;  %v875_v21 = vmin.f32 %v811_v15, 6.0  ;;  %v749_v22 = vadd.f32 3.0, %v659_v16  ;;  %v4073_v26 = vpop.f32.mrb[58].mxu0 }
 0x150   :  { %1713 = vst.msk [vmem:[#allocation2 + $0x188] sm:$0xff] %vm1019_vm4, %v4357_v33  ;;  %1714 = vst.msk [vmem:[#allocation2 + $0x190] sm:$0xff] %vm1019_vm4, %v4357_v33  ;;  %v1000_v23 = vmul.f32 0.16666667, %v936_v18  ;;  %v874_v24 = vmin.f32 %v810_v19, 6.0  ;;  %v748_v25 = vadd.f32 3.0, %v654_v20  ;;  %v669_v30 = vadd.f32 %v5042_v51, %v4073_v26 }
 0x151   :  { %1718 = vst.msk [vmem:[#allocation2 + $0x1b0] sm:$0xff] %vm1019_vm4, %v4357_v33  ;;  %1719 = vst.msk [vmem:[#allocation2 + $0x1b8] sm:$0xff] %vm1019_vm4, %v4357_v33  ;;  %v1001_v27 = vmul.f32 0.16666667, %v937_v14  ;;  %v939_v28 = vmul.f32 %v875_v21, %v649_v1  ;;  %v813_v29 = vmax.f32 %v749_v22, 0.0  ;;  %v663_v31 = vpop.f32.mrb[59].mxu0  ;;  %v1838_v18 = vlaneseq }
 0x152   :  { %1720 = vst.msk [vmem:[#allocation2 + $0x1c0] sm:$0xff] %vm1019_vm4, %v4357_v33  ;;  %1721 = vst.msk [vmem:[#allocation2 + $0x1c8] sm:$0xff] %vm1019_vm4, %v4357_v33  ;;  %v938_v32 = vmul.f32 %v874_v24, %v644_v5  ;;  %v812_v34 = vmax.f32 %v748_v25, 0.0  ;;  %v664_v35 = vadd.f32 %v5042_v51, %v663_v31  ;;  %4162 = vmatprep.mubr.msk.f32.mxu1 %vm1019_vm4, %v1000_v23  ;;  %v751_v37 = vadd.f32 3.0, %v669_v30  ;;  %v5086_v22 = vld [vmem:[%s5911_s3] sm:$0xff] }
 0x153   :  { %1722 = vst.msk [vmem:[#allocation2 + $0x1d0] sm:$0xff] %vm1019_vm4, %v4357_v33  ;;  %1723 = vst.msk [vmem:[#allocation2 + $0x1d8] sm:$0xff] %vm1019_vm4, %v4357_v33  ;;  %v877_v36 = vmin.f32 %v813_v29, 6.0  ;;  %4163 = vmatmul.mubr.msk.f32.gmra.mrb[52].mxu1 %vm1019_vm4, %v1001_v27  ;;  %v4076_v41 = vpop.f32.mrb[60].mxu0  ;;  %v1003_v42 = vmul.f32 0.16666667, %v939_v28 }
 0x154   :  { %1724 = vst.msk [vmem:[#allocation2 + $0x1e0] sm:$0xff] %vm1019_vm4, %v4357_v33  ;;  %1725 = vst.msk [vmem:[#allocation2 + $0x1e8] sm:$0xff] %vm1019_vm4, %v4357_v33  ;;  %v1002_v38 = vmul.f32 0.16666667, %v938_v32  ;;  %v876_v39 = vmin.f32 %v812_v34, 6.0  ;;  %v750_v40 = vadd.f32 3.0, %v664_v35  ;;  %v679_v45 = vadd.f32 %v5042_v51, %v4076_v41 }
 0x155   :  { %1726 = vst.msk [vmem:[#allocation2 + $0x1f0] sm:$0xff] %vm1019_vm4, %v4357_v33  ;;  %1727 = vst.msk [vmem:[#allocation2 + $0x1f8] sm:$0xff] %vm1019_vm4, %v4357_v33  ;;  %v941_v43 = vmul.f32 %v877_v36, %v659_v16  ;;  %v815_v44 = vmax.f32 %v751_v37, 0.0  ;;  %v673_v46 = vpop.f32.mrb[61].mxu0  ;;  %v5075_v19 = vshrl.u32 %v1838_v18, 7 }
 0x156   :  { %1728 = vst.msk [vmem:[#allocation2 + $0x200] sm:$0xff] %vm1019_vm4, %v4357_v33  ;;  %1729 = vst.msk [vmem:[#allocation2 + $0x208] sm:$0xff] %vm1019_vm4, %v4357_v33  ;;  %v940_v47 = vmul.f32 %v876_v39, %v654_v20  ;;  %v814_v48 = vmax.f32 %v750_v40, 0.0  ;;  %v674_v49 = vadd.f32 %v5042_v51, %v673_v46  ;;  %4165 = vmatprep.mubr.msk.f32.mxu1 %vm1019_vm4, %v1002_v38  ;;  %v753_v6 = vadd.f32 3.0, %v679_v45  ;;  %v5091_v23 = vld [vmem:[%s5918_s10 + $0x1] ss:$0 sm:$0xff] }
 0x157   :  { %1730 = vst.msk [vmem:[#allocation2 + $0x210] sm:$0xff] %vm1019_vm4, %v4357_v33  ;;  %1731 = vst.msk [vmem:[#allocation2 + $0x218] sm:$0xff] %vm1019_vm4, %v4357_v33  ;;  %v879_v50 = vmin.f32 %v815_v44, 6.0  ;;  %4166 = vmatmul.mubr.msk.f32.gmra.mrb[54].mxu1 %vm1019_vm4, %v1003_v42  ;;  %v4079_v55 = vpop.f32.mrb[62].mxu0  ;;  %v1005_v56 = vmul.f32 0.16666667, %v941_v43 }
 0x158   :  { %1732 = vst.msk [vmem:[#allocation2 + $0x220] sm:$0xff] %vm1019_vm4, %v4357_v33  ;;  %1733 = vst.msk [vmem:[#allocation2 + $0x228] sm:$0xff] %vm1019_vm4, %v4357_v33  ;;  %v1004_v52 = vmul.f32 0.16666667, %v940_v47  ;;  %v878_v53 = vmin.f32 %v814_v48, 6.0  ;;  %v752_v54 = vadd.f32 3.0, %v674_v49  ;;  %v689_v59 = vadd.f32 %v5042_v51, %v4079_v55 }
 0x159   :  { %1734 = vst.msk [vmem:[#allocation2 + $0x230] sm:$0xff] %vm1019_vm4, %v4357_v33  ;;  %1735 = vst.msk [vmem:[#allocation2 + $0x238] sm:$0xff] %vm1019_vm4, %v4357_v33  ;;  %v943_v57 = vmul.f32 %v879_v50, %v669_v30  ;;  %v817_v58 = vmax.f32 %v753_v6, 0.0  ;;  %v683_v60 = vpop.f32.mrb[63].mxu0  ;;  %v5078_v20 = vsub.s32 0, %v5075_v19  ;;  %v5081_v21 = vsub.s32 1, %v5075_v19 }
 0x15a   :  { %1736 = vst.msk [vmem:[#allocation2 + $0x240] sm:$0xff] %vm1019_vm4, %v4357_v33  ;;  %1737 = vst.msk [vmem:[#allocation2 + $0x248] sm:$0xff] %vm1019_vm4, %v4357_v33  ;;  %v942_v61 = vmul.f32 %v878_v53, %v664_v35  ;;  %v816_v62 = vmax.f32 %v752_v54, 0.0  ;;  %v684_v63 = vadd.f32 %v5042_v51, %v683_v60  ;;  %4168 = vmatprep.mubr.msk.f32.mxu1 %vm1019_vm4, %v1004_v52  ;;  %v755_v1 = vadd.f32 3.0, %v689_v59  ;;  %v1837_v30 = vld [vmem:[#allocation2 + $0x7] ss:$2 sm:$0xff] }
 0x15b   :  { %1738 = vst.msk [vmem:[#allocation2 + $0x250] sm:$0xff] %vm1019_vm4, %v4357_v33  ;;  %1739 = vst.msk [vmem:[#allocation2 + $0x258] sm:$0xff] %vm1019_vm4, %v4357_v33  ;;  %v881_v0 = vmin.f32 %v817_v58, 6.0  ;;  %4169 = vmatmul.mubr.msk.f32.gmra.mrb[56].mxu1 %vm1019_vm4, %v1005_v56  ;;  %v1007_v5 = vmul.f32 0.16666667, %v943_v57  ;;  %v5095_v25 = vrot.slane %v5086_v22, %v5078_v20  ;;  %v5099_v26 = vrot.slane %v5086_v22, %v5081_v21 }
 0x15c   :  { %1740 = vst.msk [vmem:[#allocation2 + $0x260] sm:$0xff] %vm1019_vm4, %v4357_v33  ;;  %1741 = vst.msk [vmem:[#allocation2 + $0x268] sm:$0xff] %vm1019_vm4, %v4357_v33  ;;  %v1006_v2 = vmul.f32 0.16666667, %v942_v61  ;;  %v880_v3 = vmin.f32 %v816_v62, 6.0  ;;  %v754_v4 = vadd.f32 3.0, %v684_v63 }
 0x15d   :  { %1742 = vst.msk [vmem:[#allocation2 + $0x270] sm:$0xff] %vm1019_vm4, %v4357_v33  ;;  %1743 = vst.msk [vmem:[#allocation2 + $0x278] sm:$0xff] %vm1019_vm4, %v4357_v33  ;;  %v945_v7 = vmul.f32 %v881_v0, %v679_v45  ;;  %v819_v8 = vmax.f32 %v755_v1, 0.0  ;;  %v1856_v27 = vsub.s32 2, %v5075_v19  ;;  %v1845_v31 = vld [vmem:[#allocation2 + $0x8] ss:$2 sm:$0xff]  ;;  %v1842_v37 = vmul.f32 %v5095_v25, %v1837_v30 }
 0x15e   :  { %1744 = vst.msk [vmem:[#allocation2 + $0x280] sm:$0xff] %vm1019_vm4, %v4357_v33  ;;  %1745 = vst.msk [vmem:[#allocation2 + $0x288] sm:$0xff] %vm1019_vm4, %v4357_v33  ;;  %v944_v9 = vmul.f32 %v880_v3, %v674_v49  ;;  %v818_v10 = vmax.f32 %v754_v4, 0.0  ;;  %4171 = vmatprep.mubr.msk.f32.mxu1 %vm1019_vm4, %v1006_v2  ;;  %v1850_v38 = vmul.f32 %v5099_v26, %v1845_v31  ;;  %v1853_v42 = vld [vmem:[#allocation2 + $0x9] ss:$2 sm:$0xff]  ;;  %v1864_v44 = vsub.s32 3, %v5075_v19 }
 0x15f   :  { %1746 = vst.msk [vmem:[#allocation2 + $0x290] sm:$0xff] %vm1019_vm4, %v4357_v33  ;;  %1747 = vst.msk [vmem:[#allocation2 + $0x298] sm:$0xff] %vm1019_vm4, %v4357_v33  ;;  %v883_v11 = vmin.f32 %v819_v8, 6.0  ;;  %4172 = vmatmul.mubr.msk.f32.gmra.mrb[58].mxu1 %vm1019_vm4, %v1007_v5  ;;  %v1009_v13 = vmul.f32 0.16666667, %v945_v7  ;;  %v5109_v39 = vrot.slane %v5086_v22, %v1856_v27  ;;  %v1872_v50 = vsub.s32 4, %v5075_v19 }
 0x160   :  { %1748 = vst.msk [vmem:[#allocation2 + $0x2a0] sm:$0xff] %vm1019_vm4, %v4357_v33  ;;  %1749 = vst.msk [vmem:[#allocation2 + $0x2a8] sm:$0xff] %vm1019_vm4, %v4357_v33  ;;  %v1008_v51 = vmul.f32 0.16666667, %v944_v9  ;;  %v882_v12 = vmin.f32 %v818_v10, 6.0  ;;  %v1851_v48 = vadd.f32 %v1850_v38, %v1842_v37  ;;  %v5125_v54 = vrot.slane %v5086_v22, %v1864_v44 }
 0x161   :  { %1750 = vst.msk [vmem:[#allocation2 + $0x2b0] sm:$0xff] %vm1019_vm4, %v4357_v33  ;;  %1751 = vst.msk [vmem:[#allocation2 + $0x2b8] sm:$0xff] %vm1019_vm4, %v4357_v33  ;;  %v947_v14 = vmul.f32 %v883_v11, %v689_v59  ;;  %v1858_v49 = vmul.f32 %v5109_v39, %v1853_v42  ;;  %v1880_v55 = vsub.s32 5, %v5075_v19  ;;  %v5131_v60 = vrot.slane %v5086_v22, %v1872_v50 }
 0x162   :  { %1752 = vst.msk [vmem:[#allocation2 + $0x2c0] sm:$0xff] %vm1019_vm4, %v4357_v33  ;;  %1753 = vst.msk [vmem:[#allocation2 + $0x2c8] sm:$0xff] %vm1019_vm4, %v4357_v33  ;;  %v946_v15 = vmul.f32 %v882_v12, %v684_v63  ;;  %4174 = vmatprep.mubr.msk.f32.mxu1 %vm1019_vm4, %v1008_v51  ;;  %v1888_v61 = vsub.s32 6, %v5075_v19  ;;  %v1896_v5 = vsub.s32 7, %v5075_v19 }
 0x163   :  { %1754 = vst.msk [vmem:[#allocation2 + $0x2d0] sm:$0xff] %vm1019_vm4, %v4357_v33  ;;  %1755 = vst.msk [vmem:[#allocation2 + $0x2d8] sm:$0xff] %vm1019_vm4, %v4357_v33  ;;  %4175 = vmatmul.mubr.msk.f32.gmra.mrb[60].mxu1 %vm1019_vm4, %v1009_v13  ;;  %v1011_v17 = vmul.f32 0.16666667, %v947_v14  ;;  %v1859_v59 = vadd.f32 %v1858_v49, %v1851_v48  ;;  %v5142_v4 = vrot.slane %v5086_v22, %v1880_v55 }
 0x164   :  { %1756 = vst.msk [vmem:[#allocation2 + $0x2e0] sm:$0xff] %vm1019_vm4, %v4357_v33  ;;  %1757 = vst.msk [vmem:[#allocation2 + $0x2e8] sm:$0xff] %vm1019_vm4, %v4357_v33  ;;  %v1010_v16 = vmul.f32 0.16666667, %v946_v15  ;;  %v5149_v12 = vrot.slane %v5086_v22, %v1888_v61 }
 0x165   :  { %1758 = vst.msk [vmem:[#allocation2 + $0x2f0] sm:$0xff] %vm1019_vm4, %v4357_v33  ;;  %1759 = vst.msk [vmem:[#allocation2 + $0x2f8] sm:$0xff] %vm1019_vm4, %v4357_v33 }
 0x166   :  { %1760 = vst.msk [vmem:[#allocation2 + $0x300] sm:$0xff] %vm1019_vm4, %v4357_v33  ;;  %1761 = vst.msk [vmem:[#allocation2 + $0x308] sm:$0xff] %vm1019_vm4, %v4357_v33  ;;  %4177 = vmatprep.mubr.msk.f32.mxu1 %vm1019_vm4, %v1010_v16 }
 0x167   :  { %1762 = vst.msk [vmem:[#allocation2 + $0x310] sm:$0xff] %vm1019_vm4, %v4357_v33  ;;  %1763 = vst.msk [vmem:[#allocation2 + $0x318] sm:$0xff] %vm1019_vm4, %v4357_v33  ;;  %4178 = vmatmul.mubr.msk.f32.gmra.mrb[62].mxu1 %vm1019_vm4, %v1011_v17 }
 0x168   :  { %1764 = vst.msk [vmem:[#allocation2 + $0x320] sm:$0xff] %vm1019_vm4, %v4357_v33  ;;  %1765 = vst.msk [vmem:[#allocation2 + $0x328] sm:$0xff] %vm1019_vm4, %v4357_v33  ;;  %4212 = vmatprep.mubr.msk.f32.mxu1 %vm4359_vm5, %v4357_v33 }
 0x169   :  { %1766 = vst.msk [vmem:[#allocation2 + $0x330] sm:$0xff] %vm1019_vm4, %v4357_v33  ;;  %1767 = vst.msk [vmem:[#allocation2 + $0x338] sm:$0xff] %vm1019_vm4, %v4357_v33 }
 0x16a   :  { %1768 = vst.msk [vmem:[#allocation2 + $0x340] sm:$0xff] %vm1019_vm4, %v4357_v33 }
 0x16b   :  { %3064 = vst.msk [vmem:[#allocation3 + $0x28] sm:$0xff] %vm3058_vm8, %v4357_v33  ;;  %3059 = vst.msk [vmem:[#allocation3] sm:$0xff] %vm3058_vm8, %v4357_v33 }
 0x16c   :  { %3060 = vst.msk [vmem:[#allocation3 + $0x8] sm:$0xff] %vm3058_vm8, %v4357_v33  ;;  %3061 = vst.msk [vmem:[#allocation3 + $0x10] sm:$0xff] %vm3058_vm8, %v4357_v33 }
 0x16d   :  { %3062 = vst.msk [vmem:[#allocation3 + $0x18] sm:$0xff] %vm3058_vm8, %v4357_v33  ;;  %3063 = vst.msk [vmem:[#allocation3 + $0x20] sm:$0xff] %vm3058_vm8, %v4357_v33 }
 0x16e   :  { %3065 = vst.msk [vmem:[#allocation3 + $0x30] sm:$0xff] %vm3058_vm8, %v4357_v33  ;;  %3066 = vst.msk [vmem:[#allocation3 + $0x38] sm:$0xff] %vm3058_vm8, %v4357_v33 }
 0x16f   :  { %3067 = vst.msk [vmem:[#allocation3 + $0x40] sm:$0xff] %vm3058_vm8, %v4357_v33  ;;  %3068 = vst.msk [vmem:[#allocation3 + $0x48] sm:$0xff] %vm3058_vm8, %v4357_v33 }
 0x170   :  { %3069 = vst.msk [vmem:[#allocation3 + $0x50] sm:$0xff] %vm3058_vm8, %v4357_v33  ;;  %3070 = vst.msk [vmem:[#allocation3 + $0x58] sm:$0xff] %vm3058_vm8, %v4357_v33 }
 0x171   :  { %3071 = vst.msk [vmem:[#allocation3 + $0x60] sm:$0xff] %vm3058_vm8, %v4357_v33  ;;  %3072 = vst.msk [vmem:[#allocation3 + $0x68] sm:$0xff] %vm3058_vm8, %v4357_v33 }
 0x172   :  { %3073 = vst.msk [vmem:[#allocation3 + $0x70] sm:$0xff] %vm3058_vm8, %v4357_v33  ;;  %3074 = vst.msk [vmem:[#allocation3 + $0x78] sm:$0xff] %vm3058_vm8, %v4357_v33 }
 0x173   :  { %3075 = vst.msk [vmem:[#allocation3 + $0x80] sm:$0xff] %vm3058_vm8, %v4357_v33  ;;  %3076 = vst.msk [vmem:[#allocation3 + $0x88] sm:$0xff] %vm3058_vm8, %v4357_v33 }
 0x174   :  { %3079 = vst.msk [vmem:[#allocation3 + $0xa0] sm:$0xff] %vm3058_vm8, %v4357_v33  ;;  %3080 = vst.msk [vmem:[#allocation3 + $0xa8] sm:$0xff] %vm3058_vm8, %v4357_v33 }
 0x175   :  { %3081 = vst.msk [vmem:[#allocation3 + $0xb0] sm:$0xff] %vm3058_vm8, %v4357_v33  ;;  %3082 = vst.msk [vmem:[#allocation3 + $0xb8] sm:$0xff] %vm3058_vm8, %v4357_v33 }
 0x176   :  { %3083 = vst.msk [vmem:[#allocation3 + $0xc0] sm:$0xff] %vm3058_vm8, %v4357_v33  ;;  %3084 = vst.msk [vmem:[#allocation3 + $0xc8] sm:$0xff] %vm3058_vm8, %v4357_v33 }
 0x177   :  { %3085 = vst.msk [vmem:[#allocation3 + $0xd0] sm:$0xff] %vm3058_vm8, %v4357_v33  ;;  %3086 = vst.msk [vmem:[#allocation3 + $0xd8] sm:$0xff] %vm3058_vm8, %v4357_v33 }
 0x178   :  { %3087 = vst.msk [vmem:[#allocation3 + $0xe0] sm:$0xff] %vm3058_vm8, %v4357_v33  ;;  %3088 = vst.msk [vmem:[#allocation3 + $0xe8] sm:$0xff] %vm3058_vm8, %v4357_v33 }
 0x179   :  { %3089 = vst.msk [vmem:[#allocation3 + $0xf0] sm:$0xff] %vm3058_vm8, %v4357_v33  ;;  %3090 = vst.msk [vmem:[#allocation3 + $0xf8] sm:$0xff] %vm3058_vm8, %v4357_v33 }
 0x17a   :  { %3091 = vst.msk [vmem:[#allocation3 + $0x100] sm:$0xff] %vm3058_vm8, %v4357_v33  ;;  %3092 = vst.msk [vmem:[#allocation3 + $0x108] sm:$0xff] %vm3058_vm8, %v4357_v33 }
 0x17b   :  { %3093 = vst.msk [vmem:[#allocation3 + $0x110] sm:$0xff] %vm3058_vm8, %v4357_v33  ;;  %3094 = vst.msk [vmem:[#allocation3 + $0x118] sm:$0xff] %vm3058_vm8, %v4357_v33 }
 0x17c   :  { %3095 = vst.msk [vmem:[#allocation3 + $0x120] sm:$0xff] %vm3058_vm8, %v4357_v33  ;;  %3096 = vst.msk [vmem:[#allocation3 + $0x128] sm:$0xff] %vm3058_vm8, %v4357_v33 }
 0x1bd   :  { %v4086_v24 = vpop.f32.mrb[0].mxu1 }
 0x1be   :  { %v1284_v28 = vadd.f32 %v4086_v24, %v5091_v23  ;;  %v1278_v29 = vpop.f32.mrb[1].mxu1 }
 0x1bf   :  { %v1279_v32 = vadd.f32 %v5091_v23, %v1278_v29 }
 0x1c0   :  { %v1598_v34 = vmax.f32 %v1284_v28, 0.0  ;;  %v5159_v28 = vrot.slane %v5086_v22, %v1896_v5  ;;  %v5169_v22 = vld [vmem:[%s5911_s3 + $0x8] ss:$0 sm:$0xff] }
 0x1c1   :  { %v1597_v35 = vmax.f32 %v1279_v32, 0.0  ;;  %v4089_v36 = vpop.f32.mrb[2].mxu1 }
 0x1c2   :  { %1773 = vst.msk [vmem:[#allocation2 + $0x28] sm:$0xff] %vm1019_vm4, %v1598_v34  ;;  %v1294_v40 = vadd.f32 %v4089_v36, %v5091_v23  ;;  %v1288_v41 = vpop.f32.mrb[3].mxu1 }
 0x1c3   :  { %1772 = vst.msk [vmem:[#allocation2 + $0x20] sm:$0xff] %vm1019_vm4, %v1597_v35  ;;  %v1289_v43 = vadd.f32 %v5091_v23, %v1288_v41 }
 0x1c4   :  { %v1600_v45 = vmax.f32 %v1294_v40, 0.0 }
 0x1c5   :  { %v1599_v46 = vmax.f32 %v1289_v43, 0.0  ;;  %v4092_v47 = vpop.f32.mrb[4].mxu1 }
 0x1c6   :  { %1775 = vst.msk [vmem:[#allocation2 + $0x40] sm:$0xff] %vm1019_vm4, %v1600_v45  ;;  %v1304_v6 = vadd.f32 %v4092_v47, %v5091_v23  ;;  %v1298_v52 = vpop.f32.mrb[5].mxu1 }
 0x1c7   :  { %1774 = vst.msk [vmem:[#allocation2 + $0x38] sm:$0xff] %vm1019_vm4, %v1599_v46  ;;  %v1299_v53 = vadd.f32 %v5091_v23, %v1298_v52 }
 0x1c8   :  { %v1602_v56 = vmax.f32 %v1304_v6, 0.0 }
 0x1c9   :  { %v1601_v57 = vmax.f32 %v1299_v53, 0.0  ;;  %v4095_v58 = vpop.f32.mrb[6].mxu1 }
 0x1ca   :  { %1777 = vst.msk [vmem:[#allocation2 + $0x58] sm:$0xff] %vm1019_vm4, %v1602_v56  ;;  %v1314_v62 = vadd.f32 %v4095_v58, %v5091_v23  ;;  %v1308_v63 = vpop.f32.mrb[7].mxu1  ;;  %v1861_v0 = vld [vmem:[#allocation2 + $0x1f] ss:$2 sm:$0xff]  ;;  %v1869_v1 = vld [vmem:[#allocation2 + $0x20] ss:$2 sm:$0xff] }
 0x1cb   :  { %1776 = vst.msk [vmem:[#allocation2 + $0x50] sm:$0xff] %vm1019_vm4, %v1601_v57  ;;  %v1309_v2 = vadd.f32 %v5091_v23, %v1308_v63  ;;  %v1866_v3 = vmul.f32 %v5125_v54, %v1861_v0  ;;  %v1877_v8 = vld [vmem:[#allocation2 + $0x21] ss:$2 sm:$0xff]  ;;  %v1874_v51 = vmul.f32 %v5131_v60, %v1869_v1  ;;  %v5179_v57 = vld [vmem:[%s5918_s10 + $0x2] ss:$0 sm:$0xff] }
 0x1cc   :  { %v1604_v7 = vmax.f32 %v1314_v62, 0.0  ;;  %v1882_v24 = vmul.f32 %v5142_v4, %v1877_v8 }
 0x1cd   :  { %v1603_v9 = vmax.f32 %v1309_v2, 0.0  ;;  %v4098_v10 = vpop.f32.mrb[8].mxu1  ;;  %v1867_v11 = vadd.f32 %v1866_v3, %v1859_v59 }
 0x1ce   :  { %1779 = vst.msk [vmem:[#allocation2 + $0x70] sm:$0xff] %vm1019_vm4, %v1604_v7  ;;  %v1324_v13 = vadd.f32 %v4098_v10, %v5091_v23  ;;  %v1318_v14 = vpop.f32.mrb[9].mxu1  ;;  %v1885_v15 = vld [vmem:[#allocation2 + $0x37] ss:$2 sm:$0xff]  ;;  %v1893_v16 = vld [vmem:[#allocation2 + $0x38] ss:$2 sm:$0xff] }
 0x1cf   :  { %1778 = vst.msk [vmem:[#allocation2 + $0x68] sm:$0xff] %vm1019_vm4, %v1603_v9  ;;  %v1319_v17 = vadd.f32 %v5091_v23, %v1318_v14  ;;  %v1875_v18 = vadd.f32 %v1874_v51, %v1867_v11  ;;  %v1901_v29 = vld [vmem:[#allocation2 + $0x39] ss:$2 sm:$0xff]  ;;  %v1914_v31 = vmul.f32 %v1885_v15, %v5095_v25  ;;  %v1916_v32 = vmul.f32 %v1893_v16, %v5099_v26 }
 0x1d0   :  { %v1606_v30 = vmax.f32 %v1324_v13, 0.0  ;;  %v1890_v37 = vmul.f32 %v5149_v12, %v1885_v15  ;;  %v1918_v42 = vmul.f32 %v1901_v29, %v5109_v39  ;;  %v1898_v47 = vmul.f32 %v5159_v28, %v1893_v16 }
 0x1d1   :  { %v1605_v34 = vmax.f32 %v1319_v17, 0.0  ;;  %v4101_v35 = vpop.f32.mrb[10].mxu1  ;;  %v1883_v36 = vadd.f32 %v1882_v24, %v1875_v18  ;;  %v1917_v41 = vadd.f32 %v1916_v32, %v1914_v31  ;;  %v1906_v59 = vmul.f32 %v5169_v22, %v1901_v29 }
 0x1d2   :  { %1781 = vst.msk [vmem:[#allocation2 + $0x88] sm:$0xff] %vm1019_vm4, %v1606_v30  ;;  %v1334_v38 = vadd.f32 %v4101_v35, %v5091_v23  ;;  %v1328_v40 = vpop.f32.mrb[11].mxu1  ;;  %v1921_v43 = vld [vmem:[#allocation2 + $0x4f] ss:$2 sm:$0xff]  ;;  %v1925_v49 = vld [vmem:[#allocation2 + $0x50] ss:$2 sm:$0xff] }
 0x1d3   :  { %1780 = vst.msk [vmem:[#allocation2 + $0x80] sm:$0xff] %vm1019_vm4, %v1605_v34  ;;  %v1329_v45 = vadd.f32 %v5091_v23, %v1328_v40  ;;  %v1891_v46 = vadd.f32 %v1890_v37, %v1883_v36  ;;  %v1922_v48 = vmul.f32 %v1921_v43, %v5125_v54  ;;  %v1919_v52 = vadd.f32 %v1918_v42, %v1917_v41  ;;  %v1929_v62 = vld [vmem:[#allocation2 + $0x51] ss:$2 sm:$0xff] }
 0x1d4   :  { %v1608_v6 = vmax.f32 %v1334_v38, 0.0  ;;  %v1926_v2 = vmul.f32 %v1925_v49, %v5131_v60  ;;  %v1930_v13 = vmul.f32 %v1929_v62, %v5142_v4 }
 0x1d5   :  { %v1607_v53 = vmax.f32 %v1329_v45, 0.0  ;;  %v4104_v56 = vpop.f32.mrb[12].mxu1  ;;  %v1899_v58 = vadd.f32 %v1898_v47, %v1891_v46  ;;  %v1923_v1 = vadd.f32 %v1922_v48, %v1919_v52 }
 0x1d6   :  { %1783 = vst.msk [vmem:[#allocation2 + $0xa0] sm:$0xff] %vm1019_vm4, %v1608_v6  ;;  %v1344_v63 = vadd.f32 %v4104_v56, %v5091_v23  ;;  %v1338_v0 = vpop.f32.mrb[13].mxu1  ;;  %v1933_v3 = vld [vmem:[#allocation2 + $0x67] ss:$2 sm:$0xff]  ;;  %v1937_v7 = vld [vmem:[#allocation2 + $0x68] ss:$2 sm:$0xff] }
 0x1d7   :  { %1782 = vst.msk [vmem:[#allocation2 + $0x98] sm:$0xff] %vm1019_vm4, %v1607_v53  ;;  %v1339_v8 = vadd.f32 %v5091_v23, %v1338_v0  ;;  %v1907_v9 = vadd.f32 %v1906_v59, %v1899_v58  ;;  %v1941_v10 = vld [vmem:[#allocation2 + $0x69] ss:$2 sm:$0xff]  ;;  %v1927_v51 = vadd.f32 %v1926_v2, %v1923_v1  ;;  %v1946_v14 = vmul.f32 %v1933_v3, %v5095_v25 }
 0x1d8   :  { %v1610_v11 = vmax.f32 %v1344_v63, 0.0  ;;  %v1948_v18 = vmul.f32 %v1937_v7, %v5099_v26  ;;  %v1934_v31 = vmul.f32 %v1933_v3, %v5149_v12  ;;  %v1950_v32 = vmul.f32 %v1941_v10, %v5109_v39 }
 0x1d9   :  { %v1609_v15 = vmax.f32 %v1339_v8, 0.0  ;;  %v4107_v16 = vpop.f32.mrb[14].mxu1  ;;  %v1912_v17 = vadd.f32 %v5179_v57, %v1907_v9  ;;  %v1931_v30 = vadd.f32 %v1930_v13, %v1927_v51  ;;  %v1938_v42 = vmul.f32 %v1937_v7, %v5159_v28 }
 0x1da   :  { %1785 = vst.msk [vmem:[#allocation2 + $0xb8] sm:$0xff] %vm1019_vm4, %v1610_v11  ;;  %v1354_v24 = vadd.f32 %v4107_v16, %v5091_v23  ;;  %v1348_v29 = vpop.f32.mrb[15].mxu1  ;;  %v1953_v34 = vld [vmem:[#allocation2 + $0x7f] ss:$2 sm:$0xff]  ;;  %v1949_v37 = vadd.f32 %v1948_v18, %v1946_v14  ;;  %v1957_v43 = vld [vmem:[#allocation2 + $0x80] ss:$2 sm:$0xff]  ;;  %v1942_v53 = vmul.f32 %v5169_v22, %v1941_v10 }
 0x1db   :  { %1784 = vst.msk [vmem:[#allocation2 + $0xb0] sm:$0xff] %vm1019_vm4, %v1609_v15  ;;  %v1349_v35 = vadd.f32 %v5091_v23, %v1348_v29  ;;  %v1913_v36 = vmax.f32 %v1912_v17, 0.0  ;;  %v1954_v38 = vmul.f32 %v1953_v34, %v5125_v54  ;;  %v1935_v41 = vadd.f32 %v1934_v31, %v1931_v30  ;;  %v1961_v48 = vld [vmem:[#allocation2 + $0x81] ss:$2 sm:$0xff] }
 0x1dc   :  { %v1612_v40 = vmax.f32 %v1354_v24, 0.0  ;;  %v1951_v47 = vadd.f32 %v1950_v32, %v1949_v37  ;;  %v1958_v63 = vmul.f32 %v1957_v43, %v5131_v60  ;;  %v1962_v11 = vmul.f32 %v1961_v48, %v5142_v4 }
 0x1dd   :  { %v1611_v45 = vmax.f32 %v1349_v35, 0.0  ;;  %v4110_v46 = vpop.f32.mrb[16].mxu1  ;;  %4184 = vmatprep.mubr.msk.f32.mxu0 %vm1019_vm4, %v1913_v36  ;;  %v1939_v52 = vadd.f32 %v1938_v42, %v1935_v41 }
 0x1de   :  { %1787 = vst.msk [vmem:[#allocation2 + $0xd0] sm:$0xff] %vm1019_vm4, %v1612_v40  ;;  %v1364_v49 = vadd.f32 %v4110_v46, %v5091_v23  ;;  %v1358_v6 = vpop.f32.mrb[17].mxu1  ;;  %v1965_v56 = vld [vmem:[#allocation2 + $0x97] ss:$2 sm:$0xff]  ;;  %v1969_v58 = vld [vmem:[#allocation2 + $0x98] ss:$2 sm:$0xff]  ;;  %v1955_v62 = vadd.f32 %v1954_v38, %v1951_v47 }
 0x1df   :  { %1786 = vst.msk [vmem:[#allocation2 + $0xc8] sm:$0xff] %vm1019_vm4, %v1611_v45  ;;  %v1359_v59 = vadd.f32 %v5091_v23, %v1358_v6  ;;  %v1973_v0 = vld [vmem:[#allocation2 + $0x99] ss:$2 sm:$0xff]  ;;  %v1943_v2 = vadd.f32 %v1942_v53, %v1939_v52  ;;  %v1978_v3 = vmul.f32 %v1965_v56, %v5095_v25  ;;  %v1980_v10 = vmul.f32 %v1969_v58, %v5099_v26 }
 0x1e0   :  { %v1614_v1 = vmax.f32 %v1364_v49, 0.0  ;;  %v1959_v9 = vadd.f32 %v1958_v63, %v1955_v62  ;;  %v1966_v15 = vmul.f32 %v1965_v56, %v5149_v12  ;;  %v1982_v16 = vmul.f32 %v1973_v0, %v5109_v39 }
 0x1e1   :  { %v1613_v7 = vmax.f32 %v1359_v59, 0.0  ;;  %v4113_v8 = vpop.f32.mrb[18].mxu1  ;;  %v1944_v14 = vadd.f32 %v5179_v57, %v1943_v2  ;;  %v1981_v29 = vadd.f32 %v1980_v10, %v1978_v3  ;;  %v1970_v38 = vmul.f32 %v1969_v58, %v5159_v28 }
 0x1e2   :  { %1789 = vst.msk [vmem:[#allocation2 + $0xe8] sm:$0xff] %vm1019_vm4, %v1614_v1  ;;  %v1374_v51 = vadd.f32 %v4113_v8, %v5091_v23  ;;  %v1368_v13 = vpop.f32.mrb[19].mxu1  ;;  %v1985_v17 = vld [vmem:[#allocation2 + $0xaf] ss:$2 sm:$0xff]  ;;  %v1963_v24 = vadd.f32 %v1962_v11, %v1959_v9  ;;  %v1989_v34 = vld [vmem:[#allocation2 + $0xb0] ss:$2 sm:$0xff]  ;;  %v1974_v45 = vmul.f32 %v5169_v22, %v1973_v0 }
 0x1e3   :  { %1788 = vst.msk [vmem:[#allocation2 + $0xe0] sm:$0xff] %vm1019_vm4, %v1613_v7  ;;  %v1369_v18 = vadd.f32 %v5091_v23, %v1368_v13  ;;  %v1986_v30 = vmul.f32 %v1985_v17, %v5125_v54  ;;  %v1945_v32 = vmax.f32 %v1944_v14, 0.0  ;;  %v1983_v40 = vadd.f32 %v1982_v16, %v1981_v29  ;;  %v1993_v41 = vld [vmem:[#allocation2 + $0xb1] ss:$2 sm:$0xff] }
 0x1e4   :  { %v1616_v31 = vmax.f32 %v1374_v51, 0.0  ;;  %v1967_v37 = vadd.f32 %v1966_v15, %v1963_v24  ;;  %v1990_v52 = vmul.f32 %v1989_v34, %v5131_v60  ;;  %v1994_v58 = vmul.f32 %v1993_v41, %v5142_v4 }
 0x1e5   :  { %v1615_v35 = vmax.f32 %v1369_v18, 0.0  ;;  %v4116_v36 = vpop.f32.mrb[20].mxu1  ;;  %4185 = vmatmul.mubr.msk.f32.vlgmr.msra.gmra.mrb[64].mxu0 %vm1019_vm4, %v1945_v32  ;;  %v1987_v6 = vadd.f32 %v1986_v30, %v1983_v40 }
 0x1e6   :  { %1791 = vst.msk [vmem:[#allocation2 + $0x100] sm:$0xff] %vm1019_vm4, %v1616_v31  ;;  %v1384_v42 = vadd.f32 %v4116_v36, %v5091_v23  ;;  %v1378_v43 = vpop.f32.mrb[21].mxu1  ;;  %v1997_v46 = vld [vmem:[#allocation2 + $0xc7] ss:$2 sm:$0xff]  ;;  %v2001_v47 = vld [vmem:[#allocation2 + $0xc8] ss:$2 sm:$0xff]  ;;  %v1971_v49 = vadd.f32 %v1970_v38, %v1967_v37 }
 0x1e7   :  { %1790 = vst.msk [vmem:[#allocation2 + $0xf8] sm:$0xff] %vm1019_vm4, %v1615_v35  ;;  %v1379_v48 = vadd.f32 %v5091_v23, %v1378_v43  ;;  %v2005_v53 = vld [vmem:[#allocation2 + $0xc9] ss:$2 sm:$0xff]  ;;  %v2010_v59 = vmul.f32 %v1997_v46, %v5095_v25  ;;  %v1991_v0 = vadd.f32 %v1990_v52, %v1987_v6  ;;  %v2012_v2 = vmul.f32 %v2001_v47, %v5099_v26 }
 0x1e8   :  { %v1618_v56 = vmax.f32 %v1384_v42, 0.0  ;;  %v1975_v1 = vadd.f32 %v1974_v45, %v1971_v49  ;;  %v1998_v8 = vmul.f32 %v1997_v46, %v5149_v12  ;;  %v2014_v9 = vmul.f32 %v2005_v53, %v5109_v39 }
 0x1e9   :  { %v1617_v62 = vmax.f32 %v1379_v48, 0.0  ;;  %v4119_v63 = vpop.f32.mrb[22].mxu1  ;;  %v1995_v13 = vadd.f32 %v1994_v58, %v1991_v0  ;;  %v2013_v14 = vadd.f32 %v2012_v2, %v2010_v59  ;;  %v2002_v16 = vmul.f32 %v2001_v47, %v5159_v28 }
 0x1ea   :  { %1793 = vst.msk [vmem:[#allocation2 + $0x118] sm:$0xff] %vm1019_vm4, %v1618_v56  ;;  %v1394_v3 = vadd.f32 %v4119_v63, %v5091_v23  ;;  %v1388_v7 = vpop.f32.mrb[23].mxu1  ;;  %v2017_v11 = vld [vmem:[#allocation2 + $0xdf] ss:$2 sm:$0xff]  ;;  %v1976_v51 = vadd.f32 %v5179_v57, %v1975_v1  ;;  %v2021_v18 = vld [vmem:[#allocation2 + $0xe0] ss:$2 sm:$0xff]  ;;  %v2006_v37 = vmul.f32 %v5169_v22, %v2005_v53 }
 0x1eb   :  { %1792 = vst.msk [vmem:[#allocation2 + $0x110] sm:$0xff] %vm1019_vm4, %v1617_v62  ;;  %v1389_v10 = vadd.f32 %v5091_v23, %v1388_v7  ;;  %v2018_v17 = vmul.f32 %v2017_v11, %v5125_v54  ;;  %v1999_v31 = vadd.f32 %v1998_v8, %v1995_v13  ;;  %v2015_v32 = vadd.f32 %v2014_v9, %v2013_v14  ;;  %v2025_v34 = vld [vmem:[#allocation2 + $0xe1] ss:$2 sm:$0xff] }
 0x1ec   :  { %v1620_v15 = vmax.f32 %v1394_v3, 0.0  ;;  %v1977_v30 = vmax.f32 %v1976_v51, 0.0  ;;  %v2022_v45 = vmul.f32 %v2021_v18, %v5131_v60  ;;  %v2026_v48 = vmul.f32 %v2025_v34, %v5142_v4 }
 0x1ed   :  { %v1619_v24 = vmax.f32 %v1389_v10, 0.0  ;;  %v4122_v29 = vpop.f32.mrb[24].mxu1  ;;  %v2003_v42 = vadd.f32 %v2002_v16, %v1999_v31  ;;  %v2019_v43 = vadd.f32 %v2018_v17, %v2015_v32 }
 0x1ee   :  { %1795 = vst.msk [vmem:[#allocation2 + $0x130] sm:$0xff] %vm1019_vm4, %v1620_v15  ;;  %v1404_v35 = vadd.f32 %v4122_v29, %v5091_v23  ;;  %v1398_v36 = vpop.f32.mrb[25].mxu1  ;;  %v2029_v38 = vld [vmem:[#allocation2 + $0xf7] ss:$2 sm:$0xff]  ;;  %v2033_v40 = vld [vmem:[#allocation2 + $0xf8] ss:$2 sm:$0xff]  ;;  %4187 = vmatprep.mubr.msk.f32.mxu0 %vm1019_vm4, %v1977_v30 }
 0x1ef   :  { %1794 = vst.msk [vmem:[#allocation2 + $0x128] sm:$0xff] %vm1019_vm4, %v1619_v24  ;;  %v1399_v41 = vadd.f32 %v5091_v23, %v1398_v36  ;;  %v2037_v46 = vld [vmem:[#allocation2 + $0xf9] ss:$2 sm:$0xff]  ;;  %v2042_v49 = vmul.f32 %v2029_v38, %v5095_v25  ;;  %v2007_v53 = vadd.f32 %v2006_v37, %v2003_v42  ;;  %v2023_v56 = vadd.f32 %v2022_v45, %v2019_v43 }
 0x1f0   :  { %v1622_v47 = vmax.f32 %v1404_v35, 0.0  ;;  %v2044_v58 = vmul.f32 %v2033_v40, %v5099_v26  ;;  %v2030_v63 = vmul.f32 %v2029_v38, %v5149_v12  ;;  %v2046_v1 = vmul.f32 %v2037_v46, %v5109_v39 }
 0x1f1   :  { %v1621_v6 = vmax.f32 %v1399_v41, 0.0  ;;  %v4125_v52 = vpop.f32.mrb[26].mxu1  ;;  %v2008_v3 = vadd.f32 %v5179_v57, %v2007_v53  ;;  %v2027_v7 = vadd.f32 %v2026_v48, %v2023_v56  ;;  %v2034_v11 = vmul.f32 %v2033_v40, %v5159_v28 }
 0x1f2   :  { %1797 = vst.msk [vmem:[#allocation2 + $0x148] sm:$0xff] %vm1019_vm4, %v1622_v47  ;;  %v1414_v59 = vadd.f32 %v4125_v52, %v5091_v23  ;;  %v1408_v62 = vpop.f32.mrb[27].mxu1  ;;  %v2049_v0 = vld [vmem:[#allocation2 + $0x10f] ss:$2 sm:$0xff]  ;;  %v2045_v8 = vadd.f32 %v2044_v58, %v2042_v49  ;;  %v2053_v51 = vld [vmem:[#allocation2 + $0x110] ss:$2 sm:$0xff]  ;;  %v2038_v30 = vmul.f32 %v5169_v22, %v2037_v46 }
 0x1f3   :  { %1796 = vst.msk [vmem:[#allocation2 + $0x140] sm:$0xff] %vm1019_vm4, %v1621_v6  ;;  %v1409_v2 = vadd.f32 %v5091_v23, %v1408_v62  ;;  %v2050_v10 = vmul.f32 %v2049_v0, %v5125_v54  ;;  %v2009_v15 = vmax.f32 %v2008_v3, 0.0  ;;  %v2031_v16 = vadd.f32 %v2030_v63, %v2027_v7  ;;  %v2057_v18 = vld [vmem:[#allocation2 + $0x111] ss:$2 sm:$0xff]  ;;  %v2143_v0 = vld [vmem:[#allocation2 + $0x1b8] ss:$2 sm:$0xff] }
 0x1f4   :  { %v1624_v9 = vmax.f32 %v1414_v59, 0.0  ;;  %v2047_v17 = vadd.f32 %v2046_v1, %v2045_v8  ;;  %v2054_v37 = vmul.f32 %v2053_v51, %v5131_v60  ;;  %v2058_v41 = vmul.f32 %v2057_v18, %v5142_v4  ;;  %v2139_v1 = vld [vmem:[#allocation2 + $0x1b7] ss:$2 sm:$0xff] }
 0x1f5   :  { %v1623_v13 = vmax.f32 %v1409_v2, 0.0  ;;  %v4128_v14 = vpop.f32.mrb[28].mxu1  ;;  %4188 = vmatmul.mubr.msk.f32.gmra.mrb[66].mxu0 %vm1019_vm4, %v2009_v15  ;;  %v2035_v35 = vadd.f32 %v2034_v11, %v2031_v16 }
 0x1f6   :  { %1799 = vst.msk [vmem:[#allocation2 + $0x160] sm:$0xff] %vm1019_vm4, %v1624_v9  ;;  %v1424_v24 = vadd.f32 %v4128_v14, %v5091_v23  ;;  %v1418_v29 = vpop.f32.mrb[29].mxu1  ;;  %v2061_v31 = vld [vmem:[#allocation2 + $0x127] ss:$2 sm:$0xff]  ;;  %v2065_v32 = vld [vmem:[#allocation2 + $0x128] ss:$2 sm:$0xff]  ;;  %v2051_v36 = vadd.f32 %v2050_v10, %v2047_v17 }
 0x1f7   :  { %1798 = vst.msk [vmem:[#allocation2 + $0x158] sm:$0xff] %vm1019_vm4, %v1623_v13  ;;  %v1419_v34 = vadd.f32 %v5091_v23, %v1418_v29  ;;  %v2069_v38 = vld [vmem:[#allocation2 + $0x129] ss:$2 sm:$0xff]  ;;  %v2074_v42 = vmul.f32 %v2061_v31, %v5095_v25  ;;  %v2039_v46 = vadd.f32 %v2038_v30, %v2035_v35  ;;  %v2076_v48 = vmul.f32 %v2065_v32, %v5099_v26 }
 0x1f8   :  { %v1626_v40 = vmax.f32 %v1424_v24, 0.0  ;;  %v2055_v47 = vadd.f32 %v2054_v37, %v2051_v36  ;;  %v2062_v52 = vmul.f32 %v2061_v31, %v5149_v12  ;;  %v2078_v53 = vmul.f32 %v2069_v38, %v5109_v39 }
 0x1f9   :  { %v1625_v43 = vmax.f32 %v1419_v34, 0.0  ;;  %v4131_v45 = vpop.f32.mrb[30].mxu1  ;;  %v2040_v59 = vadd.f32 %v5179_v57, %v2039_v46  ;;  %v2077_v63 = vadd.f32 %v2076_v48, %v2074_v42  ;;  %v2066_v3 = vmul.f32 %v2065_v32, %v5159_v28 }
 0x1fa   :  { %1801 = vst.msk [vmem:[#allocation2 + $0x178] sm:$0xff] %vm1019_vm4, %v1626_v40  ;;  %v1434_v49 = vadd.f32 %v4131_v45, %v5091_v23  ;;  %v1428_v6 = vpop.f32.mrb[31].mxu1  ;;  %v2081_v56 = vld [vmem:[#allocation2 + $0x13f] ss:$2 sm:$0xff]  ;;  %v2059_v62 = vadd.f32 %v2058_v41, %v2055_v47  ;;  %v2085_v8 = vld [vmem:[#allocation2 + $0x140] ss:$2 sm:$0xff]  ;;  %v2070_v17 = vmul.f32 %v5169_v22, %v2069_v38  ;;  %v2140_v29 = vmul.f32 %v2139_v1, %v5095_v25 }
 0x1fb   :  { %1800 = vst.msk [vmem:[#allocation2 + $0x170] sm:$0xff] %vm1019_vm4, %v1625_v43  ;;  %v1429_v58 = vadd.f32 %v5091_v23, %v1428_v6  ;;  %v2082_v7 = vmul.f32 %v2081_v56, %v5125_v54  ;;  %v2041_v10 = vmax.f32 %v2040_v59, 0.0  ;;  %v2079_v13 = vadd.f32 %v2078_v53, %v2077_v63  ;;  %v2089_v14 = vld [vmem:[#allocation2 + $0x141] ss:$2 sm:$0xff] }
 0x1fc   :  { %v1628_v2 = vmax.f32 %v1434_v49, 0.0  ;;  %v2063_v51 = vadd.f32 %v2062_v52, %v2059_v62  ;;  %v2144_v30 = vmul.f32 %v2143_v0, %v5099_v26  ;;  %v2086_v35 = vmul.f32 %v2085_v8, %v5131_v60  ;;  %v2147_v47 = vld [vmem:[#allocation2 + $0x1b9] ss:$2 sm:$0xff] }
 0x1fd   :  { %v1627_v9 = vmax.f32 %v1429_v58, 0.0  ;;  %v4134_v11 = vpop.f32.mrb[32].mxu1  ;;  %4190 = vmatprep.mubr.msk.f32.mxu0 %vm1019_vm4, %v2041_v10  ;;  %v2083_v34 = vadd.f32 %v2082_v7, %v2079_v13  ;;  %v2090_v38 = vmul.f32 %v2089_v14, %v5142_v4  ;;  %v2148_v7 = vmul.f32 %v2147_v47, %v5109_v39 }
 0x1fe   :  { %1803 = vst.msk [vmem:[#allocation2 + $0x190] sm:$0xff] %vm1019_vm4, %v1628_v2  ;;  %v1444_v15 = vadd.f32 %v4134_v11, %v5091_v23  ;;  %v1438_v16 = vpop.f32.mrb[33].mxu1  ;;  %v2093_v18 = vld [vmem:[#allocation2 + $0x157] ss:$2 sm:$0xff]  ;;  %v2097_v24 = vld [vmem:[#allocation2 + $0x158] ss:$2 sm:$0xff]  ;;  %v2067_v32 = vadd.f32 %v2066_v3, %v2063_v51  ;;  %v2145_v56 = vadd.f32 %v2144_v30, %v2140_v29 }
 0x1ff   :  { %1802 = vst.msk [vmem:[#allocation2 + $0x188] sm:$0xff] %vm1019_vm4, %v1627_v9  ;;  %v1439_v31 = vadd.f32 %v5091_v23, %v1438_v16  ;;  %v2101_v36 = vld [vmem:[#allocation2 + $0x159] ss:$2 sm:$0xff]  ;;  %v2106_v40 = vmul.f32 %v2093_v18, %v5095_v25  ;;  %v2087_v45 = vadd.f32 %v2086_v35, %v2083_v34  ;;  %v2108_v46 = vmul.f32 %v2097_v24, %v5099_v26 }
 0x200   :  { %v1630_v37 = vmax.f32 %v1444_v15, 0.0  ;;  %v2071_v43 = vadd.f32 %v2070_v17, %v2067_v32  ;;  %v2094_v6 = vmul.f32 %v2093_v18, %v5149_v12  ;;  %v2110_v52 = vmul.f32 %v2101_v36, %v5109_v39 }
 0x201   :  { %v1629_v41 = vmax.f32 %v1439_v31, 0.0  ;;  %v4137_v42 = vpop.f32.mrb[34].mxu1  ;;  %v2091_v62 = vadd.f32 %v2090_v38, %v2087_v45  ;;  %v2109_v63 = vadd.f32 %v2108_v46, %v2106_v40  ;;  %v2098_v0 = vmul.f32 %v2097_v24, %v5159_v28 }
 0x202   :  { %1805 = vst.msk [vmem:[#allocation2 + $0x1d8] sm:$0xff] %vm1019_vm4, %v1630_v37  ;;  %v1454_v48 = vadd.f32 %v4137_v42, %v5091_v23  ;;  %v1448_v49 = vpop.f32.mrb[35].mxu1  ;;  %v2113_v53 = vld [vmem:[#allocation2 + $0x16f] ss:$2 sm:$0xff]  ;;  %v2072_v59 = vadd.f32 %v5179_v57, %v2071_v43  ;;  %v2117_v3 = vld [vmem:[#allocation2 + $0x170] ss:$2 sm:$0xff]  ;;  %v2102_v15 = vmul.f32 %v5169_v22, %v2101_v36  ;;  %v2149_v32 = vadd.f32 %v2148_v7, %v2145_v56 }
 0x203   :  { %1804 = vst.msk [vmem:[#allocation2 + $0x1d0] sm:$0xff] %vm1019_vm4, %v1629_v41  ;;  %v1449_v58 = vadd.f32 %v5091_v23, %v1448_v49  ;;  %v2114_v2 = vmul.f32 %v2113_v53, %v5125_v54  ;;  %v2095_v10 = vadd.f32 %v2094_v6, %v2091_v62  ;;  %v2111_v51 = vadd.f32 %v2110_v52, %v2109_v63  ;;  %v2121_v16 = vld [vmem:[#allocation2 + $0x171] ss:$2 sm:$0xff] }
 0x204   :  { %v1632_v1 = vmax.f32 %v1454_v48, 0.0  ;;  %v2073_v11 = vmax.f32 %v2072_v59, 0.0  ;;  %v2118_v29 = vmul.f32 %v2117_v3, %v5131_v60  ;;  %v2122_v36 = vmul.f32 %v2121_v16, %v5142_v4 }
 0x205   :  { %v1631_v8 = vmax.f32 %v1449_v58, 0.0  ;;  %v4140_v9 = vpop.f32.mrb[36].mxu1  ;;  %v2099_v18 = vadd.f32 %v2098_v0, %v2095_v10  ;;  %v2115_v24 = vadd.f32 %v2114_v2, %v2111_v51 }
 0x206   :  { %1807 = vst.msk [vmem:[#allocation2 + $0x1f0] sm:$0xff] %vm1019_vm4, %v1632_v1  ;;  %v1464_v13 = vadd.f32 %v4140_v9, %v5091_v23  ;;  %v1458_v14 = vpop.f32.mrb[37].mxu1  ;;  %4191 = vmatmul.mubr.msk.f32.gmra.mrb[68].mxu0 %vm1019_vm4, %v2073_v11  ;;  %v2125_v30 = vld [vmem:[#allocation2 + $0x187] ss:$2 sm:$0xff]  ;;  %v2129_v40 = vld [vmem:[#allocation2 + $0x188] ss:$2 sm:$0xff] }
 0x207   :  { %1806 = vst.msk [vmem:[#allocation2 + $0x1e8] sm:$0xff] %vm1019_vm4, %v1631_v8  ;;  %v1459_v17 = vadd.f32 %v5091_v23, %v1458_v14  ;;  %v2103_v37 = vadd.f32 %v2102_v15, %v2099_v18  ;;  %v2119_v38 = vadd.f32 %v2118_v29, %v2115_v24  ;;  %v2126_v43 = vmul.f32 %v2125_v30, %v5149_v12  ;;  %v2133_v6 = vld [vmem:[#allocation2 + $0x189] ss:$2 sm:$0xff] }
 0x208   :  { %v1634_v31 = vmax.f32 %v1464_v13, 0.0  ;;  %v2130_v56 = vmul.f32 %v2129_v40, %v5159_v28  ;;  %v2134_v8 = vmul.f32 %v5169_v22, %v2133_v6 }
 0x209   :  { %v1633_v34 = vmax.f32 %v1459_v17, 0.0  ;;  %v4143_v35 = vpop.f32.mrb[38].mxu1  ;;  %v2104_v48 = vadd.f32 %v5179_v57, %v2103_v37  ;;  %v2123_v49 = vadd.f32 %v2122_v36, %v2119_v38 }
 0x20a   :  { %1809 = vst.msk [vmem:[#allocation2 + $0x208] sm:$0xff] %vm1019_vm4, %v1634_v31  ;;  %v1474_v41 = vadd.f32 %v4143_v35, %v5091_v23  ;;  %v1468_v42 = vpop.f32.mrb[39].mxu1  ;;  %v2151_v45 = vld [vmem:[#allocation2 + $0x1cf] ss:$2 sm:$0xff]  ;;  %v2155_v46 = vld [vmem:[#allocation2 + $0x1d0] ss:$2 sm:$0xff] }
 0x20b   :  { %1808 = vst.msk [vmem:[#allocation2 + $0x200] sm:$0xff] %vm1019_vm4, %v1633_v34  ;;  %v1469_v47 = vadd.f32 %v5091_v23, %v1468_v42  ;;  %v2152_v52 = vmul.f32 %v2151_v45, %v5125_v54  ;;  %v2156_v58 = vmul.f32 %v2155_v46, %v5131_v60  ;;  %v2159_v59 = vld [vmem:[#allocation2 + $0x1d1] ss:$2 sm:$0xff]  ;;  %v2105_v1 = vmax.f32 %v2104_v48, 0.0 }
 0x20c   :  { %v1636_v53 = vmax.f32 %v1474_v41, 0.0  ;;  %v2127_v0 = vadd.f32 %v2126_v43, %v2123_v49  ;;  %v2160_v14 = vmul.f32 %v2159_v59, %v5142_v4 }
 0x20d   :  { %v1635_v62 = vmax.f32 %v1469_v47, 0.0  ;;  %v4146_v63 = vpop.f32.mrb[40].mxu1  ;;  %v2153_v2 = vadd.f32 %v2152_v52, %v2149_v32  ;;  %4193 = vmatprep.mubr.msk.f32.mxu0 %vm1019_vm4, %v2105_v1 }
 0x20e   :  { %1811 = vst.msk [vmem:[#allocation2 + $0x220] sm:$0xff] %vm1019_vm4, %v1636_v53  ;;  %v1484_v3 = vadd.f32 %v4146_v63, %v5091_v23  ;;  %v1478_v7 = vpop.f32.mrb[41].mxu1  ;;  %v2163_v9 = vld [vmem:[#allocation2 + $0x1e7] ss:$2 sm:$0xff]  ;;  %v2167_v11 = vld [vmem:[#allocation2 + $0x1e8] ss:$2 sm:$0xff]  ;;  %v2131_v51 = vadd.f32 %v2130_v56, %v2127_v0 }
 0x20f   :  { %1810 = vst.msk [vmem:[#allocation2 + $0x218] sm:$0xff] %vm1019_vm4, %v1635_v62  ;;  %v1479_v10 = vadd.f32 %v5091_v23, %v1478_v7  ;;  %v2157_v13 = vadd.f32 %v2156_v58, %v2153_v2  ;;  %v2171_v15 = vld [vmem:[#allocation2 + $0x1e9] ss:$2 sm:$0xff]  ;;  %v2164_v17 = vmul.f32 %v2163_v9, %v5149_v12  ;;  %v2176_v18 = vmul.f32 %v2163_v9, %v5095_v25 }
 0x210   :  { %v1638_v16 = vmax.f32 %v1484_v3, 0.0  ;;  %v2135_v30 = vadd.f32 %v2134_v8, %v2131_v51  ;;  %v2178_v32 = vmul.f32 %v2167_v11, %v5099_v26  ;;  %v2168_v37 = vmul.f32 %v2167_v11, %v5159_v28 }
 0x211   :  { %v1637_v24 = vmax.f32 %v1479_v10, 0.0  ;;  %v4149_v29 = vpop.f32.mrb[42].mxu1  ;;  %v2161_v31 = vadd.f32 %v2160_v14, %v2157_v13  ;;  %v2180_v38 = vmul.f32 %v2171_v15, %v5109_v39  ;;  %v2172_v46 = vmul.f32 %v5169_v22, %v2171_v15 }
 0x212   :  { %1813 = vst.msk [vmem:[#allocation2 + $0x238] sm:$0xff] %vm1019_vm4, %v1638_v16  ;;  %v1494_v34 = vadd.f32 %v4149_v29, %v5091_v23  ;;  %v1488_v35 = vpop.f32.mrb[43].mxu1  ;;  %v2183_v36 = vld [vmem:[#allocation2 + $0x1ff] ss:$2 sm:$0xff]  ;;  %v2136_v41 = vadd.f32 %v5179_v57, %v2135_v30  ;;  %v2179_v43 = vadd.f32 %v2178_v32, %v2176_v18  ;;  %v2187_v48 = vld [vmem:[#allocation2 + $0x200] ss:$2 sm:$0xff] }
 0x213   :  { %1812 = vst.msk [vmem:[#allocation2 + $0x230] sm:$0xff] %vm1019_vm4, %v1637_v24  ;;  %v1489_v40 = vadd.f32 %v5091_v23, %v1488_v35  ;;  %v2165_v42 = vadd.f32 %v2164_v17, %v2161_v31  ;;  %v2184_v47 = vmul.f32 %v2183_v36, %v5125_v54  ;;  %v2191_v58 = vld [vmem:[#allocation2 + $0x201] ss:$2 sm:$0xff]  ;;  %v2188_v7 = vmul.f32 %v2187_v48, %v5131_v60 }
 0x214   :  { %v1640_v45 = vmax.f32 %v1494_v34, 0.0  ;;  %v2137_v52 = vmax.f32 %v2136_v41, 0.0  ;;  %v2181_v56 = vadd.f32 %v2180_v38, %v2179_v43  ;;  %v2192_v11 = vmul.f32 %v2191_v58, %v5142_v4 }
 0x215   :  { %v1639_v49 = vmax.f32 %v1489_v40, 0.0  ;;  %v4152_v6 = vpop.f32.mrb[44].mxu1  ;;  %v2169_v53 = vadd.f32 %v2168_v37, %v2165_v42 }
 0x216   :  { %1815 = vst.msk [vmem:[#allocation2 + $0x250] sm:$0xff] %vm1019_vm4, %v1640_v45  ;;  %v1504_v59 = vadd.f32 %v4152_v6, %v5091_v23  ;;  %v1498_v62 = vpop.f32.mrb[45].mxu1  ;;  %v2195_v63 = vld [vmem:[#allocation2 + $0x217] ss:$2 sm:$0xff]  ;;  %v2199_v1 = vld [vmem:[#allocation2 + $0x218] ss:$2 sm:$0xff]  ;;  %4194 = vmatmul.mubr.msk.f32.gmra.mrb[70].mxu0 %vm1019_vm4, %v2137_v52  ;;  %v2185_v3 = vadd.f32 %v2184_v47, %v2181_v56 }
 0x217   :  { %1814 = vst.msk [vmem:[#allocation2 + $0x248] sm:$0xff] %vm1019_vm4, %v1639_v49  ;;  %v1499_v0 = vadd.f32 %v5091_v23, %v1498_v62  ;;  %v2173_v2 = vadd.f32 %v2172_v46, %v2169_v53  ;;  %v2203_v8 = vld [vmem:[#allocation2 + $0x219] ss:$2 sm:$0xff]  ;;  %v2208_v10 = vmul.f32 %v2195_v63, %v5095_v25  ;;  %v2210_v16 = vmul.f32 %v2199_v1, %v5099_v26 }
 0x218   :  { %v1642_v9 = vmax.f32 %v1504_v59, 0.0  ;;  %v2189_v15 = vadd.f32 %v2188_v7, %v2185_v3  ;;  %v2196_v24 = vmul.f32 %v2195_v63, %v5149_v12  ;;  %v2212_v29 = vmul.f32 %v2203_v8, %v5109_v39 }
 0x219   :  { %v1641_v51 = vmax.f32 %v1499_v0, 0.0  ;;  %v4155_v13 = vpop.f32.mrb[46].mxu1  ;;  %v2174_v14 = vadd.f32 %v5179_v57, %v2173_v2  ;;  %v2211_v35 = vadd.f32 %v2210_v16, %v2208_v10  ;;  %v2200_v43 = vmul.f32 %v2199_v1, %v5159_v28 }
 0x21a   :  { %1817 = vst.msk [vmem:[#allocation2 + $0x268] sm:$0xff] %vm1019_vm4, %v1642_v9  ;;  %v1514_v17 = vadd.f32 %v4155_v13, %v5091_v23  ;;  %v1508_v18 = vpop.f32.mrb[47].mxu1  ;;  %v2215_v30 = vld [vmem:[#allocation2 + $0x22f] ss:$2 sm:$0xff]  ;;  %v2193_v34 = vadd.f32 %v2192_v11, %v2189_v15  ;;  %v2219_v36 = vld [vmem:[#allocation2 + $0x230] ss:$2 sm:$0xff]  ;;  %v2204_v49 = vmul.f32 %v5169_v22, %v2203_v8 }
 0x21b   :  { %1816 = vst.msk [vmem:[#allocation2 + $0x260] sm:$0xff] %vm1019_vm4, %v1641_v51  ;;  %v1509_v31 = vadd.f32 %v5091_v23, %v1508_v18  ;;  %v2175_v32 = vmax.f32 %v2174_v14, 0.0  ;;  %v2216_v38 = vmul.f32 %v2215_v30, %v5125_v54  ;;  %v2213_v45 = vadd.f32 %v2212_v29, %v2211_v35  ;;  %v2223_v46 = vld [vmem:[#allocation2 + $0x231] ss:$2 sm:$0xff] }
 0x21c   :  { %v1644_v37 = vmax.f32 %v1514_v17, 0.0  ;;  %v2197_v42 = vadd.f32 %v2196_v24, %v2193_v34  ;;  %v2220_v59 = vmul.f32 %v2219_v36, %v5131_v60  ;;  %v2224_v1 = vmul.f32 %v2223_v46, %v5142_v4 }
 0x21d   :  { %v1643_v40 = vmax.f32 %v1509_v31, 0.0  ;;  %v4158_v41 = vpop.f32.mrb[48].mxu1  ;;  %4196 = vmatprep.mubr.msk.f32.mxu0 %vm1019_vm4, %v2175_v32  ;;  %v2217_v58 = vadd.f32 %v2216_v38, %v2213_v45 }
 0x21e   :  { %1819 = vst.msk [vmem:[#allocation2 + $0x280] sm:$0xff] %vm1019_vm4, %v1644_v37  ;;  %v1524_v47 = vadd.f32 %v4158_v41, %v5091_v23  ;;  %v1518_v48 = vpop.f32.mrb[49].mxu1  ;;  %v2227_v6 = vld [vmem:[#allocation2 + $0x247] ss:$2 sm:$0xff]  ;;  %v2231_v52 = vld [vmem:[#allocation2 + $0x248] ss:$2 sm:$0xff]  ;;  %v2201_v56 = vadd.f32 %v2200_v43, %v2197_v42 }
 0x21f   :  { %1818 = vst.msk [vmem:[#allocation2 + $0x278] sm:$0xff] %vm1019_vm4, %v1643_v40  ;;  %v1519_v53 = vadd.f32 %v5091_v23, %v1518_v48  ;;  %v2235_v62 = vld [vmem:[#allocation2 + $0x249] ss:$2 sm:$0xff]  ;;  %v2240_v0 = vmul.f32 %v2227_v6, %v5095_v25  ;;  %v2221_v8 = vadd.f32 %v2220_v59, %v2217_v58  ;;  %v2242_v9 = vmul.f32 %v2231_v52, %v5099_v26 }
 0x220   :  { %v1646_v63 = vmax.f32 %v1524_v47, 0.0  ;;  %v2205_v7 = vadd.f32 %v2204_v49, %v2201_v56  ;;  %v2228_v51 = vmul.f32 %v2227_v6, %v5149_v12  ;;  %v2244_v13 = vmul.f32 %v2235_v62, %v5109_v39 }
 0x221   :  { %v1645_v2 = vmax.f32 %v1519_v53, 0.0  ;;  %v4161_v3 = vpop.f32.mrb[50].mxu1  ;;  %v2225_v17 = vadd.f32 %v2224_v1, %v2221_v8  ;;  %v2243_v18 = vadd.f32 %v2242_v9, %v2240_v0  ;;  %v2232_v29 = vmul.f32 %v2231_v52, %v5159_v28 }
 0x222   :  { %1821 = vst.msk [vmem:[#allocation2 + $0x298] sm:$0xff] %vm1019_vm4, %v1646_v63  ;;  %v1534_v11 = vadd.f32 %v4161_v3, %v5091_v23  ;;  %v1528_v10 = vpop.f32.mrb[51].mxu1  ;;  %v2247_v14 = vld [vmem:[#allocation2 + $0x25f] ss:$2 sm:$0xff]  ;;  %v2206_v16 = vadd.f32 %v5179_v57, %v2205_v7  ;;  %v2251_v31 = vld [vmem:[#allocation2 + $0x260] ss:$2 sm:$0xff]  ;;  %v2236_v42 = vmul.f32 %v5169_v22, %v2235_v62 }
 0x223   :  { %1820 = vst.msk [vmem:[#allocation2 + $0x290] sm:$0xff] %vm1019_vm4, %v1645_v2  ;;  %v1529_v15 = vadd.f32 %v5091_v23, %v1528_v10  ;;  %v2248_v30 = vmul.f32 %v2247_v14, %v5125_v54  ;;  %v2229_v37 = vadd.f32 %v2228_v51, %v2225_v17  ;;  %v2245_v38 = vadd.f32 %v2244_v13, %v2243_v18  ;;  %v2255_v36 = vld [vmem:[#allocation2 + $0x261] ss:$2 sm:$0xff] }
 0x224   :  { %v1648_v24 = vmax.f32 %v1534_v11, 0.0  ;;  %v2207_v35 = vmax.f32 %v2206_v16, 0.0  ;;  %v5374_v23 = vld [vmem:[%s5918_s10 + $0x1] ss:$0 sm:$0xff]  ;;  %v2252_v49 = vmul.f32 %v2251_v31, %v5131_v60  ;;  %v2256_v53 = vmul.f32 %v2255_v36, %v5142_v4 }
 0x225   :  { %v1647_v32 = vmax.f32 %v1529_v15, 0.0  ;;  %v2233_v47 = vadd.f32 %v2232_v29, %v2229_v37  ;;  %v2249_v48 = vadd.f32 %v2248_v30, %v2245_v38 }
 0x226   :  { %v4164_v34 = vpop.f32.mrb[52].mxu1  ;;  %1823 = vst.msk [vmem:[#allocation2 + $0x2b0] sm:$0xff] %vm1019_vm4, %v1648_v24  ;;  %v2259_v43 = vld [vmem:[#allocation2 + $0x277] ss:$2 sm:$0xff]  ;;  %v2263_v45 = vld [vmem:[#allocation2 + $0x278] ss:$2 sm:$0xff]  ;;  %4197 = vmatmul.mubr.msk.f32.gmra.mrb[72].mxu0 %vm1019_vm4, %v2207_v35 }
 0x227   :  { %v1544_v40 = vadd.f32 %v5374_v23, %v4164_v34  ;;  %v1538_v41 = vpop.f32.mrb[53].mxu1  ;;  %1822 = vst.msk [vmem:[#allocation2 + $0x2a8] sm:$0xff] %vm1019_vm4, %v1647_v32  ;;  %v2267_v6 = vld [vmem:[#allocation2 + $0x279] ss:$2 sm:$0xff]  ;;  %v2272_v56 = vmul.f32 %v2259_v43, %v5095_v25  ;;  %v2237_v62 = vadd.f32 %v2236_v42, %v2233_v47  ;;  %v2253_v63 = vadd.f32 %v2252_v49, %v2249_v48 }
 0x228   :  { %v1539_v46 = vadd.f32 %v5374_v23, %v1538_v41  ;;  %v2274_v1 = vmul.f32 %v2263_v45, %v5099_v26  ;;  %v2260_v3 = vmul.f32 %v2259_v43, %v5149_v12  ;;  %v2276_v7 = vmul.f32 %v2267_v6, %v5109_v39 }
 0x229   :  { %v1650_v52 = vmax.f32 %v1544_v40, 0.0  ;;  %v2238_v11 = vadd.f32 %v5179_v57, %v2237_v62  ;;  %v2257_v10 = vadd.f32 %v2256_v53, %v2253_v63  ;;  %v2264_v14 = vmul.f32 %v2263_v45, %v5159_v28 }
 0x22a   :  { %v1649_v58 = vmax.f32 %v1539_v46, 0.0  ;;  %v4167_v59 = vpop.f32.mrb[54].mxu1  ;;  %v2279_v8 = vld [vmem:[#allocation2 + $0x28f] ss:$2 sm:$0xff]  ;;  %v2275_v51 = vadd.f32 %v2274_v1, %v2272_v56  ;;  %v2283_v16 = vld [vmem:[#allocation2 + $0x290] ss:$2 sm:$0xff]  ;;  %v2268_v35 = vmul.f32 %v5169_v22, %v2267_v6 }
 0x22b   :  { %1825 = vst.msk [vmem:[#allocation2 + $0x2c8] sm:$0xff] %vm1019_vm4, %v1650_v52  ;;  %v1554_v0 = vadd.f32 %v5374_v23, %v4167_v59  ;;  %v1548_v2 = vpop.f32.mrb[55].mxu1  ;;  %v2280_v15 = vmul.f32 %v2279_v8, %v5125_v54  ;;  %v2239_v24 = vmax.f32 %v2238_v11, 0.0  ;;  %v2261_v29 = vadd.f32 %v2260_v3, %v2257_v10  ;;  %v2287_v31 = vld [vmem:[#allocation2 + $0x291] ss:$2 sm:$0xff] }
 0x22c   :  { %1824 = vst.msk [vmem:[#allocation2 + $0x2c0] sm:$0xff] %vm1019_vm4, %v1649_v58  ;;  %v1549_v9 = vadd.f32 %v5374_v23, %v1548_v2  ;;  %v2277_v30 = vadd.f32 %v2276_v7, %v2275_v51  ;;  %v2284_v42 = vmul.f32 %v2283_v16, %v5131_v60  ;;  %v2288_v46 = vmul.f32 %v2287_v31, %v5142_v4 }
 0x22d   :  { %v1652_v13 = vmax.f32 %v1554_v0, 0.0  ;;  %4199 = vmatprep.mubr.msk.f32.mxu0 %vm1019_vm4, %v2239_v24  ;;  %v2265_v40 = vadd.f32 %v2264_v14, %v2261_v29 }
 0x22e   :  { %v1651_v17 = vmax.f32 %v1549_v9, 0.0  ;;  %v4170_v18 = vpop.f32.mrb[56].mxu1  ;;  %v2291_v37 = vld [vmem:[#allocation2 + $0x2a7] ss:$2 sm:$0xff]  ;;  %v2295_v38 = vld [vmem:[#allocation2 + $0x2a8] ss:$2 sm:$0xff]  ;;  %v2281_v41 = vadd.f32 %v2280_v15, %v2277_v30 }
 0x22f   :  { %1827 = vst.msk [vmem:[#allocation2 + $0x2e0] sm:$0xff] %vm1019_vm4, %v1652_v13  ;;  %v1564_v32 = vadd.f32 %v5374_v23, %v4170_v18  ;;  %v1558_v34 = vpop.f32.mrb[57].mxu1  ;;  %v2299_v43 = vld [vmem:[#allocation2 + $0x2a9] ss:$2 sm:$0xff]  ;;  %v2304_v47 = vmul.f32 %v2291_v37, %v5095_v25  ;;  %v2269_v49 = vadd.f32 %v2268_v35, %v2265_v40  ;;  %v2306_v52 = vmul.f32 %v2295_v38, %v5099_v26 }
 0x230   :  { %1826 = vst.msk [vmem:[#allocation2 + $0x2d8] sm:$0xff] %vm1019_vm4, %v1651_v17  ;;  %v1559_v36 = vadd.f32 %v5374_v23, %v1558_v34  ;;  %v2285_v6 = vadd.f32 %v2284_v42, %v2281_v41  ;;  %v2292_v58 = vmul.f32 %v2291_v37, %v5149_v12  ;;  %v2308_v59 = vmul.f32 %v2299_v43, %v5109_v39 }
 0x231   :  { %v1654_v45 = vmax.f32 %v1564_v32, 0.0  ;;  %v2270_v1 = vadd.f32 %v5179_v57, %v2269_v49  ;;  %v2307_v2 = vadd.f32 %v2306_v52, %v2304_v47  ;;  %v2296_v7 = vmul.f32 %v2295_v38, %v5159_v28  ;;  %v5418_v57 = vld [vmem:[%s5911_s3 + $0x8] ss:$0 sm:$0xff]  ;;  %v5437_v52 = vld [vmem:[%s5918_s10 + $0x2] ss:$0 sm:$0xff] }
 0x232   :  { %v1653_v48 = vmax.f32 %v1559_v36, 0.0  ;;  %v4173_v22 = vpop.f32.mrb[58].mxu1  ;;  %v2289_v0 = vadd.f32 %v2288_v46, %v2285_v6  ;;  %v2300_v18 = vmul.f32 %v5418_v57, %v2299_v43 }
 0x233   :  { %1829 = vst.msk [vmem:[#allocation2 + $0x2f8] sm:$0xff] %vm1019_vm4, %v1654_v45  ;;  %v1574_v53 = vadd.f32 %v5374_v23, %v4173_v22  ;;  %v1568_v56 = vpop.f32.mrb[59].mxu1  ;;  %v2311_v62 = vld [vmem:[#allocation2 + $0x2bf] ss:$2 sm:$0xff]  ;;  %v2315_v9 = vld [vmem:[#allocation2 + $0x2c0] ss:$2 sm:$0xff]  ;;  %v2309_v14 = vadd.f32 %v2308_v59, %v2307_v2 }
 0x234   :  { %1828 = vst.msk [vmem:[#allocation2 + $0x2f0] sm:$0xff] %vm1019_vm4, %v1653_v48  ;;  %v1569_v63 = vadd.f32 %v5374_v23, %v1568_v56  ;;  %v2312_v8 = vmul.f32 %v2311_v62, %v5125_v54  ;;  %v2271_v51 = vmax.f32 %v2270_v1, 0.0  ;;  %v2293_v13 = vadd.f32 %v2292_v58, %v2289_v0  ;;  %v2319_v15 = vld [vmem:[#allocation2 + $0x2c1] ss:$2 sm:$0xff] }
 0x235   :  { %v1656_v3 = vmax.f32 %v1574_v53, 0.0  ;;  %v2316_v34 = vmul.f32 %v2315_v9, %v5131_v60  ;;  %v2320_v38 = vmul.f32 %v2319_v15, %v5142_v4  ;;  %v2600_v15 = vld [vmem:[%s5913_s5] sm:$0xff] }
 0x236   :  { %v1655_v11 = vmax.f32 %v1569_v63, 0.0  ;;  %v4176_v10 = vpop.f32.mrb[60].mxu1  ;;  %4200 = vmatmul.mubr.msk.f32.gmra.mrb[74].mxu0 %vm1019_vm4, %v2271_v51  ;;  %v2297_v31 = vadd.f32 %v2296_v7, %v2293_v13  ;;  %v2313_v32 = vadd.f32 %v2312_v8, %v2309_v14 }
 0x237   :  { %1831 = vst.msk [vmem:[#allocation2 + $0x310] sm:$0xff] %vm1019_vm4, %v1656_v3  ;;  %v1584_v16 = vadd.f32 %v5374_v23, %v4176_v10  ;;  %v1578_v17 = vpop.f32.mrb[61].mxu1  ;;  %v2323_v24 = vld [vmem:[#allocation2 + $0x2d7] ss:$2 sm:$0xff]  ;;  %v2327_v29 = vld [vmem:[#allocation2 + $0x2d8] ss:$2 sm:$0xff] }
 0x238   :  { %1830 = vst.msk [vmem:[#allocation2 + $0x308] sm:$0xff] %vm1019_vm4, %v1655_v11  ;;  %v1579_v30 = vadd.f32 %v5374_v23, %v1578_v17  ;;  %v2331_v35 = vld [vmem:[#allocation2 + $0x2d9] ss:$2 sm:$0xff]  ;;  %v2336_v36 = vmul.f32 %v2323_v24, %v5095_v25  ;;  %v2301_v42 = vadd.f32 %v2300_v18, %v2297_v31  ;;  %v2317_v43 = vadd.f32 %v2316_v34, %v2313_v32 }
 0x239   :  { %v1658_v37 = vmax.f32 %v1584_v16, 0.0  ;;  %v2338_v45 = vmul.f32 %v2327_v29, %v5099_v26  ;;  %v2324_v48 = vmul.f32 %v2323_v24, %v5149_v12  ;;  %v2340_v22 = vmul.f32 %v2331_v35, %v5109_v39  ;;  %v2601_v16 = vld [vmem:[%s5913_s5 + $0x8] sm:$0xff] }
 0x23a   :  { %v1657_v40 = vmax.f32 %v1579_v30, 0.0  ;;  %v4179_v41 = vpop.f32.mrb[62].mxu1  ;;  %v2302_v53 = vadd.f32 %v5437_v52, %v2301_v42  ;;  %v2321_v56 = vadd.f32 %v2320_v38, %v2317_v43  ;;  %v2328_v62 = vmul.f32 %v2327_v29, %v5159_v28 }
 0x23b   :  { %1833 = vst.msk [vmem:[#allocation2 + $0x328] sm:$0xff] %vm1019_vm4, %v1658_v37  ;;  %v1594_v46 = vadd.f32 %v5374_v23, %v4179_v41  ;;  %v1588_v47 = vpop.f32.mrb[63].mxu1  ;;  %v2343_v49 = vld [vmem:[#allocation2 + $0x2ef] ss:$2 sm:$0xff]  ;;  %v2339_v58 = vadd.f32 %v2338_v45, %v2336_v36  ;;  %v2347_v1 = vld [vmem:[#allocation2 + $0x2f0] ss:$2 sm:$0xff]  ;;  %v2332_v10 = vmul.f32 %v5418_v57, %v2331_v35  ;;  %v4293_v31 = vpack.c.bf16 %v2601_v16, %v2600_v15 }
 0x23c   :  { %1832 = vst.msk [vmem:[#allocation2 + $0x320] sm:$0xff] %vm1019_vm4, %v1657_v40  ;;  %v1589_v6 = vadd.f32 %v5374_v23, %v1588_v47  ;;  %v2344_v63 = vmul.f32 %v2343_v49, %v5125_v54  ;;  %v2303_v2 = vmax.f32 %v2302_v53, 0.0  ;;  %v2325_v3 = vadd.f32 %v2324_v48, %v2321_v56  ;;  %v2351_v23 = vld [vmem:[#allocation2 + $0x2f1] ss:$2 sm:$0xff] }
 0x23d   :  { %v1660_v59 = vmax.f32 %v1594_v46, 0.0  ;;  %v2341_v7 = vadd.f32 %v2340_v22, %v2339_v58  ;;  %v2348_v13 = vmul.f32 %v2347_v1, %v5131_v60  ;;  %v2352_v17 = vmul.f32 %v2351_v23, %v5142_v4 }
 0x23e   :  { %v1659_v0 = vmax.f32 %v1589_v6, 0.0  ;;  %4202 = vmatprep.mubr.msk.f32.mxu0 %vm1019_vm4, %v2303_v2  ;;  %v2329_v11 = vadd.f32 %v2328_v62, %v2325_v3  ;;  %v4358_v37 = vmov 0.0|0.0  }
 0x23f   :  { %1835 = vst.msk [vmem:[#allocation2 + $0x340] sm:$0xff] %vm1019_vm4, %v1660_v59  ;;  %v2355_v8 = vld [vmem:[#allocation2 + $0x307] ss:$2 sm:$0xff]  ;;  %v2359_v9 = vld [vmem:[#allocation2 + $0x308] ss:$2 sm:$0xff]  ;;  %v2345_v51 = vadd.f32 %v2344_v63, %v2341_v7  ;;  %4292 = vmatprep.subr.bf16.mxu1 %v4358_v37 }
 0x240   :  { %1834 = vst.msk [vmem:[#allocation2 + $0x338] sm:$0xff] %vm1019_vm4, %v1659_v0  ;;  %v2363_v14 = vld [vmem:[#allocation2 + $0x309] ss:$2 sm:$0xff]  ;;  %v2368_v18 = vmul.f32 %v2355_v8, %v5095_v25  ;;  %v2370_v24 = vmul.f32 %v2359_v9, %v5099_v26  ;;  %v2333_v29 = vadd.f32 %v2332_v10, %v2329_v11  ;;  %v2356_v40 = vmul.f32 %v2355_v8, %v5149_v12 }
 0x241   :  { %v2349_v30 = vadd.f32 %v2348_v13, %v2345_v51  ;;  %v2372_v34 = vmul.f32 %v2363_v14, %v5109_v39  ;;  %4294 = vmatpush3.bf16.msra.mxu1 %v4293_v31  ;;  %v2360_v45 = vmul.f32 %v2359_v9, %v5159_v28  ;;  %v2364_v22 = vmul.f32 %v5418_v57, %v2363_v14 }
 0x242   :  { %v2371_v32 = vadd.f32 %v2370_v24, %v2368_v18  ;;  %v2334_v38 = vadd.f32 %v5437_v52, %v2333_v29  ;;  %4215 = vmatprep.subr.mxu1 %v4357_v33 }
 0x243   :  { %v2375_v35 = vld [vmem:[#allocation2 + $0x31f] ss:$2 sm:$0xff]  ;;  %v2353_v36 = vadd.f32 %v2352_v17, %v2349_v30  ;;  %v2379_v42 = vld [vmem:[#allocation2 + $0x320] ss:$2 sm:$0xff] }
 0x244   :  { %v2376_v41 = vmul.f32 %v2375_v35, %v5125_v54  ;;  %v2373_v25 = vadd.f32 %v2372_v34, %v2371_v32  ;;  %v2335_v26 = vmax.f32 %v2334_v38, 0.0  ;;  %v2383_v39 = vld [vmem:[#allocation2 + $0x321] ss:$2 sm:$0xff]  ;;  %v2380_v47 = vmul.f32 %v2379_v42, %v5131_v60 }
 0x245   :  { %v2357_v43 = vadd.f32 %v2356_v40, %v2353_v36  ;;  %v2384_v6 = vmul.f32 %v2383_v39, %v5142_v4 }
 0x246   :  { %v2377_v46 = vadd.f32 %v2376_v41, %v2373_v25  ;;  %4203 = vmatmul.mubr.msk.f32.gmra.mrb[76].mxu0 %vm1019_vm4, %v2335_v26 }
 0x247   :  { %v2361_v48 = vadd.f32 %v2360_v45, %v2357_v43  ;;  %v2387_v49 = vld [vmem:[#allocation2 + $0x337] ss:$2 sm:$0xff]  ;;  %v2391_v56 = vld [vmem:[#allocation2 + $0x338] ss:$2 sm:$0xff] }
 0x248   :  { %v2381_v54 = vadd.f32 %v2380_v47, %v2377_v46  ;;  %v2388_v59 = vmul.f32 %v2387_v49, %v5149_v12  ;;  %v2395_v63 = vld [vmem:[#allocation2 + $0x339] ss:$2 sm:$0xff]  ;;  %v2392_v60 = vmul.f32 %v2391_v56, %v5159_v28 }
 0x249   :  { %v2365_v53 = vadd.f32 %v2364_v22, %v2361_v48  ;;  %v2396_v3 = vmul.f32 %v5418_v57, %v2395_v63 }
 0x24a   :  { %v2385_v58 = vadd.f32 %v2384_v6, %v2381_v54 }
 0x24b   :  { %v2366_v62 = vadd.f32 %v5437_v52, %v2365_v53 }
 0x24c   :  { %v2389_v1 = vadd.f32 %v2388_v59, %v2385_v58 }
 0x24d   :  { %v2367_v0 = vmax.f32 %v2366_v62, 0.0 }
 0x24e   :  { %v2393_v2 = vadd.f32 %v2392_v60, %v2389_v1 }
 0x24f   :  { %4205 = vmatprep.mubr.msk.f32.mxu0 %vm1019_vm4, %v2367_v0 }
 0x250   :  { %v2397_v7 = vadd.f32 %v2396_v3, %v2393_v2 }
 0x252   :  { %v2398_v4 = vadd.f32 %v5437_v52, %v2397_v7  ;;  %v3745_v52 = vld [vmem:[%s5918_s10 + $0x3] ss:$0 sm:$0xff] }
 0x254   :  { %v2399_v23 = vmax.f32 %v2398_v4, 0.0 }
 0x256   :  { %4206 = vmatmul.mubr.msk.f32.gmra.mrb[78].mxu0 %vm1019_vm4, %v2399_v23 }
 0x2b8   :  { %v4186_v8 = vpop.f32.mrb[64].mxu0 }
 0x2b9   :  { %v2521_v12 = vpop.f32.mrb[65].mxu0  ;;  %v5478_v15 = vadd.f32 %v4186_v8, %v3745_v52 }
 0x2ba   :  { %v5480_v16 = vadd.f32 %v3745_v52, %v2521_v12 }
 0x2bb   :  { %v2606_v29 = vsel %vm1019_vm4, %v5478_v15, 0.0 }
 0x2bc   :  { %v2605_v30 = vsel %vm1019_vm4, %v5480_v16, 0.0 }
 0x2bd   :  { %v2607_v32 = vadd.f32 %v2606_v29, %v2605_v30 }
 0x2c8   :  { %v4189_v9 = vpop.f32.mrb[66].mxu0 }
 0x2c9   :  { %v2531_v28 = vpop.f32.mrb[67].mxu0  ;;  %v5490_v34 = vadd.f32 %v4189_v9, %v3745_v52 }
 0x2ca   :  { %v5482_v18 = vadd.f32 %v3745_v52, %v2531_v28 }
 0x2cb   :  { %v2610_v38 = vsel %vm1019_vm4, %v5490_v34, 0.0 }
 0x2cc   :  { %v2608_v31 = vsel %vm1019_vm4, %v5482_v18, 0.0 }
 0x2cd   :  { %v2609_v37 = vadd.f32 %v2608_v31, %v2607_v32 }
 0x2cf   :  { %v2611_v40 = vadd.f32 %v2610_v38, %v2609_v37 }
 0x2d9   :  { %v4192_v11 = vpop.f32.mrb[68].mxu0 }
 0x2da   :  { %v2541_v10 = vpop.f32.mrb[69].mxu0  ;;  %v5498_v41 = vadd.f32 %v4192_v11, %v3745_v52 }
 0x2db   :  { %v5492_v35 = vadd.f32 %v3745_v52, %v2541_v10 }
 0x2dc   :  { %v2614_v39 = vsel %vm1019_vm4, %v5498_v41, 0.0 }
 0x2dd   :  { %v2612_v36 = vsel %vm1019_vm4, %v5492_v35, 0.0 }
 0x2de   :  { %v2613_v25 = vadd.f32 %v2612_v36, %v2611_v40 }
 0x2e0   :  { %v2615_v22 = vadd.f32 %v2614_v39, %v2613_v25 }
 0x2e9   :  { %v4195_v51 = vpop.f32.mrb[70].mxu0 }
 0x2ea   :  { %v2551_v57 = vpop.f32.mrb[71].mxu0  ;;  %v5512_v49 = vadd.f32 %v4195_v51, %v3745_v52 }
 0x2eb   :  { %v5500_v42 = vadd.f32 %v3745_v52, %v2551_v57 }
 0x2ec   :  { %v2618_v59 = vsel %vm1019_vm4, %v5512_v49, 0.0 }
 0x2ed   :  { %v2616_v46 = vsel %vm1019_vm4, %v5500_v42, 0.0 }
 0x2ee   :  { %v2617_v53 = vadd.f32 %v2616_v46, %v2615_v22  ;;  %v2603_v46 = vld [vmem:[%s5914_s6] sm:$0xf] }
 0x2f0   :  { %v2619_v1 = vadd.f32 %v2618_v59, %v2617_v53 }
 0x2f2   :  { %v2620_v3 = vrot.slane %v2619_v1, 4 }
 0x2f4   :  { %v2621_v12 = vadd.f32 %v2620_v3, %v2619_v1  ;;  %v3764_v1 = vld [vmem:[%s5918_s10 + $0x5] ss:$0 sm:$0xff] }
 0x2f9   :  { %v4198_v13 = vpop.f32.mrb[72].mxu0 }
 0x2fa   :  { %v2561_v14 = vpop.f32.mrb[73].mxu0  ;;  %v5502_v26 = vadd.f32 %v4198_v13, %v3745_v52  ;;  %v2622_v13 = vrot.slane %v2621_v12, 2 }
 0x2fb   :  { %v5504_v43 = vadd.f32 %v3745_v52, %v2561_v14 }
 0x2fc   :  { %v2629_v54 = vsel %vm1019_vm4, %v5502_v26, 0.0  ;;  %v2623_v29 = vadd.f32 %v2622_v13, %v2621_v12 }
 0x2fd   :  { %v2628_v6 = vsel %vm1019_vm4, %v5504_v43, 0.0 }
 0x2fe   :  { %v2630_v58 = vadd.f32 %v2629_v54, %v2628_v6  ;;  %v2624_v32 = vrot.slane %v2623_v29, 1 }
 0x300   :  { %v2625_v36 = vadd.f32 %v2624_v32, %v2623_v29  ;;  %v3447_v32 = vld [vmem:[%s5917_s9 + $0x40] sm:$0xff] }
 0x302   :  { %v2627_v25 = vmul.f32 0.015625, %v2625_v36 }
 0x309   :  { %v4201_v17 = vpop.f32.mrb[74].mxu0 }
 0x30a   :  { %v2571_v24 = vpop.f32.mrb[75].mxu0  ;;  %v5522_v62 = vadd.f32 %v4201_v17, %v3745_v52 }
 0x30b   :  { %v5510_v47 = vadd.f32 %v3745_v52, %v2571_v24 }
 0x30c   :  { %v2633_v0 = vsel %vm1019_vm4, %v5522_v62, 0.0 }
 0x30d   :  { %v2631_v56 = vsel %vm1019_vm4, %v5510_v47, 0.0 }
 0x30e   :  { %v2632_v60 = vadd.f32 %v2631_v56, %v2630_v58  ;;  %v2839_v56 = vld [vmem:[%s5915_s7] sm:$0xff]  ;;  %v2840_v58 = vld [vmem:[%s5915_s7 + $0x8] sm:$0xff] }
 0x30f   :  { %v4295_v59 = vpack.c.bf16 %v2840_v58, %v2839_v56  ;;  %v3124_v56 = vld [vmem:[#allocation3 + $0x8] ss:$2 sm:$0xf] }
 0x310   :  { %v2634_v7 = vadd.f32 %v2633_v0, %v2632_v60 }
 0x319   :  { %v4204_v45 = vpop.f32.mrb[76].mxu0 }
 0x31a   :  { %v2581_v48 = vpop.f32.mrb[77].mxu0  ;;  %v5530_v4 = vadd.f32 %v4204_v45, %v3745_v52 }
 0x31b   :  { %v5524_v63 = vadd.f32 %v3745_v52, %v2581_v48  ;;  %v3762_v48 = vld [vmem:[%s5918_s10 + $0x4] ss:$0 sm:$0xff] }
 0x31c   :  { %v2637_v28 = vsel %vm1019_vm4, %v5530_v4, 0.0 }
 0x31d   :  { %v2635_v2 = vsel %vm1019_vm4, %v5524_v63, 0.0 }
 0x31e   :  { %v2636_v23 = vadd.f32 %v2635_v2, %v2634_v7 }
 0x320   :  { %v2638_v51 = vadd.f32 %v2637_v28, %v2636_v23 }
 0x329   :  { %v4207_v8 = vpop.f32.mrb[78].mxu0 }
 0x32a   :  { %v2591_v9 = vpop.f32.mrb[79].mxu0  ;;  %v5534_v11 = vadd.f32 %v4207_v8, %v3745_v52 }
 0x32b   :  { %v5536_v10 = vadd.f32 %v3745_v52, %v2591_v9 }
 0x32c   :  { %v2641_v17 = vsel %vm1019_vm4, %v5534_v11, 0.0 }
 0x32d   :  { %v2639_v57 = vsel %vm1019_vm4, %v5536_v10, 0.0 }
 0x32e   :  { %v2640_v14 = vadd.f32 %v2639_v57, %v2638_v51 }
 0x330   :  { %v2642_v24 = vadd.f32 %v2641_v17, %v2640_v14 }
 0x332   :  { %v2643_v30 = vrot.slane %v2642_v24, 4 }
 0x334   :  { %v2644_v31 = vadd.f32 %v2643_v30, %v2642_v24  ;;  %v3444_v24 = vld [vmem:[%s5917_s9 + $0x28] sm:$0xff]  ;;  %v3445_v30 = vld [vmem:[%s5917_s9 + $0x30] sm:$0xff] }
 0x336   :  { %v2645_v37 = vrot.slane %v2644_v31, 2 }
 0x338   :  { %v2646_v38 = vadd.f32 %v2645_v37, %v2644_v31  ;;  %v3446_v31 = vld [vmem:[%s5917_s9 + $0x38] sm:$0xff] }
 0x339   :  { %v4311_v37 = vpack.c.bf16 %v3446_v31, %v3445_v30 }
 0x33a   :  { %v2647_v40 = vrot.slane %v2646_v38, 1 }
 0x33c   :  { %v2648_v52 = vadd.f32 %v2647_v40, %v2646_v38  ;;  %v3448_v38 = vld [vmem:[%s5917_s9 + $0x48] sm:$0xff]  ;;  %v3449_v40 = vld [vmem:[%s5917_s9 + $0x50] sm:$0xff] }
 0x33d   :  { %v4315_v36 = vpack.c.bf16 %v3448_v38, %v3447_v32 }
 0x33e   :  { %v2649_v45 = vmul.f32 0.015625, %v2648_v52  ;;  %v3450_v52 = vld [vmem:[%s5917_s9 + $0x58] sm:$0xff] }
 0x340   :  { %v2650_v39 = vsel %vm303_vm0, %v2627_v25, %v2649_v45  ;;  %v4319_v25 = vpack.c.bf16 %v3450_v52, %v3449_v40  ;;  %v5707_v45 = vld [vmem:[%s5916_s8] sm:$0xff] }
 0x341   :  { %4213 = vmatmul.mubr.msk.f32.vlgmr.msra.gmra.mrb[64].mxu1 %vm1019_vm4, %v2650_v39  ;;  %v5712_v39 = vld [vmem:[%s5918_s10 + $0x6] ss:$0 sm:$0xff] }
 0x342   :  { %4217 = vmatprep.mubr.msk.f32.mxu1 %vm4359_vm5, %v4357_v33  ;;  %4216 = vmatpush3.msk.msra.mxu1 %vm2737_vm6, %v2603_v46 }
 0x343   :  { %4296 = vmatprep.subr.bf16.mxu1 %v4295_v59 }
 0x414   :  { %v2724_v22 = vpop.f32.mrb[64].mxu1 }
 0x415   :  { %v2725_v54 = vadd.f32 %v3762_v48, %v2724_v22  ;;  %v4214_v6 = vpop.f32.mrb[65].mxu1  ;;  %v3116_v48 = vld [vmem:[#allocation3 + $0x7] ss:$2 sm:$0xf]  ;;  %v5716_v22 = vrot.slane %v5707_v45, %v5078_v20 }
 0x417   :  { %v2728_v53 = vmax.f32 %v2725_v54, 0.0  ;;  %v5720_v54 = vrot.slane %v5707_v45, %v5081_v21 }
 0x419   :  { %4218 = vmatmul.mubr.msk.f32.vlgmr.msra.gmra.mrb[66].mxu1 %vm2733_vm7, %v2728_v53 }
 0x41a   :  { %4298 = vmatpush3.bf16.msra.mxu1 %v4295_v59 }
 0x4ec   :  { %v2807_v60 = vpop.f32.mrb[66].mxu1 }
 0x4ed   :  { %v2808_v0 = vadd.f32 %v3764_v1, %v2807_v60  ;;  %v4219_v2 = vpop.f32.mrb[67].mxu1 }
 0x4ee   :  { %v3129_v2 = vmul.f32 %v5720_v54, %v3124_v56 }
 0x4ef   :  { %v2811_v3 = vadd.f32 3.0, %v2808_v0  ;;  %v3121_v0 = vmul.f32 %v5716_v22, %v3116_v48 }
 0x4f1   :  { %v2812_v7 = vmax.f32 %v2811_v3, 0.0 }
 0x4f3   :  { %v2813_v23 = vmin.f32 %v2812_v7, 6.0  ;;  %v3132_v7 = vld [vmem:[#allocation3 + $0x9] ss:$2 sm:$0xf] }
 0x4f5   :  { %v2814_v8 = vmul.f32 0.16666667, %v2813_v23 }
 0x4f7   :  { %v2818_v12 = vrot.slane %v2814_v8, %v5078_v20  ;;  %v5729_v20 = vrot.slane %v5707_v45, %v1856_v27 }
 0x4f9   :  { %v2823_v9 = vmul.f32 %v2818_v12, %v5480_v16  ;;  %v2824_v28 = vmul.f32 %v2818_v12, %v5478_v15  ;;  %v2825_v51 = vmul.f32 %v2818_v12, %v5482_v18  ;;  %v2826_v57 = vmul.f32 %v2818_v12, %v5490_v34 }
 0x4fa   :  { %v2827_v13 = vmul.f32 %v2818_v12, %v5492_v35  ;;  %v2828_v16 = vmul.f32 %v2818_v12, %v5498_v41  ;;  %v2822_v15 = vrot.slane %v2814_v8, %v5081_v21  ;;  %v2829_v14 = vmul.f32 %v2818_v12, %v5500_v42 }
 0x4fb   :  { %4224 = vmatprep.mubr.msk.f32.mxu1 %vm1019_vm4, %v2823_v9  ;;  %v2830_v18 = vmul.f32 %v2818_v12, %v5512_v49 }
 0x4fc   :  { %4225 = vmatmul.mubr.msk.f32.vlgmr.msra.gmra.mrb[68].mxu1 %vm1019_vm4, %v2824_v28  ;;  %v2831_v34 = vmul.f32 %v2822_v15, %v5504_v43  ;;  %v2832_v35 = vmul.f32 %v2822_v15, %v5502_v26  ;;  %v2833_v41 = vmul.f32 %v2822_v15, %v5510_v47  ;;  %v2834_v42 = vmul.f32 %v2822_v15, %v5522_v62  ;;  %v3439_v47 = vld [vmem:[%s5917_s9] sm:$0xff]  ;;  %v3440_v62 = vld [vmem:[%s5917_s9 + $0x8] sm:$0xff] }
 0x4fd   :  { %4227 = vmatprep.mubr.msk.f32.mxu1 %vm1019_vm4, %v2825_v51  ;;  %v2835_v17 = vmul.f32 %v2822_v15, %v5524_v63  ;;  %v2836_v43 = vmul.f32 %v2822_v15, %v5530_v4  ;;  %v2837_v49 = vmul.f32 %v2822_v15, %v5536_v10  ;;  %v2838_v26 = vmul.f32 %v2822_v15, %v5534_v11  ;;  %v3441_v4 = vld [vmem:[%s5917_s9 + $0x10] sm:$0xff]  ;;  %v3442_v11 = vld [vmem:[%s5917_s9 + $0x18] sm:$0xff]  ;;  %v3443_v10 = vld [vmem:[%s5917_s9 + $0x20] sm:$0xff] }
 0x4fe   :  { %v4299_v63 = vpack.c.bf16 %v3440_v62, %v3439_v47  ;;  %v4303_v33 = vpack.c.bf16 %v3442_v11, %v3441_v4  ;;  %v4307_v29 = vpack.c.bf16 %v3444_v24, %v3443_v10  ;;  %v3130_v28 = vadd.f32 %v3129_v2, %v3121_v0  ;;  %v3290_v15 = vld [vmem:[#allocation3 + $0xa7] ss:$2 sm:$0xf] }
 0x4ff   :  { %v3137_v51 = vmul.f32 %v5729_v20, %v3132_v7  ;;  %v3298_v11 = vld [vmem:[#allocation3 + $0xa9] ss:$2 sm:$0xf]  ;;  %v5764_v10 = vrot.slane %v5707_v45, %v1888_v61 }
 0x500   :  { %4228 = vmatmul.mubr.msk.f32.gmra.mrb[70].mxu1 %vm1019_vm4, %v2826_v57  ;;  %4300 = vmatprep.subr.bf16.mxu0 %v4299_v63  ;;  %v5785_v19 = vmul.f32 %v3298_v11, %v5729_v20 }
 0x501   :  { %4230 = vmatprep.mubr.msk.f32.mxu1 %vm1019_vm4, %v2827_v13  ;;  %4302 = vmatpush3.bf16.msra.mxu0 %v4299_v63 }
 0x502   :  { %4304 = vmatprep.subr.bf16.mxu0 %v4303_v33 }
 0x504   :  { %4231 = vmatmul.mubr.msk.f32.gmra.mrb[72].mxu1 %vm1019_vm4, %v2828_v16  ;;  %v5743_v16 = vrot.slane %v5707_v45, %v1864_v44  ;;  %v5755_v44 = vrot.slane %v5707_v45, %v1880_v55  ;;  %v3291_v55 = vmul.f32 %v3290_v15, %v5716_v22 }
 0x505   :  { %4233 = vmatprep.mubr.msk.f32.mxu1 %vm1019_vm4, %v2829_v14  ;;  %4306 = vmatpush3.bf16.msra.mxu0 %v4303_v33 }
 0x506   :  { %4308 = vmatprep.subr.bf16.mxu0 %v4307_v29 }
 0x508   :  { %4234 = vmatmul.mubr.msk.f32.gmra.mrb[74].mxu1 %vm1019_vm4, %v2830_v18  ;;  %v3294_v18 = vld [vmem:[#allocation3 + $0xa8] ss:$2 sm:$0xf] }
 0x509   :  { %4236 = vmatprep.mubr.msk.f32.mxu1 %vm1019_vm4, %v2831_v34  ;;  %4310 = vmatpush3.bf16.msra.mxu0 %v4307_v29  ;;  %v3295_v29 = vmul.f32 %v3294_v18, %v5720_v54 }
 0x50a   :  { %4312 = vmatprep.subr.bf16.mxu0 %v4311_v37 }
 0x50b   :  { %v5782_v2 = vadd.f32 %v3295_v29, %v3291_v55 }
 0x50c   :  { %4237 = vmatmul.mubr.msk.f32.gmra.mrb[76].mxu1 %vm1019_vm4, %v2832_v35 }
 0x50d   :  { %4239 = vmatprep.mubr.msk.f32.mxu1 %vm1019_vm4, %v2833_v41  ;;  %4314 = vmatpush3.bf16.msra.mxu0 %v4311_v37  ;;  %v3138_v41 = vadd.f32 %v3137_v51, %v3130_v28 }
 0x50e   :  { %4316 = vmatprep.subr.bf16.mxu0 %v4315_v36 }
 0x510   :  { %4240 = vmatmul.mubr.msk.f32.gmra.mrb[78].mxu1 %vm1019_vm4, %v2834_v42  ;;  %v5748_v42 = vrot.slane %v5707_v45, %v1872_v50 }
 0x511   :  { %4242 = vmatprep.mubr.msk.f32.mxu1 %vm1019_vm4, %v2835_v17  ;;  %4318 = vmatpush3.bf16.msra.mxu0 %v4315_v36 }
 0x512   :  { %4320 = vmatprep.subr.bf16.mxu0 %v4319_v25 }
 0x514   :  { %4243 = vmatmul.mubr.msk.f32.gmra.mrb[80].mxu1 %vm1019_vm4, %v2836_v43 }
 0x515   :  { %4245 = vmatprep.mubr.msk.f32.mxu1 %vm1019_vm4, %v2837_v49  ;;  %4322 = vmatpush3.bf16.msra.mxu0 %v4319_v25  ;;  %v5776_v25 = vrot.slane %v5707_v45, %v1896_v5 }
 0x518   :  { %4246 = vmatmul.mubr.msk.f32.gmra.mrb[82].mxu1 %vm1019_vm4, %v2838_v26 }
 0x5cf   :  { %v4226_v46 = vpop.f32.mrb[68].mxu1 }
 0x5d0   :  { %v2966_v6 = vadd.f32 %v4226_v46, %v5712_v39  ;;  %v2960_v53 = vpop.f32.mrb[69].mxu1 }
 0x5d1   :  { %v2961_v58 = vadd.f32 %v5712_v39, %v2960_v53 }
 0x5d2   :  { %v3040_v59 = vmax.f32 %v2966_v6, 0.0 }
 0x5d3   :  { %v3039_v1 = vmax.f32 %v2961_v58, 0.0  ;;  %v4229_v60 = vpop.f32.mrb[70].mxu1 }
 0x5d4   :  { %3100 = vst.msk [vmem:[#allocation3 + $0x28] sm:$0xff] %vm3058_vm8, %v3040_v59  ;;  %v2976_v21 = vadd.f32 %v4229_v60, %v5712_v39  ;;  %v2970_v3 = vpop.f32.mrb[71].mxu1 }
 0x5d5   :  { %3099 = vst.msk [vmem:[#allocation3 + $0x18] sm:$0xff] %vm3058_vm8, %v3039_v1  ;;  %v2971_v23 = vadd.f32 %v5712_v39, %v2970_v3 }
 0x5d6   :  { %v3042_v8 = vmax.f32 %v2976_v21, 0.0 }
 0x5d7   :  { %v3041_v12 = vmax.f32 %v2971_v23, 0.0  ;;  %v4232_v9 = vpop.f32.mrb[72].mxu1 }
 0x5d8   :  { %3102 = vst.msk [vmem:[#allocation3 + $0x48] sm:$0xff] %vm3058_vm8, %v3042_v8  ;;  %v2986_v27 = vadd.f32 %v4232_v9, %v5712_v39  ;;  %v2980_v57 = vpop.f32.mrb[73].mxu1  ;;  %v5793_v9 = vld [vmem:[%s5916_s8 + $0x8] ss:$0 sm:$0xff] }
 0x5d9   :  { %3101 = vst.msk [vmem:[#allocation3 + $0x38] sm:$0xff] %vm3058_vm8, %v3041_v12  ;;  %v2981_v13 = vadd.f32 %v5712_v39, %v2980_v57 }
 0x5da   :  { %v3044_v14 = vmax.f32 %v2986_v27, 0.0 }
 0x5db   :  { %v3043_v34 = vmax.f32 %v2981_v13, 0.0  ;;  %v4235_v35 = vpop.f32.mrb[74].mxu1  ;;  %v3164_v17 = vld [vmem:[#allocation3 + $0x27] ss:$2 sm:$0xf] }
 0x5dc   :  { %3104 = vst.msk [vmem:[#allocation3 + $0x68] sm:$0xff] %vm3058_vm8, %v3044_v14  ;;  %v2996_v43 = vadd.f32 %v4235_v35, %v5712_v39  ;;  %v2990_v49 = vpop.f32.mrb[75].mxu1  ;;  %v3140_v26 = vld [vmem:[#allocation3 + $0x17] ss:$2 sm:$0xf]  ;;  %v3193_v4 = vmul.f32 %v3164_v17, %v5716_v22  ;;  %v3169_v3 = vmul.f32 %v5764_v10, %v3164_v17 }
 0x5dd   :  { %3103 = vst.msk [vmem:[#allocation3 + $0x58] sm:$0xff] %vm3058_vm8, %v3043_v34  ;;  %v2991_v47 = vadd.f32 %v5712_v39, %v2990_v49  ;;  %v3145_v62 = vmul.f32 %v5743_v16, %v3140_v26  ;;  %v3148_v50 = vld [vmem:[#allocation3 + $0x18] ss:$2 sm:$0xf] }
 0x5de   :  { %v3156_v63 = vld [vmem:[#allocation3 + $0x19] ss:$2 sm:$0xf]  ;;  %v3046_v33 = vmax.f32 %v2996_v43, 0.0  ;;  %v3153_v37 = vmul.f32 %v5748_v42, %v3148_v50 }
 0x5df   :  { %v3172_v24 = vld [vmem:[#allocation3 + $0x28] ss:$2 sm:$0xf]  ;;  %v3045_v30 = vmax.f32 %v2991_v47, 0.0  ;;  %v4238_v31 = vpop.f32.mrb[76].mxu1  ;;  %v3146_v32 = vadd.f32 %v3145_v62, %v3138_v41  ;;  %v3161_v61 = vmul.f32 %v5755_v44, %v3156_v63 }
 0x5e0   :  { %v3180_v38 = vld [vmem:[#allocation3 + $0x29] ss:$2 sm:$0xf]  ;;  %v3195_v36 = vmul.f32 %v3172_v24, %v5720_v54  ;;  %3106 = vst.msk [vmem:[#allocation3 + $0x88] sm:$0xff] %vm3058_vm8, %v3046_v33  ;;  %v3006_v40 = vadd.f32 %v4238_v31, %v5712_v39  ;;  %v3000_v52 = vpop.f32.mrb[77].mxu1  ;;  %v3177_v28 = vmul.f32 %v5776_v25, %v3172_v24 }
 0x5e1   :  { %v3197_v46 = vmul.f32 %v3180_v38, %v5729_v20  ;;  %v3200_v48 = vld [vmem:[#allocation3 + $0x37] ss:$2 sm:$0xf]  ;;  %3105 = vst.msk [vmem:[#allocation3 + $0x78] sm:$0xff] %vm3058_vm8, %v3045_v30  ;;  %v3001_v6 = vadd.f32 %v5712_v39, %v3000_v52  ;;  %v3154_v53 = vadd.f32 %v3153_v37, %v3146_v32  ;;  %v3185_v50 = vmul.f32 %v5793_v9, %v3180_v38 }
 0x5e2   :  { %v3196_v56 = vadd.f32 %v3195_v36, %v3193_v4  ;;  %v3201_v58 = vmul.f32 %v3200_v48, %v5743_v16  ;;  %v3204_v59 = vld [vmem:[#allocation3 + $0x38] ss:$2 sm:$0xf]  ;;  %v3048_v1 = vmax.f32 %v3006_v40, 0.0 }
 0x5e3   :  { %v3208_v60 = vld [vmem:[#allocation3 + $0x39] ss:$2 sm:$0xf]  ;;  %v3212_v0 = vld [vmem:[#allocation3 + $0x47] ss:$2 sm:$0xf]  ;;  %v3162_v21 = vadd.f32 %v3161_v61, %v3154_v53  ;;  %v3205_v18 = vmul.f32 %v3204_v59, %v5748_v42 }
 0x5e4   :  { %v3047_v5 = vmax.f32 %v3001_v6, 0.0  ;;  %v4241_v45 = vpop.f32.mrb[78].mxu1  ;;  %v3198_v7 = vadd.f32 %v3197_v46, %v3196_v56  ;;  %v3216_v23 = vld [vmem:[#allocation3 + $0x48] ss:$2 sm:$0xf]  ;;  %3108 = vst.msk [vmem:[#allocation3 + $0xc8] sm:$0xff] %vm3058_vm8, %v3048_v1  ;;  %v3225_v27 = vmul.f32 %v3212_v0, %v5716_v22  ;;  %v3209_v4 = vmul.f32 %v3208_v60, %v5755_v44 }
 0x5e5   :  { %v3016_v8 = vadd.f32 %v4241_v45, %v5712_v39  ;;  %v3010_v12 = vpop.f32.mrb[79].mxu1  ;;  %v3220_v51 = vld [vmem:[#allocation3 + $0x49] ss:$2 sm:$0xf]  ;;  %v3227_v57 = vmul.f32 %v3216_v23, %v5720_v54  ;;  %v3170_v15 = vadd.f32 %v3169_v3, %v3162_v21  ;;  %v3213_v29 = vmul.f32 %v3212_v0, %v5764_v10 }
 0x5e6   :  { %3107 = vst.msk [vmem:[#allocation3 + $0xb8] sm:$0xff] %vm3058_vm8, %v3047_v5  ;;  %v3011_v13 = vadd.f32 %v5712_v39, %v3010_v12  ;;  %v3202_v14 = vadd.f32 %v3201_v58, %v3198_v7  ;;  %v3232_v34 = vld [vmem:[#allocation3 + $0x57] ss:$2 sm:$0xf]  ;;  %v3229_v43 = vmul.f32 %v3220_v51, %v5729_v20  ;;  %v3217_v38 = vmul.f32 %v3216_v23, %v5776_v25 }
 0x5e7   :  { %v3236_v35 = vld [vmem:[#allocation3 + $0x58] ss:$2 sm:$0xf]  ;;  %v3050_v41 = vmax.f32 %v3016_v8, 0.0  ;;  %v3228_v17 = vadd.f32 %v3227_v57, %v3225_v27  ;;  %v3233_v49 = vmul.f32 %v3232_v34, %v5743_v16  ;;  %v4244_v62 = vpop.f32.mrb[80].mxu1  ;;  %v3178_v55 = vadd.f32 %v3177_v28, %v3170_v15 }
 0x5e8   :  { %v3240_v26 = vld [vmem:[#allocation3 + $0x59] ss:$2 sm:$0xf]  ;;  %v3049_v47 = vmax.f32 %v3011_v13, 0.0  ;;  %v3206_v63 = vadd.f32 %v3205_v18, %v3202_v14  ;;  %v3026_v33 = vadd.f32 %v4244_v62, %v5712_v39  ;;  %v3020_v24 = vpop.f32.mrb[81].mxu1  ;;  %v3221_v36 = vmul.f32 %v5793_v9, %v3220_v51 }
 0x5e9   :  { %v3244_v11 = vld [vmem:[#allocation3 + $0x67] ss:$2 sm:$0xf]  ;;  %3110 = vst.msk [vmem:[#allocation3 + $0xe8] sm:$0xff] %vm3058_vm8, %v3050_v41  ;;  %v3230_v30 = vadd.f32 %v3229_v43, %v3228_v17  ;;  %v3021_v32 = vadd.f32 %v5712_v39, %v3020_v24  ;;  %v3237_v46 = vmul.f32 %v3236_v35, %v5748_v42  ;;  %v3241_v59 = vmul.f32 %v3240_v26, %v5755_v44 }
 0x5ea   :  { %v3248_v31 = vld [vmem:[#allocation3 + $0x68] ss:$2 sm:$0xf]  ;;  %3109 = vst.msk [vmem:[#allocation3 + $0xd8] sm:$0xff] %vm3058_vm8, %v3049_v47  ;;  %v3210_v37 = vadd.f32 %v3209_v4, %v3206_v63  ;;  %v3052_v52 = vmax.f32 %v3026_v33, 0.0  ;;  %v3257_v48 = vmul.f32 %v3244_v11, %v5716_v22  ;;  %v3186_v5 = vadd.f32 %v3185_v50, %v3178_v55 }
 0x5eb   :  { %v3252_v40 = vld [vmem:[#allocation3 + $0x69] ss:$2 sm:$0xf]  ;;  %v3234_v61 = vadd.f32 %v3233_v49, %v3230_v30  ;;  %v3264_v6 = vld [vmem:[#allocation3 + $0x77] ss:$2 sm:$0xf]  ;;  %v3259_v1 = vmul.f32 %v3248_v31, %v5720_v54  ;;  %v3245_v57 = vmul.f32 %v3244_v11, %v5764_v10  ;;  %v3300_v15 = vadd.f32 %v5785_v19, %v5782_v2 }
 0x5ec   :  { %v3051_v53 = vmax.f32 %v3021_v32, 0.0  ;;  %v4247_v56 = vpop.f32.mrb[82].mxu1  ;;  %v3214_v58 = vadd.f32 %v3213_v29, %v3210_v37  ;;  %3112 = vst.msk [vmem:[#allocation3 + $0x108] sm:$0xff] %vm3058_vm8, %v3052_v52  ;;  %v3261_v21 = vmul.f32 %v3252_v40, %v5729_v20  ;;  %v3265_v8 = vmul.f32 %v3264_v6, %v5743_v16  ;;  %v3268_v12 = vld [vmem:[#allocation3 + $0x78] ss:$2 sm:$0xf] }
 0x5ed   :  { %v3036_v60 = vadd.f32 %v4247_v56, %v5712_v39  ;;  %v3030_v0 = vpop.f32.mrb[83].mxu1  ;;  %v3238_v45 = vadd.f32 %v3237_v46, %v3234_v61  ;;  %v3260_v23 = vadd.f32 %v3259_v1, %v3257_v48  ;;  %v5825_v51 = vld [vmem:[%s5918_s10 + $0x7] ss:$0 sm:$0xff]  ;;  %v3272_v13 = vld [vmem:[#allocation3 + $0x79] ss:$2 sm:$0xf]  ;;  %v3269_v2 = vmul.f32 %v3268_v12, %v5748_v42 }
 0x5ee   :  { %3111 = vst.msk [vmem:[#allocation3 + $0xf8] sm:$0xff] %vm3058_vm8, %v3051_v53  ;;  %v3031_v3 = vadd.f32 %v5712_v39, %v3030_v0  ;;  %v3218_v7 = vadd.f32 %v3217_v38, %v3214_v58  ;;  %v3302_v34 = vld [vmem:[#allocation3 + $0xb7] ss:$2 sm:$0xf]  ;;  %v3191_v49 = vadd.f32 %v5825_v51, %v3186_v5  ;;  %v3249_v50 = vmul.f32 %v3248_v31, %v5776_v25 }
 0x5ef   :  { %v3054_v28 = vmax.f32 %v3036_v60, 0.0  ;;  %v3242_v27 = vadd.f32 %v3241_v59, %v3238_v45  ;;  %v3262_v18 = vadd.f32 %v3261_v21, %v3260_v23  ;;  %v3303_v41 = vmul.f32 %v3302_v34, %v5743_v16  ;;  %v3306_v17 = vld [vmem:[#allocation3 + $0xb8] ss:$2 sm:$0xf] }
 0x5f0   :  { %v3053_v14 = vmax.f32 %v3031_v3, 0.0  ;;  %v3222_v39 = vadd.f32 %v3221_v36, %v3218_v7  ;;  %v3310_v43 = vld [vmem:[#allocation3 + $0xb9] ss:$2 sm:$0xf]  ;;  %v3253_v63 = vmul.f32 %v5793_v9, %v3252_v40  ;;  %v3307_v33 = vmul.f32 %v3306_v17, %v5748_v42 }
 0x5f1   :  { %3114 = vst.msk [vmem:[#allocation3 + $0x128] sm:$0xff] %vm3058_vm8, %v3054_v28  ;;  %v3246_v35 = vadd.f32 %v3245_v57, %v3242_v27  ;;  %v3266_v47 = vadd.f32 %v3265_v8, %v3262_v18  ;;  %v3314_v19 = vld [vmem:[#allocation3 + $0xc7] ss:$2 sm:$0xf]  ;;  %v3304_v11 = vadd.f32 %v3303_v41, %v3300_v15  ;;  %v3273_v30 = vmul.f32 %v3272_v13, %v5755_v44 }
 0x5f2   :  { %3113 = vst.msk [vmem:[#allocation3 + $0x118] sm:$0xff] %vm3058_vm8, %v3053_v14  ;;  %v3223_v26 = vadd.f32 %v5825_v51, %v3222_v39  ;;  %v3318_v62 = vld [vmem:[#allocation3 + $0xc8] ss:$2 sm:$0xf]  ;;  %v3327_v32 = vmul.f32 %v3314_v19, %v5716_v22  ;;  %v3311_v31 = vmul.f32 %v3310_v43, %v5755_v44  ;;  %v3192_v61 = vmax.f32 %v3191_v49, 0.0 }
 0x5f3   :  { %v3276_v4 = vld [vmem:[#allocation3 + $0x87] ss:$2 sm:$0xf]  ;;  %v3270_v29 = vadd.f32 %v3269_v2, %v3266_v47  ;;  %v3334_v37 = vld [vmem:[#allocation3 + $0xd7] ss:$2 sm:$0xf]  ;;  %v3250_v38 = vadd.f32 %v3249_v50, %v3246_v35  ;;  %v3308_v52 = vadd.f32 %v3307_v33, %v3304_v11  ;;  %v3329_v40 = vmul.f32 %v3318_v62, %v5720_v54 }
 0x5f4   :  { %v5839_v24 = vld [vmem:[#allocation3 + $0xc9] ss:$2 sm:$0xf]  ;;  %v3224_v55 = vmax.f32 %v3223_v26, 0.0  ;;  %v3277_v6 = vmul.f32 %v3276_v4, %v5764_v10  ;;  %v3335_v1 = vmul.f32 %v3334_v37, %v5743_v16  ;;  %v3315_v23 = vmul.f32 %v3314_v19, %v5764_v10 }
 0x5f5   :  { %v3280_v36 = vld [vmem:[#allocation3 + $0x88] ss:$2 sm:$0xf]  ;;  %v3274_v48 = vadd.f32 %v3273_v30, %v3270_v29  ;;  %v3284_v53 = vld [vmem:[#allocation3 + $0x89] ss:$2 sm:$0xf]  ;;  %v3312_v56 = vadd.f32 %v3311_v31, %v3308_v52  ;;  %v3330_v58 = vadd.f32 %v3329_v40, %v3327_v32  ;;  %v3331_v59 = vmul.f32 %v5839_v24, %v5729_v20 }
 0x5f6   :  { %v3424_v46 = vrot.slane %v3224_v55, 4  ;;  %v3346_v60 = vld [vmem:[#allocation3 + $0xe7] ss:$2 sm:$0xf]  ;;  %v3281_v21 = vmul.f32 %v3280_v36, %v5776_v25  ;;  %v3254_v7 = vadd.f32 %v3253_v63, %v3250_v38  ;;  %v3285_v57 = vmul.f32 %v5793_v9, %v3284_v53 }
 0x5f7   :  { %v3350_v0 = vld [vmem:[#allocation3 + $0xe8] ss:$2 sm:$0xf]  ;;  %v3278_v45 = vadd.f32 %v3277_v6, %v3274_v48  ;;  %v3338_v3 = vld [vmem:[#allocation3 + $0xd8] ss:$2 sm:$0xf]  ;;  %v3332_v8 = vadd.f32 %v3331_v59, %v3330_v58  ;;  %v3359_v15 = vmul.f32 %v3346_v60, %v5716_v22  ;;  %v3316_v39 = vadd.f32 %v3315_v23, %v3312_v56 }
 0x5f8   :  { %v3435_v5 = vsel %vm2737_vm6, %v3192_v61, %v3424_v46  ;;  %v3354_v12 = vld [vmem:[#allocation3 + $0xe9] ss:$2 sm:$0xf]  ;;  %v3366_v28 = vld [vmem:[#allocation3 + $0xf7] ss:$2 sm:$0xf]  ;;  %v3361_v14 = vmul.f32 %v3350_v0, %v5720_v54  ;;  %v3319_v18 = vmul.f32 %v3318_v62, %v5776_v25  ;;  %v3339_v35 = vmul.f32 %v3338_v3, %v5748_v42 }
 0x5f9   :  { %4272 = vmatprep.mubr.msk.f32.mxu0 %vm3058_vm8, %v3435_v5  ;;  %v3282_v27 = vadd.f32 %v3281_v21, %v3278_v45  ;;  %v3342_v13 = vld [vmem:[#allocation3 + $0xd9] ss:$2 sm:$0xf]  ;;  %v3336_v34 = vadd.f32 %v3335_v1, %v3332_v8  ;;  %v3378_v41 = vld [vmem:[#allocation3 + $0x107] ss:$2 sm:$0xf]  ;;  %v3363_v26 = vmul.f32 %v3354_v12, %v5729_v20  ;;  %v3367_v47 = vmul.f32 %v3366_v28, %v5743_v16 }
 0x5fa   :  { %v3382_v17 = vld [vmem:[#allocation3 + $0x108] ss:$2 sm:$0xf]  ;;  %v3362_v49 = vadd.f32 %v3361_v14, %v3359_v15  ;;  %v3370_v2 = vld [vmem:[#allocation3 + $0xf8] ss:$2 sm:$0xf]  ;;  %v3255_v50 = vadd.f32 %v5825_v51, %v3254_v7  ;;  %v3343_v4 = vmul.f32 %v3342_v13, %v5755_v44  ;;  %v3347_v62 = vmul.f32 %v3346_v60, %v5764_v10 }
 0x5fb   :  { %v3286_v43 = vadd.f32 %v3285_v57, %v3282_v27  ;;  %v3386_v19 = vld [vmem:[#allocation3 + $0x109] ss:$2 sm:$0xf]  ;;  %v3340_v63 = vadd.f32 %v3339_v35, %v3336_v34  ;;  %v3398_v11 = vld [vmem:[#allocation3 + $0x117] ss:$2 sm:$0xf]  ;;  %v3391_v29 = vmul.f32 %v3378_v41, %v5716_v22  ;;  %v3393_v30 = vmul.f32 %v3382_v17, %v5720_v54 }
 0x5fc   :  { %v3364_v55 = vadd.f32 %v3363_v26, %v3362_v49  ;;  %v3320_v32 = vadd.f32 %v3319_v18, %v3316_v39  ;;  %v3371_v38 = vmul.f32 %v3370_v2, %v5748_v42  ;;  %v3374_v36 = vld [vmem:[#allocation3 + $0xf9] ss:$2 sm:$0xf]  ;;  %v3395_v52 = vmul.f32 %v3386_v19, %v5729_v20  ;;  %v3402_v54 = vld [vmem:[#allocation3 + $0x118] ss:$2 sm:$0xf] }
 0x5fd   :  { %v3287_v33 = vadd.f32 %v5825_v51, %v3286_v43  ;;  %v3344_v37 = vadd.f32 %v3343_v4, %v3340_v63  ;;  %v3394_v61 = vadd.f32 %v3393_v30, %v3391_v29  ;;  %v3399_v46 = vmul.f32 %v3398_v11, %v5743_v16  ;;  %v3406_v16 = vld [vmem:[#allocation3 + $0x119] ss:$2 sm:$0xf]  ;;  %v3410_v23 = vld [vmem:[#allocation3 + $0x127] ss:$2 sm:$0xf] }
 0x5fe   :  { %v3368_v40 = vadd.f32 %v3367_v47, %v3364_v55  ;;  %v3256_v48 = vmax.f32 %v3255_v50, 0.0  ;;  %v3323_v6 = vmul.f32 %v5793_v9, %v5839_v24  ;;  %v3351_v22 = vmul.f32 %v3350_v0, %v5776_v25  ;;  %v3414_v15 = vld [vmem:[#allocation3 + $0x128] ss:$2 sm:$0xf] }
 0x5ff   :  { %v3288_v31 = vmax.f32 %v3287_v33, 0.0  ;;  %v3348_v53 = vadd.f32 %v3347_v62, %v3344_v37  ;;  %v3375_v59 = vmul.f32 %v3374_v36, %v5755_v44  ;;  %v3396_v1 = vadd.f32 %v3395_v52, %v3394_v61  ;;  %v3418_v34 = vld [vmem:[#allocation3 + $0x129] ss:$2 sm:$0xf] }
 0x600   :  { %v3372_v58 = vadd.f32 %v3371_v38, %v3368_v40  ;;  %v3324_v60 = vadd.f32 %v3323_v6, %v3320_v32  ;;  %v3355_v5 = vmul.f32 %v5793_v9, %v3354_v12  ;;  %v3379_v45 = vmul.f32 %v3378_v41, %v5764_v10 }
 0x601   :  { %v3427_v56 = vrot.slane %v3288_v31, 4  ;;  %v3352_v20 = vadd.f32 %v3351_v22, %v3348_v53  ;;  %v3400_v24 = vadd.f32 %v3399_v46, %v3396_v1  ;;  %v3403_v7 = vmul.f32 %v3402_v54, %v5748_v42 }
 0x602   :  { %v3376_v3 = vadd.f32 %v3375_v59, %v3372_v58  ;;  %v3383_v28 = vmul.f32 %v3382_v17, %v5776_v25  ;;  %v3407_v57 = vmul.f32 %v3406_v16, %v5755_v44  ;;  %v3325_v12 = vadd.f32 %v5825_v51, %v3324_v60 }
 0x603   :  { %v3436_v21 = vsel %vm2737_vm6, %v3256_v48, %v3427_v56  ;;  %v3356_v0 = vadd.f32 %v3355_v5, %v3352_v20  ;;  %v3404_v27 = vadd.f32 %v3403_v7, %v3400_v24  ;;  %v3411_v18 = vmul.f32 %v3410_v23, %v5764_v10 }
 0x604   :  { %4273 = vmatmul.mubr.msk.f32.vlgmr.msra.gmra.mrb[80].mxu0 %vm3058_vm8, %v3436_v21  ;;  %v3380_v8 = vadd.f32 %v3379_v45, %v3376_v3  ;;  %v3387_v35 = vmul.f32 %v5793_v9, %v3386_v19  ;;  %v3415_v43 = vmul.f32 %v3414_v15, %v5776_v25  ;;  %v3326_v17 = vmax.f32 %v3325_v12, 0.0 }
 0x605   :  { %v3357_v13 = vadd.f32 %v5825_v51, %v3356_v0  ;;  %v3408_v39 = vadd.f32 %v3407_v57, %v3404_v27  ;;  %v3419_v47 = vmul.f32 %v5793_v9, %v3418_v34  ;;  %v3786_v9 = vld [vmem:[%s5918_s10 + $0x8] ss:$0 sm:$0xff]  ;;  %s4360_s10 = smov [#allocation5]  }
 0x606   :  { %v3384_v14 = vadd.f32 %v3383_v28, %v3380_v8  ;;  %s3604_s25 = sshll.u32 %s4360_s10, 4  ;;  %s3605_s25 = int_to_ptr.vmem [resolvable:$true] %s3604_s25 }
 0x607   :  { %v3358_v42 = vmax.f32 %v3357_v13, 0.0  ;;  %v3412_v41 = vadd.f32 %v3411_v18, %v3408_v39  ;;  %s4332_s1 = scalar_lea.vmem %s3605_s25, 32  ;;  %p4337_p1 = scmp.lt.s32.totalorder %s3605_s25, %s3605_s25 }
 0x608   :  { %v3388_v26 = vadd.f32 %v3387_v35, %v3384_v14  ;;  %p4333_p0 = scmp.ne.s32.totalorder %s3605_s25, %s4332_s1  ;;  %p4338_p2 = scmp.lt.s32.totalorder %s4332_s1, %s4332_s1 }
 0x609   :  { %v3430_v49 = vrot.slane %v3358_v42, 4  ;;  %v3416_v44 = vadd.f32 %v3415_v43, %v3412_v41 }
 0x60a   :  { %v3389_v10 = vadd.f32 %v5825_v51, %v3388_v26  ;;  %p4339_p3 = por %p4338_p2, %p4337_p1 }
 0x60b   :  { %v3437_v2 = vsel %vm2737_vm6, %v3326_v17, %v3430_v49  ;;  %v3420_v50 = vadd.f32 %v3419_v47, %v3416_v44 }
 0x60c   :  { %4275 = vmatprep.mubr.msk.f32.mxu0 %vm3058_vm8, %v3437_v2  ;;  %v3390_v19 = vmax.f32 %v3389_v10, 0.0  ;;  %p4340_p4 = pnand %p4339_p3, %p4333_p0 }
 0x60d   :  { %v3421_v63 = vadd.f32 %v5825_v51, %v3420_v50 }
 0x60f   :  { %v3422_v4 = vmax.f32 %v3421_v63, 0.0 }
 0x611   :  { %v3433_v62 = vrot.slane %v3422_v4, 4 }
 0x613   :  { %v3438_v25 = vsel %vm2737_vm6, %v3390_v19, %v3433_v62 }
 0x614   :  { %4276 = vmatmul.mubr.msk.f32.gmra.mrb[82].mxu0 %vm3058_vm8, %v3438_v25 }
 0x6d7   :  { %v4274_v11 = vpop.f32.mrb[80].mxu0 }
 0x6d8   :  { %v3540_v33 = vadd.f32 %v4274_v11, %v3786_v9  ;;  %v3534_v55 = vpop.f32.mrb[81].mxu0 }
 0x6d9   :  { %v3535_v29 = vadd.f32 %v3786_v9, %v3534_v55 }
 0x6da   :  { %3555 = vst.msk [vmem:[#allocation4 + $0x8] sm:$0xff] %vm3553_vm9, %v3540_v33 }
 0x6db   :  { %3554 = vst.msk [vmem:[#allocation4] sm:$0xff] %vm3553_vm9, %v3535_v29 }
 0x6e1   :  { %v3569_v16 = vld [vmem:[#allocation4 + $0x8] sm:$0x1]  ;;  %v3571_v23 = vld [vmem:[#allocation4 + $0x9] sm:$0x1]  ;;  %v3573_v13 = vld [vmem:[#allocation4 + $0xa] sm:$0x1] }
 0x6e2   :  { %v3558_v30 = vld [vmem:[#allocation4] sm:$0x1]  ;;  %v3559_v51 = vld [vmem:[#allocation4 + $0x1] sm:$0x1]  ;;  %v3561_v31 = vld [vmem:[#allocation4 + $0x2] sm:$0x1] }
 0x6e3   :  { %v3560_v37 = vmax.f32 %v3558_v30, %v3559_v51  ;;  %v3563_v61 = vld [vmem:[#allocation4 + $0x4] sm:$0x1]  ;;  %v3565_v48 = vld [vmem:[#allocation4 + $0x5] sm:$0x1]  ;;  %v3567_v59 = vld [vmem:[#allocation4 + $0x6] sm:$0x1] }
 0x6e5   :  { %v3562_v40 = vmax.f32 %v3560_v37, %v3561_v31 }
 0x6e7   :  { %v4277_v32 = vpop.f32.mrb[82].mxu0  ;;  %v3564_v46 = vmax.f32 %v3562_v40, %v3563_v61 }
 0x6e8   :  { %v3550_v38 = vadd.f32 %v4277_v32, %v3786_v9  ;;  %v3544_v36 = vpop.f32.mrb[83].mxu0 }
 0x6e9   :  { %v3545_v52 = vadd.f32 %v3786_v9, %v3544_v36  ;;  %v3566_v22 = vmax.f32 %v3564_v46, %v3565_v48 }
 0x6ea   :  { %3557 = vst.msk [vmem:[#allocation4 + $0x18] sm:$0xff] %vm3553_vm9, %v3550_v38 }
 0x6eb   :  { %3556 = vst.msk [vmem:[#allocation4 + $0x10] sm:$0xff] %vm3553_vm9, %v3545_v52  ;;  %v3568_v60 = vmax.f32 %v3566_v22, %v3567_v59 }
 0x6ed   :  { %v3570_v3 = vmax.f32 %v3568_v60, %v3569_v16 }
 0x6ef   :  { %v3572_v28 = vmax.f32 %v3570_v3, %v3571_v23 }
 0x6f1   :  { %v3586_v7 = vld [vmem:[#allocation4 + $0x18] sm:$0x1]  ;;  %v3588_v8 = vld [vmem:[#allocation4 + $0x19] sm:$0x1]  ;;  %v3590_v57 = vld [vmem:[#allocation4 + $0x1a] sm:$0x1]  ;;  %v3574_v15 = vmax.f32 %v3572_v28, %v3573_v13 }
 0x6f2   :  { %v3575_v6 = vld [vmem:[#allocation4 + $0x10] sm:$0x1]  ;;  %v3576_v53 = vld [vmem:[#allocation4 + $0x11] sm:$0x1]  ;;  %v3578_v56 = vld [vmem:[#allocation4 + $0x12] sm:$0x1] }
 0x6f3   :  { %v3577_v54 = vmax.f32 %v3575_v6, %v3576_v53  ;;  %v3580_v1 = vld [vmem:[#allocation4 + $0x14] sm:$0x1]  ;;  %v3582_v5 = vld [vmem:[#allocation4 + $0x15] sm:$0x1]  ;;  %v3584_v21 = vld [vmem:[#allocation4 + $0x16] sm:$0x1] }
 0x6f5   :  { %v3579_v58 = vmax.f32 %v3577_v54, %v3578_v56 }
 0x6f7   :  { %v3581_v20 = vmax.f32 %v3579_v58, %v3580_v1 }
 0x6f9   :  { %v3583_v45 = vmax.f32 %v3581_v20, %v3582_v5 }
 0x6fb   :  { %v3585_v24 = vmax.f32 %v3583_v45, %v3584_v21 }
 0x6fd   :  { %v3587_v0 = vmax.f32 %v3585_v24, %v3586_v7 }
 0x6ff   :  { %v3589_v27 = vmax.f32 %v3587_v0, %v3588_v8 }
 0x701   :  { %v3591_v12 = vmax.f32 %v3589_v27, %v3590_v57 }
 0x703   :  { %v3593_v14 = vrot.slane %v3591_v12, 7 }
 0x705   :  { %v3595_v39 = vsel %vm303_vm0, %v3574_v15, %v3593_v14 }
 0x706   :  { %3597 = vst.msk [vmem:[#allocation5] sm:$0x3] %vm3596_vm10, %v3595_v39 }
 0x707   :  { %4343 = shalt.err (!%p4340_p4)
}
 0x708   :  { %s4344_s3 = scalar_lea.hbm %s5919_s11, 32 }
 0x709   :  { %p4345_p5 = scmp.ne.s32.totalorder %s5919_s11, %s4344_s3  ;;  %p4348_p6 = scmp.lt.u32.totalorder %s4344_s3, %s5919_s11 }
 0x70b   :  { %p4350_p7 = pnand %p4348_p6, %p4345_p5 }
 0x70d   :  { %4353 = shalt.err (!%p4350_p7)
}
 0x70e   :  { %3607 = dma.vmem_to_hbm [thread:$0]  %s3605_s25, 32, %s5919_s11, [#allocation6]  }
 0x70f   :  { %4354 = dma.done.wait [#allocation6], 32  }
 0x710   :  { %4355 = vsyncadd [#allocation6], 4294967264 }
 0x711   :  { %3611 = vsyncpa [#allocation6], 1 }

</bundles_post_ra>
